<compile_context>
chip_gen: v7x
topology: tpu7x:2x2x1
jax: 0.10.0
libtpu: 0.0.40
codegen_flags: <defaults>
</compile_context>

<pallas_src>
import numpy as np

import jax
import jax.numpy as jnp
from jax import lax
from jax.experimental import pallas as pl
from jax.experimental.pallas import tpu as pltpu


def _round_up(x, m):
    return (x + m - 1) // m * m


# ---------------------------------------------------------------------------
# Fused forward kernel: 6 x (GEMM + bias + optional ReLU), all VMEM-resident.
# ---------------------------------------------------------------------------
def _fused_autoencoder_kernel(x_ref,
                              t1, b1, t2, b2, t3, b3,      # encoder layers
                              t4, b4, t5, b5, t6, b6,      # decoder layers
                              o_ref):
    def layer(a, t_ref, b_ref, relu):
        y = jnp.dot(a, t_ref[...], preferred_element_type=jnp.float32) + b_ref[...]
        return jnp.maximum(y, 0.0) if relu else y

    a = x_ref[...]
    a = layer(a, t1, b1, True)     # Conv2d(C -> 16, s2, p1) + ReLU
    a = layer(a, t2, b2, True)     # Conv2d(16 -> 32, s2, p1) + ReLU
    a = layer(a, t3, b3, False)    # Conv2d(32 -> 64, s2, p1)           (latent)
    a = layer(a, t4, b4, True)     # ConvTranspose2d(64 -> 32, s2, p1) + ReLU
    a = layer(a, t5, b5, True)     # ConvTranspose2d(32 -> 16, s2, p1) + ReLU
    a = layer(a, t6, b6, False)    # ConvTranspose2d(16 -> C, s2, p1)
    o_ref[...] = a.astype(o_ref.dtype)


# ---------------------------------------------------------------------------
# One-time weight packing (pure numpy, exact f32 placement of the weights).
# Flattening convention everywhere: index = c * (H*W) + h * W + w  (NCHW order),
# so the model input/output need only a reshape (no transpose) outside the kernel.
# ---------------------------------------------------------------------------
def _conv_tap_pattern(H, W, k, stride, pad):
    """A[ki,kj, hi*W+wi, ho*Wo+wo] = 1  iff  hi = s*ho + ki - pad, wi = s*wo + kj - pad."""
    Ho = (H + 2 * pad - k) // stride + 1
    Wo = (W + 2 * pad - k) // stride + 1
    A = np.zeros((k, k, H * W, Ho * Wo), np.float32)
    for ki in range(k):
        for kj in range(k):
            for ho in range(Ho):
                hi = stride * ho - pad + ki
                if hi < 0 or hi >= H:
                    continue
                for wo in range(Wo):
                    wi = stride * wo - pad + kj
                    if wi < 0 or wi >= W:
                        continue
                    A[ki, kj, hi * W + wi, ho * Wo + wo] = 1.0
    return A, Ho, Wo


def _deconv_tap_pattern(H, W, k, stride, pad):
    """PyTorch ConvTranspose2d scatter: out[s*hi - pad + ki, s*wi - pad + kj] += ..."""
    Ho = (H - 1) * stride - 2 * pad + k
    Wo = (W - 1) * stride - 2 * pad + k
    A = np.zeros((k, k, H * W, Ho * Wo), np.float32)
    for ki in range(k):
        for kj in range(k):
            for hi in range(H):
                ho = stride * hi - pad + ki
                if ho < 0 or ho >= Ho:
                    continue
                for wi in range(W):
                    wo = stride * wi - pad + kj
                    if wo < 0 or wo >= Wo:
                        continue
                    A[ki, kj, hi * W + wi, ho * Wo + wo] = 1.0
    return A, Ho, Wo


def _finalize(T, bias, out_per_channel):
    """Zero-pad the Toeplitz matrix / bias row to (8,128)-friendly sizes."""
    K, N = T.shape
    Kp, Np = _round_up(K, 128), _round_up(N, 128)
    Tp = np.zeros((Kp, Np), np.float32)
    Tp[:K, :N] = T
    brow = np.zeros((1, Np), np.float32)
    brow[0, :N] = np.repeat(bias, out_per_channel)
    return jnp.asarray(Tp), jnp.asarray(brow)


def _pack_conv(w_oihw, b, H, W, stride=2, pad=1):
    w = np.asarray(w_oihw, np.float32)          # (Cout, Cin, kh, kw)
    bias = np.asarray(b, np.float32)
    Cout, Cin, kh, kw = w.shape
    assert kh == kw, "square kernels only"
    A, Ho, Wo = _conv_tap_pattern(H, W, kh, stride, pad)
    # T[ci*HW + s_in, co*HoWo + s_out] = sum_taps A * w[co, ci, ki, kj]
    T = np.einsum("ijst,ocij->csot", A, w).reshape(Cin * H * W, Cout * Ho * Wo)
    Tp, brow = _finalize(T, bias, Ho * Wo)
    return Tp, brow, (Cout, Ho, Wo)


def _pack_deconv(w_iohw, b, H, W, stride=2, pad=1):
    w = np.asarray(w_iohw, np.float32)          # (Cin, Cout, kh, kw)
    bias = np.asarray(b, np.float32)
    Cin, Cout, kh, kw = w.shape
    assert kh == kw, "square kernels only"
    A, Ho, Wo = _deconv_tap_pattern(H, W, kh, stride, pad)
    T = np.einsum("ijst,coij->csot", A, w).reshape(Cin * H * W, Cout * Ho * Wo)
    Tp, brow = _finalize(T, bias, Ho * Wo)
    return Tp, brow, (Cout, Ho, Wo)


def pack_params(params, in_hw=(16, 16)):
    """Pre-transform all conv/deconv weights once into padded GEMM matrices."""
    h, w = in_hw
    mats = []
    layers = (
        ("e1_w", "e1_b", _pack_conv), ("e2_w", "e2_b", _pack_conv),
        ("e3_w", "e3_b", _pack_conv),
        ("d1_w", "d1_b", _pack_deconv), ("d2_w", "d2_b", _pack_deconv),
        ("d3_w", "d3_b", _pack_deconv),
    )
    out_meta = None
    for wk, bk, packer in layers:
        T, brow, (co, ho, wo) = packer(params[wk], params[bk], h, w)
        mats.append((T, brow))
        h, w = ho, wo
        out_meta = (co, ho, wo)
    return tuple(mats), out_meta


# ---------------------------------------------------------------------------
# Forward-pass factory: packs once, returns a jitted forward(x_nchw).
# ---------------------------------------------------------------------------
def make_forward(params, input_channels, in_hw=(16, 16)):
    assert params["e1_w"].shape[1] == input_channels
    mats, (out_c, out_h, out_w) = pack_params(params, in_hw)
    flat_mats = tuple(a for pair in mats for a in pair)   # t1,b1,...,t6,b6
    k_in = int(flat_mats[0].shape[0])
    n_last = int(flat_mats[-2].shape[1])
    n_out = out_c * out_h * out_w

    @jax.jit
    def _forward(x_nchw, *m):
        B, C, H, W = x_nchw.shape
        assert (H, W) == tuple(in_hw) and _round_up(C * H * W, 128) == k_in
        mp = _round_up(B, 8)
        x2d = x_nchw.reshape(B, C * H * W)                       # NCHW-flat, no transpose
        xp = jnp.pad(x2d, ((0, mp - B), (0, k_in - C * H * W)))  # tiny, once per call
        out = pl.pallas_call(
            _fused_autoencoder_kernel,
            out_shape=jax.ShapeDtypeStruct((mp, n_last), jnp.float32),
            compiler_params=pltpu.CompilerParams(
                vmem_limit_bytes=32 * 1024 * 1024),
        )(xp, *m)
        return out[:B, :n_out].reshape(B, out_c, out_h, out_w)   # already NCHW order

    return lambda x: _forward(x, *flat_mats)


# ---------------------------------------------------------------------------
# Parameter init (PyTorch weight layouts) + pure-JAX reference for validation.
# ---------------------------------------------------------------------------
def init_params(input_channels, key):
    keys = jax.random.split(key, 12)

    def w(k, shape):
        return (0.1 * jax.random.normal(k, shape)).astype(jnp.float32)

    return {
        # encoder (Conv2d weights: (Cout, Cin, 3, 3))
        "e1_w": w(keys[0], (16, input_channels, 3, 3)), "e1_b": w(keys[1], (16,)),
        "e2_w": w(keys[2], (32, 16, 3, 3)),             "e2_b": w(keys[3], (32,)),
        "e3_w": w(keys[4], (64, 32, 3, 3)),             "e3_b": w(keys[5], (64,)),
        # decoder (ConvTranspose2d weights: (Cin, Cout, 3, 3))
        "d1_w": w(keys[6], (64, 32, 3, 3)),             "d1_b": w(keys[7], (32,)),
        "d2_w": w(keys[8], (32, 16, 3, 3)),             "d2_b": w(keys[9], (16,)),
        "d3_w": w(keys[10], (16, input_channels, 3, 3)),
        "d3_b": w(keys[11], (input_channels,)),
    }


def _reference_forward(x, params):
    """Pure lax.conv reference (PyTorch semantics) used only for validation."""
    dn = ("NCHW", "OIHW", "NCHW")
    hp = lax.Precision.HIGHEST

    def conv(x, w, b, relu):
        y = lax.conv_general_dilated(x, w, (2, 2), [(1, 1), (1, 1)],
                                     dimension_numbers=dn, precision=hp)
        y = y + b[None, :, None, None]
        return jnp.maximum(y, 0.0) if relu else y

    def deconv(x, w, b, relu):
        wk = jnp.transpose(w, (1, 0, 2, 3))[:, :, ::-1, ::-1]
        y = lax.conv_general_dilated(x, wk, (1, 1), [(1, 1), (1, 1)],
                                     lhs_dilation=(2, 2),
                                     dimension_numbers=dn, precision=hp)
        y = y + b[None, :, None, None]
        return jnp.maximum(y, 0.0) if relu else y

    x = conv(x, params["e1_w"], params["e1_b"], True)
    x = conv(x, params["e2_w"], params["e2_b"], True)
    x = conv(x, params["e3_w"], params["e3_b"], False)
    x = deconv(x, params["d1_w"], params["d1_b"], True)
    x = deconv(x, params["d2_w"], params["d2_b"], True)
    x = deconv(x, params["d3_w"], params["d3_b"], False)
    return x


if __name__ == "__main__":
    key = jax.random.PRNGKey(0)
    k_x, k_p = jax.random.split(key)

    B, C, H, W = 2, 4, 16, 16
    x = jax.random.normal(k_x, (B, C, H, W), dtype=jnp.float32)
    params = init_params(C, k_p)

    forward = make_forward(params, C, in_hw=(H, W))
    out = jax.block_until_ready(forward(x))

    # PyTorch shape trace: 16 -> 8 -> 4 -> 2 (encoder), 2 -> 3 -> 5 -> 9 (decoder)
    assert out.shape == (B, C, 9, 9), out.shape
    assert out.dtype == jnp.float32

    ref = jax.block_until_ready(_reference_forward(x, params))
    np.testing.assert_allclose(np.asarray(out), np.asarray(ref), rtol=2e-3, atol=2e-3)

    print("KERNEL_OK")
</pallas_src>

<mosaic_0001>
module attributes {stable_mosaic.version = 11 : i64} {
  func.func @_fused_autoencoder_kernel(%arg0: memref<8x1024xf32, #tpu.memory_space<vmem>>, %arg1: memref<1024x1024xf32, #tpu.memory_space<vmem>>, %arg2: memref<1x1024xf32, #tpu.memory_space<vmem>>, %arg3: memref<1024x512xf32, #tpu.memory_space<vmem>>, %arg4: memref<1x512xf32, #tpu.memory_space<vmem>>, %arg5: memref<512x256xf32, #tpu.memory_space<vmem>>, %arg6: memref<1x256xf32, #tpu.memory_space<vmem>>, %arg7: memref<256x384xf32, #tpu.memory_space<vmem>>, %arg8: memref<1x384xf32, #tpu.memory_space<vmem>>, %arg9: memref<384x512xf32, #tpu.memory_space<vmem>>, %arg10: memref<1x512xf32, #tpu.memory_space<vmem>>, %arg11: memref<512x384xf32, #tpu.memory_space<vmem>>, %arg12: memref<1x384xf32, #tpu.memory_space<vmem>>, %arg13: memref<8x384xf32, #tpu.memory_space<vmem>>) attributes {dimension_semantics = [], scalar_prefetch = 0 : i64, scratch_operands = 0 : i64, tpu.core_type = #tpu.core_type<tc>} {
    %c0 = arith.constant 0 : index
    %c0_0 = arith.constant 0 : index
    %0 = vector.load %arg0[%c0, %c0_0] : memref<8x1024xf32, #tpu.memory_space<vmem>>, vector<8x1024xf32>
    %c0_1 = arith.constant 0 : index
    %c0_2 = arith.constant 0 : index
    %1 = vector.load %arg1[%c0_1, %c0_2] : memref<1024x1024xf32, #tpu.memory_space<vmem>>, vector<1024x1024xf32>
    %cst = arith.constant dense<0.000000e+00> : vector<8x1024xf32>
    %2 = tpu.matmul %0, %1, %cst {dimension_numbers = #tpu.dot_dimension_numbers<[1], [0], [0], [1], [0, 0, 1, 1], [], []>} : vector<8x1024xf32>, vector<1024x1024xf32>, vector<8x1024xf32> -> vector<8x1024xf32>
    %c0_3 = arith.constant 0 : index
    %c0_4 = arith.constant 0 : index
    %3 = vector.load %arg2[%c0_3, %c0_4] : memref<1x1024xf32, #tpu.memory_space<vmem>>, vector<1x1024xf32>
    %4 = vector.broadcast %3 : vector<1x1024xf32> to vector<8x1024xf32>
    %5 = arith.addf %2, %4 : vector<8x1024xf32>
    %cst_5 = arith.constant 0.000000e+00 : f32
    %6 = vector.broadcast %cst_5 : f32 to vector<8x1024xf32>
    %7 = arith.maximumf %5, %6 : vector<8x1024xf32>
    %c0_6 = arith.constant 0 : index
    %c0_7 = arith.constant 0 : index
    %8 = vector.load %arg3[%c0_6, %c0_7] : memref<1024x512xf32, #tpu.memory_space<vmem>>, vector<1024x512xf32>
    %cst_8 = arith.constant dense<0.000000e+00> : vector<8x512xf32>
    %9 = tpu.matmul %7, %8, %cst_8 {dimension_numbers = #tpu.dot_dimension_numbers<[1], [0], [0], [1], [0, 0, 1, 1], [], []>} : vector<8x1024xf32>, vector<1024x512xf32>, vector<8x512xf32> -> vector<8x512xf32>
    %c0_9 = arith.constant 0 : index
    %c0_10 = arith.constant 0 : index
    %10 = vector.load %arg4[%c0_9, %c0_10] : memref<1x512xf32, #tpu.memory_space<vmem>>, vector<1x512xf32>
    %11 = vector.broadcast %10 : vector<1x512xf32> to vector<8x512xf32>
    %12 = arith.addf %9, %11 : vector<8x512xf32>
    %cst_11 = arith.constant 0.000000e+00 : f32
    %13 = vector.broadcast %cst_11 : f32 to vector<8x512xf32>
    %14 = arith.maximumf %12, %13 : vector<8x512xf32>
    %c0_12 = arith.constant 0 : index
    %c0_13 = arith.constant 0 : index
    %15 = vector.load %arg5[%c0_12, %c0_13] : memref<512x256xf32, #tpu.memory_space<vmem>>, vector<512x256xf32>
    %cst_14 = arith.constant dense<0.000000e+00> : vector<8x256xf32>
    %16 = tpu.matmul %14, %15, %cst_14 {dimension_numbers = #tpu.dot_dimension_numbers<[1], [0], [0], [1], [0, 0, 1, 1], [], []>} : vector<8x512xf32>, vector<512x256xf32>, vector<8x256xf32> -> vector<8x256xf32>
    %c0_15 = arith.constant 0 : index
    %c0_16 = arith.constant 0 : index
    %17 = vector.load %arg6[%c0_15, %c0_16] : memref<1x256xf32, #tpu.memory_space<vmem>>, vector<1x256xf32>
    %18 = vector.broadcast %17 : vector<1x256xf32> to vector<8x256xf32>
    %19 = arith.addf %16, %18 : vector<8x256xf32>
    %c0_17 = arith.constant 0 : index
    %c0_18 = arith.constant 0 : index
    %20 = vector.load %arg7[%c0_17, %c0_18] : memref<256x384xf32, #tpu.memory_space<vmem>>, vector<256x384xf32>
    %cst_19 = arith.constant dense<0.000000e+00> : vector<8x384xf32>
    %21 = tpu.matmul %19, %20, %cst_19 {dimension_numbers = #tpu.dot_dimension_numbers<[1], [0], [0], [1], [0, 0, 1, 1], [], []>} : vector<8x256xf32>, vector<256x384xf32>, vector<8x384xf32> -> vector<8x384xf32>
    %c0_20 = arith.constant 0 : index
    %c0_21 = arith.constant 0 : index
    %22 = vector.load %arg8[%c0_20, %c0_21] : memref<1x384xf32, #tpu.memory_space<vmem>>, vector<1x384xf32>
    %23 = vector.broadcast %22 : vector<1x384xf32> to vector<8x384xf32>
    %24 = arith.addf %21, %23 : vector<8x384xf32>
    %cst_22 = arith.constant 0.000000e+00 : f32
    %25 = vector.broadcast %cst_22 : f32 to vector<8x384xf32>
    %26 = arith.maximumf %24, %25 : vector<8x384xf32>
    %c0_23 = arith.constant 0 : index
    %c0_24 = arith.constant 0 : index
    %27 = vector.load %arg9[%c0_23, %c0_24] : memref<384x512xf32, #tpu.memory_space<vmem>>, vector<384x512xf32>
    %cst_25 = arith.constant dense<0.000000e+00> : vector<8x512xf32>
    %28 = tpu.matmul %26, %27, %cst_25 {dimension_numbers = #tpu.dot_dimension_numbers<[1], [0], [0], [1], [0, 0, 1, 1], [], []>} : vector<8x384xf32>, vector<384x512xf32>, vector<8x512xf32> -> vector<8x512xf32>
    %c0_26 = arith.constant 0 : index
    %c0_27 = arith.constant 0 : index
    %29 = vector.load %arg10[%c0_26, %c0_27] : memref<1x512xf32, #tpu.memory_space<vmem>>, vector<1x512xf32>
    %30 = vector.broadcast %29 : vector<1x512xf32> to vector<8x512xf32>
    %31 = arith.addf %28, %30 : vector<8x512xf32>
    %cst_28 = arith.constant 0.000000e+00 : f32
    %32 = vector.broadcast %cst_28 : f32 to vector<8x512xf32>
    %33 = arith.maximumf %31, %32 : vector<8x512xf32>
    %c0_29 = arith.constant 0 : index
    %c0_30 = arith.constant 0 : index
    %34 = vector.load %arg11[%c0_29, %c0_30] : memref<512x384xf32, #tpu.memory_space<vmem>>, vector<512x384xf32>
    %cst_31 = arith.constant dense<0.000000e+00> : vector<8x384xf32>
    %35 = tpu.matmul %33, %34, %cst_31 {dimension_numbers = #tpu.dot_dimension_numbers<[1], [0], [0], [1], [0, 0, 1, 1], [], []>} : vector<8x512xf32>, vector<512x384xf32>, vector<8x384xf32> -> vector<8x384xf32>
    %c0_32 = arith.constant 0 : index
    %c0_33 = arith.constant 0 : index
    %36 = vector.load %arg12[%c0_32, %c0_33] : memref<1x384xf32, #tpu.memory_space<vmem>>, vector<1x384xf32>
    %37 = vector.broadcast %36 : vector<1x384xf32> to vector<8x384xf32>
    %38 = arith.addf %35, %37 : vector<8x384xf32>
    %c0_34 = arith.constant 0 : index
    %c0_35 = arith.constant 0 : index
    %39 = vector.load %arg13[%c0_34, %c0_35] : memref<8x384xf32, #tpu.memory_space<vmem>>, vector<8x384xf32>
    tpu.vector_store %arg13[%c0_34, %c0_35], %38 {strides = array<i32>} : memref<8x384xf32, #tpu.memory_space<vmem>>, vector<8x384xf32>,
    return
  }
}

</mosaic_0001>

<bundles_post_ra>
// kernel: _forward.1
= control target key start
LH: loop header
LB: loop body
LE: loop exit
PB: predicated region body
PF: predicated region fallthrough
CT: control target
= control target key end

     0   :  { %18 = vsyncpa [#allocation3], 0  ;;  %s8092_s0 = inlined_call_operand.vmem [shape: f32[8,1024], index: 0, kind: input, shape index: {}]   ;;  %s8093_s1 = inlined_call_operand.hbm [shape: f32[1024,1024], index: 1, kind: input, shape index: {}]   ;;  %s8094_s2 = inlined_call_operand.hbm [shape: f32[1,1024], index: 2, kind: input, shape index: {}]   ;;  %s8095_s3 = inlined_call_operand.hbm [shape: f32[1024,512], index: 3, kind: input, shape index: {}]   ;;  %s8096_s4 = inlined_call_operand.hbm [shape: f32[1,512], index: 4, kind: input, shape index: {}]   ;;  %s8097_s5 = inlined_call_operand.hbm [shape: f32[512,256], index: 5, kind: input, shape index: {}]   ;;  %s8098_s6 = inlined_call_operand.hbm [shape: f32[1,256], index: 6, kind: input, shape index: {}]   ;;  %s8099_s7 = inlined_call_operand.hbm [shape: f32[256,384], index: 7, kind: input, shape index: {}]   ;;  %s8100_s8 = inlined_call_operand.hbm [shape: f32[1,384], index: 8, kind: input, shape index: {}]   ;;  %s8101_s9 = inlined_call_operand.hbm [shape: f32[384,512], index: 9, kind: input, shape index: {}]   ;;  %s8102_s10 = inlined_call_operand.hbm [shape: f32[1,512], index: 10, kind: input, shape index: {}]   ;;  %s8103_s11 = inlined_call_operand.hbm [shape: f32[512,384], index: 11, kind: input, shape index: {}]   ;;  %s8104_s12 = inlined_call_operand.hbm [shape: f32[1,384], index: 12, kind: input, shape index: {}]   ;;  %s8105_s13 = inlined_call_operand.vmem [shape: f32[8,384], index: 13, kind: output, shape index: {}]  }
   0x1   :  { %19 = vsyncpa [#allocation5], 0 }
   0x2   :  { %20 = vsyncpa [#allocation8], 0 }
   0x3   :  { %21 = vsyncpa [#allocation11], 0 }
   0x4   :  { %22 = vsyncpa [#allocation14], 0 }
   0x5   :  { %23 = vsyncpa [#allocation17], 0 }
   0x6   :  { %24 = vsyncpa [#allocation20], 0  ;;  %s7687_s25 = smov [#allocation4]   ;;  %s7688_s27 = smov [#allocation7]  }
   0x7   :  { %s45_s26 = sshll.u32 %s7687_s25, 4  ;;  %s67_s28 = sshll.u32 %s7688_s27, 4  ;;  %s46_s26 = int_to_ptr.vmem [resolvable:$true] %s45_s26  ;;  %s68_s28 = int_to_ptr.vmem [resolvable:$true] %s67_s28 }
   0x8   :  { %s7409_s14 = scalar_lea.hbm %s8094_s2, 128 }
   0x9   :  { %p7410_p0 = scmp.ne.s32.totalorder %s8094_s2, %s7409_s14  ;;  %p7413_p1 = scmp.lt.u32.totalorder %s7409_s14, %s8094_s2 }
   0xb   :  { %p7415_p2 = pnand %p7413_p1, %p7410_p0 }
   0xd   :  { %7418 = shalt.err (!%p7415_p2)
}
   0xe   :  { %s7419_s19 = scalar_lea.vmem %s46_s26, 128  ;;  %p7424_p4 = scmp.lt.s32.totalorder %s46_s26, %s46_s26 }
   0xf   :  { %p7420_p3 = scmp.ne.s32.totalorder %s46_s26, %s7419_s19  ;;  %p7425_p5 = scmp.lt.s32.totalorder %s7419_s19, %s7419_s19 }
  0x11   :  { %p7426_p6 = por %p7425_p5, %p7424_p4 }
  0x13   :  { %p7427_p7 = pnand %p7426_p6, %p7420_p3 }
  0x15   :  { %7430 = shalt.err (!%p7427_p7)
}
  0x16   :  { %48 = dma.hbm_to_vmem [thread:$0]  %s8094_s2, 128, %s46_s26, [#allocation5]  }
  0x17   :  { %s7431_s24 = scalar_lea.hbm %s8096_s4, 64 }
  0x18   :  { %p7432_p8 = scmp.ne.s32.totalorder %s8096_s4, %s7431_s24  ;;  %p7435_p9 = scmp.lt.u32.totalorder %s7431_s24, %s8096_s4 }
  0x1a   :  { %p7437_p10 = pnand %p7435_p9, %p7432_p8 }
  0x1c   :  { %7440 = shalt.err (!%p7437_p10)
}
  0x1d   :  { %s7441_s14 = scalar_lea.vmem %s68_s28, 64  ;;  %p7446_p12 = scmp.lt.s32.totalorder %s68_s28, %s68_s28 }
  0x1e   :  { %p7442_p11 = scmp.ne.s32.totalorder %s68_s28, %s7441_s14  ;;  %p7447_p13 = scmp.lt.s32.totalorder %s7441_s14, %s7441_s14 }
  0x20   :  { %p7448_p0 = por %p7447_p13, %p7446_p12 }
  0x22   :  { %p7449_p1 = pnand %p7448_p0, %p7442_p11 }
  0x24   :  { %7452 = shalt.err (!%p7449_p1)
}
  0x25   :  { %70 = dma.hbm_to_vmem [thread:$0]  %s8096_s4, 64, %s68_s28, [#allocation8]  }
  0x26   :  { %s7689_s15 = smov [#allocation10]   ;;  %s7690_s17 = smov [#allocation13]  }
  0x27   :  { %s89_s16 = sshll.u32 %s7689_s15, 4  ;;  %s111_s18 = sshll.u32 %s7690_s17, 4  ;;  %s90_s16 = int_to_ptr.vmem [resolvable:$true] %s89_s16  ;;  %s112_s18 = int_to_ptr.vmem [resolvable:$true] %s111_s18 }
  0x28   :  { %s7453_s21 = scalar_lea.hbm %s8098_s6, 32 }
  0x29   :  { %p7454_p2 = scmp.ne.s32.totalorder %s8098_s6, %s7453_s21  ;;  %p7457_p3 = scmp.lt.u32.totalorder %s7453_s21, %s8098_s6 }
  0x2b   :  { %p7459_p4 = pnand %p7457_p3, %p7454_p2 }
  0x2d   :  { %7462 = shalt.err (!%p7459_p4)
}
  0x2e   :  { %s7463_s4 = scalar_lea.vmem %s90_s16, 32  ;;  %p7468_p6 = scmp.lt.s32.totalorder %s90_s16, %s90_s16 }
  0x2f   :  { %p7464_p5 = scmp.ne.s32.totalorder %s90_s16, %s7463_s4  ;;  %p7469_p7 = scmp.lt.s32.totalorder %s7463_s4, %s7463_s4 }
  0x31   :  { %p7470_p8 = por %p7469_p7, %p7468_p6 }
  0x33   :  { %p7471_p9 = pnand %p7470_p8, %p7464_p5 }
  0x35   :  { %7474 = shalt.err (!%p7471_p9)
}
  0x36   :  { %92 = dma.hbm_to_vmem [thread:$0]  %s8098_s6, 32, %s90_s16, [#allocation11]  }
  0x37   :  { %s7475_s14 = scalar_lea.hbm %s8100_s8, 48 }
  0x38   :  { %p7476_p10 = scmp.ne.s32.totalorder %s8100_s8, %s7475_s14  ;;  %p7479_p11 = scmp.lt.u32.totalorder %s7475_s14, %s8100_s8 }
  0x3a   :  { %p7481_p12 = pnand %p7479_p11, %p7476_p10 }
  0x3c   :  { %7484 = shalt.err (!%p7481_p12)
}
  0x3d   :  { %s7485_s19 = scalar_lea.vmem %s112_s18, 48  ;;  %s7489_s20 = scalar_lea.vmem %s112_s18, 64 }
  0x3e   :  { %p7486_p13 = scmp.ne.s32.totalorder %s112_s18, %s7485_s19  ;;  %p7490_p0 = scmp.lt.s32.totalorder %s112_s18, %s112_s18 }
  0x3f   :  { %p7491_p1 = scmp.lt.s32.totalorder %s7489_s20, %s7485_s19 }
  0x41   :  { %p7492_p2 = por %p7491_p1, %p7490_p0 }
  0x43   :  { %p7493_p3 = pnand %p7492_p2, %p7486_p13 }
  0x45   :  { %7496 = shalt.err (!%p7493_p3)
}
  0x46   :  { %114 = dma.hbm_to_vmem [thread:$0]  %s8100_s8, 48, %s112_s18, [#allocation14]  }
  0x47   :  { %s7691_s21 = smov [#allocation16]   ;;  %s7692_s23 = smov [#allocation2]  }
  0x48   :  { %s133_s22 = sshll.u32 %s7691_s21, 4  ;;  %s32_s24 = sshll.u32 %s7692_s23, 4  ;;  %s134_s22 = int_to_ptr.vmem [resolvable:$true] %s133_s22  ;;  %s7826_s24 = int_to_ptr.vmem [resolvable:$true] %s32_s24 }
  0x49   :  { %s7497_s28 = scalar_lea.hbm %s8102_s10, 64 }
  0x4a   :  { %p7498_p4 = scmp.ne.s32.totalorder %s8102_s10, %s7497_s28  ;;  %p7501_p5 = scmp.lt.u32.totalorder %s7497_s28, %s8102_s10 }
  0x4c   :  { %p7503_p6 = pnand %p7501_p5, %p7498_p4 }
  0x4e   :  { %7506 = shalt.err (!%p7503_p6)
}
  0x4f   :  { %s7507_s8 = scalar_lea.vmem %s134_s22, 64  ;;  %p7512_p8 = scmp.lt.s32.totalorder %s134_s22, %s134_s22 }
  0x50   :  { %p7508_p7 = scmp.ne.s32.totalorder %s134_s22, %s7507_s8  ;;  %p7513_p9 = scmp.lt.s32.totalorder %s7507_s8, %s7507_s8 }
  0x52   :  { %p7514_p10 = por %p7513_p9, %p7512_p8 }
  0x54   :  { %p7515_p11 = pnand %p7514_p10, %p7508_p7 }
  0x56   :  { %7518 = shalt.err (!%p7515_p11)
}
  0x57   :  { %136 = dma.hbm_to_vmem [thread:$0]  %s8102_s10, 64, %s134_s22, [#allocation17]  }
  0x58   :  { %s7519_s17 = scalar_lea.hbm %s8093_s1, 131072 }
  0x59   :  { %p7520_p12 = scmp.ne.s32.totalorder %s8093_s1, %s7519_s17  ;;  %p7523_p13 = scmp.lt.u32.totalorder %s7519_s17, %s8093_s1 }
  0x5b   :  { %p7525_p0 = pnand %p7523_p13, %p7520_p12 }
  0x5d   :  { %7528 = shalt.err (!%p7525_p0)
}
  0x5e   :  { %s7529_s21 = scalar_lea.vmem %s7826_s24, 131072  ;;  %p7534_p2 = scmp.lt.s32.totalorder %s7826_s24, %s7826_s24 }
  0x5f   :  { %p7530_p1 = scmp.ne.s32.totalorder %s7826_s24, %s7529_s21  ;;  %p7535_p3 = scmp.lt.s32.totalorder %s7529_s21, %s7529_s21 }
  0x61   :  { %p7536_p4 = por %p7535_p3, %p7534_p2 }
  0x63   :  { %p7537_p5 = pnand %p7536_p4, %p7530_p1 }
  0x65   :  { %7540 = shalt.err (!%p7537_p5)
}
  0x66   :  { %s7693_s10 = smov 1024   ;;  %s7694_s22 = smov 64  }
  0x67   :  { %38 = dma.hbm_to_vmem [thread:$0]  %s8093_s1, 131072, %s7826_s24, [#allocation3], %s7693_s10, %s7693_s10, %s7694_s22  }
  0x68   :  { %s7695_s4 = smov [#allocation6]   ;;  %s7541_s30 = scalar_lea.hbm %s8095_s3, 65536 }
  0x69   :  { %s54_s28 = sshll.u32 %s7695_s4, 4  ;;  %p7542_p6 = scmp.ne.s32.totalorder %s8095_s3, %s7541_s30  ;;  %s55_s28 = int_to_ptr.vmem [resolvable:$true] %s54_s28 }
  0x6a   :  { %p7545_p7 = scmp.lt.u32.totalorder %s7541_s30, %s8095_s3 }
  0x6c   :  { %p7547_p8 = pnand %p7545_p7, %p7542_p6 }
  0x6e   :  { %7550 = shalt.err (!%p7547_p8)
}
  0x6f   :  { %s7551_s26 = scalar_lea.vmem %s55_s28, 65536  ;;  %p7556_p10 = scmp.lt.s32.totalorder %s55_s28, %s55_s28 }
  0x70   :  { %p7552_p9 = scmp.ne.s32.totalorder %s55_s28, %s7551_s26  ;;  %p7557_p11 = scmp.lt.s32.totalorder %s7551_s26, %s7551_s26 }
  0x72   :  { %p7558_p12 = por %p7557_p11, %p7556_p10 }
  0x74   :  { %p7559_p13 = pnand %p7558_p12, %p7552_p9 }
  0x76   :  { %7562 = shalt.err (!%p7559_p13)
}
  0x77   :  { %s7696_s1 = smov 512   ;;  %s7697_s24 = smov 32  }
  0x78   :  { %60 = dma.hbm_to_vmem [thread:$0]  %s8095_s3, 65536, %s55_s28, [#allocation5], %s7696_s1, %s7696_s1, %s7697_s24  }
  0x79   :  { %s7698_s19 = smov [#allocation9]   ;;  %s7563_s21 = scalar_lea.hbm %s8097_s5, 16384 }
  0x7a   :  { %s76_s20 = sshll.u32 %s7698_s19, 4  ;;  %p7564_p0 = scmp.ne.s32.totalorder %s8097_s5, %s7563_s21  ;;  %s77_s20 = int_to_ptr.vmem [resolvable:$true] %s76_s20 }
  0x7b   :  { %p7567_p1 = scmp.lt.u32.totalorder %s7563_s21, %s8097_s5 }
  0x7d   :  { %p7569_p2 = pnand %p7567_p1, %p7564_p0 }
  0x7f   :  { %7572 = shalt.err (!%p7569_p2)
}
  0x80   :  { %s7573_s4 = scalar_lea.vmem %s77_s20, 16384  ;;  %p7578_p4 = scmp.lt.s32.totalorder %s77_s20, %s77_s20 }
  0x81   :  { %p7574_p3 = scmp.ne.s32.totalorder %s77_s20, %s7573_s4  ;;  %p7579_p5 = scmp.lt.s32.totalorder %s7573_s4, %s7573_s4 }
  0x83   :  { %p7580_p6 = por %p7579_p5, %p7578_p4 }
  0x85   :  { %p7581_p7 = pnand %p7580_p6, %p7574_p3 }
  0x87   :  { %7584 = shalt.err (!%p7581_p7)
}
  0x88   :  { %s7699_s3 = smov 256   ;;  %s7700_s28 = smov 16  }
  0x89   :  { %82 = dma.hbm_to_vmem [thread:$0]  %s8097_s5, 16384, %s77_s20, [#allocation8], %s7699_s3, %s7699_s3, %s7700_s28  }
  0x8a   :  { %s7701_s30 = smov [#allocation12]   ;;  %s7585_s2 = scalar_lea.hbm %s8099_s7, 12288 }
  0x8b   :  { %s98_s14 = sshll.u32 %s7701_s30, 4  ;;  %p7586_p8 = scmp.ne.s32.totalorder %s8099_s7, %s7585_s2  ;;  %s99_s14 = int_to_ptr.vmem [resolvable:$true] %s98_s14 }
  0x8c   :  { %p7589_p9 = scmp.lt.u32.totalorder %s7585_s2, %s8099_s7 }
  0x8e   :  { %p7591_p10 = pnand %p7589_p9, %p7586_p8 }
  0x90   :  { %7594 = shalt.err (!%p7591_p10)
}
  0x91   :  { %s7595_s6 = scalar_lea.vmem %s99_s14, 12288  ;;  %p7600_p12 = scmp.lt.s32.totalorder %s99_s14, %s99_s14 }
  0x92   :  { %p7596_p11 = scmp.ne.s32.totalorder %s99_s14, %s7595_s6  ;;  %p7601_p13 = scmp.lt.s32.totalorder %s7595_s6, %s7595_s6 }
  0x94   :  { %p7602_p0 = por %p7601_p13, %p7600_p12 }
  0x96   :  { %p7603_p1 = pnand %p7602_p0, %p7596_p11 }
  0x98   :  { %7606 = shalt.err (!%p7603_p1)
}
  0x99   :  { %s7702_s5 = smov 384   ;;  %s7703_s20 = smov 24  }
  0x9a   :  { %104 = dma.hbm_to_vmem [thread:$0]  %s8099_s7, 12288, %s99_s14, [#allocation11], %s7702_s5, %s7702_s5, %s7703_s20  }
  0x9b   :  { %s7704_s10 = smov [#allocation15]   ;;  %s7705_s23 = smov [#allocation18]  }
  0x9c   :  { %s120_s22 = sshll.u32 %s7704_s10, 4  ;;  %s142_s25 = sshll.u32 %s7705_s23, 4  ;;  %s121_s22 = int_to_ptr.vmem [resolvable:$true] %s120_s22  ;;  %s143_s25 = int_to_ptr.vmem [resolvable:$true] %s142_s25 }
  0x9d   :  { %s7607_s28 = scalar_lea.hbm %s8101_s9, 24576 }
  0x9e   :  { %p7608_p2 = scmp.ne.s32.totalorder %s8101_s9, %s7607_s28  ;;  %p7611_p3 = scmp.lt.u32.totalorder %s7607_s28, %s8101_s9 }
  0xa0   :  { %p7613_p4 = pnand %p7611_p3, %p7608_p2 }
  0xa2   :  { %7616 = shalt.err (!%p7613_p4)
}
  0xa3   :  { %s7617_s7 = scalar_lea.vmem %s121_s22, 24576  ;;  %p7622_p6 = scmp.lt.s32.totalorder %s121_s22, %s121_s22 }
  0xa4   :  { %p7618_p5 = scmp.ne.s32.totalorder %s121_s22, %s7617_s7  ;;  %p7623_p7 = scmp.lt.s32.totalorder %s7617_s7, %s7617_s7 }
  0xa6   :  { %p7624_p8 = por %p7623_p7, %p7622_p6 }
  0xa8   :  { %p7625_p9 = pnand %p7624_p8, %p7618_p5 }
  0xaa   :  { %7628 = shalt.err (!%p7625_p9)
}
  0xab   :  { %126 = dma.hbm_to_vmem [thread:$0]  %s8101_s9, 24576, %s121_s22, [#allocation14], %s7696_s1, %s7696_s1, %s7697_s24  }
  0xac   :  { %s7629_s15 = scalar_lea.hbm %s8103_s11, 24576 }
  0xad   :  { %p7630_p10 = scmp.ne.s32.totalorder %s8103_s11, %s7629_s15  ;;  %p7633_p11 = scmp.lt.u32.totalorder %s7629_s15, %s8103_s11 }
  0xaf   :  { %p7635_p12 = pnand %p7633_p11, %p7630_p10 }
  0xb1   :  { %7638 = shalt.err (!%p7635_p12)
}
  0xb2   :  { %s7639_s21 = scalar_lea.vmem %s143_s25, 24576  ;;  %p7644_p0 = scmp.lt.s32.totalorder %s143_s25, %s143_s25 }
  0xb3   :  { %p7640_p13 = scmp.ne.s32.totalorder %s143_s25, %s7639_s21  ;;  %p7645_p1 = scmp.lt.s32.totalorder %s7639_s21, %s7639_s21 }
  0xb5   :  { %p7646_p2 = por %p7645_p1, %p7644_p0 }
  0xb7   :  { %p7647_p3 = pnand %p7646_p2, %p7640_p13 }
  0xb9   :  { %7650 = shalt.err (!%p7647_p3)
}
  0xba   :  { %148 = dma.hbm_to_vmem [thread:$0]  %s8103_s11, 24576, %s143_s25, [#allocation17], %s7702_s5, %s7702_s5, %s7703_s20  }
  0xbb   :  { %s7706_s24 = smov [#allocation19]   ;;  %s7651_s4 = scalar_lea.hbm %s8104_s12, 48 }
  0xbc   :  { %s155_s10 = sshll.u32 %s7706_s24, 4  ;;  %p7652_p4 = scmp.ne.s32.totalorder %s8104_s12, %s7651_s4  ;;  %s156_s10 = int_to_ptr.vmem [resolvable:$true] %s155_s10 }
  0xbd   :  { %p7655_p5 = scmp.lt.u32.totalorder %s7651_s4, %s8104_s12 }
  0xbf   :  { %p7657_p6 = pnand %p7655_p5, %p7652_p4 }
  0xc1   :  { %7660 = shalt.err (!%p7657_p6)
}
  0xc2   :  { %s7661_s30 = scalar_lea.vmem %s156_s10, 48  ;;  %s7665_s11 = scalar_lea.vmem %s156_s10, 64 }
  0xc3   :  { %p7662_p7 = scmp.ne.s32.totalorder %s156_s10, %s7661_s30  ;;  %p7666_p8 = scmp.lt.s32.totalorder %s156_s10, %s156_s10 }
  0xc4   :  { %p7667_p9 = scmp.lt.s32.totalorder %s7665_s11, %s7661_s30 }
  0xc6   :  { %p7668_p10 = por %p7667_p9, %p7666_p8 }
  0xc8   :  { %p7669_p11 = pnand %p7668_p10, %p7662_p7 }
  0xca   :  { %7672 = shalt.err (!%p7669_p11)
}
  0xcb   :  { %158 = dma.hbm_to_vmem [thread:$0]  %s8104_s12, 48, %s156_s10, [#allocation20]  }
  0xcc   :  { %7673 = dma.done.wait [#allocation3], 131072  }
  0xcd   :  { %7674 = vsyncadd [#allocation3], 4294836224 }
  0xce   :  { %7675 = dma.done.wait [#allocation5], 65664  }
  0xcf   :  { %7676 = vsyncadd [#allocation5], 4294901632 }
  0xd0   :  { %7677 = dma.done.wait [#allocation8], 16448  }
  0xd1   :  { %7678 = vsyncadd [#allocation8], 4294950848 }
  0xd2   :  { %7679 = dma.done.wait [#allocation11], 12320  }
  0xd3   :  { %7680 = vsyncadd [#allocation11], 4294954976 }
  0xd4   :  { %7681 = dma.done.wait [#allocation14], 24624  }
  0xd5   :  { %7682 = vsyncadd [#allocation14], 4294942672 }
  0xd6   :  { %7683 = dma.done.wait [#allocation17], 24640  }
  0xd7   :  { %7684 = vsyncadd [#allocation17], 4294942656 }
  0xd8   :  { %7685 = dma.done.wait [#allocation20], 48  }
  0xd9   :  { %7686 = vsyncadd [#allocation20], 4294967248  ;;  %v204_v0 = vld [vmem:[#allocation2 + $0x8] sm:$0xff]  ;;  %v206_v2 = vld [vmem:[#allocation2 + $0x18] sm:$0xff] }
  0xda   :  { %v212_v1 = vld [vmem:[#allocation2 + $0x48] sm:$0xff]  ;;  %v214_v4 = vld [vmem:[#allocation2 + $0x58] sm:$0xff]  ;;  %v203_v5 = vld [vmem:[#allocation2] sm:$0xff] }
  0xdb   :  { %v5170_v3 = vpack.c.bf16 %v212_v1, %v204_v0  ;;  %v211_v6 = vld [vmem:[#allocation2 + $0x40] sm:$0xff]  ;;  %v5426_v7 = vpack.c.bf16 %v214_v4, %v206_v2  ;;  %v205_v9 = vld [vmem:[#allocation2 + $0x10] sm:$0xff]  ;;  %v220_v11 = vld [vmem:[#allocation2 + $0x88] sm:$0xff] }
  0xdc   :  { %v5172_v8 = vpack.c.bf16 %v211_v6, %v203_v5  ;;  %v213_v10 = vld [vmem:[#allocation2 + $0x50] sm:$0xff]  ;;  %v228_v13 = vld [vmem:[#allocation2 + $0xc8] sm:$0xff]  ;;  %v222_v14 = vld [vmem:[#allocation2 + $0x98] sm:$0xff] }
  0xdd   :  { %5171 = vmatprep.subr.bf16.mxu0 %v5170_v3  ;;  %v5428_v12 = vpack.c.bf16 %v213_v10, %v205_v9  ;;  %v230_v15 = vld [vmem:[#allocation2 + $0xd8] sm:$0xff]  ;;  %5427 = vmatprep.subr.bf16.mxu1 %v5426_v7  ;;  %v5174_v16 = vpack.c.bf16 %v228_v13, %v220_v11  ;;  %v219_v18 = vld [vmem:[#allocation2 + $0x80] sm:$0xff]  ;;  %v221_v20 = vld [vmem:[#allocation2 + $0x90] sm:$0xff] }
  0xde   :  { %5173 = vmatpush1.bf16.msra.mxu0 %v5172_v8  ;;  %v5430_v17 = vpack.c.bf16 %v230_v15, %v222_v14  ;;  %v227_v19 = vld [vmem:[#allocation2 + $0xc0] sm:$0xff]  ;;  %v229_v22 = vld [vmem:[#allocation2 + $0xd0] sm:$0xff]  ;;  %v236_v23 = vld [vmem:[#allocation2 + $0x108] sm:$0xff] }
  0xdf   :  { %5429 = vmatpush1.bf16.msra.mxu1 %v5428_v12  ;;  %v5176_v21 = vpack.c.bf16 %v227_v19, %v219_v18  ;;  %v244_v24 = vld [vmem:[#allocation2 + $0x148] sm:$0xff]  ;;  %5175 = vmatprep.subr.bf16.mxu0 %v5174_v16  ;;  %v5432_v25 = vpack.c.bf16 %v229_v22, %v221_v20  ;;  %v238_v27 = vld [vmem:[#allocation2 + $0x118] sm:$0xff]  ;;  %v235_v29 = vld [vmem:[#allocation2 + $0x100] sm:$0xff] }
  0xe0   :  { %5431 = vmatprep.subr.bf16.mxu1 %v5430_v17  ;;  %v5178_v26 = vpack.c.bf16 %v244_v24, %v236_v23  ;;  %v246_v28 = vld [vmem:[#allocation2 + $0x158] sm:$0xff]  ;;  %v243_v31 = vld [vmem:[#allocation2 + $0x140] sm:$0xff]  ;;  %v237_v32 = vld [vmem:[#allocation2 + $0x110] sm:$0xff] }
  0xe1   :  { %v5434_v30 = vpack.c.bf16 %v246_v28, %v238_v27  ;;  %v245_v33 = vld [vmem:[#allocation2 + $0x150] sm:$0xff]  ;;  %v5180_v34 = vpack.c.bf16 %v243_v31, %v235_v29  ;;  %v252_v35 = vld [vmem:[#allocation2 + $0x188] sm:$0xff]  ;;  %v254_v37 = vld [vmem:[#allocation2 + $0x198] sm:$0xff] }
  0xe2   :  { %5177 = vmatpush1.bf16.msra.mxu0 %v5176_v21  ;;  %v260_v36 = vld [vmem:[#allocation2 + $0x1c8] sm:$0xff]  ;;  %v5436_v38 = vpack.c.bf16 %v245_v33, %v237_v32  ;;  %v262_v40 = vld [vmem:[#allocation2 + $0x1d8] sm:$0xff]  ;;  %v251_v41 = vld [vmem:[#allocation2 + $0x180] sm:$0xff] }
  0xe3   :  { %5433 = vmatpush1.bf16.msra.mxu1 %v5432_v25  ;;  %5179 = vmatprep.subr.bf16.mxu0 %v5178_v26  ;;  %v5182_v39 = vpack.c.bf16 %v260_v36, %v252_v35  ;;  %v259_v42 = vld [vmem:[#allocation2 + $0x1c0] sm:$0xff]  ;;  %v5438_v43 = vpack.c.bf16 %v262_v40, %v254_v37  ;;  %v253_v44 = vld [vmem:[#allocation2 + $0x190] sm:$0xff]  ;;  %v268_v46 = vld [vmem:[#allocation2 + $0x208] sm:$0xff] }
  0xe4   :  { %5435 = vmatprep.subr.bf16.mxu1 %v5434_v30  ;;  %v261_v45 = vld [vmem:[#allocation2 + $0x1d0] sm:$0xff]  ;;  %v276_v47 = vld [vmem:[#allocation2 + $0x248] sm:$0xff]  ;;  %v270_v48 = vld [vmem:[#allocation2 + $0x218] sm:$0xff]  ;;  %v5184_v50 = vpack.c.bf16 %v259_v42, %v251_v41 }
  0xe5   :  { %v278_v49 = vld [vmem:[#allocation2 + $0x258] sm:$0xff]  ;;  %v5440_v51 = vpack.c.bf16 %v261_v45, %v253_v44  ;;  %v5186_v52 = vpack.c.bf16 %v276_v47, %v268_v46  ;;  %v267_v53 = vld [vmem:[#allocation2 + $0x200] sm:$0xff]  ;;  %v269_v55 = vld [vmem:[#allocation2 + $0x210] sm:$0xff] }
  0xe6   :  { %5181 = vmatpush1.bf16.msra.mxu0 %v5180_v34  ;;  %v275_v54 = vld [vmem:[#allocation2 + $0x240] sm:$0xff]  ;;  %v5442_v56 = vpack.c.bf16 %v278_v49, %v270_v48  ;;  %v277_v57 = vld [vmem:[#allocation2 + $0x250] sm:$0xff]  ;;  %v284_v58 = vld [vmem:[#allocation2 + $0x288] sm:$0xff] }
  0xe7   :  { %5437 = vmatpush1.bf16.msra.mxu1 %v5436_v38  ;;  %5183 = vmatprep.subr.bf16.mxu0 %v5182_v39  ;;  %v292_v59 = vld [vmem:[#allocation2 + $0x2c8] sm:$0xff]  ;;  %v286_v60 = vld [vmem:[#allocation2 + $0x298] sm:$0xff]  ;;  %v5188_v62 = vpack.c.bf16 %v275_v54, %v267_v53  ;;  %v5444_v63 = vpack.c.bf16 %v277_v57, %v269_v55  ;;  %v283_v1 = vld [vmem:[#allocation2 + $0x280] sm:$0xff] }
  0xe8   :  { %5439 = vmatprep.subr.bf16.mxu1 %v5438_v43  ;;  %v294_v61 = vld [vmem:[#allocation2 + $0x2d8] sm:$0xff]  ;;  %v5190_v0 = vpack.c.bf16 %v292_v59, %v284_v58  ;;  %v291_v2 = vld [vmem:[#allocation2 + $0x2c0] sm:$0xff]  ;;  %v285_v3 = vld [vmem:[#allocation2 + $0x290] sm:$0xff] }
  0xe9   :  { %v5446_v4 = vpack.c.bf16 %v294_v61, %v286_v60  ;;  %v293_v5 = vld [vmem:[#allocation2 + $0x2d0] sm:$0xff]  ;;  %v300_v6 = vld [vmem:[#allocation2 + $0x308] sm:$0xff]  ;;  %v302_v8 = vld [vmem:[#allocation2 + $0x318] sm:$0xff]  ;;  %v5192_v10 = vpack.c.bf16 %v291_v2, %v283_v1 }
  0xea   :  { %5185 = vmatpush1.bf16.msra.mxu0 %v5184_v50  ;;  %v308_v7 = vld [vmem:[#allocation2 + $0x348] sm:$0xff]  ;;  %v310_v9 = vld [vmem:[#allocation2 + $0x358] sm:$0xff]  ;;  %v5448_v11 = vpack.c.bf16 %v293_v5, %v285_v3  ;;  %v299_v13 = vld [vmem:[#allocation2 + $0x300] sm:$0xff] }
  0xeb   :  { %5441 = vmatpush1.bf16.msra.mxu1 %v5440_v51  ;;  %5187 = vmatprep.subr.bf16.mxu0 %v5186_v52  ;;  %v5194_v12 = vpack.c.bf16 %v308_v7, %v300_v6  ;;  %v307_v14 = vld [vmem:[#allocation2 + $0x340] sm:$0xff]  ;;  %v301_v15 = vld [vmem:[#allocation2 + $0x310] sm:$0xff]  ;;  %v5450_v16 = vpack.c.bf16 %v310_v9, %v302_v8  ;;  %v316_v18 = vld [vmem:[#allocation2 + $0x388] sm:$0xff] }
  0xec   :  { %5443 = vmatprep.subr.bf16.mxu1 %v5442_v56  ;;  %v309_v17 = vld [vmem:[#allocation2 + $0x350] sm:$0xff]  ;;  %v324_v19 = vld [vmem:[#allocation2 + $0x3c8] sm:$0xff]  ;;  %v318_v20 = vld [vmem:[#allocation2 + $0x398] sm:$0xff]  ;;  %v5196_v22 = vpack.c.bf16 %v307_v14, %v299_v13 }
  0xed   :  { %v326_v21 = vld [vmem:[#allocation2 + $0x3d8] sm:$0xff]  ;;  %v5452_v23 = vpack.c.bf16 %v309_v17, %v301_v15  ;;  %v5198_v24 = vpack.c.bf16 %v324_v19, %v316_v18  ;;  %v315_v25 = vld [vmem:[#allocation2 + $0x380] sm:$0xff]  ;;  %v317_v27 = vld [vmem:[#allocation2 + $0x390] sm:$0xff] }
  0xee   :  { %5189 = vmatpush1.bf16.msra.mxu0 %v5188_v62  ;;  %v323_v26 = vld [vmem:[#allocation2 + $0x3c0] sm:$0xff]  ;;  %v5454_v28 = vpack.c.bf16 %v326_v21, %v318_v20  ;;  %v325_v29 = vld [vmem:[#allocation2 + $0x3d0] sm:$0xff]  ;;  %v332_v30 = vld [vmem:[#allocation2 + $0x408] sm:$0xff] }
  0xef   :  { %5445 = vmatpush1.bf16.msra.mxu1 %v5444_v63  ;;  %5191 = vmatprep.subr.bf16.mxu0 %v5190_v0  ;;  %v340_v31 = vld [vmem:[#allocation2 + $0x448] sm:$0xff]  ;;  %v334_v32 = vld [vmem:[#allocation2 + $0x418] sm:$0xff]  ;;  %v5200_v34 = vpack.c.bf16 %v323_v26, %v315_v25  ;;  %v5456_v35 = vpack.c.bf16 %v325_v29, %v317_v27  ;;  %v331_v37 = vld [vmem:[#allocation2 + $0x400] sm:$0xff] }
  0xf0   :  { %5447 = vmatprep.subr.bf16.mxu1 %v5446_v4  ;;  %v342_v33 = vld [vmem:[#allocation2 + $0x458] sm:$0xff]  ;;  %v5202_v36 = vpack.c.bf16 %v340_v31, %v332_v30  ;;  %v339_v38 = vld [vmem:[#allocation2 + $0x440] sm:$0xff]  ;;  %v333_v39 = vld [vmem:[#allocation2 + $0x410] sm:$0xff] }
  0xf1   :  { %v5458_v40 = vpack.c.bf16 %v342_v33, %v334_v32  ;;  %v341_v41 = vld [vmem:[#allocation2 + $0x450] sm:$0xff]  ;;  %v348_v42 = vld [vmem:[#allocation2 + $0x488] sm:$0xff]  ;;  %v350_v44 = vld [vmem:[#allocation2 + $0x498] sm:$0xff]  ;;  %v5204_v46 = vpack.c.bf16 %v339_v38, %v331_v37 }
  0xf2   :  { %5193 = vmatpush1.bf16.msra.mxu0 %v5192_v10  ;;  %v356_v43 = vld [vmem:[#allocation2 + $0x4c8] sm:$0xff]  ;;  %v358_v45 = vld [vmem:[#allocation2 + $0x4d8] sm:$0xff]  ;;  %v5460_v47 = vpack.c.bf16 %v341_v41, %v333_v39  ;;  %v347_v49 = vld [vmem:[#allocation2 + $0x480] sm:$0xff] }
  0xf3   :  { %5449 = vmatpush1.bf16.msra.mxu1 %v5448_v11  ;;  %5195 = vmatprep.subr.bf16.mxu0 %v5194_v12  ;;  %v5206_v48 = vpack.c.bf16 %v356_v43, %v348_v42  ;;  %v355_v50 = vld [vmem:[#allocation2 + $0x4c0] sm:$0xff]  ;;  %v349_v51 = vld [vmem:[#allocation2 + $0x490] sm:$0xff]  ;;  %v5462_v52 = vpack.c.bf16 %v358_v45, %v350_v44  ;;  %v364_v54 = vld [vmem:[#allocation2 + $0x508] sm:$0xff] }
  0xf4   :  { %5451 = vmatprep.subr.bf16.mxu1 %v5450_v16  ;;  %v357_v53 = vld [vmem:[#allocation2 + $0x4d0] sm:$0xff]  ;;  %v372_v55 = vld [vmem:[#allocation2 + $0x548] sm:$0xff]  ;;  %v366_v56 = vld [vmem:[#allocation2 + $0x518] sm:$0xff]  ;;  %v5208_v58 = vpack.c.bf16 %v355_v50, %v347_v49 }
  0xf5   :  { %v374_v57 = vld [vmem:[#allocation2 + $0x558] sm:$0xff]  ;;  %v5464_v59 = vpack.c.bf16 %v357_v53, %v349_v51  ;;  %v5210_v60 = vpack.c.bf16 %v372_v55, %v364_v54  ;;  %v363_v61 = vld [vmem:[#allocation2 + $0x500] sm:$0xff]  ;;  %v365_v63 = vld [vmem:[#allocation2 + $0x510] sm:$0xff] }
  0xf6   :  { %5197 = vmatpush1.bf16.msra.mxu0 %v5196_v22  ;;  %v371_v62 = vld [vmem:[#allocation2 + $0x540] sm:$0xff]  ;;  %v5466_v0 = vpack.c.bf16 %v374_v57, %v366_v56  ;;  %v373_v1 = vld [vmem:[#allocation2 + $0x550] sm:$0xff]  ;;  %v380_v2 = vld [vmem:[#allocation2 + $0x588] sm:$0xff] }
  0xf7   :  { %5453 = vmatpush1.bf16.msra.mxu1 %v5452_v23  ;;  %5199 = vmatprep.subr.bf16.mxu0 %v5198_v24  ;;  %v388_v3 = vld [vmem:[#allocation2 + $0x5c8] sm:$0xff]  ;;  %v382_v4 = vld [vmem:[#allocation2 + $0x598] sm:$0xff]  ;;  %v5212_v6 = vpack.c.bf16 %v371_v62, %v363_v61  ;;  %v379_v7 = vld [vmem:[#allocation2 + $0x580] sm:$0xff]  ;;  %v5468_v8 = vpack.c.bf16 %v373_v1, %v365_v63 }
  0xf8   :  { %5455 = vmatprep.subr.bf16.mxu1 %v5454_v28  ;;  %v390_v5 = vld [vmem:[#allocation2 + $0x5d8] sm:$0xff]  ;;  %v5214_v9 = vpack.c.bf16 %v388_v3, %v380_v2  ;;  %v387_v10 = vld [vmem:[#allocation2 + $0x5c0] sm:$0xff]  ;;  %v381_v11 = vld [vmem:[#allocation2 + $0x590] sm:$0xff] }
  0xf9   :  { %v389_v12 = vld [vmem:[#allocation2 + $0x5d0] sm:$0xff]  ;;  %v5470_v13 = vpack.c.bf16 %v390_v5, %v382_v4  ;;  %v396_v14 = vld [vmem:[#allocation2 + $0x608] sm:$0xff]  ;;  %v398_v17 = vld [vmem:[#allocation2 + $0x618] sm:$0xff]  ;;  %v5216_v19 = vpack.c.bf16 %v387_v10, %v379_v7 }
  0xfa   :  { %5201 = vmatpush1.bf16.msra.mxu0 %v5200_v34  ;;  %v404_v15 = vld [vmem:[#allocation2 + $0x648] sm:$0xff]  ;;  %v406_v18 = vld [vmem:[#allocation2 + $0x658] sm:$0xff]  ;;  %v5472_v20 = vpack.c.bf16 %v389_v12, %v381_v11  ;;  %v395_v22 = vld [vmem:[#allocation2 + $0x600] sm:$0xff] }
  0xfb   :  { %5457 = vmatpush1.bf16.msra.mxu1 %v5456_v35  ;;  %5203 = vmatprep.subr.bf16.mxu0 %v5202_v36  ;;  %v196_v16 = vld [vmem:[%s8092_s0 + $0x8] sm:$0xff]  ;;  %v5218_v21 = vpack.c.bf16 %v404_v15, %v396_v14  ;;  %v403_v23 = vld [vmem:[#allocation2 + $0x640] sm:$0xff]  ;;  %v397_v24 = vld [vmem:[#allocation2 + $0x610] sm:$0xff]  ;;  %v5474_v25 = vpack.c.bf16 %v406_v18, %v398_v17 }
  0xfc   :  { %5459 = vmatprep.subr.bf16.mxu1 %v5458_v40  ;;  %1333 = vmatprep.mubr.f32.mxu0 %v196_v16  ;;  %v405_v26 = vld [vmem:[#allocation2 + $0x650] sm:$0xff]  ;;  %v412_v27 = vld [vmem:[#allocation2 + $0x688] sm:$0xff]  ;;  %v414_v29 = vld [vmem:[#allocation2 + $0x698] sm:$0xff]  ;;  %v5220_v31 = vpack.c.bf16 %v403_v23, %v395_v22 }
  0xfd   :  { %1617 = vmatprep.mubr.f32.mxu1 %v196_v16  ;;  %v420_v28 = vld [vmem:[#allocation2 + $0x6c8] sm:$0xff]  ;;  %v422_v30 = vld [vmem:[#allocation2 + $0x6d8] sm:$0xff]  ;;  %v5476_v32 = vpack.c.bf16 %v405_v26, %v397_v24  ;;  %v411_v34 = vld [vmem:[#allocation2 + $0x680] sm:$0xff] }
  0xfe   :  { %5205 = vmatpush1.bf16.msra.mxu0 %v5204_v46  ;;  %v5222_v33 = vpack.c.bf16 %v420_v28, %v412_v27  ;;  %v419_v35 = vld [vmem:[#allocation2 + $0x6c0] sm:$0xff]  ;;  %v413_v36 = vld [vmem:[#allocation2 + $0x690] sm:$0xff]  ;;  %v5478_v37 = vpack.c.bf16 %v422_v30, %v414_v29  ;;  %v428_v39 = vld [vmem:[#allocation2 + $0x708] sm:$0xff] }
  0xff   :  { %5461 = vmatpush1.bf16.msra.mxu1 %v5460_v47  ;;  %5207 = vmatprep.subr.bf16.mxu0 %v5206_v48  ;;  %v421_v38 = vld [vmem:[#allocation2 + $0x6d0] sm:$0xff]  ;;  %v436_v40 = vld [vmem:[#allocation2 + $0x748] sm:$0xff]  ;;  %v430_v41 = vld [vmem:[#allocation2 + $0x718] sm:$0xff]  ;;  %v5224_v43 = vpack.c.bf16 %v419_v35, %v411_v34 }
 0x100   :  { %5463 = vmatprep.subr.bf16.mxu1 %v5462_v52  ;;  %v438_v42 = vld [vmem:[#allocation2 + $0x758] sm:$0xff]  ;;  %v5480_v44 = vpack.c.bf16 %v421_v38, %v413_v36  ;;  %v5226_v45 = vpack.c.bf16 %v436_v40, %v428_v39  ;;  %v427_v46 = vld [vmem:[#allocation2 + $0x700] sm:$0xff]  ;;  %v429_v48 = vld [vmem:[#allocation2 + $0x710] sm:$0xff] }
 0x101   :  { %v435_v47 = vld [vmem:[#allocation2 + $0x740] sm:$0xff]  ;;  %v5482_v49 = vpack.c.bf16 %v438_v42, %v430_v41  ;;  %v437_v50 = vld [vmem:[#allocation2 + $0x750] sm:$0xff]  ;;  %v444_v51 = vld [vmem:[#allocation2 + $0x788] sm:$0xff] }
 0x102   :  { %5209 = vmatpush1.bf16.msra.mxu0 %v5208_v58  ;;  %v452_v52 = vld [vmem:[#allocation2 + $0x7c8] sm:$0xff]  ;;  %v446_v53 = vld [vmem:[#allocation2 + $0x798] sm:$0xff]  ;;  %v5228_v55 = vpack.c.bf16 %v435_v47, %v427_v46  ;;  %v5484_v56 = vpack.c.bf16 %v437_v50, %v429_v48  ;;  %v443_v58 = vld [vmem:[#allocation2 + $0x780] sm:$0xff] }
 0x103   :  { %5465 = vmatpush1.bf16.msra.mxu1 %v5464_v59  ;;  %5211 = vmatprep.subr.bf16.mxu0 %v5210_v60  ;;  %v454_v54 = vld [vmem:[#allocation2 + $0x7d8] sm:$0xff]  ;;  %v5230_v57 = vpack.c.bf16 %v452_v52, %v444_v51  ;;  %v451_v59 = vld [vmem:[#allocation2 + $0x7c0] sm:$0xff]  ;;  %v445_v60 = vld [vmem:[#allocation2 + $0x790] sm:$0xff] }
 0x104   :  { %5467 = vmatprep.subr.bf16.mxu1 %v5466_v0  ;;  %v5486_v61 = vpack.c.bf16 %v454_v54, %v446_v53  ;;  %v453_v62 = vld [vmem:[#allocation2 + $0x7d0] sm:$0xff]  ;;  %v460_v63 = vld [vmem:[#allocation2 + $0x808] sm:$0xff]  ;;  %v462_v1 = vld [vmem:[#allocation2 + $0x818] sm:$0xff]  ;;  %v5232_v3 = vpack.c.bf16 %v451_v59, %v443_v58 }
 0x105   :  { %v468_v0 = vld [vmem:[#allocation2 + $0x848] sm:$0xff]  ;;  %v470_v2 = vld [vmem:[#allocation2 + $0x858] sm:$0xff]  ;;  %v5488_v4 = vpack.c.bf16 %v453_v62, %v445_v60  ;;  %v467_v7 = vld [vmem:[#allocation2 + $0x840] sm:$0xff] }
 0x106   :  { %5213 = vmatpush1.bf16.msra.mxu0 %v5212_v6  ;;  %v5234_v5 = vpack.c.bf16 %v468_v0, %v460_v63  ;;  %v459_v6 = vld [vmem:[#allocation2 + $0x800] sm:$0xff]  ;;  %v469_v10 = vld [vmem:[#allocation2 + $0x850] sm:$0xff]  ;;  %v476_v11 = vld [vmem:[#allocation2 + $0x888] sm:$0xff] }
 0x107   :  { %5469 = vmatpush1.bf16.msra.mxu1 %v5468_v8  ;;  %5215 = vmatprep.subr.bf16.mxu0 %v5214_v9  ;;  %v461_v8 = vld [vmem:[#allocation2 + $0x810] sm:$0xff]  ;;  %v5490_v9 = vpack.c.bf16 %v470_v2, %v462_v1  ;;  %v484_v12 = vld [vmem:[#allocation2 + $0x8c8] sm:$0xff]  ;;  %v486_v14 = vld [vmem:[#allocation2 + $0x8d8] sm:$0xff]  ;;  %v5236_v16 = vpack.c.bf16 %v467_v7, %v459_v6 }
 0x108   :  { %5471 = vmatprep.subr.bf16.mxu1 %v5470_v13  ;;  %v478_v13 = vld [vmem:[#allocation2 + $0x898] sm:$0xff]  ;;  %v195_v15 = vld [vmem:[%s8092_s0] sm:$0xff]  ;;  %v5492_v17 = vpack.c.bf16 %v469_v10, %v461_v8  ;;  %v5238_v18 = vpack.c.bf16 %v484_v12, %v476_v11  ;;  %v485_v23 = vld [vmem:[#allocation2 + $0x8d0] sm:$0xff] }
 0x109   :  { %v5494_v22 = vpack.c.bf16 %v486_v14, %v478_v13  ;;  %v492_v24 = vld [vmem:[#allocation2 + $0x908] sm:$0xff]  ;;  %v494_v26 = vld [vmem:[#allocation2 + $0x918] sm:$0xff]  ;;  %v501_v35 = vld [vmem:[#allocation2 + $0x950] sm:$0xff] }
 0x10a   :  { %5217 = vmatpush1.bf16.msra.mxu0 %v5216_v19  ;;  %v475_v19 = vld [vmem:[#allocation2 + $0x880] sm:$0xff]  ;;  %v502_v27 = vld [vmem:[#allocation2 + $0x958] sm:$0xff]  ;;  %v508_v36 = vld [vmem:[#allocation2 + $0x988] sm:$0xff] }
 0x10b   :  { %5473 = vmatpush1.bf16.msra.mxu1 %v5472_v20  ;;  %5219 = vmatprep.subr.bf16.mxu0 %v5218_v21  ;;  %v483_v20 = vld [vmem:[#allocation2 + $0x8c0] sm:$0xff]  ;;  %v477_v21 = vld [vmem:[#allocation2 + $0x890] sm:$0xff]  ;;  %v5498_v34 = vpack.c.bf16 %v502_v27, %v494_v26  ;;  %v510_v38 = vld [vmem:[#allocation2 + $0x998] sm:$0xff] }
 0x10c   :  { %5475 = vmatprep.subr.bf16.mxu1 %v5474_v25  ;;  %v500_v25 = vld [vmem:[#allocation2 + $0x948] sm:$0xff]  ;;  %v5240_v28 = vpack.c.bf16 %v483_v20, %v475_v19  ;;  %v5496_v29 = vpack.c.bf16 %v485_v23, %v477_v21  ;;  %v518_v39 = vld [vmem:[#allocation2 + $0x9d8] sm:$0xff]  ;;  %v517_v47 = vld [vmem:[#allocation2 + $0x9d0] sm:$0xff] }
 0x10d   :  { %v5242_v30 = vpack.c.bf16 %v500_v25, %v492_v24  ;;  %v5502_v46 = vpack.c.bf16 %v518_v39, %v510_v38  ;;  %v524_v48 = vld [vmem:[#allocation2 + $0xa08] sm:$0xff]  ;;  %v526_v50 = vld [vmem:[#allocation2 + $0xa18] sm:$0xff]  ;;  %v533_v59 = vld [vmem:[#allocation2 + $0xa50] sm:$0xff] }
 0x10e   :  { %5221 = vmatpush1.bf16.msra.mxu0 %v5220_v31  ;;  %v491_v31 = vld [vmem:[#allocation2 + $0x900] sm:$0xff]  ;;  %v534_v51 = vld [vmem:[#allocation2 + $0xa58] sm:$0xff]  ;;  %v540_v60 = vld [vmem:[#allocation2 + $0xa88] sm:$0xff] }
 0x10f   :  { %5477 = vmatpush1.bf16.msra.mxu1 %v5476_v32  ;;  %5223 = vmatprep.subr.bf16.mxu0 %v5222_v33  ;;  %v499_v32 = vld [vmem:[#allocation2 + $0x940] sm:$0xff]  ;;  %v493_v33 = vld [vmem:[#allocation2 + $0x910] sm:$0xff]  ;;  %v5506_v58 = vpack.c.bf16 %v534_v51, %v526_v50  ;;  %v542_v62 = vld [vmem:[#allocation2 + $0xa98] sm:$0xff] }
 0x110   :  { %5479 = vmatprep.subr.bf16.mxu1 %v5478_v37  ;;  %v516_v37 = vld [vmem:[#allocation2 + $0x9c8] sm:$0xff]  ;;  %v5244_v40 = vpack.c.bf16 %v499_v32, %v491_v31  ;;  %v5500_v41 = vpack.c.bf16 %v501_v35, %v493_v33  ;;  %v550_v63 = vld [vmem:[#allocation2 + $0xad8] sm:$0xff]  ;;  %v549_v7 = vld [vmem:[#allocation2 + $0xad0] sm:$0xff] }
 0x111   :  { %v5246_v42 = vpack.c.bf16 %v516_v37, %v508_v36  ;;  %v5510_v6 = vpack.c.bf16 %v550_v63, %v542_v62  ;;  %v556_v8 = vld [vmem:[#allocation2 + $0xb08] sm:$0xff]  ;;  %v558_v10 = vld [vmem:[#allocation2 + $0xb18] sm:$0xff]  ;;  %v555_v13 = vld [vmem:[#allocation2 + $0xb00] sm:$0xff] }
 0x112   :  { %5225 = vmatpush1.bf16.msra.mxu0 %v5224_v43  ;;  %v507_v43 = vld [vmem:[#allocation2 + $0x980] sm:$0xff]  ;;  %v566_v11 = vld [vmem:[#allocation2 + $0xb58] sm:$0xff]  ;;  %v572_v20 = vld [vmem:[#allocation2 + $0xb88] sm:$0xff] }
 0x113   :  { %5481 = vmatpush1.bf16.msra.mxu1 %v5480_v44  ;;  %5227 = vmatprep.subr.bf16.mxu0 %v5226_v45  ;;  %v515_v44 = vld [vmem:[#allocation2 + $0x9c0] sm:$0xff]  ;;  %v509_v45 = vld [vmem:[#allocation2 + $0x990] sm:$0xff]  ;;  %v5514_v19 = vpack.c.bf16 %v566_v11, %v558_v10  ;;  %v580_v21 = vld [vmem:[#allocation2 + $0xbc8] sm:$0xff] }
 0x114   :  { %5483 = vmatprep.subr.bf16.mxu1 %v5482_v49  ;;  %v532_v49 = vld [vmem:[#allocation2 + $0xa48] sm:$0xff]  ;;  %v5248_v52 = vpack.c.bf16 %v515_v44, %v507_v43  ;;  %v5504_v53 = vpack.c.bf16 %v517_v47, %v509_v45  ;;  %v574_v23 = vld [vmem:[#allocation2 + $0xb98] sm:$0xff]  ;;  %v5262_v27 = vpack.c.bf16 %v580_v21, %v572_v20  ;;  %v581_v32 = vld [vmem:[#allocation2 + $0xbd0] sm:$0xff] }
 0x115   :  { %v5250_v54 = vpack.c.bf16 %v532_v49, %v524_v48  ;;  %v582_v24 = vld [vmem:[#allocation2 + $0xbd8] sm:$0xff]  ;;  %v588_v33 = vld [vmem:[#allocation2 + $0xc08] sm:$0xff]  ;;  %v597_v44 = vld [vmem:[#allocation2 + $0xc50] sm:$0xff] }
 0x116   :  { %5229 = vmatpush1.bf16.msra.mxu0 %v5228_v55  ;;  %v523_v55 = vld [vmem:[#allocation2 + $0xa00] sm:$0xff]  ;;  %v5518_v31 = vpack.c.bf16 %v582_v24, %v574_v23  ;;  %v590_v35 = vld [vmem:[#allocation2 + $0xc18] sm:$0xff]  ;;  %v604_v45 = vld [vmem:[#allocation2 + $0xc88] sm:$0xff] }
 0x117   :  { %5485 = vmatpush1.bf16.msra.mxu1 %v5484_v56  ;;  %5231 = vmatprep.subr.bf16.mxu0 %v5230_v57  ;;  %v531_v56 = vld [vmem:[#allocation2 + $0xa40] sm:$0xff]  ;;  %v525_v57 = vld [vmem:[#allocation2 + $0xa10] sm:$0xff]  ;;  %v598_v36 = vld [vmem:[#allocation2 + $0xc58] sm:$0xff] }
 0x118   :  { %5487 = vmatprep.subr.bf16.mxu1 %v5486_v61  ;;  %v548_v61 = vld [vmem:[#allocation2 + $0xac8] sm:$0xff]  ;;  %v5252_v0 = vpack.c.bf16 %v531_v56, %v523_v55  ;;  %v5508_v1 = vpack.c.bf16 %v533_v59, %v525_v57  ;;  %v5522_v43 = vpack.c.bf16 %v598_v36, %v590_v35  ;;  %v606_v47 = vld [vmem:[#allocation2 + $0xc98] sm:$0xff]  ;;  %v613_v56 = vld [vmem:[#allocation2 + $0xcd0] sm:$0xff] }
 0x119   :  { %v5254_v2 = vpack.c.bf16 %v548_v61, %v540_v60  ;;  %v614_v48 = vld [vmem:[#allocation2 + $0xcd8] sm:$0xff]  ;;  %v620_v57 = vld [vmem:[#allocation2 + $0xd08] sm:$0xff]  ;;  %v651_v24 = vld [vmem:[#allocation2 + $0xe00] sm:$0xff] }
 0x11a   :  { %5233 = vmatpush1.bf16.msra.mxu0 %v5232_v3  ;;  %v539_v3 = vld [vmem:[#allocation2 + $0xa80] sm:$0xff]  ;;  %v5526_v55 = vpack.c.bf16 %v614_v48, %v606_v47  ;;  %v622_v59 = vld [vmem:[#allocation2 + $0xd18] sm:$0xff] }
 0x11b   :  { %5489 = vmatpush1.bf16.msra.mxu1 %v5488_v4  ;;  %5235 = vmatprep.subr.bf16.mxu0 %v5234_v5  ;;  %v547_v4 = vld [vmem:[#allocation2 + $0xac0] sm:$0xff]  ;;  %v541_v5 = vld [vmem:[#allocation2 + $0xa90] sm:$0xff]  ;;  %v630_v60 = vld [vmem:[#allocation2 + $0xd58] sm:$0xff] }
 0x11c   :  { %5491 = vmatprep.subr.bf16.mxu1 %v5490_v9  ;;  %v564_v9 = vld [vmem:[#allocation2 + $0xb48] sm:$0xff]  ;;  %v5256_v12 = vpack.c.bf16 %v547_v4, %v539_v3  ;;  %v5512_v14 = vpack.c.bf16 %v549_v7, %v541_v5  ;;  %v5530_v3 = vpack.c.bf16 %v630_v60, %v622_v59  ;;  %v629_v4 = vld [vmem:[#allocation2 + $0xd50] sm:$0xff]  ;;  %v638_v7 = vld [vmem:[#allocation2 + $0xd98] sm:$0xff] }
 0x11d   :  { %1334 = vmatmul.mubr.f32.vlgmr.msra.gmra.mrb[0].mxu0 %v195_v15  ;;  %v636_v5 = vld [vmem:[#allocation2 + $0xd88] sm:$0xff]  ;;  %v662_v20 = vld [vmem:[#allocation2 + $0xe58] sm:$0xff]  ;;  %v667_v36 = vld [vmem:[#allocation2 + $0xe80] sm:$0xff] }
 0x11e   :  { %5237 = vmatpush1.bf16.msra.mxu0 %v5236_v16  ;;  %1618 = vmatmul.mubr.f32.vlgmr.msra.gmra.mrb[0].mxu1 %v195_v15  ;;  %v5258_v15 = vpack.c.bf16 %v564_v9, %v556_v8  ;;  %v563_v16 = vld [vmem:[#allocation2 + $0xb40] sm:$0xff]  ;;  %v646_v8 = vld [vmem:[#allocation2 + $0xdd8] sm:$0xff] }
 0x11f   :  { %5493 = vmatpush1.bf16.msra.mxu1 %v5492_v17  ;;  %5239 = vmatprep.subr.bf16.mxu0 %v5238_v18  ;;  %v557_v17 = vld [vmem:[#allocation2 + $0xb10] sm:$0xff]  ;;  %v5260_v25 = vpack.c.bf16 %v563_v16, %v555_v13  ;;  %v643_v13 = vld [vmem:[#allocation2 + $0xdc0] sm:$0xff] }
 0x120   :  { %5495 = vmatprep.subr.bf16.mxu1 %v5494_v22  ;;  %v565_v18 = vld [vmem:[#allocation2 + $0xb50] sm:$0xff]  ;;  %v198_v22 = vld [vmem:[%s8092_s0 + $0x18] sm:$0xff]  ;;  %v683_v48 = vld [vmem:[#allocation2 + $0xf00] sm:$0xff] }
 0x121   :  { %1404 = vmatprep.mubr.f32.mxu0 %v198_v22  ;;  %1688 = vmatprep.mubr.f32.mxu1 %v198_v22  ;;  %v5516_v26 = vpack.c.bf16 %v565_v18, %v557_v17  ;;  %v645_v16 = vld [vmem:[#allocation2 + $0xdd0] sm:$0xff]  ;;  %v652_v17 = vld [vmem:[#allocation2 + $0xe08] sm:$0xff]  ;;  %v699_v60 = vld [vmem:[#allocation2 + $0xf80] sm:$0xff] }
 0x122   :  { %5241 = vmatpush1.bf16.msra.mxu0 %v5240_v28  ;;  %v571_v28 = vld [vmem:[#allocation2 + $0xb80] sm:$0xff]  ;;  %v660_v18 = vld [vmem:[#allocation2 + $0xe48] sm:$0xff] }
 0x123   :  { %5497 = vmatpush1.bf16.msra.mxu1 %v5496_v29  ;;  %5243 = vmatprep.subr.bf16.mxu0 %v5242_v30  ;;  %v579_v29 = vld [vmem:[#allocation2 + $0xbc0] sm:$0xff]  ;;  %v573_v30 = vld [vmem:[#allocation2 + $0xb90] sm:$0xff]  ;;  %v5282_v23 = vpack.c.bf16 %v660_v18, %v652_v17 }
 0x124   :  { %5499 = vmatprep.subr.bf16.mxu1 %v5498_v34  ;;  %v596_v34 = vld [vmem:[#allocation2 + $0xc48] sm:$0xff]  ;;  %v5264_v37 = vpack.c.bf16 %v579_v29, %v571_v28  ;;  %v5520_v38 = vpack.c.bf16 %v581_v32, %v573_v30  ;;  %v661_v28 = vld [vmem:[#allocation2 + $0xe50] sm:$0xff]  ;;  %v678_v32 = vld [vmem:[#allocation2 + $0xed8] sm:$0xff] }
 0x125   :  { %v5266_v39 = vpack.c.bf16 %v596_v34, %v588_v33  ;;  %v668_v29 = vld [vmem:[#allocation2 + $0xe88] sm:$0xff]  ;;  %v197_v17 = vld [vmem:[%s8092_s0 + $0x10] sm:$0xff] }
 0x126   :  { %5245 = vmatpush1.bf16.msra.mxu0 %v5244_v40  ;;  %v587_v40 = vld [vmem:[#allocation2 + $0xc00] sm:$0xff]  ;;  %v676_v30 = vld [vmem:[#allocation2 + $0xec8] sm:$0xff] }
 0x127   :  { %5501 = vmatpush1.bf16.msra.mxu1 %v5500_v41  ;;  %5247 = vmatprep.subr.bf16.mxu0 %v5246_v42  ;;  %v595_v41 = vld [vmem:[#allocation2 + $0xc40] sm:$0xff]  ;;  %v589_v42 = vld [vmem:[#allocation2 + $0xc10] sm:$0xff]  ;;  %v5286_v35 = vpack.c.bf16 %v676_v30, %v668_v29  ;;  %v758_v29 = vld [vmem:[#allocation2 + $0x1158] sm:$0xff] }
 0x128   :  { %5503 = vmatprep.subr.bf16.mxu1 %v5502_v46  ;;  %v612_v46 = vld [vmem:[#allocation2 + $0xcc8] sm:$0xff]  ;;  %v5268_v49 = vpack.c.bf16 %v595_v41, %v587_v40  ;;  %v5524_v50 = vpack.c.bf16 %v597_v44, %v589_v42  ;;  %v677_v40 = vld [vmem:[#allocation2 + $0xed0] sm:$0xff]  ;;  %v694_v44 = vld [vmem:[#allocation2 + $0xf58] sm:$0xff] }
 0x129   :  { %v5270_v51 = vpack.c.bf16 %v612_v46, %v604_v45  ;;  %v684_v41 = vld [vmem:[#allocation2 + $0xf08] sm:$0xff] }
 0x12a   :  { %5249 = vmatpush1.bf16.msra.mxu0 %v5248_v52  ;;  %v603_v52 = vld [vmem:[#allocation2 + $0xc80] sm:$0xff]  ;;  %v692_v42 = vld [vmem:[#allocation2 + $0xf48] sm:$0xff] }
 0x12b   :  { %5505 = vmatpush1.bf16.msra.mxu1 %v5504_v53  ;;  %5251 = vmatprep.subr.bf16.mxu0 %v5250_v54  ;;  %v611_v53 = vld [vmem:[#allocation2 + $0xcc0] sm:$0xff]  ;;  %v605_v54 = vld [vmem:[#allocation2 + $0xc90] sm:$0xff]  ;;  %v5290_v47 = vpack.c.bf16 %v692_v42, %v684_v41  ;;  %v200_v30 = vld [vmem:[%s8092_s0 + $0x28] sm:$0xff] }
 0x12c   :  { %5507 = vmatprep.subr.bf16.mxu1 %v5506_v58  ;;  %v628_v58 = vld [vmem:[#allocation2 + $0xd48] sm:$0xff]  ;;  %v5272_v61 = vpack.c.bf16 %v611_v53, %v603_v52  ;;  %v5528_v62 = vpack.c.bf16 %v613_v56, %v605_v54  ;;  %v693_v52 = vld [vmem:[#allocation2 + $0xf50] sm:$0xff]  ;;  %v710_v56 = vld [vmem:[#allocation2 + $0xfd8] sm:$0xff] }
 0x12d   :  { %v5274_v63 = vpack.c.bf16 %v628_v58, %v620_v57  ;;  %v700_v53 = vld [vmem:[#allocation2 + $0xf88] sm:$0xff]  ;;  %v766_v41 = vld [vmem:[#allocation2 + $0x1198] sm:$0xff] }
 0x12e   :  { %5253 = vmatpush1.bf16.msra.mxu0 %v5252_v0  ;;  %v619_v0 = vld [vmem:[#allocation2 + $0xd00] sm:$0xff]  ;;  %v708_v54 = vld [vmem:[#allocation2 + $0xfc8] sm:$0xff]  ;;  %v774_v42 = vld [vmem:[#allocation2 + $0x11d8] sm:$0xff] }
 0x12f   :  { %5509 = vmatpush1.bf16.msra.mxu1 %v5508_v1  ;;  %5255 = vmatprep.subr.bf16.mxu0 %v5254_v2  ;;  %v627_v1 = vld [vmem:[#allocation2 + $0xd40] sm:$0xff]  ;;  %v621_v2 = vld [vmem:[#allocation2 + $0xd10] sm:$0xff]  ;;  %v5294_v59 = vpack.c.bf16 %v708_v54, %v700_v53  ;;  %v782_v53 = vld [vmem:[#allocation2 + $0x1218] sm:$0xff] }
 0x130   :  { %5511 = vmatprep.subr.bf16.mxu1 %v5510_v6  ;;  %v644_v6 = vld [vmem:[#allocation2 + $0xdc8] sm:$0xff]  ;;  %v5276_v9 = vpack.c.bf16 %v627_v1, %v619_v0  ;;  %v5532_v10 = vpack.c.bf16 %v629_v4, %v621_v2  ;;  %v709_v0 = vld [vmem:[#allocation2 + $0xfd0] sm:$0xff]  ;;  %v726_v4 = vld [vmem:[#allocation2 + $0x1058] sm:$0xff] }
 0x131   :  { %v5278_v11 = vpack.c.bf16 %v644_v6, %v636_v5  ;;  %v716_v1 = vld [vmem:[#allocation2 + $0x1008] sm:$0xff]  ;;  %v790_v54 = vld [vmem:[#allocation2 + $0x1258] sm:$0xff] }
 0x132   :  { %5257 = vmatpush1.bf16.msra.mxu0 %v5256_v12  ;;  %v635_v12 = vld [vmem:[#allocation2 + $0xd80] sm:$0xff]  ;;  %v724_v2 = vld [vmem:[#allocation2 + $0x1048] sm:$0xff] }
 0x133   :  { %5513 = vmatpush1.bf16.msra.mxu1 %v5512_v14  ;;  %5259 = vmatprep.subr.bf16.mxu0 %v5258_v15  ;;  %v637_v14 = vld [vmem:[#allocation2 + $0xd90] sm:$0xff]  ;;  %v5534_v15 = vpack.c.bf16 %v646_v8, %v638_v7  ;;  %v5280_v21 = vpack.c.bf16 %v643_v13, %v635_v12  ;;  %v5298_v7 = vpack.c.bf16 %v724_v2, %v716_v1  ;;  %v715_v8 = vld [vmem:[#allocation2 + $0x1000] sm:$0xff]  ;;  %v732_v13 = vld [vmem:[#allocation2 + $0x1088] sm:$0xff] }
 0x134   :  { %5515 = vmatprep.subr.bf16.mxu1 %v5514_v19  ;;  %v654_v19 = vld [vmem:[#allocation2 + $0xe18] sm:$0xff]  ;;  %v5536_v22 = vpack.c.bf16 %v645_v16, %v637_v14  ;;  %v725_v12 = vld [vmem:[#allocation2 + $0x1050] sm:$0xff]  ;;  %v740_v14 = vld [vmem:[#allocation2 + $0x10c8] sm:$0xff] }
 0x135   :  { %v742_v16 = vld [vmem:[#allocation2 + $0x10d8] sm:$0xff] }
 0x136   :  { %5261 = vmatpush1.bf16.msra.mxu0 %v5260_v25  ;;  %v659_v25 = vld [vmem:[#allocation2 + $0xe40] sm:$0xff]  ;;  %v798_v1 = vld [vmem:[#allocation2 + $0x1298] sm:$0xff] }
 0x137   :  { %5517 = vmatpush1.bf16.msra.mxu1 %v5516_v26  ;;  %5263 = vmatprep.subr.bf16.mxu0 %v5262_v27  ;;  %v653_v26 = vld [vmem:[#allocation2 + $0xe10] sm:$0xff]  ;;  %v5538_v27 = vpack.c.bf16 %v662_v20, %v654_v19  ;;  %v5284_v33 = vpack.c.bf16 %v659_v25, %v651_v24  ;;  %v5302_v20 = vpack.c.bf16 %v740_v14, %v732_v13  ;;  %v806_v2 = vld [vmem:[#allocation2 + $0x12d8] sm:$0xff] }
 0x138   :  { %5519 = vmatprep.subr.bf16.mxu1 %v5518_v31  ;;  %v670_v31 = vld [vmem:[#allocation2 + $0xe98] sm:$0xff]  ;;  %v5540_v34 = vpack.c.bf16 %v661_v28, %v653_v26  ;;  %v741_v25 = vld [vmem:[#allocation2 + $0x10d0] sm:$0xff]  ;;  %v748_v26 = vld [vmem:[#allocation2 + $0x1108] sm:$0xff] }
 0x139   :  { %v750_v28 = vld [vmem:[#allocation2 + $0x1118] sm:$0xff] }
 0x13a   :  { %5265 = vmatpush1.bf16.msra.mxu0 %v5264_v37  ;;  %v675_v37 = vld [vmem:[#allocation2 + $0xec0] sm:$0xff]  ;;  %v814_v13 = vld [vmem:[#allocation2 + $0x1318] sm:$0xff] }
 0x13b   :  { %5521 = vmatpush1.bf16.msra.mxu1 %v5520_v38  ;;  %5267 = vmatprep.subr.bf16.mxu0 %v5266_v39  ;;  %v669_v38 = vld [vmem:[#allocation2 + $0xe90] sm:$0xff]  ;;  %v5542_v39 = vpack.c.bf16 %v678_v32, %v670_v31  ;;  %v5288_v45 = vpack.c.bf16 %v675_v37, %v667_v36  ;;  %v5562_v37 = vpack.c.bf16 %v758_v29, %v750_v28  ;;  %v822_v14 = vld [vmem:[#allocation2 + $0x1358] sm:$0xff] }
 0x13c   :  { %5523 = vmatprep.subr.bf16.mxu1 %v5522_v43  ;;  %v686_v43 = vld [vmem:[#allocation2 + $0xf18] sm:$0xff]  ;;  %v5544_v46 = vpack.c.bf16 %v677_v40, %v669_v38  ;;  %v749_v36 = vld [vmem:[#allocation2 + $0x1110] sm:$0xff]  ;;  %v772_v40 = vld [vmem:[#allocation2 + $0x11c8] sm:$0xff] }
 0x13d   :  { %v757_v38 = vld [vmem:[#allocation2 + $0x1150] sm:$0xff] }
 0x13e   :  { %5269 = vmatpush1.bf16.msra.mxu0 %v5268_v49  ;;  %v691_v49 = vld [vmem:[#allocation2 + $0xf40] sm:$0xff] }
 0x13f   :  { %5525 = vmatpush1.bf16.msra.mxu1 %v5524_v50  ;;  %5271 = vmatprep.subr.bf16.mxu0 %v5270_v51  ;;  %v685_v50 = vld [vmem:[#allocation2 + $0xf10] sm:$0xff]  ;;  %v5546_v51 = vpack.c.bf16 %v694_v44, %v686_v43  ;;  %v5292_v57 = vpack.c.bf16 %v691_v49, %v683_v48  ;;  %v5564_v44 = vpack.c.bf16 %v757_v38, %v749_v36  ;;  %v852_v36 = vld [vmem:[#allocation2 + $0x1448] sm:$0xff]  ;;  %v854_v38 = vld [vmem:[#allocation2 + $0x1458] sm:$0xff] }
 0x140   :  { %5527 = vmatprep.subr.bf16.mxu1 %v5526_v55  ;;  %v702_v55 = vld [vmem:[#allocation2 + $0xf98] sm:$0xff]  ;;  %v5548_v58 = vpack.c.bf16 %v693_v52, %v685_v50  ;;  %v765_v48 = vld [vmem:[#allocation2 + $0x1190] sm:$0xff]  ;;  %v5566_v49 = vpack.c.bf16 %v774_v42, %v766_v41  ;;  %v788_v52 = vld [vmem:[#allocation2 + $0x1248] sm:$0xff] }
 0x141   :  { %v773_v50 = vld [vmem:[#allocation2 + $0x11d0] sm:$0xff]  ;;  %v843_v42 = vld [vmem:[#allocation2 + $0x1400] sm:$0xff] }
 0x142   :  { %5273 = vmatpush1.bf16.msra.mxu0 %v5272_v61  ;;  %v707_v61 = vld [vmem:[#allocation2 + $0xfc0] sm:$0xff] }
 0x143   :  { %5529 = vmatpush1.bf16.msra.mxu1 %v5528_v62  ;;  %5275 = vmatprep.subr.bf16.mxu0 %v5274_v63  ;;  %v701_v62 = vld [vmem:[#allocation2 + $0xf90] sm:$0xff]  ;;  %v5550_v63 = vpack.c.bf16 %v710_v56, %v702_v55  ;;  %v5296_v5 = vpack.c.bf16 %v707_v61, %v699_v60  ;;  %v5568_v56 = vpack.c.bf16 %v773_v50, %v765_v48  ;;  %v868_v48 = vld [vmem:[#allocation2 + $0x14c8] sm:$0xff]  ;;  %v870_v50 = vld [vmem:[#allocation2 + $0x14d8] sm:$0xff] }
 0x144   :  { %5531 = vmatprep.subr.bf16.mxu1 %v5530_v3  ;;  %v718_v3 = vld [vmem:[#allocation2 + $0x1018] sm:$0xff]  ;;  %v5552_v6 = vpack.c.bf16 %v709_v0, %v701_v62  ;;  %v781_v60 = vld [vmem:[#allocation2 + $0x1210] sm:$0xff]  ;;  %v5570_v61 = vpack.c.bf16 %v790_v54, %v782_v53  ;;  %v804_v0 = vld [vmem:[#allocation2 + $0x12c8] sm:$0xff] }
 0x145   :  { %v789_v62 = vld [vmem:[#allocation2 + $0x1250] sm:$0xff]  ;;  %v859_v54 = vld [vmem:[#allocation2 + $0x1480] sm:$0xff] }
 0x146   :  { %5277 = vmatpush1.bf16.msra.mxu0 %v5276_v9  ;;  %v723_v9 = vld [vmem:[#allocation2 + $0x1040] sm:$0xff] }
 0x147   :  { %5533 = vmatpush1.bf16.msra.mxu1 %v5532_v10  ;;  %5279 = vmatprep.subr.bf16.mxu0 %v5278_v11  ;;  %v717_v10 = vld [vmem:[#allocation2 + $0x1010] sm:$0xff]  ;;  %v5554_v11 = vpack.c.bf16 %v726_v4, %v718_v3  ;;  %v5300_v18 = vpack.c.bf16 %v723_v9, %v715_v8  ;;  %v5572_v4 = vpack.c.bf16 %v789_v62, %v781_v60  ;;  %v884_v60 = vld [vmem:[#allocation2 + $0x1548] sm:$0xff]  ;;  %v886_v62 = vld [vmem:[#allocation2 + $0x1558] sm:$0xff] }
 0x148   :  { %5535 = vmatprep.subr.bf16.mxu1 %v5534_v15  ;;  %v734_v15 = vld [vmem:[#allocation2 + $0x1098] sm:$0xff]  ;;  %v5556_v19 = vpack.c.bf16 %v725_v12, %v717_v10  ;;  %v797_v8 = vld [vmem:[#allocation2 + $0x1290] sm:$0xff]  ;;  %v5574_v9 = vpack.c.bf16 %v806_v2, %v798_v1  ;;  %v820_v12 = vld [vmem:[#allocation2 + $0x1348] sm:$0xff] }
 0x149   :  { %v5558_v24 = vpack.c.bf16 %v742_v16, %v734_v15  ;;  %v805_v10 = vld [vmem:[#allocation2 + $0x12d0] sm:$0xff]  ;;  %v875_v2 = vld [vmem:[#allocation2 + $0x1500] sm:$0xff] }
 0x14a   :  { %5281 = vmatpush1.bf16.msra.mxu0 %v5280_v21  ;;  %v731_v21 = vld [vmem:[#allocation2 + $0x1080] sm:$0xff]  ;;  %v5576_v16 = vpack.c.bf16 %v805_v10, %v797_v8  ;;  %v900_v8 = vld [vmem:[#allocation2 + $0x15c8] sm:$0xff]  ;;  %v902_v10 = vld [vmem:[#allocation2 + $0x15d8] sm:$0xff] }
 0x14b   :  { %5537 = vmatpush1.bf16.msra.mxu1 %v5536_v22  ;;  %5283 = vmatprep.subr.bf16.mxu0 %v5282_v23  ;;  %v739_v22 = vld [vmem:[#allocation2 + $0x10c0] sm:$0xff]  ;;  %v733_v23 = vld [vmem:[#allocation2 + $0x1090] sm:$0xff] }
 0x14c   :  { %5539 = vmatprep.subr.bf16.mxu1 %v5538_v27  ;;  %v756_v27 = vld [vmem:[#allocation2 + $0x1148] sm:$0xff]  ;;  %v5304_v31 = vpack.c.bf16 %v739_v22, %v731_v21  ;;  %v5560_v32 = vpack.c.bf16 %v741_v25, %v733_v23  ;;  %v5578_v21 = vpack.c.bf16 %v822_v14, %v814_v13  ;;  %v821_v22 = vld [vmem:[#allocation2 + $0x1350] sm:$0xff]  ;;  %v830_v25 = vld [vmem:[#allocation2 + $0x1398] sm:$0xff] }
 0x14d   :  { %v828_v23 = vld [vmem:[#allocation2 + $0x1388] sm:$0xff]  ;;  %v891_v14 = vld [vmem:[#allocation2 + $0x1580] sm:$0xff] }
 0x14e   :  { %5285 = vmatpush1.bf16.msra.mxu0 %v5284_v33  ;;  %v5306_v33 = vpack.c.bf16 %v756_v27, %v748_v26  ;;  %v838_v26 = vld [vmem:[#allocation2 + $0x13d8] sm:$0xff] }
 0x14f   :  { %5541 = vmatpush1.bf16.msra.mxu1 %v5540_v34  ;;  %5287 = vmatprep.subr.bf16.mxu0 %v5286_v35  ;;  %v747_v34 = vld [vmem:[#allocation2 + $0x1100] sm:$0xff] }
 0x150   :  { %5543 = vmatprep.subr.bf16.mxu1 %v5542_v39  ;;  %v755_v35 = vld [vmem:[#allocation2 + $0x1140] sm:$0xff]  ;;  %v764_v39 = vld [vmem:[#allocation2 + $0x1188] sm:$0xff] }
 0x151   :  { %v5308_v43 = vpack.c.bf16 %v755_v35, %v747_v34  ;;  %v837_v34 = vld [vmem:[#allocation2 + $0x13d0] sm:$0xff]  ;;  %v844_v35 = vld [vmem:[#allocation2 + $0x1408] sm:$0xff] }
 0x152   :  { %5289 = vmatpush1.bf16.msra.mxu0 %v5288_v45  ;;  %v5310_v45 = vpack.c.bf16 %v772_v40, %v764_v39  ;;  %v5330_v41 = vpack.c.bf16 %v852_v36, %v844_v35 }
 0x153   :  { %5545 = vmatpush1.bf16.msra.mxu1 %v5544_v46  ;;  %5291 = vmatprep.subr.bf16.mxu0 %v5290_v47  ;;  %v763_v46 = vld [vmem:[#allocation2 + $0x1180] sm:$0xff] }
 0x154   :  { %5547 = vmatprep.subr.bf16.mxu1 %v5546_v51  ;;  %v771_v47 = vld [vmem:[#allocation2 + $0x11c0] sm:$0xff]  ;;  %v780_v51 = vld [vmem:[#allocation2 + $0x1208] sm:$0xff] }
 0x155   :  { %v5312_v55 = vpack.c.bf16 %v771_v47, %v763_v46  ;;  %v853_v46 = vld [vmem:[#allocation2 + $0x1450] sm:$0xff]  ;;  %v860_v47 = vld [vmem:[#allocation2 + $0x1488] sm:$0xff] }
 0x156   :  { %5293 = vmatpush1.bf16.msra.mxu0 %v5292_v57  ;;  %v5314_v57 = vpack.c.bf16 %v788_v52, %v780_v51  ;;  %v5334_v53 = vpack.c.bf16 %v868_v48, %v860_v47 }
 0x157   :  { %5549 = vmatpush1.bf16.msra.mxu1 %v5548_v58  ;;  %5295 = vmatprep.subr.bf16.mxu0 %v5294_v59  ;;  %v779_v58 = vld [vmem:[#allocation2 + $0x1200] sm:$0xff] }
 0x158   :  { %5551 = vmatprep.subr.bf16.mxu1 %v5550_v63  ;;  %v787_v59 = vld [vmem:[#allocation2 + $0x1240] sm:$0xff]  ;;  %v796_v63 = vld [vmem:[#allocation2 + $0x1288] sm:$0xff] }
 0x159   :  { %v5316_v3 = vpack.c.bf16 %v787_v59, %v779_v58  ;;  %v869_v58 = vld [vmem:[#allocation2 + $0x14d0] sm:$0xff]  ;;  %v876_v59 = vld [vmem:[#allocation2 + $0x1508] sm:$0xff] }
 0x15a   :  { %5297 = vmatpush1.bf16.msra.mxu0 %v5296_v5  ;;  %v5318_v5 = vpack.c.bf16 %v804_v0, %v796_v63  ;;  %v5338_v1 = vpack.c.bf16 %v884_v60, %v876_v59 }
 0x15b   :  { %5553 = vmatpush1.bf16.msra.mxu1 %v5552_v6  ;;  %5299 = vmatprep.subr.bf16.mxu0 %v5298_v7  ;;  %v795_v6 = vld [vmem:[#allocation2 + $0x1280] sm:$0xff] }
 0x15c   :  { %5555 = vmatprep.subr.bf16.mxu1 %v5554_v11  ;;  %v803_v7 = vld [vmem:[#allocation2 + $0x12c0] sm:$0xff]  ;;  %v812_v11 = vld [vmem:[#allocation2 + $0x1308] sm:$0xff] }
 0x15d   :  { %1405 = vmatmul.mubr.f32.vlgmr.msra.gmra.mrb[0].mxu0 %v197_v17  ;;  %v5320_v15 = vpack.c.bf16 %v803_v7, %v795_v6  ;;  %v885_v6 = vld [vmem:[#allocation2 + $0x1550] sm:$0xff]  ;;  %v892_v7 = vld [vmem:[#allocation2 + $0x1588] sm:$0xff] }
 0x15e   :  { %5301 = vmatpush1.bf16.msra.mxu0 %v5300_v18  ;;  %1689 = vmatmul.mubr.f32.vlgmr.msra.gmra.mrb[0].mxu1 %v197_v17  ;;  %v5322_v17 = vpack.c.bf16 %v820_v12, %v812_v11  ;;  %v811_v18 = vld [vmem:[#allocation2 + $0x1300] sm:$0xff]  ;;  %v5342_v13 = vpack.c.bf16 %v900_v8, %v892_v7 }
 0x15f   :  { %5557 = vmatpush1.bf16.msra.mxu1 %v5556_v19  ;;  %5303 = vmatprep.subr.bf16.mxu0 %v5302_v20  ;;  %v819_v19 = vld [vmem:[#allocation2 + $0x1340] sm:$0xff]  ;;  %v813_v20 = vld [vmem:[#allocation2 + $0x1310] sm:$0xff] }
 0x160   :  { %5559 = vmatprep.subr.bf16.mxu1 %v5558_v24  ;;  %1475 = vmatprep.mubr.f32.mxu0 %v200_v30  ;;  %v836_v24 = vld [vmem:[#allocation2 + $0x13c8] sm:$0xff]  ;;  %v5324_v27 = vpack.c.bf16 %v819_v19, %v811_v18  ;;  %v5580_v28 = vpack.c.bf16 %v821_v22, %v813_v20  ;;  %v901_v18 = vld [vmem:[#allocation2 + $0x15d0] sm:$0xff]  ;;  %v918_v22 = vld [vmem:[#allocation2 + $0x1658] sm:$0xff] }
 0x161   :  { %1759 = vmatprep.mubr.f32.mxu1 %v200_v30  ;;  %v5326_v29 = vpack.c.bf16 %v836_v24, %v828_v23  ;;  %v827_v30 = vld [vmem:[#allocation2 + $0x1380] sm:$0xff]  ;;  %v908_v19 = vld [vmem:[#allocation2 + $0x1608] sm:$0xff] }
 0x162   :  { %5305 = vmatpush1.bf16.msra.mxu0 %v5304_v31  ;;  %v835_v31 = vld [vmem:[#allocation2 + $0x13c0] sm:$0xff]  ;;  %v916_v20 = vld [vmem:[#allocation2 + $0x1648] sm:$0xff] }
 0x163   :  { %5561 = vmatpush1.bf16.msra.mxu1 %v5560_v32  ;;  %5307 = vmatprep.subr.bf16.mxu0 %v5306_v33  ;;  %v829_v32 = vld [vmem:[#allocation2 + $0x1390] sm:$0xff]  ;;  %v5582_v33 = vpack.c.bf16 %v838_v26, %v830_v25  ;;  %v5328_v39 = vpack.c.bf16 %v835_v31, %v827_v30  ;;  %v5346_v25 = vpack.c.bf16 %v916_v20, %v908_v19  ;;  %v907_v26 = vld [vmem:[#allocation2 + $0x1600] sm:$0xff]  ;;  %v924_v31 = vld [vmem:[#allocation2 + $0x1688] sm:$0xff] }
 0x164   :  { %5563 = vmatprep.subr.bf16.mxu1 %v5562_v37  ;;  %v846_v37 = vld [vmem:[#allocation2 + $0x1418] sm:$0xff]  ;;  %v5584_v40 = vpack.c.bf16 %v837_v34, %v829_v32  ;;  %v917_v30 = vld [vmem:[#allocation2 + $0x1650] sm:$0xff]  ;;  %v932_v32 = vld [vmem:[#allocation2 + $0x16c8] sm:$0xff] }
 0x165   :  { %v934_v34 = vld [vmem:[#allocation2 + $0x16d8] sm:$0xff]  ;;  %v199_v19 = vld [vmem:[%s8092_s0 + $0x20] sm:$0xff] }
 0x166   :  { %5309 = vmatpush1.bf16.msra.mxu0 %v5308_v43  ;;  %v851_v43 = vld [vmem:[#allocation2 + $0x1440] sm:$0xff] }
 0x167   :  { %5565 = vmatpush1.bf16.msra.mxu1 %v5564_v44  ;;  %5311 = vmatprep.subr.bf16.mxu0 %v5310_v45  ;;  %v845_v44 = vld [vmem:[#allocation2 + $0x1410] sm:$0xff]  ;;  %v5586_v45 = vpack.c.bf16 %v854_v38, %v846_v37  ;;  %v5332_v51 = vpack.c.bf16 %v851_v43, %v843_v42  ;;  %v5350_v37 = vpack.c.bf16 %v932_v32, %v924_v31  ;;  %v923_v38 = vld [vmem:[#allocation2 + $0x1680] sm:$0xff]  ;;  %v940_v43 = vld [vmem:[#allocation2 + $0x1708] sm:$0xff] }
 0x168   :  { %5567 = vmatprep.subr.bf16.mxu1 %v5566_v49  ;;  %v862_v49 = vld [vmem:[#allocation2 + $0x1498] sm:$0xff]  ;;  %v5588_v52 = vpack.c.bf16 %v853_v46, %v845_v44  ;;  %v933_v42 = vld [vmem:[#allocation2 + $0x16d0] sm:$0xff]  ;;  %v948_v44 = vld [vmem:[#allocation2 + $0x1748] sm:$0xff] }
 0x169   :  { %v950_v46 = vld [vmem:[#allocation2 + $0x1758] sm:$0xff] }
 0x16a   :  { %5313 = vmatpush1.bf16.msra.mxu0 %v5312_v55  ;;  %v867_v55 = vld [vmem:[#allocation2 + $0x14c0] sm:$0xff]  ;;  %v1014_v31 = vld [vmem:[#allocation2 + $0x1958] sm:$0xff] }
 0x16b   :  { %5569 = vmatpush1.bf16.msra.mxu1 %v5568_v56  ;;  %5315 = vmatprep.subr.bf16.mxu0 %v5314_v57  ;;  %v861_v56 = vld [vmem:[#allocation2 + $0x1490] sm:$0xff]  ;;  %v5590_v57 = vpack.c.bf16 %v870_v50, %v862_v49  ;;  %v5336_v63 = vpack.c.bf16 %v867_v55, %v859_v54  ;;  %v5354_v49 = vpack.c.bf16 %v948_v44, %v940_v43  ;;  %v939_v50 = vld [vmem:[#allocation2 + $0x1700] sm:$0xff]  ;;  %v956_v55 = vld [vmem:[#allocation2 + $0x1788] sm:$0xff] }
 0x16c   :  { %5571 = vmatprep.subr.bf16.mxu1 %v5570_v61  ;;  %v878_v61 = vld [vmem:[#allocation2 + $0x1518] sm:$0xff]  ;;  %v5592_v0 = vpack.c.bf16 %v869_v58, %v861_v56  ;;  %v949_v54 = vld [vmem:[#allocation2 + $0x1750] sm:$0xff]  ;;  %v964_v56 = vld [vmem:[#allocation2 + $0x17c8] sm:$0xff] }
 0x16d   :  { %v966_v58 = vld [vmem:[#allocation2 + $0x17d8] sm:$0xff] }
 0x16e   :  { %5317 = vmatpush1.bf16.msra.mxu0 %v5316_v3  ;;  %v883_v3 = vld [vmem:[#allocation2 + $0x1540] sm:$0xff]  ;;  %v202_v32 = vld [vmem:[%s8092_s0 + $0x38] sm:$0xff] }
 0x16f   :  { %5573 = vmatpush1.bf16.msra.mxu1 %v5572_v4  ;;  %5319 = vmatprep.subr.bf16.mxu0 %v5318_v5  ;;  %v877_v4 = vld [vmem:[#allocation2 + $0x1510] sm:$0xff]  ;;  %v5594_v5 = vpack.c.bf16 %v886_v62, %v878_v61  ;;  %v5340_v11 = vpack.c.bf16 %v883_v3, %v875_v2  ;;  %v5358_v61 = vpack.c.bf16 %v964_v56, %v956_v55  ;;  %v955_v62 = vld [vmem:[#allocation2 + $0x1780] sm:$0xff]  ;;  %v972_v3 = vld [vmem:[#allocation2 + $0x1808] sm:$0xff] }
 0x170   :  { %5575 = vmatprep.subr.bf16.mxu1 %v5574_v9  ;;  %v894_v9 = vld [vmem:[#allocation2 + $0x1598] sm:$0xff]  ;;  %v5596_v12 = vpack.c.bf16 %v885_v6, %v877_v4  ;;  %v965_v2 = vld [vmem:[#allocation2 + $0x17d0] sm:$0xff]  ;;  %v980_v4 = vld [vmem:[#allocation2 + $0x1848] sm:$0xff] }
 0x171   :  { %v982_v6 = vld [vmem:[#allocation2 + $0x1858] sm:$0xff] }
 0x172   :  { %5321 = vmatpush1.bf16.msra.mxu0 %v5320_v15  ;;  %v899_v15 = vld [vmem:[#allocation2 + $0x15c0] sm:$0xff]  ;;  %v1022_v43 = vld [vmem:[#allocation2 + $0x1998] sm:$0xff] }
 0x173   :  { %5577 = vmatpush1.bf16.msra.mxu1 %v5576_v16  ;;  %5323 = vmatprep.subr.bf16.mxu0 %v5322_v17  ;;  %v893_v16 = vld [vmem:[#allocation2 + $0x1590] sm:$0xff]  ;;  %v5598_v17 = vpack.c.bf16 %v902_v10, %v894_v9  ;;  %v5344_v23 = vpack.c.bf16 %v899_v15, %v891_v14  ;;  %v5362_v9 = vpack.c.bf16 %v980_v4, %v972_v3  ;;  %v971_v10 = vld [vmem:[#allocation2 + $0x1800] sm:$0xff]  ;;  %v988_v15 = vld [vmem:[#allocation2 + $0x1888] sm:$0xff] }
 0x174   :  { %5579 = vmatprep.subr.bf16.mxu1 %v5578_v21  ;;  %v910_v21 = vld [vmem:[#allocation2 + $0x1618] sm:$0xff]  ;;  %v5600_v24 = vpack.c.bf16 %v901_v18, %v893_v16  ;;  %v981_v14 = vld [vmem:[#allocation2 + $0x1850] sm:$0xff]  ;;  %v996_v16 = vld [vmem:[#allocation2 + $0x18c8] sm:$0xff] }
 0x175   :  { %v998_v18 = vld [vmem:[#allocation2 + $0x18d8] sm:$0xff] }
 0x176   :  { %5325 = vmatpush1.bf16.msra.mxu0 %v5324_v27  ;;  %v915_v27 = vld [vmem:[#allocation2 + $0x1640] sm:$0xff]  ;;  %v1030_v44 = vld [vmem:[#allocation2 + $0x19d8] sm:$0xff] }
 0x177   :  { %5581 = vmatpush1.bf16.msra.mxu1 %v5580_v28  ;;  %5327 = vmatprep.subr.bf16.mxu0 %v5326_v29  ;;  %v909_v28 = vld [vmem:[#allocation2 + $0x1610] sm:$0xff]  ;;  %v5602_v29 = vpack.c.bf16 %v918_v22, %v910_v21  ;;  %v5348_v35 = vpack.c.bf16 %v915_v27, %v907_v26  ;;  %v5366_v22 = vpack.c.bf16 %v996_v16, %v988_v15  ;;  %v1038_v55 = vld [vmem:[#allocation2 + $0x1a18] sm:$0xff] }
 0x178   :  { %5583 = vmatprep.subr.bf16.mxu1 %v5582_v33  ;;  %v926_v33 = vld [vmem:[#allocation2 + $0x1698] sm:$0xff]  ;;  %v5604_v36 = vpack.c.bf16 %v917_v30, %v909_v28  ;;  %v997_v27 = vld [vmem:[#allocation2 + $0x18d0] sm:$0xff]  ;;  %v1004_v28 = vld [vmem:[#allocation2 + $0x1908] sm:$0xff] }
 0x179   :  { %v1006_v30 = vld [vmem:[#allocation2 + $0x1918] sm:$0xff] }
 0x17a   :  { %5329 = vmatpush1.bf16.msra.mxu0 %v5328_v39  ;;  %v931_v39 = vld [vmem:[#allocation2 + $0x16c0] sm:$0xff]  ;;  %v1046_v56 = vld [vmem:[#allocation2 + $0x1a58] sm:$0xff] }
 0x17b   :  { %5585 = vmatpush1.bf16.msra.mxu1 %v5584_v40  ;;  %5331 = vmatprep.subr.bf16.mxu0 %v5330_v41  ;;  %v925_v40 = vld [vmem:[#allocation2 + $0x1690] sm:$0xff]  ;;  %v5606_v41 = vpack.c.bf16 %v934_v34, %v926_v33  ;;  %v5352_v47 = vpack.c.bf16 %v931_v39, %v923_v38  ;;  %v5626_v39 = vpack.c.bf16 %v1014_v31, %v1006_v30  ;;  %v1054_v3 = vld [vmem:[#allocation2 + $0x1a98] sm:$0xff] }
 0x17c   :  { %5587 = vmatprep.subr.bf16.mxu1 %v5586_v45  ;;  %v942_v45 = vld [vmem:[#allocation2 + $0x1718] sm:$0xff]  ;;  %v5608_v48 = vpack.c.bf16 %v933_v42, %v925_v40  ;;  %v1005_v38 = vld [vmem:[#allocation2 + $0x1910] sm:$0xff]  ;;  %v1028_v42 = vld [vmem:[#allocation2 + $0x19c8] sm:$0xff] }
 0x17d   :  { %v1013_v40 = vld [vmem:[#allocation2 + $0x1950] sm:$0xff]  ;;  %v1062_v4 = vld [vmem:[#allocation2 + $0x1ad8] sm:$0xff] }
 0x17e   :  { %5333 = vmatpush1.bf16.msra.mxu0 %v5332_v51  ;;  %v947_v51 = vld [vmem:[#allocation2 + $0x1740] sm:$0xff]  ;;  %v1070_v15 = vld [vmem:[#allocation2 + $0x1b18] sm:$0xff] }
 0x17f   :  { %5589 = vmatpush1.bf16.msra.mxu1 %v5588_v52  ;;  %5335 = vmatprep.subr.bf16.mxu0 %v5334_v53  ;;  %v941_v52 = vld [vmem:[#allocation2 + $0x1710] sm:$0xff]  ;;  %v5610_v53 = vpack.c.bf16 %v950_v46, %v942_v45  ;;  %v5356_v59 = vpack.c.bf16 %v947_v51, %v939_v50  ;;  %v5628_v46 = vpack.c.bf16 %v1013_v40, %v1005_v38  ;;  %v1078_v16 = vld [vmem:[#allocation2 + $0x1b58] sm:$0xff]  ;;  %v1108_v38 = vld [vmem:[#allocation2 + $0x1c48] sm:$0xff] }
 0x180   :  { %5591 = vmatprep.subr.bf16.mxu1 %v5590_v57  ;;  %v958_v57 = vld [vmem:[#allocation2 + $0x1798] sm:$0xff]  ;;  %v5612_v60 = vpack.c.bf16 %v949_v54, %v941_v52  ;;  %v1021_v50 = vld [vmem:[#allocation2 + $0x1990] sm:$0xff]  ;;  %v5630_v51 = vpack.c.bf16 %v1030_v44, %v1022_v43  ;;  %v1044_v54 = vld [vmem:[#allocation2 + $0x1a48] sm:$0xff] }
 0x181   :  { %v1029_v52 = vld [vmem:[#allocation2 + $0x19d0] sm:$0xff]  ;;  %v1110_v40 = vld [vmem:[#allocation2 + $0x1c58] sm:$0xff]  ;;  %v1099_v44 = vld [vmem:[#allocation2 + $0x1c00] sm:$0xff] }
 0x182   :  { %5337 = vmatpush1.bf16.msra.mxu0 %v5336_v63  ;;  %v963_v63 = vld [vmem:[#allocation2 + $0x17c0] sm:$0xff] }
 0x183   :  { %5593 = vmatpush1.bf16.msra.mxu1 %v5592_v0  ;;  %5339 = vmatprep.subr.bf16.mxu0 %v5338_v1  ;;  %v957_v0 = vld [vmem:[#allocation2 + $0x1790] sm:$0xff]  ;;  %v5614_v1 = vpack.c.bf16 %v966_v58, %v958_v57  ;;  %v5360_v7 = vpack.c.bf16 %v963_v63, %v955_v62  ;;  %v5632_v58 = vpack.c.bf16 %v1029_v52, %v1021_v50  ;;  %v1124_v50 = vld [vmem:[#allocation2 + $0x1cc8] sm:$0xff]  ;;  %v1126_v52 = vld [vmem:[#allocation2 + $0x1cd8] sm:$0xff] }
 0x184   :  { %5595 = vmatprep.subr.bf16.mxu1 %v5594_v5  ;;  %v974_v5 = vld [vmem:[#allocation2 + $0x1818] sm:$0xff]  ;;  %v5616_v8 = vpack.c.bf16 %v965_v2, %v957_v0  ;;  %v1037_v62 = vld [vmem:[#allocation2 + $0x1a10] sm:$0xff]  ;;  %v5634_v63 = vpack.c.bf16 %v1046_v56, %v1038_v55  ;;  %v1060_v2 = vld [vmem:[#allocation2 + $0x1ac8] sm:$0xff] }
 0x185   :  { %v1045_v0 = vld [vmem:[#allocation2 + $0x1a50] sm:$0xff]  ;;  %v1115_v56 = vld [vmem:[#allocation2 + $0x1c80] sm:$0xff] }
 0x186   :  { %5341 = vmatpush1.bf16.msra.mxu0 %v5340_v11  ;;  %v979_v11 = vld [vmem:[#allocation2 + $0x1840] sm:$0xff] }
 0x187   :  { %5597 = vmatpush1.bf16.msra.mxu1 %v5596_v12  ;;  %5343 = vmatprep.subr.bf16.mxu0 %v5342_v13  ;;  %v973_v12 = vld [vmem:[#allocation2 + $0x1810] sm:$0xff]  ;;  %v5618_v13 = vpack.c.bf16 %v982_v6, %v974_v5  ;;  %v5364_v20 = vpack.c.bf16 %v979_v11, %v971_v10  ;;  %v5636_v6 = vpack.c.bf16 %v1045_v0, %v1037_v62  ;;  %v1140_v62 = vld [vmem:[#allocation2 + $0x1d48] sm:$0xff]  ;;  %v1142_v0 = vld [vmem:[#allocation2 + $0x1d58] sm:$0xff] }
 0x188   :  { %5599 = vmatprep.subr.bf16.mxu1 %v5598_v17  ;;  %v990_v17 = vld [vmem:[#allocation2 + $0x1898] sm:$0xff]  ;;  %v5620_v21 = vpack.c.bf16 %v981_v14, %v973_v12  ;;  %v1053_v10 = vld [vmem:[#allocation2 + $0x1a90] sm:$0xff]  ;;  %v5638_v11 = vpack.c.bf16 %v1062_v4, %v1054_v3  ;;  %v1076_v14 = vld [vmem:[#allocation2 + $0x1b48] sm:$0xff] }
 0x189   :  { %v5622_v26 = vpack.c.bf16 %v998_v18, %v990_v17  ;;  %v1061_v12 = vld [vmem:[#allocation2 + $0x1ad0] sm:$0xff]  ;;  %v1131_v4 = vld [vmem:[#allocation2 + $0x1d00] sm:$0xff] }
 0x18a   :  { %5345 = vmatpush1.bf16.msra.mxu0 %v5344_v23  ;;  %v987_v23 = vld [vmem:[#allocation2 + $0x1880] sm:$0xff]  ;;  %v5640_v18 = vpack.c.bf16 %v1061_v12, %v1053_v10  ;;  %v1156_v10 = vld [vmem:[#allocation2 + $0x1dc8] sm:$0xff]  ;;  %v1158_v12 = vld [vmem:[#allocation2 + $0x1dd8] sm:$0xff] }
 0x18b   :  { %5601 = vmatpush1.bf16.msra.mxu1 %v5600_v24  ;;  %5347 = vmatprep.subr.bf16.mxu0 %v5346_v25  ;;  %v995_v24 = vld [vmem:[#allocation2 + $0x18c0] sm:$0xff]  ;;  %v989_v25 = vld [vmem:[#allocation2 + $0x1890] sm:$0xff] }
 0x18c   :  { %5603 = vmatprep.subr.bf16.mxu1 %v5602_v29  ;;  %v1012_v29 = vld [vmem:[#allocation2 + $0x1948] sm:$0xff]  ;;  %v5368_v33 = vpack.c.bf16 %v995_v24, %v987_v23  ;;  %v5624_v34 = vpack.c.bf16 %v997_v27, %v989_v25  ;;  %v5642_v23 = vpack.c.bf16 %v1078_v16, %v1070_v15  ;;  %v1077_v24 = vld [vmem:[#allocation2 + $0x1b50] sm:$0xff]  ;;  %v1086_v27 = vld [vmem:[#allocation2 + $0x1b98] sm:$0xff] }
 0x18d   :  { %v1084_v25 = vld [vmem:[#allocation2 + $0x1b88] sm:$0xff]  ;;  %v1147_v16 = vld [vmem:[#allocation2 + $0x1d80] sm:$0xff] }
 0x18e   :  { %5349 = vmatpush1.bf16.msra.mxu0 %v5348_v35  ;;  %v5370_v35 = vpack.c.bf16 %v1012_v29, %v1004_v28  ;;  %v1094_v28 = vld [vmem:[#allocation2 + $0x1bd8] sm:$0xff] }
 0x18f   :  { %5605 = vmatpush1.bf16.msra.mxu1 %v5604_v36  ;;  %5351 = vmatprep.subr.bf16.mxu0 %v5350_v37  ;;  %v1003_v36 = vld [vmem:[#allocation2 + $0x1900] sm:$0xff] }
 0x190   :  { %5607 = vmatprep.subr.bf16.mxu1 %v5606_v41  ;;  %v1011_v37 = vld [vmem:[#allocation2 + $0x1940] sm:$0xff]  ;;  %v1020_v41 = vld [vmem:[#allocation2 + $0x1988] sm:$0xff] }
 0x191   :  { %v5372_v45 = vpack.c.bf16 %v1011_v37, %v1003_v36  ;;  %v1093_v36 = vld [vmem:[#allocation2 + $0x1bd0] sm:$0xff]  ;;  %v1100_v37 = vld [vmem:[#allocation2 + $0x1c08] sm:$0xff] }
 0x192   :  { %5353 = vmatpush1.bf16.msra.mxu0 %v5352_v47  ;;  %v5374_v47 = vpack.c.bf16 %v1028_v42, %v1020_v41  ;;  %v5394_v43 = vpack.c.bf16 %v1108_v38, %v1100_v37 }
 0x193   :  { %5609 = vmatpush1.bf16.msra.mxu1 %v5608_v48  ;;  %5355 = vmatprep.subr.bf16.mxu0 %v5354_v49  ;;  %v1019_v48 = vld [vmem:[#allocation2 + $0x1980] sm:$0xff] }
 0x194   :  { %5611 = vmatprep.subr.bf16.mxu1 %v5610_v53  ;;  %v1027_v49 = vld [vmem:[#allocation2 + $0x19c0] sm:$0xff]  ;;  %v1036_v53 = vld [vmem:[#allocation2 + $0x1a08] sm:$0xff] }
 0x195   :  { %v5376_v57 = vpack.c.bf16 %v1027_v49, %v1019_v48  ;;  %v1109_v48 = vld [vmem:[#allocation2 + $0x1c50] sm:$0xff]  ;;  %v1116_v49 = vld [vmem:[#allocation2 + $0x1c88] sm:$0xff] }
 0x196   :  { %5357 = vmatpush1.bf16.msra.mxu0 %v5356_v59  ;;  %v5378_v59 = vpack.c.bf16 %v1044_v54, %v1036_v53  ;;  %v5398_v55 = vpack.c.bf16 %v1124_v50, %v1116_v49 }
 0x197   :  { %5613 = vmatpush1.bf16.msra.mxu1 %v5612_v60  ;;  %5359 = vmatprep.subr.bf16.mxu0 %v5358_v61  ;;  %v1035_v60 = vld [vmem:[#allocation2 + $0x1a00] sm:$0xff] }
 0x198   :  { %5615 = vmatprep.subr.bf16.mxu1 %v5614_v1  ;;  %v1043_v61 = vld [vmem:[#allocation2 + $0x1a40] sm:$0xff]  ;;  %v1052_v1 = vld [vmem:[#allocation2 + $0x1a88] sm:$0xff] }
 0x199   :  { %v5380_v5 = vpack.c.bf16 %v1043_v61, %v1035_v60  ;;  %v1125_v60 = vld [vmem:[#allocation2 + $0x1cd0] sm:$0xff]  ;;  %v1132_v61 = vld [vmem:[#allocation2 + $0x1d08] sm:$0xff] }
 0x19a   :  { %5361 = vmatpush1.bf16.msra.mxu0 %v5360_v7  ;;  %v5382_v7 = vpack.c.bf16 %v1060_v2, %v1052_v1  ;;  %v5402_v3 = vpack.c.bf16 %v1140_v62, %v1132_v61 }
 0x19b   :  { %5617 = vmatpush1.bf16.msra.mxu1 %v5616_v8  ;;  %5363 = vmatprep.subr.bf16.mxu0 %v5362_v9  ;;  %v1051_v8 = vld [vmem:[#allocation2 + $0x1a80] sm:$0xff] }
 0x19c   :  { %5619 = vmatprep.subr.bf16.mxu1 %v5618_v13  ;;  %v1059_v9 = vld [vmem:[#allocation2 + $0x1ac0] sm:$0xff]  ;;  %v1068_v13 = vld [vmem:[#allocation2 + $0x1b08] sm:$0xff] }
 0x19d   :  { %1476 = vmatmul.mubr.f32.vlgmr.msra.gmra.mrb[0].mxu0 %v199_v19  ;;  %v5384_v17 = vpack.c.bf16 %v1059_v9, %v1051_v8  ;;  %v1141_v8 = vld [vmem:[#allocation2 + $0x1d50] sm:$0xff]  ;;  %v1148_v9 = vld [vmem:[#allocation2 + $0x1d88] sm:$0xff] }
 0x19e   :  { %5365 = vmatpush1.bf16.msra.mxu0 %v5364_v20  ;;  %1760 = vmatmul.mubr.f32.vlgmr.msra.gmra.mrb[0].mxu1 %v199_v19  ;;  %v5386_v19 = vpack.c.bf16 %v1076_v14, %v1068_v13  ;;  %v1067_v20 = vld [vmem:[#allocation2 + $0x1b00] sm:$0xff]  ;;  %v5406_v15 = vpack.c.bf16 %v1156_v10, %v1148_v9 }
 0x19f   :  { %5621 = vmatpush1.bf16.msra.mxu1 %v5620_v21  ;;  %5367 = vmatprep.subr.bf16.mxu0 %v5366_v22  ;;  %v1075_v21 = vld [vmem:[#allocation2 + $0x1b40] sm:$0xff]  ;;  %v1069_v22 = vld [vmem:[#allocation2 + $0x1b10] sm:$0xff] }
 0x1a0   :  { %5623 = vmatprep.subr.bf16.mxu1 %v5622_v26  ;;  %1546 = vmatprep.mubr.f32.mxu0 %v202_v32  ;;  %v1092_v26 = vld [vmem:[#allocation2 + $0x1bc8] sm:$0xff]  ;;  %v5388_v29 = vpack.c.bf16 %v1075_v21, %v1067_v20  ;;  %v5644_v30 = vpack.c.bf16 %v1077_v24, %v1069_v22  ;;  %v1157_v20 = vld [vmem:[#allocation2 + $0x1dd0] sm:$0xff]  ;;  %v1174_v24 = vld [vmem:[#allocation2 + $0x1e58] sm:$0xff] }
 0x1a1   :  { %1830 = vmatprep.mubr.f32.mxu1 %v202_v32  ;;  %v5390_v31 = vpack.c.bf16 %v1092_v26, %v1084_v25  ;;  %v1083_v32 = vld [vmem:[#allocation2 + $0x1b80] sm:$0xff]  ;;  %v1164_v21 = vld [vmem:[#allocation2 + $0x1e08] sm:$0xff] }
 0x1a2   :  { %5369 = vmatpush1.bf16.msra.mxu0 %v5368_v33  ;;  %v1091_v33 = vld [vmem:[#allocation2 + $0x1bc0] sm:$0xff]  ;;  %v1172_v22 = vld [vmem:[#allocation2 + $0x1e48] sm:$0xff] }
 0x1a3   :  { %5625 = vmatpush1.bf16.msra.mxu1 %v5624_v34  ;;  %5371 = vmatprep.subr.bf16.mxu0 %v5370_v35  ;;  %v1085_v34 = vld [vmem:[#allocation2 + $0x1b90] sm:$0xff]  ;;  %v5646_v35 = vpack.c.bf16 %v1094_v28, %v1086_v27  ;;  %v5392_v41 = vpack.c.bf16 %v1091_v33, %v1083_v32  ;;  %v5410_v27 = vpack.c.bf16 %v1172_v22, %v1164_v21  ;;  %v1163_v28 = vld [vmem:[#allocation2 + $0x1e00] sm:$0xff]  ;;  %v1180_v33 = vld [vmem:[#allocation2 + $0x1e88] sm:$0xff] }
 0x1a4   :  { %5627 = vmatprep.subr.bf16.mxu1 %v5626_v39  ;;  %v1102_v39 = vld [vmem:[#allocation2 + $0x1c18] sm:$0xff]  ;;  %v5648_v42 = vpack.c.bf16 %v1093_v36, %v1085_v34  ;;  %v1173_v32 = vld [vmem:[#allocation2 + $0x1e50] sm:$0xff]  ;;  %v1188_v34 = vld [vmem:[#allocation2 + $0x1ec8] sm:$0xff] }
 0x1a5   :  { %v1190_v36 = vld [vmem:[#allocation2 + $0x1ed8] sm:$0xff]  ;;  %v201_v21 = vld [vmem:[%s8092_s0 + $0x30] sm:$0xff] }
 0x1a6   :  { %5373 = vmatpush1.bf16.msra.mxu0 %v5372_v45  ;;  %v1107_v45 = vld [vmem:[#allocation2 + $0x1c40] sm:$0xff] }
 0x1a7   :  { %5629 = vmatpush1.bf16.msra.mxu1 %v5628_v46  ;;  %5375 = vmatprep.subr.bf16.mxu0 %v5374_v47  ;;  %v1101_v46 = vld [vmem:[#allocation2 + $0x1c10] sm:$0xff]  ;;  %v5650_v47 = vpack.c.bf16 %v1110_v40, %v1102_v39  ;;  %v5396_v53 = vpack.c.bf16 %v1107_v45, %v1099_v44  ;;  %v5414_v39 = vpack.c.bf16 %v1188_v34, %v1180_v33  ;;  %v1179_v40 = vld [vmem:[#allocation2 + $0x1e80] sm:$0xff]  ;;  %v1196_v45 = vld [vmem:[#allocation2 + $0x1f08] sm:$0xff] }
 0x1a8   :  { %5631 = vmatprep.subr.bf16.mxu1 %v5630_v51  ;;  %v1118_v51 = vld [vmem:[#allocation2 + $0x1c98] sm:$0xff]  ;;  %v5652_v54 = vpack.c.bf16 %v1109_v48, %v1101_v46  ;;  %v1189_v44 = vld [vmem:[#allocation2 + $0x1ed0] sm:$0xff]  ;;  %v1204_v46 = vld [vmem:[#allocation2 + $0x1f48] sm:$0xff] }
 0x1a9   :  { %v1206_v48 = vld [vmem:[#allocation2 + $0x1f58] sm:$0xff] }
 0x1aa   :  { %5377 = vmatpush1.bf16.msra.mxu0 %v5376_v57  ;;  %v1123_v57 = vld [vmem:[#allocation2 + $0x1cc0] sm:$0xff]  ;;  %v250_v33 = vld [vmem:[#allocation2 + $0x178] sm:$0xff] }
 0x1ab   :  { %5633 = vmatpush1.bf16.msra.mxu1 %v5632_v58  ;;  %5379 = vmatprep.subr.bf16.mxu0 %v5378_v59  ;;  %v1117_v58 = vld [vmem:[#allocation2 + $0x1c90] sm:$0xff]  ;;  %v5654_v59 = vpack.c.bf16 %v1126_v52, %v1118_v51  ;;  %v5400_v1 = vpack.c.bf16 %v1123_v57, %v1115_v56  ;;  %v5418_v51 = vpack.c.bf16 %v1204_v46, %v1196_v45  ;;  %v1195_v52 = vld [vmem:[#allocation2 + $0x1f00] sm:$0xff]  ;;  %v1212_v57 = vld [vmem:[#allocation2 + $0x1f88] sm:$0xff] }
 0x1ac   :  { %5635 = vmatprep.subr.bf16.mxu1 %v5634_v63  ;;  %v1134_v63 = vld [vmem:[#allocation2 + $0x1d18] sm:$0xff]  ;;  %v5656_v2 = vpack.c.bf16 %v1125_v60, %v1117_v58  ;;  %v1205_v56 = vld [vmem:[#allocation2 + $0x1f50] sm:$0xff]  ;;  %v1220_v58 = vld [vmem:[#allocation2 + $0x1fc8] sm:$0xff] }
 0x1ad   :  { %v1222_v60 = vld [vmem:[#allocation2 + $0x1fd8] sm:$0xff] }
 0x1ae   :  { %5381 = vmatpush1.bf16.msra.mxu0 %v5380_v5  ;;  %v1139_v5 = vld [vmem:[#allocation2 + $0x1d40] sm:$0xff]  ;;  %v258_v45 = vld [vmem:[#allocation2 + $0x1b8] sm:$0xff] }
 0x1af   :  { %5637 = vmatpush1.bf16.msra.mxu1 %v5636_v6  ;;  %5383 = vmatprep.subr.bf16.mxu0 %v5382_v7  ;;  %v1133_v6 = vld [vmem:[#allocation2 + $0x1d10] sm:$0xff]  ;;  %v5658_v7 = vpack.c.bf16 %v1142_v0, %v1134_v63  ;;  %v5404_v13 = vpack.c.bf16 %v1139_v5, %v1131_v4  ;;  %v5422_v63 = vpack.c.bf16 %v1220_v58, %v1212_v57  ;;  %v1211_v0 = vld [vmem:[#allocation2 + $0x1f80] sm:$0xff]  ;;  %v208_v5 = vld [vmem:[#allocation2 + $0x28] sm:$0xff] }
 0x1b0   :  { %5639 = vmatprep.subr.bf16.mxu1 %v5638_v11  ;;  %v1150_v11 = vld [vmem:[#allocation2 + $0x1d98] sm:$0xff]  ;;  %v5660_v14 = vpack.c.bf16 %v1141_v8, %v1133_v6  ;;  %v1221_v4 = vld [vmem:[#allocation2 + $0x1fd0] sm:$0xff]  ;;  %v216_v6 = vld [vmem:[#allocation2 + $0x68] sm:$0xff] }
 0x1b1   :  { %v218_v8 = vld [vmem:[#allocation2 + $0x78] sm:$0xff] }
 0x1b2   :  { %5385 = vmatpush1.bf16.msra.mxu0 %v5384_v17  ;;  %v1155_v17 = vld [vmem:[#allocation2 + $0x1dc0] sm:$0xff]  ;;  %v266_v46 = vld [vmem:[#allocation2 + $0x1f8] sm:$0xff] }
 0x1b3   :  { %5641 = vmatpush1.bf16.msra.mxu1 %v5640_v18  ;;  %5387 = vmatprep.subr.bf16.mxu0 %v5386_v19  ;;  %v1149_v18 = vld [vmem:[#allocation2 + $0x1d90] sm:$0xff]  ;;  %v5662_v19 = vpack.c.bf16 %v1158_v12, %v1150_v11  ;;  %v5408_v25 = vpack.c.bf16 %v1155_v17, %v1147_v16  ;;  %v5682_v11 = vpack.c.bf16 %v216_v6, %v208_v5  ;;  %v207_v12 = vld [vmem:[#allocation2 + $0x20] sm:$0xff]  ;;  %v224_v17 = vld [vmem:[#allocation2 + $0xa8] sm:$0xff] }
 0x1b4   :  { %5643 = vmatprep.subr.bf16.mxu1 %v5642_v23  ;;  %v1166_v23 = vld [vmem:[#allocation2 + $0x1e18] sm:$0xff]  ;;  %v5664_v26 = vpack.c.bf16 %v1157_v20, %v1149_v18  ;;  %v217_v16 = vld [vmem:[#allocation2 + $0x70] sm:$0xff]  ;;  %v232_v18 = vld [vmem:[#allocation2 + $0xe8] sm:$0xff] }
 0x1b5   :  { %v234_v20 = vld [vmem:[#allocation2 + $0xf8] sm:$0xff] }
 0x1b6   :  { %5389 = vmatpush1.bf16.msra.mxu0 %v5388_v29  ;;  %v1171_v29 = vld [vmem:[#allocation2 + $0x1e40] sm:$0xff]  ;;  %v274_v57 = vld [vmem:[#allocation2 + $0x238] sm:$0xff] }
 0x1b7   :  { %5645 = vmatpush1.bf16.msra.mxu1 %v5644_v30  ;;  %5391 = vmatprep.subr.bf16.mxu0 %v5390_v31  ;;  %v1165_v30 = vld [vmem:[#allocation2 + $0x1e10] sm:$0xff]  ;;  %v5666_v31 = vpack.c.bf16 %v1174_v24, %v1166_v23  ;;  %v5412_v37 = vpack.c.bf16 %v1171_v29, %v1163_v28  ;;  %v5686_v24 = vpack.c.bf16 %v232_v18, %v224_v17  ;;  %v282_v58 = vld [vmem:[#allocation2 + $0x278] sm:$0xff] }
 0x1b8   :  { %5647 = vmatprep.subr.bf16.mxu1 %v5646_v35  ;;  %v1182_v35 = vld [vmem:[#allocation2 + $0x1e98] sm:$0xff]  ;;  %v5668_v38 = vpack.c.bf16 %v1173_v32, %v1165_v30  ;;  %v233_v29 = vld [vmem:[#allocation2 + $0xf0] sm:$0xff]  ;;  %v240_v30 = vld [vmem:[#allocation2 + $0x128] sm:$0xff] }
 0x1b9   :  { %v242_v32 = vld [vmem:[#allocation2 + $0x138] sm:$0xff] }
 0x1ba   :  { %5393 = vmatpush1.bf16.msra.mxu0 %v5392_v41  ;;  %v1187_v41 = vld [vmem:[#allocation2 + $0x1ec0] sm:$0xff]  ;;  %v290_v5 = vld [vmem:[#allocation2 + $0x2b8] sm:$0xff] }
 0x1bb   :  { %5649 = vmatpush1.bf16.msra.mxu1 %v5648_v42  ;;  %5395 = vmatprep.subr.bf16.mxu0 %v5394_v43  ;;  %v1181_v42 = vld [vmem:[#allocation2 + $0x1e90] sm:$0xff]  ;;  %v5670_v43 = vpack.c.bf16 %v1190_v36, %v1182_v35  ;;  %v5416_v49 = vpack.c.bf16 %v1187_v41, %v1179_v40  ;;  %v5946_v40 = vpack.c.bf16 %v250_v33, %v242_v32  ;;  %v298_v6 = vld [vmem:[#allocation2 + $0x2f8] sm:$0xff] }
 0x1bc   :  { %5651 = vmatprep.subr.bf16.mxu1 %v5650_v47  ;;  %v1198_v47 = vld [vmem:[#allocation2 + $0x1f18] sm:$0xff]  ;;  %v5672_v50 = vpack.c.bf16 %v1189_v44, %v1181_v42  ;;  %v249_v41 = vld [vmem:[#allocation2 + $0x170] sm:$0xff]  ;;  %v256_v42 = vld [vmem:[#allocation2 + $0x1a8] sm:$0xff] }
 0x1bd   :  { %v7399_v44 = vld [vmem:[%s8092_s0 + $0x8] sm:$0xff]  ;;  %v306_v17 = vld [vmem:[#allocation2 + $0x338] sm:$0xff] }
 0x1be   :  { %5397 = vmatpush1.bf16.msra.mxu0 %v5396_v53  ;;  %v1203_v53 = vld [vmem:[#allocation2 + $0x1f40] sm:$0xff]  ;;  %v314_v18 = vld [vmem:[#allocation2 + $0x378] sm:$0xff] }
 0x1bf   :  { %5653 = vmatpush1.bf16.msra.mxu1 %v5652_v54  ;;  %5399 = vmatprep.subr.bf16.mxu0 %v5398_v55  ;;  %v1197_v54 = vld [vmem:[#allocation2 + $0x1f10] sm:$0xff]  ;;  %v5674_v55 = vpack.c.bf16 %v1206_v48, %v1198_v47  ;;  %v5420_v61 = vpack.c.bf16 %v1203_v53, %v1195_v52  ;;  %v5950_v53 = vpack.c.bf16 %v266_v46, %v258_v45  ;;  %v335_v46 = vld [vmem:[#allocation2 + $0x420] sm:$0xff] }
 0x1c0   :  { %5655 = vmatprep.subr.bf16.mxu1 %v5654_v59  ;;  %v1214_v59 = vld [vmem:[#allocation2 + $0x1f98] sm:$0xff]  ;;  %v5676_v62 = vpack.c.bf16 %v1205_v56, %v1197_v54  ;;  %v257_v52 = vld [vmem:[#allocation2 + $0x1b0] sm:$0xff]  ;;  %v280_v56 = vld [vmem:[#allocation2 + $0x268] sm:$0xff] }
 0x1c1   :  { %v265_v54 = vld [vmem:[#allocation2 + $0x1f0] sm:$0xff] }
 0x1c2   :  { %5401 = vmatpush1.bf16.msra.mxu0 %v5400_v1  ;;  %v1219_v1 = vld [vmem:[#allocation2 + $0x1fc0] sm:$0xff] }
 0x1c3   :  { %5657 = vmatpush1.bf16.msra.mxu1 %v5656_v2  ;;  %5403 = vmatprep.subr.bf16.mxu0 %v5402_v3  ;;  %v1213_v2 = vld [vmem:[#allocation2 + $0x1f90] sm:$0xff]  ;;  %v5678_v3 = vpack.c.bf16 %v1222_v60, %v1214_v59  ;;  %v5424_v9 = vpack.c.bf16 %v1219_v1, %v1211_v0  ;;  %v5952_v60 = vpack.c.bf16 %v265_v54, %v257_v52  ;;  %v360_v52 = vld [vmem:[#allocation2 + $0x4e8] sm:$0xff]  ;;  %v362_v54 = vld [vmem:[#allocation2 + $0x4f8] sm:$0xff] }
 0x1c4   :  { %5659 = vmatprep.subr.bf16.mxu1 %v5658_v7  ;;  %v210_v7 = vld [vmem:[#allocation2 + $0x38] sm:$0xff]  ;;  %v5680_v10 = vpack.c.bf16 %v1221_v4, %v1213_v2  ;;  %v273_v0 = vld [vmem:[#allocation2 + $0x230] sm:$0xff]  ;;  %v5954_v1 = vpack.c.bf16 %v282_v58, %v274_v57  ;;  %v296_v4 = vld [vmem:[#allocation2 + $0x2e8] sm:$0xff] }
 0x1c5   :  { %v281_v2 = vld [vmem:[#allocation2 + $0x270] sm:$0xff]  ;;  %v351_v58 = vld [vmem:[#allocation2 + $0x4a0] sm:$0xff] }
 0x1c6   :  { %5405 = vmatpush1.bf16.msra.mxu0 %v5404_v13  ;;  %v215_v13 = vld [vmem:[#allocation2 + $0x60] sm:$0xff] }
 0x1c7   :  { %5661 = vmatpush1.bf16.msra.mxu1 %v5660_v14  ;;  %5407 = vmatprep.subr.bf16.mxu0 %v5406_v15  ;;  %v209_v14 = vld [vmem:[#allocation2 + $0x30] sm:$0xff]  ;;  %v5938_v15 = vpack.c.bf16 %v218_v8, %v210_v7  ;;  %v5684_v22 = vpack.c.bf16 %v215_v13, %v207_v12  ;;  %v5956_v8 = vpack.c.bf16 %v281_v2, %v273_v0  ;;  %v376_v0 = vld [vmem:[#allocation2 + $0x568] sm:$0xff]  ;;  %v378_v2 = vld [vmem:[#allocation2 + $0x578] sm:$0xff] }
 0x1c8   :  { %5663 = vmatprep.subr.bf16.mxu1 %v5662_v19  ;;  %v226_v19 = vld [vmem:[#allocation2 + $0xb8] sm:$0xff]  ;;  %v5940_v23 = vpack.c.bf16 %v217_v16, %v209_v14  ;;  %v289_v12 = vld [vmem:[#allocation2 + $0x2b0] sm:$0xff]  ;;  %v5958_v13 = vpack.c.bf16 %v298_v6, %v290_v5  ;;  %v312_v16 = vld [vmem:[#allocation2 + $0x368] sm:$0xff] }
 0x1c9   :  { %v5942_v28 = vpack.c.bf16 %v234_v20, %v226_v19  ;;  %v297_v14 = vld [vmem:[#allocation2 + $0x2f0] sm:$0xff]  ;;  %v367_v6 = vld [vmem:[#allocation2 + $0x520] sm:$0xff] }
 0x1ca   :  { %5409 = vmatpush1.bf16.msra.mxu0 %v5408_v25  ;;  %v223_v25 = vld [vmem:[#allocation2 + $0xa0] sm:$0xff]  ;;  %v5960_v20 = vpack.c.bf16 %v297_v14, %v289_v12  ;;  %v392_v12 = vld [vmem:[#allocation2 + $0x5e8] sm:$0xff]  ;;  %v394_v14 = vld [vmem:[#allocation2 + $0x5f8] sm:$0xff] }
 0x1cb   :  { %5665 = vmatpush1.bf16.msra.mxu1 %v5664_v26  ;;  %5411 = vmatprep.subr.bf16.mxu0 %v5410_v27  ;;  %v231_v26 = vld [vmem:[#allocation2 + $0xe0] sm:$0xff]  ;;  %v225_v27 = vld [vmem:[#allocation2 + $0xb0] sm:$0xff] }
 0x1cc   :  { %5667 = vmatprep.subr.bf16.mxu1 %v5666_v31  ;;  %v248_v31 = vld [vmem:[#allocation2 + $0x168] sm:$0xff]  ;;  %v5688_v34 = vpack.c.bf16 %v231_v26, %v223_v25  ;;  %v5944_v35 = vpack.c.bf16 %v233_v29, %v225_v27  ;;  %v5962_v25 = vpack.c.bf16 %v314_v18, %v306_v17  ;;  %v313_v26 = vld [vmem:[#allocation2 + $0x370] sm:$0xff]  ;;  %v322_v29 = vld [vmem:[#allocation2 + $0x3b8] sm:$0xff] }
 0x1cd   :  { %v5690_v36 = vpack.c.bf16 %v248_v31, %v240_v30  ;;  %v320_v27 = vld [vmem:[#allocation2 + $0x3a8] sm:$0xff]  ;;  %v330_v30 = vld [vmem:[#allocation2 + $0x3f8] sm:$0xff]  ;;  %v383_v18 = vld [vmem:[#allocation2 + $0x5a0] sm:$0xff] }
 0x1ce   :  { %5413 = vmatpush1.bf16.msra.mxu0 %v5412_v37  ;;  %v239_v37 = vld [vmem:[#allocation2 + $0x120] sm:$0xff] }
 0x1cf   :  { %5669 = vmatpush1.bf16.msra.mxu1 %v5668_v38  ;;  %5415 = vmatprep.subr.bf16.mxu0 %v5414_v39  ;;  %v247_v38 = vld [vmem:[#allocation2 + $0x160] sm:$0xff]  ;;  %v241_v39 = vld [vmem:[#allocation2 + $0x130] sm:$0xff] }
 0x1d0   :  { %5671 = vmatprep.subr.bf16.mxu1 %v5670_v43  ;;  %v264_v43 = vld [vmem:[#allocation2 + $0x1e8] sm:$0xff]  ;;  %v5692_v47 = vpack.c.bf16 %v247_v38, %v239_v37  ;;  %v5948_v48 = vpack.c.bf16 %v249_v41, %v241_v39  ;;  %v5966_v37 = vpack.c.bf16 %v330_v30, %v322_v29  ;;  %v329_v38 = vld [vmem:[#allocation2 + $0x3f0] sm:$0xff]  ;;  %v338_v41 = vld [vmem:[#allocation2 + $0x438] sm:$0xff] }
 0x1d1   :  { %v336_v39 = vld [vmem:[#allocation2 + $0x428] sm:$0xff]  ;;  %v399_v30 = vld [vmem:[#allocation2 + $0x620] sm:$0xff] }
 0x1d2   :  { %5417 = vmatpush1.bf16.msra.mxu0 %v5416_v49  ;;  %v5694_v49 = vpack.c.bf16 %v264_v43, %v256_v42  ;;  %v346_v42 = vld [vmem:[#allocation2 + $0x478] sm:$0xff] }
 0x1d3   :  { %5673 = vmatpush1.bf16.msra.mxu1 %v5672_v50  ;;  %5419 = vmatprep.subr.bf16.mxu0 %v5418_v51  ;;  %v255_v50 = vld [vmem:[#allocation2 + $0x1a0] sm:$0xff] }
 0x1d4   :  { %5675 = vmatprep.subr.bf16.mxu1 %v5674_v55  ;;  %v263_v51 = vld [vmem:[#allocation2 + $0x1e0] sm:$0xff]  ;;  %v272_v55 = vld [vmem:[#allocation2 + $0x228] sm:$0xff] }
 0x1d5   :  { %v5696_v59 = vpack.c.bf16 %v263_v51, %v255_v50  ;;  %v345_v50 = vld [vmem:[#allocation2 + $0x470] sm:$0xff]  ;;  %v352_v51 = vld [vmem:[#allocation2 + $0x4a8] sm:$0xff] }
 0x1d6   :  { %5421 = vmatpush1.bf16.msra.mxu0 %v5420_v61  ;;  %v5698_v61 = vpack.c.bf16 %v280_v56, %v272_v55  ;;  %v5718_v57 = vpack.c.bf16 %v360_v52, %v352_v51 }
 0x1d7   :  { %5677 = vmatpush1.bf16.msra.mxu1 %v5676_v62  ;;  %5423 = vmatprep.subr.bf16.mxu0 %v5422_v63  ;;  %v271_v62 = vld [vmem:[#allocation2 + $0x220] sm:$0xff] }
 0x1d8   :  { %5679 = vmatprep.subr.bf16.mxu1 %v5678_v3  ;;  %v279_v63 = vld [vmem:[#allocation2 + $0x260] sm:$0xff]  ;;  %v288_v3 = vld [vmem:[#allocation2 + $0x2a8] sm:$0xff] }
 0x1d9   :  { %v5700_v7 = vpack.c.bf16 %v279_v63, %v271_v62  ;;  %v361_v62 = vld [vmem:[#allocation2 + $0x4f0] sm:$0xff]  ;;  %v368_v63 = vld [vmem:[#allocation2 + $0x528] sm:$0xff] }
 0x1da   :  { %5425 = vmatpush1.bf16.msra.mxu0 %v5424_v9  ;;  %v5702_v9 = vpack.c.bf16 %v296_v4, %v288_v3  ;;  %v5722_v5 = vpack.c.bf16 %v376_v0, %v368_v63 }
 0x1db   :  { %5681 = vmatpush1.bf16.msra.mxu1 %v5680_v10  ;;  %5683 = vmatprep.subr.bf16.mxu0 %v5682_v11  ;;  %v287_v10 = vld [vmem:[#allocation2 + $0x2a0] sm:$0xff] }
 0x1dc   :  { %5939 = vmatprep.subr.bf16.mxu1 %v5938_v15  ;;  %v295_v11 = vld [vmem:[#allocation2 + $0x2e0] sm:$0xff]  ;;  %v304_v15 = vld [vmem:[#allocation2 + $0x328] sm:$0xff] }
 0x1dd   :  { %1547 = vmatmul.mubr.f32.vlgmr.msra.gmra.mrb[0].mxu0 %v201_v21  ;;  %v5704_v19 = vpack.c.bf16 %v295_v11, %v287_v10  ;;  %v377_v10 = vld [vmem:[#allocation2 + $0x570] sm:$0xff]  ;;  %v384_v11 = vld [vmem:[#allocation2 + $0x5a8] sm:$0xff] }
 0x1de   :  { %1831 = vmatmul.mubr.f32.vlgmr.msra.gmra.mrb[0].mxu1 %v201_v21  ;;  %5685 = vmatpush1.bf16.msra.mxu0 %v5684_v22  ;;  %v5706_v21 = vpack.c.bf16 %v312_v16, %v304_v15  ;;  %v303_v22 = vld [vmem:[#allocation2 + $0x320] sm:$0xff]  ;;  %v5726_v17 = vpack.c.bf16 %v392_v12, %v384_v11 }
 0x1df   :  { %5941 = vmatpush1.bf16.msra.mxu1 %v5940_v23  ;;  %5687 = vmatprep.subr.bf16.mxu0 %v5686_v24  ;;  %v311_v23 = vld [vmem:[#allocation2 + $0x360] sm:$0xff]  ;;  %v305_v24 = vld [vmem:[#allocation2 + $0x330] sm:$0xff] }
 0x1e0   :  { %5943 = vmatprep.subr.bf16.mxu1 %v5942_v28  ;;  %1901 = vmatprep.mubr.f32.mxu0 %v7399_v44  ;;  %v328_v28 = vld [vmem:[#allocation2 + $0x3e8] sm:$0xff]  ;;  %v5708_v31 = vpack.c.bf16 %v311_v23, %v303_v22  ;;  %v5964_v32 = vpack.c.bf16 %v313_v26, %v305_v24  ;;  %v393_v22 = vld [vmem:[#allocation2 + $0x5f0] sm:$0xff]  ;;  %v410_v26 = vld [vmem:[#allocation2 + $0x678] sm:$0xff] }
 0x1e1   :  { %2185 = vmatprep.mubr.f32.mxu1 %v7399_v44  ;;  %v5710_v33 = vpack.c.bf16 %v328_v28, %v320_v27  ;;  %v400_v23 = vld [vmem:[#allocation2 + $0x628] sm:$0xff] }
 0x1e2   :  { %5689 = vmatpush1.bf16.msra.mxu0 %v5688_v34  ;;  %v319_v34 = vld [vmem:[#allocation2 + $0x3a0] sm:$0xff]  ;;  %v408_v24 = vld [vmem:[#allocation2 + $0x668] sm:$0xff] }
 0x1e3   :  { %5945 = vmatpush1.bf16.msra.mxu1 %v5944_v35  ;;  %5691 = vmatprep.subr.bf16.mxu0 %v5690_v36  ;;  %v327_v35 = vld [vmem:[#allocation2 + $0x3e0] sm:$0xff]  ;;  %v321_v36 = vld [vmem:[#allocation2 + $0x3b0] sm:$0xff]  ;;  %v5730_v29 = vpack.c.bf16 %v408_v24, %v400_v23 }
 0x1e4   :  { %5947 = vmatprep.subr.bf16.mxu1 %v5946_v40  ;;  %v344_v40 = vld [vmem:[#allocation2 + $0x468] sm:$0xff]  ;;  %v5712_v43 = vpack.c.bf16 %v327_v35, %v319_v34  ;;  %v5968_v44 = vpack.c.bf16 %v329_v38, %v321_v36  ;;  %v409_v34 = vld [vmem:[#allocation2 + $0x670] sm:$0xff]  ;;  %v426_v38 = vld [vmem:[#allocation2 + $0x6f8] sm:$0xff] }
 0x1e5   :  { %v5714_v45 = vpack.c.bf16 %v344_v40, %v336_v39  ;;  %v416_v35 = vld [vmem:[#allocation2 + $0x6a8] sm:$0xff] }
 0x1e6   :  { %5693 = vmatpush1.bf16.msra.mxu0 %v5692_v47  ;;  %v343_v47 = vld [vmem:[#allocation2 + $0x460] sm:$0xff]  ;;  %v424_v36 = vld [vmem:[#allocation2 + $0x6e8] sm:$0xff] }
 0x1e7   :  { %5949 = vmatpush1.bf16.msra.mxu1 %v5948_v48  ;;  %5695 = vmatprep.subr.bf16.mxu0 %v5694_v49  ;;  %v337_v48 = vld [vmem:[#allocation2 + $0x430] sm:$0xff]  ;;  %v5970_v49 = vpack.c.bf16 %v346_v42, %v338_v41  ;;  %v5716_v55 = vpack.c.bf16 %v343_v47, %v335_v46  ;;  %v5734_v41 = vpack.c.bf16 %v424_v36, %v416_v35  ;;  %v415_v42 = vld [vmem:[#allocation2 + $0x6a0] sm:$0xff]  ;;  %v432_v47 = vld [vmem:[#allocation2 + $0x728] sm:$0xff] }
 0x1e8   :  { %5951 = vmatprep.subr.bf16.mxu1 %v5950_v53  ;;  %v354_v53 = vld [vmem:[#allocation2 + $0x4b8] sm:$0xff]  ;;  %v5972_v56 = vpack.c.bf16 %v345_v50, %v337_v48  ;;  %v425_v46 = vld [vmem:[#allocation2 + $0x6f0] sm:$0xff]  ;;  %v440_v48 = vld [vmem:[#allocation2 + $0x768] sm:$0xff] }
 0x1e9   :  { %v442_v50 = vld [vmem:[#allocation2 + $0x778] sm:$0xff] }
 0x1ea   :  { %5697 = vmatpush1.bf16.msra.mxu0 %v5696_v59  ;;  %v359_v59 = vld [vmem:[#allocation2 + $0x4e0] sm:$0xff]  ;;  %v506_v35 = vld [vmem:[#allocation2 + $0x978] sm:$0xff] }
 0x1eb   :  { %5953 = vmatpush1.bf16.msra.mxu1 %v5952_v60  ;;  %5699 = vmatprep.subr.bf16.mxu0 %v5698_v61  ;;  %v353_v60 = vld [vmem:[#allocation2 + $0x4b0] sm:$0xff]  ;;  %v5974_v61 = vpack.c.bf16 %v362_v54, %v354_v53  ;;  %v5720_v3 = vpack.c.bf16 %v359_v59, %v351_v58  ;;  %v5738_v53 = vpack.c.bf16 %v440_v48, %v432_v47  ;;  %v431_v54 = vld [vmem:[#allocation2 + $0x720] sm:$0xff]  ;;  %v448_v59 = vld [vmem:[#allocation2 + $0x7a8] sm:$0xff] }
 0x1ec   :  { %5955 = vmatprep.subr.bf16.mxu1 %v5954_v1  ;;  %v370_v1 = vld [vmem:[#allocation2 + $0x538] sm:$0xff]  ;;  %v5976_v4 = vpack.c.bf16 %v361_v62, %v353_v60  ;;  %v441_v58 = vld [vmem:[#allocation2 + $0x770] sm:$0xff]  ;;  %v456_v60 = vld [vmem:[#allocation2 + $0x7e8] sm:$0xff] }
 0x1ed   :  { %v458_v62 = vld [vmem:[#allocation2 + $0x7f8] sm:$0xff] }
 0x1ee   :  { %5701 = vmatpush1.bf16.msra.mxu0 %v5700_v7  ;;  %v375_v7 = vld [vmem:[#allocation2 + $0x560] sm:$0xff]  ;;  %v514_v47 = vld [vmem:[#allocation2 + $0x9b8] sm:$0xff] }
 0x1ef   :  { %5957 = vmatpush1.bf16.msra.mxu1 %v5956_v8  ;;  %5703 = vmatprep.subr.bf16.mxu0 %v5702_v9  ;;  %v369_v8 = vld [vmem:[#allocation2 + $0x530] sm:$0xff]  ;;  %v5978_v9 = vpack.c.bf16 %v378_v2, %v370_v1  ;;  %v5724_v15 = vpack.c.bf16 %v375_v7, %v367_v6  ;;  %v5742_v1 = vpack.c.bf16 %v456_v60, %v448_v59  ;;  %v447_v2 = vld [vmem:[#allocation2 + $0x7a0] sm:$0xff]  ;;  %v464_v7 = vld [vmem:[#allocation2 + $0x828] sm:$0xff] }
 0x1f0   :  { %5959 = vmatprep.subr.bf16.mxu1 %v5958_v13  ;;  %v386_v13 = vld [vmem:[#allocation2 + $0x5b8] sm:$0xff]  ;;  %v5980_v16 = vpack.c.bf16 %v377_v10, %v369_v8  ;;  %v457_v6 = vld [vmem:[#allocation2 + $0x7f0] sm:$0xff]  ;;  %v472_v8 = vld [vmem:[#allocation2 + $0x868] sm:$0xff] }
 0x1f1   :  { %v474_v10 = vld [vmem:[#allocation2 + $0x878] sm:$0xff] }
 0x1f2   :  { %5705 = vmatpush1.bf16.msra.mxu0 %v5704_v19  ;;  %v391_v19 = vld [vmem:[#allocation2 + $0x5e0] sm:$0xff]  ;;  %v522_v48 = vld [vmem:[#allocation2 + $0x9f8] sm:$0xff] }
 0x1f3   :  { %5961 = vmatpush1.bf16.msra.mxu1 %v5960_v20  ;;  %5707 = vmatprep.subr.bf16.mxu0 %v5706_v21  ;;  %v385_v20 = vld [vmem:[#allocation2 + $0x5b0] sm:$0xff]  ;;  %v5982_v21 = vpack.c.bf16 %v394_v14, %v386_v13  ;;  %v5728_v27 = vpack.c.bf16 %v391_v19, %v383_v18  ;;  %v5746_v13 = vpack.c.bf16 %v472_v8, %v464_v7  ;;  %v463_v14 = vld [vmem:[#allocation2 + $0x820] sm:$0xff]  ;;  %v480_v19 = vld [vmem:[#allocation2 + $0x8a8] sm:$0xff] }
 0x1f4   :  { %5963 = vmatprep.subr.bf16.mxu1 %v5962_v25  ;;  %v402_v25 = vld [vmem:[#allocation2 + $0x638] sm:$0xff]  ;;  %v5984_v28 = vpack.c.bf16 %v393_v22, %v385_v20  ;;  %v473_v18 = vld [vmem:[#allocation2 + $0x870] sm:$0xff]  ;;  %v488_v20 = vld [vmem:[#allocation2 + $0x8e8] sm:$0xff] }
 0x1f5   :  { %v490_v22 = vld [vmem:[#allocation2 + $0x8f8] sm:$0xff] }
 0x1f6   :  { %5709 = vmatpush1.bf16.msra.mxu0 %v5708_v31  ;;  %v407_v31 = vld [vmem:[#allocation2 + $0x660] sm:$0xff]  ;;  %v530_v59 = vld [vmem:[#allocation2 + $0xa38] sm:$0xff] }
 0x1f7   :  { %5965 = vmatpush1.bf16.msra.mxu1 %v5964_v32  ;;  %5711 = vmatprep.subr.bf16.mxu0 %v5710_v33  ;;  %v401_v32 = vld [vmem:[#allocation2 + $0x630] sm:$0xff]  ;;  %v5986_v33 = vpack.c.bf16 %v410_v26, %v402_v25  ;;  %v5732_v39 = vpack.c.bf16 %v407_v31, %v399_v30  ;;  %v5750_v25 = vpack.c.bf16 %v488_v20, %v480_v19  ;;  %v479_v26 = vld [vmem:[#allocation2 + $0x8a0] sm:$0xff]  ;;  %v496_v31 = vld [vmem:[#allocation2 + $0x928] sm:$0xff] }
 0x1f8   :  { %5967 = vmatprep.subr.bf16.mxu1 %v5966_v37  ;;  %v418_v37 = vld [vmem:[#allocation2 + $0x6b8] sm:$0xff]  ;;  %v5988_v40 = vpack.c.bf16 %v409_v34, %v401_v32  ;;  %v489_v30 = vld [vmem:[#allocation2 + $0x8f0] sm:$0xff]  ;;  %v504_v32 = vld [vmem:[#allocation2 + $0x968] sm:$0xff] }
 0x1f9   :  { %v498_v34 = vld [vmem:[#allocation2 + $0x938] sm:$0xff] }
 0x1fa   :  { %5713 = vmatpush1.bf16.msra.mxu0 %v5712_v43  ;;  %v423_v43 = vld [vmem:[#allocation2 + $0x6e0] sm:$0xff]  ;;  %v538_v60 = vld [vmem:[#allocation2 + $0xa78] sm:$0xff] }
 0x1fb   :  { %5969 = vmatpush1.bf16.msra.mxu1 %v5968_v44  ;;  %5715 = vmatprep.subr.bf16.mxu0 %v5714_v45  ;;  %v417_v44 = vld [vmem:[#allocation2 + $0x6b0] sm:$0xff]  ;;  %v5990_v45 = vpack.c.bf16 %v426_v38, %v418_v37  ;;  %v5736_v51 = vpack.c.bf16 %v423_v43, %v415_v42  ;;  %v5754_v38 = vpack.c.bf16 %v504_v32, %v496_v31  ;;  %v546_v7 = vld [vmem:[#allocation2 + $0xab8] sm:$0xff] }
 0x1fc   :  { %5971 = vmatprep.subr.bf16.mxu1 %v5970_v49  ;;  %v434_v49 = vld [vmem:[#allocation2 + $0x738] sm:$0xff]  ;;  %v5992_v52 = vpack.c.bf16 %v425_v46, %v417_v44  ;;  %v6010_v42 = vpack.c.bf16 %v506_v35, %v498_v34  ;;  %v505_v43 = vld [vmem:[#allocation2 + $0x970] sm:$0xff]  ;;  %v512_v44 = vld [vmem:[#allocation2 + $0x9a8] sm:$0xff] }
 0x1fd   :  { %v7401_v46 = vld [vmem:[%s8092_s0 + $0x18] sm:$0xff] }
 0x1fe   :  { %5717 = vmatpush1.bf16.msra.mxu0 %v5716_v55  ;;  %v439_v55 = vld [vmem:[#allocation2 + $0x760] sm:$0xff]  ;;  %v554_v8 = vld [vmem:[#allocation2 + $0xaf8] sm:$0xff] }
 0x1ff   :  { %5973 = vmatpush1.bf16.msra.mxu1 %v5972_v56  ;;  %5719 = vmatprep.subr.bf16.mxu0 %v5718_v57  ;;  %v433_v56 = vld [vmem:[#allocation2 + $0x730] sm:$0xff]  ;;  %v5994_v57 = vpack.c.bf16 %v442_v50, %v434_v49  ;;  %v5740_v63 = vpack.c.bf16 %v439_v55, %v431_v54  ;;  %v6014_v55 = vpack.c.bf16 %v522_v48, %v514_v47  ;;  %v562_v19 = vld [vmem:[#allocation2 + $0xb38] sm:$0xff]  ;;  %v591_v48 = vld [vmem:[#allocation2 + $0xc20] sm:$0xff] }
 0x200   :  { %5975 = vmatprep.subr.bf16.mxu1 %v5974_v61  ;;  %v450_v61 = vld [vmem:[#allocation2 + $0x7b8] sm:$0xff]  ;;  %v5996_v0 = vpack.c.bf16 %v441_v58, %v433_v56  ;;  %v513_v54 = vld [vmem:[#allocation2 + $0x9b0] sm:$0xff]  ;;  %v536_v58 = vld [vmem:[#allocation2 + $0xa68] sm:$0xff] }
 0x201   :  { %v521_v56 = vld [vmem:[#allocation2 + $0x9f0] sm:$0xff]  ;;  %v570_v20 = vld [vmem:[#allocation2 + $0xb78] sm:$0xff] }
 0x202   :  { %5721 = vmatpush1.bf16.msra.mxu0 %v5720_v3  ;;  %v455_v3 = vld [vmem:[#allocation2 + $0x7e0] sm:$0xff]  ;;  %v578_v31 = vld [vmem:[#allocation2 + $0xbb8] sm:$0xff] }
 0x203   :  { %5977 = vmatpush1.bf16.msra.mxu1 %v5976_v4  ;;  %5723 = vmatprep.subr.bf16.mxu0 %v5722_v5  ;;  %v449_v4 = vld [vmem:[#allocation2 + $0x7b0] sm:$0xff]  ;;  %v5998_v5 = vpack.c.bf16 %v458_v62, %v450_v61  ;;  %v5744_v11 = vpack.c.bf16 %v455_v3, %v447_v2  ;;  %v6016_v62 = vpack.c.bf16 %v521_v56, %v513_v54  ;;  %v586_v32 = vld [vmem:[#allocation2 + $0xbf8] sm:$0xff]  ;;  %v616_v54 = vld [vmem:[#allocation2 + $0xce8] sm:$0xff] }
 0x204   :  { %5979 = vmatprep.subr.bf16.mxu1 %v5978_v9  ;;  %v466_v9 = vld [vmem:[#allocation2 + $0x838] sm:$0xff]  ;;  %v6000_v12 = vpack.c.bf16 %v457_v6, %v449_v4  ;;  %v529_v2 = vld [vmem:[#allocation2 + $0xa30] sm:$0xff]  ;;  %v6018_v3 = vpack.c.bf16 %v538_v60, %v530_v59  ;;  %v552_v6 = vld [vmem:[#allocation2 + $0xae8] sm:$0xff] }
 0x205   :  { %v537_v4 = vld [vmem:[#allocation2 + $0xa70] sm:$0xff]  ;;  %v618_v56 = vld [vmem:[#allocation2 + $0xcf8] sm:$0xff]  ;;  %v607_v60 = vld [vmem:[#allocation2 + $0xca0] sm:$0xff] }
 0x206   :  { %5725 = vmatpush1.bf16.msra.mxu0 %v5724_v15  ;;  %v471_v15 = vld [vmem:[#allocation2 + $0x860] sm:$0xff] }
 0x207   :  { %5981 = vmatpush1.bf16.msra.mxu1 %v5980_v16  ;;  %5727 = vmatprep.subr.bf16.mxu0 %v5726_v17  ;;  %v465_v16 = vld [vmem:[#allocation2 + $0x830] sm:$0xff]  ;;  %v6002_v17 = vpack.c.bf16 %v474_v10, %v466_v9  ;;  %v5748_v23 = vpack.c.bf16 %v471_v15, %v463_v14  ;;  %v6020_v10 = vpack.c.bf16 %v537_v4, %v529_v2  ;;  %v632_v2 = vld [vmem:[#allocation2 + $0xd68] sm:$0xff]  ;;  %v634_v4 = vld [vmem:[#allocation2 + $0xd78] sm:$0xff] }
 0x208   :  { %5983 = vmatprep.subr.bf16.mxu1 %v5982_v21  ;;  %v482_v21 = vld [vmem:[#allocation2 + $0x8b8] sm:$0xff]  ;;  %v6004_v24 = vpack.c.bf16 %v473_v18, %v465_v16  ;;  %v545_v14 = vld [vmem:[#allocation2 + $0xab0] sm:$0xff]  ;;  %v6022_v15 = vpack.c.bf16 %v554_v8, %v546_v7  ;;  %v568_v18 = vld [vmem:[#allocation2 + $0xb68] sm:$0xff] }
 0x209   :  { %v553_v16 = vld [vmem:[#allocation2 + $0xaf0] sm:$0xff]  ;;  %v623_v8 = vld [vmem:[#allocation2 + $0xd20] sm:$0xff] }
 0x20a   :  { %5729 = vmatpush1.bf16.msra.mxu0 %v5728_v27  ;;  %v487_v27 = vld [vmem:[#allocation2 + $0x8e0] sm:$0xff] }
 0x20b   :  { %5985 = vmatpush1.bf16.msra.mxu1 %v5984_v28  ;;  %5731 = vmatprep.subr.bf16.mxu0 %v5730_v29  ;;  %v481_v28 = vld [vmem:[#allocation2 + $0x8b0] sm:$0xff]  ;;  %v6006_v29 = vpack.c.bf16 %v490_v22, %v482_v21  ;;  %v5752_v36 = vpack.c.bf16 %v487_v27, %v479_v26  ;;  %v6024_v22 = vpack.c.bf16 %v553_v16, %v545_v14  ;;  %v648_v14 = vld [vmem:[#allocation2 + $0xde8] sm:$0xff]  ;;  %v650_v16 = vld [vmem:[#allocation2 + $0xdf8] sm:$0xff] }
 0x20c   :  { %5987 = vmatprep.subr.bf16.mxu1 %v5986_v33  ;;  %v7400_v33 = vld [vmem:[%s8092_s0] sm:$0xff]  ;;  %v6008_v37 = vpack.c.bf16 %v489_v30, %v481_v28  ;;  %v561_v26 = vld [vmem:[#allocation2 + $0xb30] sm:$0xff]  ;;  %v6026_v27 = vpack.c.bf16 %v570_v20, %v562_v19  ;;  %v584_v30 = vld [vmem:[#allocation2 + $0xbe8] sm:$0xff] }
 0x20d   :  { %v569_v28 = vld [vmem:[#allocation2 + $0xb70] sm:$0xff]  ;;  %v639_v20 = vld [vmem:[#allocation2 + $0xda0] sm:$0xff] }
 0x20e   :  { %5733 = vmatpush1.bf16.msra.mxu0 %v5732_v39  ;;  %v495_v39 = vld [vmem:[#allocation2 + $0x920] sm:$0xff]  ;;  %v6028_v34 = vpack.c.bf16 %v569_v28, %v561_v26  ;;  %v664_v26 = vld [vmem:[#allocation2 + $0xe68] sm:$0xff]  ;;  %v666_v28 = vld [vmem:[#allocation2 + $0xe78] sm:$0xff] }
 0x20f   :  { %5989 = vmatpush1.bf16.msra.mxu1 %v5988_v40  ;;  %5735 = vmatprep.subr.bf16.mxu0 %v5734_v41  ;;  %v503_v40 = vld [vmem:[#allocation2 + $0x960] sm:$0xff]  ;;  %v497_v41 = vld [vmem:[#allocation2 + $0x930] sm:$0xff] }
 0x210   :  { %5991 = vmatprep.subr.bf16.mxu1 %v5990_v45  ;;  %v520_v45 = vld [vmem:[#allocation2 + $0x9e8] sm:$0xff]  ;;  %v5756_v49 = vpack.c.bf16 %v503_v40, %v495_v39  ;;  %v6012_v50 = vpack.c.bf16 %v505_v43, %v497_v41  ;;  %v6030_v39 = vpack.c.bf16 %v586_v32, %v578_v31  ;;  %v585_v40 = vld [vmem:[#allocation2 + $0xbf0] sm:$0xff]  ;;  %v594_v43 = vld [vmem:[#allocation2 + $0xc38] sm:$0xff] }
 0x211   :  { %v592_v41 = vld [vmem:[#allocation2 + $0xc28] sm:$0xff]  ;;  %v655_v32 = vld [vmem:[#allocation2 + $0xe20] sm:$0xff] }
 0x212   :  { %5737 = vmatpush1.bf16.msra.mxu0 %v5736_v51  ;;  %v5758_v51 = vpack.c.bf16 %v520_v45, %v512_v44  ;;  %v602_v44 = vld [vmem:[#allocation2 + $0xc78] sm:$0xff] }
 0x213   :  { %5993 = vmatpush1.bf16.msra.mxu1 %v5992_v52  ;;  %5739 = vmatprep.subr.bf16.mxu0 %v5738_v53  ;;  %v511_v52 = vld [vmem:[#allocation2 + $0x9a0] sm:$0xff] }
 0x214   :  { %5995 = vmatprep.subr.bf16.mxu1 %v5994_v57  ;;  %v519_v53 = vld [vmem:[#allocation2 + $0x9e0] sm:$0xff]  ;;  %v528_v57 = vld [vmem:[#allocation2 + $0xa28] sm:$0xff] }
 0x215   :  { %v5760_v61 = vpack.c.bf16 %v519_v53, %v511_v52  ;;  %v601_v52 = vld [vmem:[#allocation2 + $0xc70] sm:$0xff]  ;;  %v608_v53 = vld [vmem:[#allocation2 + $0xca8] sm:$0xff] }
 0x216   :  { %5741 = vmatpush1.bf16.msra.mxu0 %v5740_v63  ;;  %v5762_v63 = vpack.c.bf16 %v536_v58, %v528_v57  ;;  %v5782_v59 = vpack.c.bf16 %v616_v54, %v608_v53 }
 0x217   :  { %5997 = vmatpush1.bf16.msra.mxu1 %v5996_v0  ;;  %5743 = vmatprep.subr.bf16.mxu0 %v5742_v1  ;;  %v527_v0 = vld [vmem:[#allocation2 + $0xa20] sm:$0xff] }
 0x218   :  { %5999 = vmatprep.subr.bf16.mxu1 %v5998_v5  ;;  %v535_v1 = vld [vmem:[#allocation2 + $0xa60] sm:$0xff]  ;;  %v544_v5 = vld [vmem:[#allocation2 + $0xaa8] sm:$0xff] }
 0x219   :  { %v5764_v9 = vpack.c.bf16 %v535_v1, %v527_v0  ;;  %v617_v0 = vld [vmem:[#allocation2 + $0xcf0] sm:$0xff]  ;;  %v624_v1 = vld [vmem:[#allocation2 + $0xd28] sm:$0xff] }
 0x21a   :  { %5745 = vmatpush1.bf16.msra.mxu0 %v5744_v11  ;;  %v5766_v11 = vpack.c.bf16 %v552_v6, %v544_v5  ;;  %v5786_v7 = vpack.c.bf16 %v632_v2, %v624_v1 }
 0x21b   :  { %6001 = vmatpush1.bf16.msra.mxu1 %v6000_v12  ;;  %5747 = vmatprep.subr.bf16.mxu0 %v5746_v13  ;;  %v543_v12 = vld [vmem:[#allocation2 + $0xaa0] sm:$0xff] }
 0x21c   :  { %6003 = vmatprep.subr.bf16.mxu1 %v6002_v17  ;;  %v551_v13 = vld [vmem:[#allocation2 + $0xae0] sm:$0xff]  ;;  %v560_v17 = vld [vmem:[#allocation2 + $0xb28] sm:$0xff] }
 0x21d   :  { %1902 = vmatmul.mubr.f32.vlgmr.msra.gmra.mrb[2].mxu0 %v7400_v33  ;;  %v5768_v21 = vpack.c.bf16 %v551_v13, %v543_v12  ;;  %v633_v12 = vld [vmem:[#allocation2 + $0xd70] sm:$0xff]  ;;  %v640_v13 = vld [vmem:[#allocation2 + $0xda8] sm:$0xff] }
 0x21e   :  { %5749 = vmatpush1.bf16.msra.mxu0 %v5748_v23  ;;  %2186 = vmatmul.mubr.f32.vlgmr.msra.gmra.mrb[2].mxu1 %v7400_v33  ;;  %v5770_v23 = vpack.c.bf16 %v568_v18, %v560_v17  ;;  %v5790_v19 = vpack.c.bf16 %v648_v14, %v640_v13 }
 0x21f   :  { %6005 = vmatpush1.bf16.msra.mxu1 %v6004_v24  ;;  %5751 = vmatprep.subr.bf16.mxu0 %v5750_v25  ;;  %v559_v24 = vld [vmem:[#allocation2 + $0xb20] sm:$0xff] }
 0x220   :  { %6007 = vmatprep.subr.bf16.mxu1 %v6006_v29  ;;  %1972 = vmatprep.mubr.f32.mxu0 %v7401_v46  ;;  %v567_v25 = vld [vmem:[#allocation2 + $0xb60] sm:$0xff]  ;;  %v576_v29 = vld [vmem:[#allocation2 + $0xba8] sm:$0xff] }
 0x221   :  { %2256 = vmatprep.mubr.f32.mxu1 %v7401_v46  ;;  %v5772_v33 = vpack.c.bf16 %v567_v25, %v559_v24  ;;  %v5774_v35 = vpack.c.bf16 %v584_v30, %v576_v29  ;;  %v649_v24 = vld [vmem:[#allocation2 + $0xdf0] sm:$0xff]  ;;  %v656_v25 = vld [vmem:[#allocation2 + $0xe28] sm:$0xff] }
 0x222   :  { %5753 = vmatpush1.bf16.msra.mxu0 %v5752_v36  ;;  %v575_v36 = vld [vmem:[#allocation2 + $0xba0] sm:$0xff]  ;;  %v5794_v31 = vpack.c.bf16 %v664_v26, %v656_v25 }
 0x223   :  { %6009 = vmatpush1.bf16.msra.mxu1 %v6008_v37  ;;  %5755 = vmatprep.subr.bf16.mxu0 %v5754_v38  ;;  %v583_v37 = vld [vmem:[#allocation2 + $0xbe0] sm:$0xff]  ;;  %v577_v38 = vld [vmem:[#allocation2 + $0xbb0] sm:$0xff] }
 0x224   :  { %6011 = vmatprep.subr.bf16.mxu1 %v6010_v42  ;;  %v600_v42 = vld [vmem:[#allocation2 + $0xc68] sm:$0xff]  ;;  %v5776_v45 = vpack.c.bf16 %v583_v37, %v575_v36  ;;  %v6032_v46 = vpack.c.bf16 %v585_v40, %v577_v38  ;;  %v665_v36 = vld [vmem:[#allocation2 + $0xe70] sm:$0xff]  ;;  %v682_v40 = vld [vmem:[#allocation2 + $0xef8] sm:$0xff] }
 0x225   :  { %v5778_v47 = vpack.c.bf16 %v600_v42, %v592_v41  ;;  %v672_v37 = vld [vmem:[#allocation2 + $0xea8] sm:$0xff] }
 0x226   :  { %5757 = vmatpush1.bf16.msra.mxu0 %v5756_v49  ;;  %v599_v49 = vld [vmem:[#allocation2 + $0xc60] sm:$0xff]  ;;  %v680_v38 = vld [vmem:[#allocation2 + $0xee8] sm:$0xff] }
 0x227   :  { %6013 = vmatpush1.bf16.msra.mxu1 %v6012_v50  ;;  %5759 = vmatprep.subr.bf16.mxu0 %v5758_v51  ;;  %v593_v50 = vld [vmem:[#allocation2 + $0xc30] sm:$0xff]  ;;  %v6034_v51 = vpack.c.bf16 %v602_v44, %v594_v43  ;;  %v5780_v57 = vpack.c.bf16 %v599_v49, %v591_v48  ;;  %v5798_v43 = vpack.c.bf16 %v680_v38, %v672_v37  ;;  %v671_v44 = vld [vmem:[#allocation2 + $0xea0] sm:$0xff]  ;;  %v688_v49 = vld [vmem:[#allocation2 + $0xf28] sm:$0xff] }
 0x228   :  { %6015 = vmatprep.subr.bf16.mxu1 %v6014_v55  ;;  %v610_v55 = vld [vmem:[#allocation2 + $0xcb8] sm:$0xff]  ;;  %v6036_v58 = vpack.c.bf16 %v601_v52, %v593_v50  ;;  %v681_v48 = vld [vmem:[#allocation2 + $0xef0] sm:$0xff]  ;;  %v696_v50 = vld [vmem:[#allocation2 + $0xf68] sm:$0xff] }
 0x229   :  { %v698_v52 = vld [vmem:[#allocation2 + $0xf78] sm:$0xff] }
 0x22a   :  { %5761 = vmatpush1.bf16.msra.mxu0 %v5760_v61  ;;  %v615_v61 = vld [vmem:[#allocation2 + $0xce0] sm:$0xff]  ;;  %v762_v37 = vld [vmem:[#allocation2 + $0x1178] sm:$0xff] }
 0x22b   :  { %6017 = vmatpush1.bf16.msra.mxu1 %v6016_v62  ;;  %5763 = vmatprep.subr.bf16.mxu0 %v5762_v63  ;;  %v609_v62 = vld [vmem:[#allocation2 + $0xcb0] sm:$0xff]  ;;  %v6038_v63 = vpack.c.bf16 %v618_v56, %v610_v55  ;;  %v5784_v5 = vpack.c.bf16 %v615_v61, %v607_v60  ;;  %v5802_v55 = vpack.c.bf16 %v696_v50, %v688_v49  ;;  %v687_v56 = vld [vmem:[#allocation2 + $0xf20] sm:$0xff]  ;;  %v704_v61 = vld [vmem:[#allocation2 + $0xfa8] sm:$0xff] }
 0x22c   :  { %6019 = vmatprep.subr.bf16.mxu1 %v6018_v3  ;;  %v626_v3 = vld [vmem:[#allocation2 + $0xd38] sm:$0xff]  ;;  %v6040_v6 = vpack.c.bf16 %v617_v0, %v609_v62  ;;  %v697_v60 = vld [vmem:[#allocation2 + $0xf70] sm:$0xff]  ;;  %v712_v62 = vld [vmem:[#allocation2 + $0xfe8] sm:$0xff] }
 0x22d   :  { %v714_v0 = vld [vmem:[#allocation2 + $0xff8] sm:$0xff] }
 0x22e   :  { %5765 = vmatpush1.bf16.msra.mxu0 %v5764_v9  ;;  %v631_v9 = vld [vmem:[#allocation2 + $0xd60] sm:$0xff]  ;;  %v770_v49 = vld [vmem:[#allocation2 + $0x11b8] sm:$0xff] }
 0x22f   :  { %6021 = vmatpush1.bf16.msra.mxu1 %v6020_v10  ;;  %5767 = vmatprep.subr.bf16.mxu0 %v5766_v11  ;;  %v625_v10 = vld [vmem:[#allocation2 + $0xd30] sm:$0xff]  ;;  %v6042_v11 = vpack.c.bf16 %v634_v4, %v626_v3  ;;  %v5788_v17 = vpack.c.bf16 %v631_v9, %v623_v8  ;;  %v5806_v3 = vpack.c.bf16 %v712_v62, %v704_v61  ;;  %v703_v4 = vld [vmem:[#allocation2 + $0xfa0] sm:$0xff]  ;;  %v720_v9 = vld [vmem:[#allocation2 + $0x1028] sm:$0xff] }
 0x230   :  { %6023 = vmatprep.subr.bf16.mxu1 %v6022_v15  ;;  %v642_v15 = vld [vmem:[#allocation2 + $0xdb8] sm:$0xff]  ;;  %v6044_v18 = vpack.c.bf16 %v633_v12, %v625_v10  ;;  %v713_v8 = vld [vmem:[#allocation2 + $0xff0] sm:$0xff]  ;;  %v728_v10 = vld [vmem:[#allocation2 + $0x1068] sm:$0xff] }
 0x231   :  { %v730_v12 = vld [vmem:[#allocation2 + $0x1078] sm:$0xff] }
 0x232   :  { %5769 = vmatpush1.bf16.msra.mxu0 %v5768_v21  ;;  %v647_v21 = vld [vmem:[#allocation2 + $0xde0] sm:$0xff]  ;;  %v778_v50 = vld [vmem:[#allocation2 + $0x11f8] sm:$0xff] }
 0x233   :  { %6025 = vmatpush1.bf16.msra.mxu1 %v6024_v22  ;;  %5771 = vmatprep.subr.bf16.mxu0 %v5770_v23  ;;  %v641_v22 = vld [vmem:[#allocation2 + $0xdb0] sm:$0xff]  ;;  %v6046_v23 = vpack.c.bf16 %v650_v16, %v642_v15  ;;  %v5792_v29 = vpack.c.bf16 %v647_v21, %v639_v20  ;;  %v5810_v15 = vpack.c.bf16 %v728_v10, %v720_v9  ;;  %v719_v16 = vld [vmem:[#allocation2 + $0x1020] sm:$0xff]  ;;  %v736_v21 = vld [vmem:[#allocation2 + $0x10a8] sm:$0xff] }
 0x234   :  { %6027 = vmatprep.subr.bf16.mxu1 %v6026_v27  ;;  %v658_v27 = vld [vmem:[#allocation2 + $0xe38] sm:$0xff]  ;;  %v6048_v30 = vpack.c.bf16 %v649_v24, %v641_v22  ;;  %v729_v20 = vld [vmem:[#allocation2 + $0x1070] sm:$0xff]  ;;  %v744_v22 = vld [vmem:[#allocation2 + $0x10e8] sm:$0xff] }
 0x235   :  { %v746_v24 = vld [vmem:[#allocation2 + $0x10f8] sm:$0xff] }
 0x236   :  { %5773 = vmatpush1.bf16.msra.mxu0 %v5772_v33  ;;  %v663_v33 = vld [vmem:[#allocation2 + $0xe60] sm:$0xff]  ;;  %v786_v61 = vld [vmem:[#allocation2 + $0x1238] sm:$0xff] }
 0x237   :  { %6029 = vmatpush1.bf16.msra.mxu1 %v6028_v34  ;;  %5775 = vmatprep.subr.bf16.mxu0 %v5774_v35  ;;  %v657_v34 = vld [vmem:[#allocation2 + $0xe30] sm:$0xff]  ;;  %v6050_v35 = vpack.c.bf16 %v666_v28, %v658_v27  ;;  %v5796_v41 = vpack.c.bf16 %v663_v33, %v655_v32  ;;  %v5814_v27 = vpack.c.bf16 %v744_v22, %v736_v21  ;;  %v735_v28 = vld [vmem:[#allocation2 + $0x10a0] sm:$0xff]  ;;  %v752_v33 = vld [vmem:[#allocation2 + $0x1128] sm:$0xff] }
 0x238   :  { %6031 = vmatprep.subr.bf16.mxu1 %v6030_v39  ;;  %v674_v39 = vld [vmem:[#allocation2 + $0xeb8] sm:$0xff]  ;;  %v6052_v42 = vpack.c.bf16 %v665_v36, %v657_v34  ;;  %v745_v32 = vld [vmem:[#allocation2 + $0x10f0] sm:$0xff]  ;;  %v760_v34 = vld [vmem:[#allocation2 + $0x1168] sm:$0xff] }
 0x239   :  { %v754_v36 = vld [vmem:[#allocation2 + $0x1138] sm:$0xff] }
 0x23a   :  { %5777 = vmatpush1.bf16.msra.mxu0 %v5776_v45  ;;  %v679_v45 = vld [vmem:[#allocation2 + $0xee0] sm:$0xff]  ;;  %v794_v62 = vld [vmem:[#allocation2 + $0x1278] sm:$0xff] }
 0x23b   :  { %6033 = vmatpush1.bf16.msra.mxu1 %v6032_v46  ;;  %5779 = vmatprep.subr.bf16.mxu0 %v5778_v47  ;;  %v673_v46 = vld [vmem:[#allocation2 + $0xeb0] sm:$0xff]  ;;  %v6054_v47 = vpack.c.bf16 %v682_v40, %v674_v39  ;;  %v5800_v53 = vpack.c.bf16 %v679_v45, %v671_v44  ;;  %v5818_v40 = vpack.c.bf16 %v760_v34, %v752_v33  ;;  %v802_v9 = vld [vmem:[#allocation2 + $0x12b8] sm:$0xff] }
 0x23c   :  { %6035 = vmatprep.subr.bf16.mxu1 %v6034_v51  ;;  %v690_v51 = vld [vmem:[#allocation2 + $0xf38] sm:$0xff]  ;;  %v6056_v54 = vpack.c.bf16 %v681_v48, %v673_v46  ;;  %v6074_v44 = vpack.c.bf16 %v762_v37, %v754_v36  ;;  %v761_v45 = vld [vmem:[#allocation2 + $0x1170] sm:$0xff]  ;;  %v768_v46 = vld [vmem:[#allocation2 + $0x11a8] sm:$0xff] }
 0x23d   :  { %v7403_v48 = vld [vmem:[%s8092_s0 + $0x28] sm:$0xff]  ;;  %v810_v10 = vld [vmem:[#allocation2 + $0x12f8] sm:$0xff] }
 0x23e   :  { %5781 = vmatpush1.bf16.msra.mxu0 %v5780_v57  ;;  %v695_v57 = vld [vmem:[#allocation2 + $0xf60] sm:$0xff]  ;;  %v818_v21 = vld [vmem:[#allocation2 + $0x1338] sm:$0xff] }
 0x23f   :  { %6037 = vmatpush1.bf16.msra.mxu1 %v6036_v58  ;;  %5783 = vmatprep.subr.bf16.mxu0 %v5782_v59  ;;  %v689_v58 = vld [vmem:[#allocation2 + $0xf30] sm:$0xff]  ;;  %v6058_v59 = vpack.c.bf16 %v698_v52, %v690_v51  ;;  %v5804_v1 = vpack.c.bf16 %v695_v57, %v687_v56  ;;  %v6078_v57 = vpack.c.bf16 %v778_v50, %v770_v49  ;;  %v826_v22 = vld [vmem:[#allocation2 + $0x1378] sm:$0xff]  ;;  %v847_v50 = vld [vmem:[#allocation2 + $0x1420] sm:$0xff] }
 0x240   :  { %6039 = vmatprep.subr.bf16.mxu1 %v6038_v63  ;;  %v706_v63 = vld [vmem:[#allocation2 + $0xfb8] sm:$0xff]  ;;  %v6060_v2 = vpack.c.bf16 %v697_v60, %v689_v58  ;;  %v769_v56 = vld [vmem:[#allocation2 + $0x11b0] sm:$0xff]  ;;  %v792_v60 = vld [vmem:[#allocation2 + $0x1268] sm:$0xff] }
 0x241   :  { %v777_v58 = vld [vmem:[#allocation2 + $0x11f0] sm:$0xff]  ;;  %v834_v33 = vld [vmem:[#allocation2 + $0x13b8] sm:$0xff] }
 0x242   :  { %5785 = vmatpush1.bf16.msra.mxu0 %v5784_v5  ;;  %v711_v5 = vld [vmem:[#allocation2 + $0xfe0] sm:$0xff]  ;;  %v842_v34 = vld [vmem:[#allocation2 + $0x13f8] sm:$0xff] }
 0x243   :  { %6041 = vmatpush1.bf16.msra.mxu1 %v6040_v6  ;;  %5787 = vmatprep.subr.bf16.mxu0 %v5786_v7  ;;  %v705_v6 = vld [vmem:[#allocation2 + $0xfb0] sm:$0xff]  ;;  %v6062_v7 = vpack.c.bf16 %v714_v0, %v706_v63  ;;  %v5808_v13 = vpack.c.bf16 %v711_v5, %v703_v4  ;;  %v6080_v0 = vpack.c.bf16 %v777_v58, %v769_v56  ;;  %v872_v56 = vld [vmem:[#allocation2 + $0x14e8] sm:$0xff]  ;;  %v874_v58 = vld [vmem:[#allocation2 + $0x14f8] sm:$0xff] }
 0x244   :  { %6043 = vmatprep.subr.bf16.mxu1 %v6042_v11  ;;  %v722_v11 = vld [vmem:[#allocation2 + $0x1038] sm:$0xff]  ;;  %v6064_v14 = vpack.c.bf16 %v713_v8, %v705_v6  ;;  %v785_v4 = vld [vmem:[#allocation2 + $0x1230] sm:$0xff]  ;;  %v6082_v5 = vpack.c.bf16 %v794_v62, %v786_v61  ;;  %v808_v8 = vld [vmem:[#allocation2 + $0x12e8] sm:$0xff] }
 0x245   :  { %v793_v6 = vld [vmem:[#allocation2 + $0x1270] sm:$0xff]  ;;  %v863_v62 = vld [vmem:[#allocation2 + $0x14a0] sm:$0xff] }
 0x246   :  { %5789 = vmatpush1.bf16.msra.mxu0 %v5788_v17  ;;  %v727_v17 = vld [vmem:[#allocation2 + $0x1060] sm:$0xff] }
 0x247   :  { %6045 = vmatpush1.bf16.msra.mxu1 %v6044_v18  ;;  %5791 = vmatprep.subr.bf16.mxu0 %v5790_v19  ;;  %v721_v18 = vld [vmem:[#allocation2 + $0x1030] sm:$0xff]  ;;  %v6066_v19 = vpack.c.bf16 %v730_v12, %v722_v11  ;;  %v5812_v25 = vpack.c.bf16 %v727_v17, %v719_v16  ;;  %v6084_v12 = vpack.c.bf16 %v793_v6, %v785_v4  ;;  %v888_v4 = vld [vmem:[#allocation2 + $0x1568] sm:$0xff]  ;;  %v890_v6 = vld [vmem:[#allocation2 + $0x1578] sm:$0xff] }
 0x248   :  { %6047 = vmatprep.subr.bf16.mxu1 %v6046_v23  ;;  %v738_v23 = vld [vmem:[#allocation2 + $0x10b8] sm:$0xff]  ;;  %v6068_v26 = vpack.c.bf16 %v729_v20, %v721_v18  ;;  %v801_v16 = vld [vmem:[#allocation2 + $0x12b0] sm:$0xff]  ;;  %v6086_v17 = vpack.c.bf16 %v810_v10, %v802_v9  ;;  %v824_v20 = vld [vmem:[#allocation2 + $0x1368] sm:$0xff] }
 0x249   :  { %v809_v18 = vld [vmem:[#allocation2 + $0x12f0] sm:$0xff]  ;;  %v879_v10 = vld [vmem:[#allocation2 + $0x1520] sm:$0xff] }
 0x24a   :  { %5793 = vmatpush1.bf16.msra.mxu0 %v5792_v29  ;;  %v743_v29 = vld [vmem:[#allocation2 + $0x10e0] sm:$0xff] }
 0x24b   :  { %6049 = vmatpush1.bf16.msra.mxu1 %v6048_v30  ;;  %5795 = vmatprep.subr.bf16.mxu0 %v5794_v31  ;;  %v737_v30 = vld [vmem:[#allocation2 + $0x10b0] sm:$0xff]  ;;  %v6070_v31 = vpack.c.bf16 %v746_v24, %v738_v23  ;;  %v5816_v38 = vpack.c.bf16 %v743_v29, %v735_v28  ;;  %v6088_v24 = vpack.c.bf16 %v809_v18, %v801_v16  ;;  %v904_v16 = vld [vmem:[#allocation2 + $0x15e8] sm:$0xff]  ;;  %v906_v18 = vld [vmem:[#allocation2 + $0x15f8] sm:$0xff] }
 0x24c   :  { %6051 = vmatprep.subr.bf16.mxu1 %v6050_v35  ;;  %v7402_v35 = vld [vmem:[%s8092_s0 + $0x10] sm:$0xff]  ;;  %v6072_v39 = vpack.c.bf16 %v745_v32, %v737_v30  ;;  %v6090_v29 = vpack.c.bf16 %v826_v22, %v818_v21  ;;  %v840_v32 = vld [vmem:[#allocation2 + $0x13e8] sm:$0xff]  ;;  %v895_v22 = vld [vmem:[#allocation2 + $0x15a0] sm:$0xff] }
 0x24d   :  { %v817_v28 = vld [vmem:[#allocation2 + $0x1330] sm:$0xff] }
 0x24e   :  { %5797 = vmatpush1.bf16.msra.mxu0 %v5796_v41  ;;  %v751_v41 = vld [vmem:[#allocation2 + $0x1120] sm:$0xff]  ;;  %v825_v30 = vld [vmem:[#allocation2 + $0x1370] sm:$0xff] }
 0x24f   :  { %6053 = vmatpush1.bf16.msra.mxu1 %v6052_v42  ;;  %5799 = vmatprep.subr.bf16.mxu0 %v5798_v43  ;;  %v759_v42 = vld [vmem:[#allocation2 + $0x1160] sm:$0xff]  ;;  %v753_v43 = vld [vmem:[#allocation2 + $0x1130] sm:$0xff]  ;;  %v6092_v36 = vpack.c.bf16 %v825_v30, %v817_v28  ;;  %v920_v28 = vld [vmem:[#allocation2 + $0x1668] sm:$0xff] }
 0x250   :  { %6055 = vmatprep.subr.bf16.mxu1 %v6054_v47  ;;  %v776_v47 = vld [vmem:[#allocation2 + $0x11e8] sm:$0xff]  ;;  %v5820_v51 = vpack.c.bf16 %v759_v42, %v751_v41  ;;  %v6076_v52 = vpack.c.bf16 %v761_v45, %v753_v43  ;;  %v6094_v41 = vpack.c.bf16 %v842_v34, %v834_v33  ;;  %v841_v42 = vld [vmem:[#allocation2 + $0x13f0] sm:$0xff]  ;;  %v850_v45 = vld [vmem:[#allocation2 + $0x1438] sm:$0xff] }
 0x251   :  { %v848_v43 = vld [vmem:[#allocation2 + $0x1428] sm:$0xff]  ;;  %v922_v30 = vld [vmem:[#allocation2 + $0x1678] sm:$0xff]  ;;  %v911_v34 = vld [vmem:[#allocation2 + $0x1620] sm:$0xff] }
 0x252   :  { %5801 = vmatpush1.bf16.msra.mxu0 %v5800_v53  ;;  %v5822_v53 = vpack.c.bf16 %v776_v47, %v768_v46  ;;  %v858_v46 = vld [vmem:[#allocation2 + $0x1478] sm:$0xff] }
 0x253   :  { %6057 = vmatpush1.bf16.msra.mxu1 %v6056_v54  ;;  %5803 = vmatprep.subr.bf16.mxu0 %v5802_v55  ;;  %v767_v54 = vld [vmem:[#allocation2 + $0x11a0] sm:$0xff] }
 0x254   :  { %6059 = vmatprep.subr.bf16.mxu1 %v6058_v59  ;;  %v775_v55 = vld [vmem:[#allocation2 + $0x11e0] sm:$0xff]  ;;  %v784_v59 = vld [vmem:[#allocation2 + $0x1228] sm:$0xff] }
 0x255   :  { %v5824_v63 = vpack.c.bf16 %v775_v55, %v767_v54  ;;  %v857_v54 = vld [vmem:[#allocation2 + $0x1470] sm:$0xff]  ;;  %v864_v55 = vld [vmem:[#allocation2 + $0x14a8] sm:$0xff] }
 0x256   :  { %5805 = vmatpush1.bf16.msra.mxu0 %v5804_v1  ;;  %v5826_v1 = vpack.c.bf16 %v792_v60, %v784_v59  ;;  %v5846_v61 = vpack.c.bf16 %v872_v56, %v864_v55 }
 0x257   :  { %6061 = vmatpush1.bf16.msra.mxu1 %v6060_v2  ;;  %5807 = vmatprep.subr.bf16.mxu0 %v5806_v3  ;;  %v783_v2 = vld [vmem:[#allocation2 + $0x1220] sm:$0xff] }
 0x258   :  { %6063 = vmatprep.subr.bf16.mxu1 %v6062_v7  ;;  %v791_v3 = vld [vmem:[#allocation2 + $0x1260] sm:$0xff]  ;;  %v800_v7 = vld [vmem:[#allocation2 + $0x12a8] sm:$0xff] }
 0x259   :  { %v5828_v11 = vpack.c.bf16 %v791_v3, %v783_v2  ;;  %v873_v2 = vld [vmem:[#allocation2 + $0x14f0] sm:$0xff]  ;;  %v880_v3 = vld [vmem:[#allocation2 + $0x1528] sm:$0xff] }
 0x25a   :  { %5809 = vmatpush1.bf16.msra.mxu0 %v5808_v13  ;;  %v5830_v13 = vpack.c.bf16 %v808_v8, %v800_v7  ;;  %v5850_v9 = vpack.c.bf16 %v888_v4, %v880_v3 }
 0x25b   :  { %6065 = vmatpush1.bf16.msra.mxu1 %v6064_v14  ;;  %5811 = vmatprep.subr.bf16.mxu0 %v5810_v15  ;;  %v799_v14 = vld [vmem:[#allocation2 + $0x12a0] sm:$0xff] }
 0x25c   :  { %6067 = vmatprep.subr.bf16.mxu1 %v6066_v19  ;;  %v807_v15 = vld [vmem:[#allocation2 + $0x12e0] sm:$0xff]  ;;  %v816_v19 = vld [vmem:[#allocation2 + $0x1328] sm:$0xff] }
 0x25d   :  { %1973 = vmatmul.mubr.f32.vlgmr.msra.gmra.mrb[2].mxu0 %v7402_v35  ;;  %v5832_v23 = vpack.c.bf16 %v807_v15, %v799_v14  ;;  %v889_v14 = vld [vmem:[#allocation2 + $0x1570] sm:$0xff]  ;;  %v896_v15 = vld [vmem:[#allocation2 + $0x15a8] sm:$0xff] }
 0x25e   :  { %5813 = vmatpush1.bf16.msra.mxu0 %v5812_v25  ;;  %2257 = vmatmul.mubr.f32.vlgmr.msra.gmra.mrb[2].mxu1 %v7402_v35  ;;  %v5834_v25 = vpack.c.bf16 %v824_v20, %v816_v19  ;;  %v5854_v21 = vpack.c.bf16 %v904_v16, %v896_v15 }
 0x25f   :  { %6069 = vmatpush1.bf16.msra.mxu1 %v6068_v26  ;;  %5815 = vmatprep.subr.bf16.mxu0 %v5814_v27  ;;  %v815_v26 = vld [vmem:[#allocation2 + $0x1320] sm:$0xff] }
 0x260   :  { %6071 = vmatprep.subr.bf16.mxu1 %v6070_v31  ;;  %2043 = vmatprep.mubr.f32.mxu0 %v7403_v48  ;;  %v823_v27 = vld [vmem:[#allocation2 + $0x1360] sm:$0xff]  ;;  %v832_v31 = vld [vmem:[#allocation2 + $0x13a8] sm:$0xff] }
 0x261   :  { %2327 = vmatprep.mubr.f32.mxu1 %v7403_v48  ;;  %v5836_v35 = vpack.c.bf16 %v823_v27, %v815_v26  ;;  %v5838_v37 = vpack.c.bf16 %v840_v32, %v832_v31  ;;  %v905_v26 = vld [vmem:[#allocation2 + $0x15f0] sm:$0xff]  ;;  %v912_v27 = vld [vmem:[#allocation2 + $0x1628] sm:$0xff] }
 0x262   :  { %5817 = vmatpush1.bf16.msra.mxu0 %v5816_v38  ;;  %v831_v38 = vld [vmem:[#allocation2 + $0x13a0] sm:$0xff]  ;;  %v5858_v33 = vpack.c.bf16 %v920_v28, %v912_v27 }
 0x263   :  { %6073 = vmatpush1.bf16.msra.mxu1 %v6072_v39  ;;  %5819 = vmatprep.subr.bf16.mxu0 %v5818_v40  ;;  %v839_v39 = vld [vmem:[#allocation2 + $0x13e0] sm:$0xff]  ;;  %v833_v40 = vld [vmem:[#allocation2 + $0x13b0] sm:$0xff] }
 0x264   :  { %6075 = vmatprep.subr.bf16.mxu1 %v6074_v44  ;;  %v856_v44 = vld [vmem:[#allocation2 + $0x1468] sm:$0xff]  ;;  %v5840_v47 = vpack.c.bf16 %v839_v39, %v831_v38  ;;  %v6096_v48 = vpack.c.bf16 %v841_v42, %v833_v40  ;;  %v921_v38 = vld [vmem:[#allocation2 + $0x1670] sm:$0xff]  ;;  %v938_v42 = vld [vmem:[#allocation2 + $0x16f8] sm:$0xff] }
 0x265   :  { %v5842_v49 = vpack.c.bf16 %v856_v44, %v848_v43  ;;  %v928_v39 = vld [vmem:[#allocation2 + $0x16a8] sm:$0xff] }
 0x266   :  { %5821 = vmatpush1.bf16.msra.mxu0 %v5820_v51  ;;  %v855_v51 = vld [vmem:[#allocation2 + $0x1460] sm:$0xff]  ;;  %v936_v40 = vld [vmem:[#allocation2 + $0x16e8] sm:$0xff] }
 0x267   :  { %6077 = vmatpush1.bf16.msra.mxu1 %v6076_v52  ;;  %5823 = vmatprep.subr.bf16.mxu0 %v5822_v53  ;;  %v849_v52 = vld [vmem:[#allocation2 + $0x1430] sm:$0xff]  ;;  %v6098_v53 = vpack.c.bf16 %v858_v46, %v850_v45  ;;  %v5844_v59 = vpack.c.bf16 %v855_v51, %v847_v50  ;;  %v5862_v45 = vpack.c.bf16 %v936_v40, %v928_v39  ;;  %v927_v46 = vld [vmem:[#allocation2 + $0x16a0] sm:$0xff]  ;;  %v944_v51 = vld [vmem:[#allocation2 + $0x1728] sm:$0xff] }
 0x268   :  { %6079 = vmatprep.subr.bf16.mxu1 %v6078_v57  ;;  %v866_v57 = vld [vmem:[#allocation2 + $0x14b8] sm:$0xff]  ;;  %v6100_v60 = vpack.c.bf16 %v857_v54, %v849_v52  ;;  %v937_v50 = vld [vmem:[#allocation2 + $0x16f0] sm:$0xff]  ;;  %v952_v52 = vld [vmem:[#allocation2 + $0x1768] sm:$0xff] }
 0x269   :  { %v954_v54 = vld [vmem:[#allocation2 + $0x1778] sm:$0xff] }
 0x26a   :  { %5825 = vmatpush1.bf16.msra.mxu0 %v5824_v63  ;;  %v871_v63 = vld [vmem:[#allocation2 + $0x14e0] sm:$0xff]  ;;  %v1018_v39 = vld [vmem:[#allocation2 + $0x1978] sm:$0xff] }
 0x26b   :  { %6081 = vmatpush1.bf16.msra.mxu1 %v6080_v0  ;;  %5827 = vmatprep.subr.bf16.mxu0 %v5826_v1  ;;  %v865_v0 = vld [vmem:[#allocation2 + $0x14b0] sm:$0xff]  ;;  %v6102_v1 = vpack.c.bf16 %v874_v58, %v866_v57  ;;  %v5848_v7 = vpack.c.bf16 %v871_v63, %v863_v62  ;;  %v5866_v57 = vpack.c.bf16 %v952_v52, %v944_v51  ;;  %v943_v58 = vld [vmem:[#allocation2 + $0x1720] sm:$0xff]  ;;  %v960_v63 = vld [vmem:[#allocation2 + $0x17a8] sm:$0xff] }
 0x26c   :  { %6083 = vmatprep.subr.bf16.mxu1 %v6082_v5  ;;  %v882_v5 = vld [vmem:[#allocation2 + $0x1538] sm:$0xff]  ;;  %v6104_v8 = vpack.c.bf16 %v873_v2, %v865_v0  ;;  %v953_v62 = vld [vmem:[#allocation2 + $0x1770] sm:$0xff]  ;;  %v968_v0 = vld [vmem:[#allocation2 + $0x17e8] sm:$0xff] }
 0x26d   :  { %v970_v2 = vld [vmem:[#allocation2 + $0x17f8] sm:$0xff] }
 0x26e   :  { %5829 = vmatpush1.bf16.msra.mxu0 %v5828_v11  ;;  %v887_v11 = vld [vmem:[#allocation2 + $0x1560] sm:$0xff]  ;;  %v1026_v51 = vld [vmem:[#allocation2 + $0x19b8] sm:$0xff] }
 0x26f   :  { %6085 = vmatpush1.bf16.msra.mxu1 %v6084_v12  ;;  %5831 = vmatprep.subr.bf16.mxu0 %v5830_v13  ;;  %v881_v12 = vld [vmem:[#allocation2 + $0x1530] sm:$0xff]  ;;  %v6106_v13 = vpack.c.bf16 %v890_v6, %v882_v5  ;;  %v5852_v19 = vpack.c.bf16 %v887_v11, %v879_v10  ;;  %v5870_v5 = vpack.c.bf16 %v968_v0, %v960_v63  ;;  %v959_v6 = vld [vmem:[#allocation2 + $0x17a0] sm:$0xff]  ;;  %v976_v11 = vld [vmem:[#allocation2 + $0x1828] sm:$0xff] }
 0x270   :  { %6087 = vmatprep.subr.bf16.mxu1 %v6086_v17  ;;  %v898_v17 = vld [vmem:[#allocation2 + $0x15b8] sm:$0xff]  ;;  %v6108_v20 = vpack.c.bf16 %v889_v14, %v881_v12  ;;  %v969_v10 = vld [vmem:[#allocation2 + $0x17f0] sm:$0xff]  ;;  %v984_v12 = vld [vmem:[#allocation2 + $0x1868] sm:$0xff] }
 0x271   :  { %v986_v14 = vld [vmem:[#allocation2 + $0x1878] sm:$0xff] }
 0x272   :  { %5833 = vmatpush1.bf16.msra.mxu0 %v5832_v23  ;;  %v903_v23 = vld [vmem:[#allocation2 + $0x15e0] sm:$0xff]  ;;  %v1034_v52 = vld [vmem:[#allocation2 + $0x19f8] sm:$0xff] }
 0x273   :  { %6089 = vmatpush1.bf16.msra.mxu1 %v6088_v24  ;;  %5835 = vmatprep.subr.bf16.mxu0 %v5834_v25  ;;  %v897_v24 = vld [vmem:[#allocation2 + $0x15b0] sm:$0xff]  ;;  %v6110_v25 = vpack.c.bf16 %v906_v18, %v898_v17  ;;  %v5856_v31 = vpack.c.bf16 %v903_v23, %v895_v22  ;;  %v5874_v17 = vpack.c.bf16 %v984_v12, %v976_v11  ;;  %v975_v18 = vld [vmem:[#allocation2 + $0x1820] sm:$0xff]  ;;  %v992_v23 = vld [vmem:[#allocation2 + $0x18a8] sm:$0xff] }
 0x274   :  { %6091 = vmatprep.subr.bf16.mxu1 %v6090_v29  ;;  %v914_v29 = vld [vmem:[#allocation2 + $0x1638] sm:$0xff]  ;;  %v6112_v32 = vpack.c.bf16 %v905_v26, %v897_v24  ;;  %v985_v22 = vld [vmem:[#allocation2 + $0x1870] sm:$0xff]  ;;  %v1000_v24 = vld [vmem:[#allocation2 + $0x18e8] sm:$0xff] }
 0x275   :  { %v1002_v26 = vld [vmem:[#allocation2 + $0x18f8] sm:$0xff] }
 0x276   :  { %5837 = vmatpush1.bf16.msra.mxu0 %v5836_v35  ;;  %v919_v35 = vld [vmem:[#allocation2 + $0x1660] sm:$0xff]  ;;  %v1042_v63 = vld [vmem:[#allocation2 + $0x1a38] sm:$0xff] }
 0x277   :  { %6093 = vmatpush1.bf16.msra.mxu1 %v6092_v36  ;;  %5839 = vmatprep.subr.bf16.mxu0 %v5838_v37  ;;  %v913_v36 = vld [vmem:[#allocation2 + $0x1630] sm:$0xff]  ;;  %v6114_v37 = vpack.c.bf16 %v922_v30, %v914_v29  ;;  %v5860_v43 = vpack.c.bf16 %v919_v35, %v911_v34  ;;  %v5878_v29 = vpack.c.bf16 %v1000_v24, %v992_v23  ;;  %v991_v30 = vld [vmem:[#allocation2 + $0x18a0] sm:$0xff]  ;;  %v1008_v35 = vld [vmem:[#allocation2 + $0x1928] sm:$0xff] }
 0x278   :  { %6095 = vmatprep.subr.bf16.mxu1 %v6094_v41  ;;  %v930_v41 = vld [vmem:[#allocation2 + $0x16b8] sm:$0xff]  ;;  %v6116_v44 = vpack.c.bf16 %v921_v38, %v913_v36  ;;  %v1001_v34 = vld [vmem:[#allocation2 + $0x18f0] sm:$0xff]  ;;  %v1016_v36 = vld [vmem:[#allocation2 + $0x1968] sm:$0xff] }
 0x279   :  { %v1010_v38 = vld [vmem:[#allocation2 + $0x1938] sm:$0xff] }
 0x27a   :  { %5841 = vmatpush1.bf16.msra.mxu0 %v5840_v47  ;;  %v935_v47 = vld [vmem:[#allocation2 + $0x16e0] sm:$0xff]  ;;  %v1050_v0 = vld [vmem:[#allocation2 + $0x1a78] sm:$0xff] }
 0x27b   :  { %6097 = vmatpush1.bf16.msra.mxu1 %v6096_v48  ;;  %5843 = vmatprep.subr.bf16.mxu0 %v5842_v49  ;;  %v929_v48 = vld [vmem:[#allocation2 + $0x16b0] sm:$0xff]  ;;  %v6118_v49 = vpack.c.bf16 %v938_v42, %v930_v41  ;;  %v5864_v55 = vpack.c.bf16 %v935_v47, %v927_v46  ;;  %v5882_v42 = vpack.c.bf16 %v1016_v36, %v1008_v35  ;;  %v1058_v11 = vld [vmem:[#allocation2 + $0x1ab8] sm:$0xff]  ;;  %v1096_v35 = vld [vmem:[#allocation2 + $0x1be8] sm:$0xff] }
 0x27c   :  { %6099 = vmatprep.subr.bf16.mxu1 %v6098_v53  ;;  %v946_v53 = vld [vmem:[#allocation2 + $0x1738] sm:$0xff]  ;;  %v6120_v56 = vpack.c.bf16 %v937_v50, %v929_v48  ;;  %v6138_v46 = vpack.c.bf16 %v1018_v39, %v1010_v38  ;;  %v1017_v47 = vld [vmem:[#allocation2 + $0x1970] sm:$0xff]  ;;  %v1024_v48 = vld [vmem:[#allocation2 + $0x19a8] sm:$0xff] }
 0x27d   :  { %v7405_v50 = vld [vmem:[%s8092_s0 + $0x38] sm:$0xff] }
 0x27e   :  { %5845 = vmatpush1.bf16.msra.mxu0 %v5844_v59  ;;  %v951_v59 = vld [vmem:[#allocation2 + $0x1760] sm:$0xff]  ;;  %v1066_v12 = vld [vmem:[#allocation2 + $0x1af8] sm:$0xff] }
 0x27f   :  { %6101 = vmatpush1.bf16.msra.mxu1 %v6100_v60  ;;  %5847 = vmatprep.subr.bf16.mxu0 %v5846_v61  ;;  %v945_v60 = vld [vmem:[#allocation2 + $0x1730] sm:$0xff]  ;;  %v6122_v61 = vpack.c.bf16 %v954_v54, %v946_v53  ;;  %v5868_v3 = vpack.c.bf16 %v951_v59, %v943_v58  ;;  %v6142_v59 = vpack.c.bf16 %v1034_v52, %v1026_v51  ;;  %v1074_v23 = vld [vmem:[#allocation2 + $0x1b38] sm:$0xff] }
 0x280   :  { %6103 = vmatprep.subr.bf16.mxu1 %v6102_v1  ;;  %v962_v1 = vld [vmem:[#allocation2 + $0x17b8] sm:$0xff]  ;;  %v6124_v4 = vpack.c.bf16 %v953_v62, %v945_v60  ;;  %v1025_v58 = vld [vmem:[#allocation2 + $0x19b0] sm:$0xff]  ;;  %v1048_v62 = vld [vmem:[#allocation2 + $0x1a68] sm:$0xff] }
 0x281   :  { %v1033_v60 = vld [vmem:[#allocation2 + $0x19f0] sm:$0xff]  ;;  %v1082_v24 = vld [vmem:[#allocation2 + $0x1b78] sm:$0xff] }
 0x282   :  { %5849 = vmatpush1.bf16.msra.mxu0 %v5848_v7  ;;  %v967_v7 = vld [vmem:[#allocation2 + $0x17e0] sm:$0xff]  ;;  %v1090_v38 = vld [vmem:[#allocation2 + $0x1bb8] sm:$0xff] }
 0x283   :  { %6105 = vmatpush1.bf16.msra.mxu1 %v6104_v8  ;;  %5851 = vmatprep.subr.bf16.mxu0 %v5850_v9  ;;  %v961_v8 = vld [vmem:[#allocation2 + $0x17b0] sm:$0xff]  ;;  %v6126_v9 = vpack.c.bf16 %v970_v2, %v962_v1  ;;  %v5872_v15 = vpack.c.bf16 %v967_v7, %v959_v6  ;;  %v6144_v2 = vpack.c.bf16 %v1033_v60, %v1025_v58  ;;  %v1098_v39 = vld [vmem:[#allocation2 + $0x1bf8] sm:$0xff] }
 0x284   :  { %6107 = vmatprep.subr.bf16.mxu1 %v6106_v13  ;;  %v978_v13 = vld [vmem:[#allocation2 + $0x1838] sm:$0xff]  ;;  %v6128_v16 = vpack.c.bf16 %v969_v10, %v961_v8  ;;  %v1041_v6 = vld [vmem:[#allocation2 + $0x1a30] sm:$0xff]  ;;  %v6146_v7 = vpack.c.bf16 %v1050_v0, %v1042_v63  ;;  %v1064_v10 = vld [vmem:[#allocation2 + $0x1ae8] sm:$0xff] }
 0x285   :  { %v1049_v8 = vld [vmem:[#allocation2 + $0x1a70] sm:$0xff]  ;;  %v1106_v51 = vld [vmem:[#allocation2 + $0x1c38] sm:$0xff] }
 0x286   :  { %5853 = vmatpush1.bf16.msra.mxu0 %v5852_v19  ;;  %v983_v19 = vld [vmem:[#allocation2 + $0x1860] sm:$0xff]  ;;  %v1114_v52 = vld [vmem:[#allocation2 + $0x1c78] sm:$0xff]  ;;  %v1105_v58 = vld [vmem:[#allocation2 + $0x1c30] sm:$0xff] }
 0x287   :  { %6109 = vmatpush1.bf16.msra.mxu1 %v6108_v20  ;;  %5855 = vmatprep.subr.bf16.mxu0 %v5854_v21  ;;  %v977_v20 = vld [vmem:[#allocation2 + $0x1830] sm:$0xff]  ;;  %v6130_v21 = vpack.c.bf16 %v986_v14, %v978_v13  ;;  %v5876_v27 = vpack.c.bf16 %v983_v19, %v975_v18  ;;  %v6148_v14 = vpack.c.bf16 %v1049_v8, %v1041_v6  ;;  %v1122_v63 = vld [vmem:[#allocation2 + $0x1cb8] sm:$0xff] }
 0x288   :  { %6111 = vmatprep.subr.bf16.mxu1 %v6110_v25  ;;  %v994_v25 = vld [vmem:[#allocation2 + $0x18b8] sm:$0xff]  ;;  %v6132_v28 = vpack.c.bf16 %v985_v22, %v977_v20  ;;  %v1057_v18 = vld [vmem:[#allocation2 + $0x1ab0] sm:$0xff]  ;;  %v6150_v19 = vpack.c.bf16 %v1066_v12, %v1058_v11  ;;  %v1080_v22 = vld [vmem:[#allocation2 + $0x1b68] sm:$0xff] }
 0x289   :  { %v1065_v20 = vld [vmem:[#allocation2 + $0x1af0] sm:$0xff]  ;;  %v1130_v0 = vld [vmem:[#allocation2 + $0x1cf8] sm:$0xff] }
 0x28a   :  { %5857 = vmatpush1.bf16.msra.mxu0 %v5856_v31  ;;  %v999_v31 = vld [vmem:[#allocation2 + $0x18e0] sm:$0xff]  ;;  %v1113_v60 = vld [vmem:[#allocation2 + $0x1c70] sm:$0xff]  ;;  %v1138_v11 = vld [vmem:[#allocation2 + $0x1d38] sm:$0xff] }
 0x28b   :  { %6113 = vmatpush1.bf16.msra.mxu1 %v6112_v32  ;;  %5859 = vmatprep.subr.bf16.mxu0 %v5858_v33  ;;  %v993_v32 = vld [vmem:[#allocation2 + $0x18b0] sm:$0xff]  ;;  %v6134_v33 = vpack.c.bf16 %v1002_v26, %v994_v25  ;;  %v5880_v40 = vpack.c.bf16 %v999_v31, %v991_v30  ;;  %v6152_v26 = vpack.c.bf16 %v1065_v20, %v1057_v18  ;;  %v1146_v12 = vld [vmem:[#allocation2 + $0x1d78] sm:$0xff] }
 0x28c   :  { %6115 = vmatprep.subr.bf16.mxu1 %v6114_v37  ;;  %v7404_v37 = vld [vmem:[%s8092_s0 + $0x20] sm:$0xff]  ;;  %v6136_v41 = vpack.c.bf16 %v1001_v34, %v993_v32  ;;  %v1073_v30 = vld [vmem:[#allocation2 + $0x1b30] sm:$0xff]  ;;  %v6154_v32 = vpack.c.bf16 %v1082_v24, %v1074_v23  ;;  %v1088_v34 = vld [vmem:[#allocation2 + $0x1ba8] sm:$0xff] }
 0x28d   :  { %v1121_v6 = vld [vmem:[#allocation2 + $0x1cb0] sm:$0xff]  ;;  %v1154_v23 = vld [vmem:[#allocation2 + $0x1db8] sm:$0xff] }
 0x28e   :  { %5861 = vmatpush1.bf16.msra.mxu0 %v5860_v43  ;;  %v1007_v43 = vld [vmem:[#allocation2 + $0x1920] sm:$0xff]  ;;  %v1129_v8 = vld [vmem:[#allocation2 + $0x1cf0] sm:$0xff]  ;;  %v1162_v24 = vld [vmem:[#allocation2 + $0x1df8] sm:$0xff] }
 0x28f   :  { %6117 = vmatpush1.bf16.msra.mxu1 %v6116_v44  ;;  %5863 = vmatprep.subr.bf16.mxu0 %v5862_v45  ;;  %v1015_v44 = vld [vmem:[#allocation2 + $0x1960] sm:$0xff]  ;;  %v1009_v45 = vld [vmem:[#allocation2 + $0x1930] sm:$0xff] }
 0x290   :  { %6119 = vmatprep.subr.bf16.mxu1 %v6118_v49  ;;  %v1032_v49 = vld [vmem:[#allocation2 + $0x19e8] sm:$0xff]  ;;  %v5884_v53 = vpack.c.bf16 %v1015_v44, %v1007_v43  ;;  %v6140_v54 = vpack.c.bf16 %v1017_v47, %v1009_v45  ;;  %v5902_v43 = vpack.c.bf16 %v1096_v35, %v1088_v34  ;;  %v1087_v44 = vld [vmem:[#allocation2 + $0x1ba0] sm:$0xff]  ;;  %v6158_v47 = vpack.c.bf16 %v1098_v39, %v1090_v38  ;;  %v1137_v18 = vld [vmem:[#allocation2 + $0x1d30] sm:$0xff] }
 0x291   :  { %v1095_v45 = vld [vmem:[#allocation2 + $0x1be0] sm:$0xff]  ;;  %v1145_v20 = vld [vmem:[#allocation2 + $0x1d70] sm:$0xff]  ;;  %v1168_v34 = vld [vmem:[#allocation2 + $0x1e28] sm:$0xff] }
 0x292   :  { %5865 = vmatpush1.bf16.msra.mxu0 %v5864_v55  ;;  %v5886_v55 = vpack.c.bf16 %v1032_v49, %v1024_v48  ;;  %v1097_v48 = vld [vmem:[#allocation2 + $0x1bf0] sm:$0xff]  ;;  %v1104_v49 = vld [vmem:[#allocation2 + $0x1c28] sm:$0xff]  ;;  %v1170_v38 = vld [vmem:[#allocation2 + $0x1e38] sm:$0xff] }
 0x293   :  { %6121 = vmatpush1.bf16.msra.mxu1 %v6120_v56  ;;  %5867 = vmatprep.subr.bf16.mxu0 %v5866_v57  ;;  %v1023_v56 = vld [vmem:[#allocation2 + $0x19a0] sm:$0xff]  ;;  %v1176_v35 = vld [vmem:[#allocation2 + $0x1e68] sm:$0xff]  ;;  %v1178_v39 = vld [vmem:[#allocation2 + $0x1e78] sm:$0xff] }
 0x294   :  { %6123 = vmatprep.subr.bf16.mxu1 %v6122_v61  ;;  %v1031_v57 = vld [vmem:[#allocation2 + $0x19e0] sm:$0xff]  ;;  %v1040_v61 = vld [vmem:[#allocation2 + $0x1a28] sm:$0xff] }
 0x295   :  { %v5888_v1 = vpack.c.bf16 %v1031_v57, %v1023_v56  ;;  %v1103_v56 = vld [vmem:[#allocation2 + $0x1c20] sm:$0xff] }
 0x296   :  { %5869 = vmatpush1.bf16.msra.mxu0 %v5868_v3  ;;  %v5890_v3 = vpack.c.bf16 %v1048_v62, %v1040_v61  ;;  %v1111_v57 = vld [vmem:[#allocation2 + $0x1c60] sm:$0xff]  ;;  %v1120_v61 = vld [vmem:[#allocation2 + $0x1ca8] sm:$0xff] }
 0x297   :  { %6125 = vmatpush1.bf16.msra.mxu1 %v6124_v4  ;;  %5871 = vmatprep.subr.bf16.mxu0 %v5870_v5  ;;  %v1039_v4 = vld [vmem:[#allocation2 + $0x1a20] sm:$0xff]  ;;  %v1128_v62 = vld [vmem:[#allocation2 + $0x1ce8] sm:$0xff] }
 0x298   :  { %6127 = vmatprep.subr.bf16.mxu1 %v6126_v9  ;;  %v1047_v5 = vld [vmem:[#allocation2 + $0x1a60] sm:$0xff]  ;;  %v1056_v9 = vld [vmem:[#allocation2 + $0x1aa8] sm:$0xff] }
 0x299   :  { %v5892_v13 = vpack.c.bf16 %v1047_v5, %v1039_v4  ;;  %v1119_v4 = vld [vmem:[#allocation2 + $0x1ca0] sm:$0xff] }
 0x29a   :  { %5873 = vmatpush1.bf16.msra.mxu0 %v5872_v15  ;;  %v5894_v15 = vpack.c.bf16 %v1064_v10, %v1056_v9  ;;  %v1127_v5 = vld [vmem:[#allocation2 + $0x1ce0] sm:$0xff]  ;;  %v1136_v9 = vld [vmem:[#allocation2 + $0x1d28] sm:$0xff] }
 0x29b   :  { %6129 = vmatpush1.bf16.msra.mxu1 %v6128_v16  ;;  %5875 = vmatprep.subr.bf16.mxu0 %v5874_v17  ;;  %v1055_v16 = vld [vmem:[#allocation2 + $0x1aa0] sm:$0xff]  ;;  %v1144_v10 = vld [vmem:[#allocation2 + $0x1d68] sm:$0xff] }
 0x29c   :  { %6131 = vmatprep.subr.bf16.mxu1 %v6130_v21  ;;  %v1063_v17 = vld [vmem:[#allocation2 + $0x1ae0] sm:$0xff]  ;;  %v1072_v21 = vld [vmem:[#allocation2 + $0x1b28] sm:$0xff] }
 0x29d   :  { %2044 = vmatmul.mubr.f32.vlgmr.msra.gmra.mrb[2].mxu0 %v7404_v37  ;;  %v5896_v25 = vpack.c.bf16 %v1063_v17, %v1055_v16  ;;  %v1135_v16 = vld [vmem:[#allocation2 + $0x1d20] sm:$0xff] }
 0x29e   :  { %5877 = vmatpush1.bf16.msra.mxu0 %v5876_v27  ;;  %2328 = vmatmul.mubr.f32.vlgmr.msra.gmra.mrb[2].mxu1 %v7404_v37  ;;  %v5898_v27 = vpack.c.bf16 %v1080_v22, %v1072_v21  ;;  %v1143_v17 = vld [vmem:[#allocation2 + $0x1d60] sm:$0xff]  ;;  %v1152_v21 = vld [vmem:[#allocation2 + $0x1da8] sm:$0xff] }
 0x29f   :  { %6133 = vmatpush1.bf16.msra.mxu1 %v6132_v28  ;;  %5879 = vmatprep.subr.bf16.mxu0 %v5878_v29  ;;  %v1071_v28 = vld [vmem:[#allocation2 + $0x1b20] sm:$0xff]  ;;  %v1160_v22 = vld [vmem:[#allocation2 + $0x1de8] sm:$0xff] }
 0x2a0   :  { %6135 = vmatprep.subr.bf16.mxu1 %v6134_v33  ;;  %2114 = vmatprep.mubr.f32.mxu0 %v7405_v50  ;;  %v1079_v29 = vld [vmem:[#allocation2 + $0x1b60] sm:$0xff]  ;;  %v1081_v33 = vld [vmem:[#allocation2 + $0x1b70] sm:$0xff] }
 0x2a1   :  { %2398 = vmatprep.mubr.f32.mxu1 %v7405_v50  ;;  %v1112_v50 = vld [vmem:[#allocation2 + $0x1c68] sm:$0xff] }
 0x2a2   :  { %5881 = vmatpush1.bf16.msra.mxu0 %v5880_v40 }
 0x2a3   :  { %6137 = vmatpush1.bf16.msra.mxu1 %v6136_v41  ;;  %5883 = vmatprep.subr.bf16.mxu0 %v5882_v42  ;;  %v5900_v41 = vpack.c.bf16 %v1079_v29, %v1071_v28  ;;  %v6156_v42 = vpack.c.bf16 %v1081_v33, %v1073_v30  ;;  %v1151_v28 = vld [vmem:[#allocation2 + $0x1da0] sm:$0xff]  ;;  %v1153_v30 = vld [vmem:[#allocation2 + $0x1db0] sm:$0xff] }
 0x2a4   :  { %6139 = vmatprep.subr.bf16.mxu1 %v6138_v46  ;;  %v1089_v46 = vld [vmem:[#allocation2 + $0x1bb0] sm:$0xff]  ;;  %v1159_v29 = vld [vmem:[#allocation2 + $0x1de0] sm:$0xff] }
 0x2a5   :  { %v1161_v33 = vld [vmem:[#allocation2 + $0x1df0] sm:$0xff] }
 0x2a6   :  { %5885 = vmatpush1.bf16.msra.mxu0 %v5884_v53  ;;  %v5904_v53 = vpack.c.bf16 %v1095_v45, %v1087_v44  ;;  %v1167_v44 = vld [vmem:[#allocation2 + $0x1e20] sm:$0xff] }
 0x2a7   :  { %6141 = vmatpush1.bf16.msra.mxu1 %v6140_v54  ;;  %5887 = vmatprep.subr.bf16.mxu0 %v5886_v55  ;;  %v6160_v54 = vpack.c.bf16 %v1097_v48, %v1089_v46  ;;  %v5906_v55 = vpack.c.bf16 %v1112_v50, %v1104_v49  ;;  %v1175_v45 = vld [vmem:[#allocation2 + $0x1e60] sm:$0xff]  ;;  %v1169_v46 = vld [vmem:[#allocation2 + $0x1e30] sm:$0xff]  ;;  %v1184_v49 = vld [vmem:[#allocation2 + $0x1ea8] sm:$0xff] }
 0x2a8   :  { %6143 = vmatprep.subr.bf16.mxu1 %v6142_v59  ;;  %v6162_v59 = vpack.c.bf16 %v1114_v52, %v1106_v51  ;;  %v1177_v48 = vld [vmem:[#allocation2 + $0x1e70] sm:$0xff]  ;;  %v1192_v50 = vld [vmem:[#allocation2 + $0x1ee8] sm:$0xff]  ;;  %v1229_v51 = vlaneseq  ;;  %v1186_v52 = vld [vmem:[#allocation2 + $0x1eb8] sm:$0xff] }
 0x2aa   :  { %5889 = vmatpush1.bf16.msra.mxu0 %v5888_v1  ;;  %v5908_v1 = vpack.c.bf16 %v1111_v57, %v1103_v56  ;;  %v5926_v56 = vpack.c.bf16 %v1192_v50, %v1184_v49  ;;  %v1183_v57 = vld [vmem:[#allocation2 + $0x1ea0] sm:$0xff]  ;;  %v2421_v49 = vld [vmem:[#allocation6 + $0x40] sm:$0xff] }
 0x2ab   :  { %6145 = vmatpush1.bf16.msra.mxu1 %v6144_v2  ;;  %5891 = vmatprep.subr.bf16.mxu0 %v5890_v3  ;;  %v6164_v2 = vpack.c.bf16 %v1113_v60, %v1105_v58  ;;  %v5910_v3 = vpack.c.bf16 %v1128_v62, %v1120_v61  ;;  %v1191_v58 = vld [vmem:[#allocation2 + $0x1ee0] sm:$0xff]  ;;  %v1193_v61 = vld [vmem:[#allocation2 + $0x1ef0] sm:$0xff]  ;;  %v1200_v62 = vld [vmem:[#allocation2 + $0x1f28] sm:$0xff] }
 0x2ac   :  { %6147 = vmatprep.subr.bf16.mxu1 %v6146_v7  ;;  %v6166_v7 = vpack.c.bf16 %v1130_v0, %v1122_v63  ;;  %v1208_v63 = vld [vmem:[#allocation2 + $0x1f68] sm:$0xff]  ;;  %v7994_v0 = vshrl.u32 %v1229_v51, 7  ;;  %v2423_v51 = vld [vmem:[#allocation6 + $0x50] sm:$0xff] }
 0x2ad   :  { %v2425_v50 = vld [vmem:[#allocation6 + $0x60] sm:$0xff] }
 0x2ae   :  { %5893 = vmatpush1.bf16.msra.mxu0 %v5892_v13  ;;  %v5912_v13 = vpack.c.bf16 %v1127_v5, %v1119_v4  ;;  %v5930_v5 = vpack.c.bf16 %v1208_v63, %v1200_v62  ;;  %v2429_v63 = vld [vmem:[#allocation6 + $0x80] sm:$0xff] }
 0x2af   :  { %6149 = vmatpush1.bf16.msra.mxu1 %v6148_v14  ;;  %5895 = vmatprep.subr.bf16.mxu0 %v5894_v15  ;;  %v6168_v14 = vpack.c.bf16 %v1129_v8, %v1121_v6  ;;  %v5914_v15 = vpack.c.bf16 %v1144_v10, %v1136_v9  ;;  %v1199_v6 = vld [vmem:[#allocation2 + $0x1f20] sm:$0xff]  ;;  %v1201_v8 = vld [vmem:[#allocation2 + $0x1f30] sm:$0xff] }
 0x2b0   :  { %v7986_v31 = vpop.f32.mrb[0].mxu0  ;;  %6151 = vmatprep.subr.bf16.mxu1 %v6150_v19  ;;  %v6170_v19 = vpack.c.bf16 %v1146_v12, %v1138_v11  ;;  %v1209_v10 = vld [vmem:[#allocation2 + $0x1f70] sm:$0xff]  ;;  %v1216_v11 = vld [vmem:[#allocation2 + $0x1fa8] sm:$0xff] }
 0x2b1   :  { %v7988_v36 = vpop.f32.mrb[0].mxu1  ;;  %v7990_v37 = vpop.f32.mrb[1].mxu0  ;;  %v1224_v12 = vld [vmem:[#allocation2 + $0x1fe8] sm:$0xff] }
 0x2b2   :  { %v7992_v40 = vpop.f32.mrb[1].mxu1  ;;  %5897 = vmatpush1.bf16.msra.mxu0 %v5896_v25  ;;  %v5916_v25 = vpack.c.bf16 %v1143_v17, %v1135_v16  ;;  %v7999_v16 = vld [vmem:[#allocation4] sm:$0xff] }
 0x2b3   :  { %6153 = vmatpush1.bf16.msra.mxu1 %v6152_v26  ;;  %5899 = vmatprep.subr.bf16.mxu0 %v5898_v27  ;;  %v6172_v26 = vpack.c.bf16 %v1145_v20, %v1137_v18  ;;  %v5918_v27 = vpack.c.bf16 %v1160_v22, %v1152_v21  ;;  %v6188_v18 = vpack.c.bf16 %v1209_v10, %v1201_v8  ;;  %v1215_v20 = vld [vmem:[#allocation2 + $0x1fa0] sm:$0xff]  ;;  %v1217_v22 = vld [vmem:[#allocation2 + $0x1fb0] sm:$0xff] }
 0x2b4   :  { %6155 = vmatprep.subr.bf16.mxu1 %v6154_v32  ;;  %v6174_v32 = vpack.c.bf16 %v1162_v24, %v1154_v23  ;;  %v1223_v21 = vld [vmem:[#allocation2 + $0x1fe0] sm:$0xff]  ;;  %v1225_v24 = vld [vmem:[#allocation2 + $0x1ff0] sm:$0xff] }
 0x2b5   :  { %v2444_v8 = vld [vmem:[#allocation6 + $0xf8] sm:$0xff] }
 0x2b6   :  { %5901 = vmatpush1.bf16.msra.mxu0 %v5900_v41  ;;  %v5920_v41 = vpack.c.bf16 %v1159_v29, %v1151_v28  ;;  %v2416_v28 = vld [vmem:[#allocation6 + $0x18] sm:$0xff] }
 0x2b7   :  { %6157 = vmatpush1.bf16.msra.mxu1 %v6156_v42  ;;  %5903 = vmatprep.subr.bf16.mxu0 %v5902_v43  ;;  %v6176_v42 = vpack.c.bf16 %v1161_v33, %v1153_v30  ;;  %v5922_v43 = vpack.c.bf16 %v1176_v35, %v1168_v34  ;;  %v2420_v29 = vld [vmem:[#allocation6 + $0x38] sm:$0xff]  ;;  %v5936_v30 = vpack.c.bf16 %v1223_v21, %v1215_v20  ;;  %v2413_v34 = vld [vmem:[#allocation6] sm:$0xff]  ;;  %v2450_v20 = vld [vmem:[#allocation6 + $0x128] sm:$0xff] }
 0x2b8   :  { %6159 = vmatprep.subr.bf16.mxu1 %v6158_v47  ;;  %v6178_v47 = vpack.c.bf16 %v1178_v39, %v1170_v38  ;;  %v2417_v35 = vld [vmem:[#allocation6 + $0x20] sm:$0xff]  ;;  %v6450_v38 = vpack.c.bf16 %v2420_v29, %v2416_v28  ;;  %v2415_v39 = vld [vmem:[#allocation6 + $0x10] sm:$0xff]  ;;  %v2448_v21 = vld [vmem:[#allocation6 + $0x118] sm:$0xff] }
 0x2b9   :  { %v2447_v28 = vld [vmem:[#allocation6 + $0x110] sm:$0xff] }
 0x2ba   :  { %5905 = vmatpush1.bf16.msra.mxu0 %v5904_v53  ;;  %v1194_v53 = vld [vmem:[#allocation2 + $0x1ef8] sm:$0xff] }
 0x2bb   :  { %6161 = vmatpush1.bf16.msra.mxu1 %v6160_v54  ;;  %5907 = vmatprep.subr.bf16.mxu0 %v5906_v55  ;;  %v5924_v54 = vpack.c.bf16 %v1175_v45, %v1167_v44  ;;  %v6180_v55 = vpack.c.bf16 %v1177_v48, %v1169_v46  ;;  %v6182_v60 = vpack.c.bf16 %v1194_v53, %v1186_v52  ;;  %v2426_v44 = vld [vmem:[#allocation6 + $0x68] sm:$0xff]  ;;  %v2424_v46 = vld [vmem:[#allocation6 + $0x58] sm:$0xff]  ;;  %v2427_v53 = vld [vmem:[#allocation6 + $0x70] sm:$0xff] }
 0x2bc   :  { %6163 = vmatprep.subr.bf16.mxu1 %v6162_v59  ;;  %v1185_v59 = vld [vmem:[#allocation2 + $0x1eb0] sm:$0xff]  ;;  %v6196_v45 = vpack.c.bf16 %v2417_v35, %v2413_v34  ;;  %v2456_v34 = vld [vmem:[#allocation6 + $0x158] sm:$0xff] }
 0x2bd   :  { %v6184_v4 = vpack.c.bf16 %v1193_v61, %v1185_v59  ;;  %v2436_v59 = vld [vmem:[#allocation6 + $0xb8] sm:$0xff]  ;;  %v6456_v61 = vpack.c.bf16 %v2427_v53, %v2423_v51 }
 0x2be   :  { %5909 = vmatpush1.bf16.msra.mxu0 %v5908_v1  ;;  %v1202_v1 = vld [vmem:[#allocation2 + $0x1f38] sm:$0xff]  ;;  %v2460_v35 = vld [vmem:[#allocation6 + $0x178] sm:$0xff] }
 0x2bf   :  { %6165 = vmatpush1.bf16.msra.mxu1 %v6164_v2  ;;  %5911 = vmatprep.subr.bf16.mxu0 %v5910_v3  ;;  %v1210_v2 = vld [vmem:[#allocation2 + $0x1f78] sm:$0xff]  ;;  %v5928_v3 = vpack.c.bf16 %v1191_v58, %v1183_v57  ;;  %v2432_v58 = vld [vmem:[#allocation6 + $0x98] sm:$0xff] }
 0x2c0   :  { %6167 = vmatprep.subr.bf16.mxu1 %v6166_v7  ;;  %v1207_v7 = vld [vmem:[#allocation2 + $0x1f60] sm:$0xff]  ;;  %v6186_v9 = vpack.c.bf16 %v1210_v2, %v1202_v1  ;;  %v2433_v1 = vld [vmem:[#allocation6 + $0xa0] sm:$0xff]  ;;  %v2431_v2 = vld [vmem:[#allocation6 + $0x90] sm:$0xff] }
 0x2c1   :  { %v5932_v17 = vpack.c.bf16 %v1207_v7, %v1199_v6  ;;  %v2442_v6 = vld [vmem:[#allocation6 + $0xe8] sm:$0xff]  ;;  %v2440_v7 = vld [vmem:[#allocation6 + $0xd8] sm:$0xff] }
 0x2c2   :  { %5913 = vmatpush1.bf16.msra.mxu0 %v5912_v13  ;;  %v7997_v13 = vsub.s32 1, %v7994_v0 }
 0x2c3   :  { %6169 = vmatpush1.bf16.msra.mxu1 %v6168_v14  ;;  %5915 = vmatprep.subr.bf16.mxu0 %v5914_v15  ;;  %v1218_v14 = vld [vmem:[#allocation2 + $0x1fb8] sm:$0xff] }
 0x2c4   :  { %6171 = vmatprep.subr.bf16.mxu1 %v6170_v19  ;;  %v1226_v15 = vld [vmem:[#allocation2 + $0x1ff8] sm:$0xff]  ;;  %v5934_v19 = vpack.c.bf16 %v1224_v12, %v1216_v11  ;;  %v2437_v12 = vld [vmem:[#allocation6 + $0xc0] sm:$0xff] }
 0x2c5   :  { %v6190_v23 = vpack.c.bf16 %v1226_v15, %v1218_v14  ;;  %v2441_v14 = vld [vmem:[#allocation6 + $0xe0] sm:$0xff]  ;;  %v2439_v15 = vld [vmem:[#allocation6 + $0xd0] sm:$0xff] }
 0x2c6   :  { %5917 = vmatpush1.bf16.msra.mxu0 %v5916_v25  ;;  %v2414_v25 = vld [vmem:[#allocation6 + $0x8] sm:$0xff] }
 0x2c7   :  { %6173 = vmatpush1.bf16.msra.mxu1 %v6172_v26  ;;  %5919 = vmatprep.subr.bf16.mxu0 %v5918_v27  ;;  %v2418_v26 = vld [vmem:[#allocation6 + $0x28] sm:$0xff]  ;;  %v1236_v27 = vrot.slane %v7999_v16, %v7997_v13 }
 0x2c8   :  { %6175 = vmatprep.subr.bf16.mxu1 %v6174_v32  ;;  %v6192_v32 = vpack.c.bf16 %v1225_v24, %v1217_v22  ;;  %v6194_v33 = vpack.c.bf16 %v2418_v26, %v2414_v25  ;;  %v2452_v22 = vld [vmem:[#allocation6 + $0x138] sm:$0xff]  ;;  %v2445_v26 = vld [vmem:[#allocation6 + $0x100] sm:$0xff] }
 0x2c9   :  { %v6466_v29 = vpack.c.bf16 %v2452_v22, %v2448_v21  ;;  %v2486_v21 = vld [vmem:[#allocation6 + $0x248] sm:$0xff] }
 0x2ca   :  { %5921 = vmatpush1.bf16.msra.mxu0 %v5920_v41  ;;  %v2419_v41 = vld [vmem:[#allocation6 + $0x30] sm:$0xff]  ;;  %v2490_v22 = vld [vmem:[#allocation6 + $0x268] sm:$0xff] }
 0x2cb   :  { %6177 = vmatpush1.bf16.msra.mxu1 %v6176_v42  ;;  %5923 = vmatprep.subr.bf16.mxu0 %v5922_v43  ;;  %v7315_v42 = vadd.f32 %v7990_v37, %v1236_v27  ;;  %v2422_v43 = vld [vmem:[#allocation6 + $0x48] sm:$0xff]  ;;  %v6452_v48 = vpack.c.bf16 %v2419_v41, %v2415_v39  ;;  %v2449_v27 = vld [vmem:[#allocation6 + $0x120] sm:$0xff] }
 0x2cc   :  { %6179 = vmatprep.subr.bf16.mxu1 %v6178_v47  ;;  %v2428_v47 = vld [vmem:[#allocation6 + $0x78] sm:$0xff]  ;;  %v6198_v52 = vpack.c.bf16 %v2426_v44, %v2422_v43  ;;  %v7406_v37 = vld [vmem:[%s8092_s0 + $0x30] sm:$0xff]  ;;  %v2457_v43 = vld [vmem:[#allocation6 + $0x160] sm:$0xff] }
 0x2cd   :  { %v6454_v57 = vpack.c.bf16 %v2428_v47, %v2424_v46  ;;  %v2455_v44 = vld [vmem:[#allocation6 + $0x150] sm:$0xff]  ;;  %v2462_v47 = vld [vmem:[#allocation6 + $0x188] sm:$0xff] }
 0x2ce   :  { %5925 = vmatpush1.bf16.msra.mxu0 %v5924_v54  ;;  %v2430_v54 = vld [vmem:[#allocation6 + $0x88] sm:$0xff]  ;;  %v2459_v46 = vld [vmem:[#allocation6 + $0x170] sm:$0xff] }
 0x2cf   :  { %6181 = vmatpush1.bf16.msra.mxu1 %v6180_v55  ;;  %5927 = vmatprep.subr.bf16.mxu0 %v5926_v56  ;;  %v2434_v55 = vld [vmem:[#allocation6 + $0xa8] sm:$0xff]  ;;  %v2406_v56 = vmax.f32 %v7315_v42, 0.0  ;;  %v2453_v42 = vld [vmem:[#allocation6 + $0x140] sm:$0xff] }
 0x2d0   :  { %6183 = vmatprep.subr.bf16.mxu1 %v6182_v60  ;;  %v6200_v60 = vpack.c.bf16 %v2425_v50, %v2421_v49  ;;  %v6202_v62 = vpack.c.bf16 %v2434_v55, %v2430_v54  ;;  %v2464_v49 = vld [vmem:[#allocation6 + $0x198] sm:$0xff]  ;;  %v6216_v51 = vpack.c.bf16 %v2457_v43, %v2453_v42  ;;  %v2461_v54 = vld [vmem:[#allocation6 + $0x180] sm:$0xff] }
 0x2d1   :  { %v2468_v50 = vld [vmem:[#allocation6 + $0x1b8] sm:$0xff]  ;;  %v2465_v55 = vld [vmem:[#allocation6 + $0x1a0] sm:$0xff] }
 0x2d2   :  { %5929 = vmatpush1.bf16.msra.mxu0 %v5928_v3  ;;  %v6458_v3 = vpack.c.bf16 %v2436_v59, %v2432_v58  ;;  %v2470_v58 = vld [vmem:[#allocation6 + $0x1c8] sm:$0xff] }
 0x2d3   :  { %6185 = vmatpush1.bf16.msra.mxu1 %v6184_v4  ;;  %5931 = vmatprep.subr.bf16.mxu0 %v5930_v5  ;;  %v2435_v4 = vld [vmem:[#allocation6 + $0xb0] sm:$0xff]  ;;  %v2438_v5 = vld [vmem:[#allocation6 + $0xc8] sm:$0xff] }
 0x2d4   :  { %6187 = vmatprep.subr.bf16.mxu1 %v6186_v9  ;;  %v6204_v9 = vpack.c.bf16 %v2433_v1, %v2429_v63  ;;  %v6460_v10 = vpack.c.bf16 %v2435_v4, %v2431_v2  ;;  %v6206_v11 = vpack.c.bf16 %v2442_v6, %v2438_v5  ;;  %v2474_v59 = vld [vmem:[#allocation6 + $0x1e8] sm:$0xff]  ;;  %v2469_v2 = vld [vmem:[#allocation6 + $0x1c0] sm:$0xff]  ;;  %v2471_v4 = vld [vmem:[#allocation6 + $0x1d0] sm:$0xff] }
 0x2d5   :  { %v6222_v1 = vpack.c.bf16 %v2474_v59, %v2470_v58  ;;  %v2475_v6 = vld [vmem:[#allocation6 + $0x1f0] sm:$0xff] }
 0x2d6   :  { %5933 = vmatpush1.bf16.msra.mxu0 %v5932_v17  ;;  %v6462_v17 = vpack.c.bf16 %v2444_v8, %v2440_v7  ;;  %v2478_v7 = vld [vmem:[#allocation6 + $0x208] sm:$0xff]  ;;  %v2507_v59 = vld [vmem:[#allocation6 + $0x2f0] sm:$0xff] }
 0x2d7   :  { %6189 = vmatpush1.bf16.msra.mxu1 %v6188_v18  ;;  %5935 = vmatprep.subr.bf16.mxu0 %v5934_v19  ;;  %v2443_v18 = vld [vmem:[#allocation6 + $0xf0] sm:$0xff]  ;;  %v2446_v19 = vld [vmem:[#allocation6 + $0x108] sm:$0xff] }
 0x2d8   :  { %6191 = vmatprep.subr.bf16.mxu1 %v6190_v23  ;;  %v6208_v23 = vpack.c.bf16 %v2441_v14, %v2437_v12  ;;  %v6464_v24 = vpack.c.bf16 %v2443_v18, %v2439_v15  ;;  %v6210_v25 = vpack.c.bf16 %v2450_v20, %v2446_v19  ;;  %v2482_v8 = vld [vmem:[#allocation6 + $0x228] sm:$0xff]  ;;  %v6480_v12 = vpack.c.bf16 %v2475_v6, %v2471_v4  ;;  %v2477_v15 = vld [vmem:[#allocation6 + $0x200] sm:$0xff]  ;;  %v2479_v18 = vld [vmem:[#allocation6 + $0x210] sm:$0xff] }
 0x2d9   :  { %v6226_v14 = vpack.c.bf16 %v2482_v8, %v2478_v7  ;;  %v2483_v20 = vld [vmem:[#allocation6 + $0x230] sm:$0xff]  ;;  %v2509_v4 = vld [vmem:[#allocation6 + $0x300] sm:$0xff] }
 0x2da   :  { %5937 = vmatpush1.bf16.msra.mxu0 %v5936_v30  ;;  %v2451_v30 = vld [vmem:[#allocation6 + $0x130] sm:$0xff] }
 0x2db   :  { %6193 = vmatpush1.bf16.msra.mxu1 %v6192_v32  ;;  %6195 = vmatprep.subr.bf16.mxu0 %v6194_v33  ;;  %v2454_v32 = vld [vmem:[#allocation6 + $0x148] sm:$0xff]  ;;  %v6468_v39 = vpack.c.bf16 %v2451_v30, %v2447_v28  ;;  %v2485_v28 = vld [vmem:[#allocation6 + $0x240] sm:$0xff]  ;;  %v2487_v30 = vld [vmem:[#allocation6 + $0x250] sm:$0xff] }
 0x2dc   :  { %6451 = vmatprep.subr.bf16.mxu1 %v6450_v38  ;;  %v2458_v33 = vld [vmem:[#allocation6 + $0x168] sm:$0xff]  ;;  %v6212_v38 = vpack.c.bf16 %v2449_v27, %v2445_v26  ;;  %v6484_v26 = vpack.c.bf16 %v2483_v20, %v2479_v18  ;;  %v6230_v27 = vpack.c.bf16 %v2490_v22, %v2486_v21  ;;  %v2511_v6 = vld [vmem:[#allocation6 + $0x310] sm:$0xff]  ;;  %v2517_v18 = vld [vmem:[#allocation6 + $0x340] sm:$0xff] }
 0x2dd   :  { %2115 = vmatmul.mubr.f32.vlgmr.msra.gmra.mrb[2].mxu0 %v7406_v37  ;;  %v6214_v41 = vpack.c.bf16 %v2458_v33, %v2454_v32  ;;  %v2491_v33 = vld [vmem:[#allocation6 + $0x270] sm:$0xff] }
 0x2de   :  { %2399 = vmatmul.mubr.f32.vlgmr.msra.gmra.mrb[2].mxu1 %v7406_v37  ;;  %6197 = vmatpush1.bf16.msra.mxu0 %v6196_v45  ;;  %v6470_v45 = vpack.c.bf16 %v2460_v35, %v2456_v34  ;;  %v6474_v37 = vpack.c.bf16 %v2468_v50, %v2464_v49  ;;  %v2494_v34 = vld [vmem:[#allocation6 + $0x288] sm:$0xff]  ;;  %v6488_v42 = vpack.c.bf16 %v2491_v33, %v2487_v30  ;;  %v2515_v8 = vld [vmem:[#allocation6 + $0x330] sm:$0xff]  ;;  %v2529_v33 = vld [vmem:[#allocation6 + $0x3a0] sm:$0xff] }
 0x2df   :  { %3011 = vmatprep.mubr.f32.mxu0 %v2406_v56  ;;  %6453 = vmatpush1.bf16.msra.mxu1 %v6452_v48  ;;  %v2466_v48 = vld [vmem:[#allocation6 + $0x1a8] sm:$0xff]  ;;  %v2519_v20 = vld [vmem:[#allocation6 + $0x350] sm:$0xff] }
 0x2e0   :  { %3295 = vmatprep.mubr.f32.mxu1 %v2406_v56  ;;  %6199 = vmatprep.subr.bf16.mxu0 %v6198_v52  ;;  %v6472_v52 = vpack.c.bf16 %v2459_v46, %v2455_v44  ;;  %v6218_v53 = vpack.c.bf16 %v2466_v48, %v2462_v47  ;;  %v2463_v56 = vld [vmem:[#allocation6 + $0x190] sm:$0xff]  ;;  %v2498_v35 = vld [vmem:[#allocation6 + $0x2a8] sm:$0xff]  ;;  %v2493_v44 = vld [vmem:[#allocation6 + $0x280] sm:$0xff] }
 0x2e1   :  { %6455 = vmatprep.subr.bf16.mxu1 %v6454_v57  ;;  %v2467_v57 = vld [vmem:[#allocation6 + $0x1b0] sm:$0xff]  ;;  %v6234_v43 = vpack.c.bf16 %v2498_v35, %v2494_v34  ;;  %v2502_v49 = vld [vmem:[#allocation6 + $0x2c8] sm:$0xff] }
 0x2e2   :  { %6201 = vmatpush1.bf16.msra.mxu0 %v6200_v60  ;;  %v2472_v60 = vld [vmem:[#allocation6 + $0x1d8] sm:$0xff]  ;;  %v6476_v63 = vpack.c.bf16 %v2467_v57, %v2463_v56  ;;  %v2495_v46 = vld [vmem:[#allocation6 + $0x290] sm:$0xff]  ;;  %v2506_v50 = vld [vmem:[#allocation6 + $0x2e8] sm:$0xff] }
 0x2e3   :  { %6457 = vmatpush1.bf16.msra.mxu1 %v6456_v61  ;;  %6203 = vmatprep.subr.bf16.mxu0 %v6202_v62  ;;  %v2476_v61 = vld [vmem:[#allocation6 + $0x1f8] sm:$0xff]  ;;  %v6220_v62 = vpack.c.bf16 %v2465_v55, %v2461_v54  ;;  %v2499_v48 = vld [vmem:[#allocation6 + $0x2b0] sm:$0xff]  ;;  %v6238_v55 = vpack.c.bf16 %v2506_v50, %v2502_v49  ;;  %v2501_v56 = vld [vmem:[#allocation6 + $0x2c0] sm:$0xff] }
 0x2e4   :  { %6459 = vmatprep.subr.bf16.mxu1 %v6458_v3  ;;  %v2473_v3 = vld [vmem:[#allocation6 + $0x1e0] sm:$0xff]  ;;  %v6478_v5 = vpack.c.bf16 %v2476_v61, %v2472_v60  ;;  %v6492_v54 = vpack.c.bf16 %v2499_v48, %v2495_v46  ;;  %v2503_v57 = vld [vmem:[#allocation6 + $0x2d0] sm:$0xff]  ;;  %v2510_v60 = vld [vmem:[#allocation6 + $0x308] sm:$0xff] }
 0x2e5   :  { %v2514_v61 = vld [vmem:[#allocation6 + $0x328] sm:$0xff]  ;;  %v2523_v22 = vld [vmem:[#allocation6 + $0x370] sm:$0xff]  ;;  %v2533_v49 = vld [vmem:[#allocation6 + $0x3c0] sm:$0xff] }
 0x2e6   :  { %6205 = vmatpush1.bf16.msra.mxu0 %v6204_v9  ;;  %v2480_v9 = vld [vmem:[#allocation6 + $0x218] sm:$0xff]  ;;  %v2527_v34 = vld [vmem:[#allocation6 + $0x390] sm:$0xff]  ;;  %v2537_v50 = vld [vmem:[#allocation6 + $0x3e0] sm:$0xff] }
 0x2e7   :  { %6461 = vmatpush1.bf16.msra.mxu1 %v6460_v10  ;;  %6207 = vmatprep.subr.bf16.mxu0 %v6206_v11  ;;  %v2484_v10 = vld [vmem:[#allocation6 + $0x238] sm:$0xff]  ;;  %v6224_v11 = vpack.c.bf16 %v2473_v3, %v2469_v2  ;;  %v6496_v2 = vpack.c.bf16 %v2507_v59, %v2503_v57  ;;  %v6242_v3 = vpack.c.bf16 %v2514_v61, %v2510_v60 }
 0x2e8   :  { %6463 = vmatprep.subr.bf16.mxu1 %v6462_v17  ;;  %v2481_v17 = vld [vmem:[#allocation6 + $0x220] sm:$0xff]  ;;  %v6482_v19 = vpack.c.bf16 %v2484_v10, %v2480_v9  ;;  %v2518_v9 = vld [vmem:[#allocation6 + $0x348] sm:$0xff]  ;;  %v2548_v57 = vld [vmem:[#allocation6 + $0x438] sm:$0xff] }
 0x2e9   :  { %v2522_v10 = vld [vmem:[#allocation6 + $0x368] sm:$0xff] }
 0x2ea   :  { %6209 = vmatpush1.bf16.msra.mxu0 %v6208_v23  ;;  %v2488_v23 = vld [vmem:[#allocation6 + $0x258] sm:$0xff] }
 0x2eb   :  { %6465 = vmatpush1.bf16.msra.mxu1 %v6464_v24  ;;  %6211 = vmatprep.subr.bf16.mxu0 %v6210_v25  ;;  %v2492_v24 = vld [vmem:[#allocation6 + $0x278] sm:$0xff]  ;;  %v6228_v25 = vpack.c.bf16 %v2481_v17, %v2477_v15  ;;  %v6500_v15 = vpack.c.bf16 %v2515_v8, %v2511_v6  ;;  %v6246_v17 = vpack.c.bf16 %v2522_v10, %v2518_v9  ;;  %v2549_v10 = vld [vmem:[#allocation6 + $0x440] sm:$0xff] }
 0x2ec   :  { %6467 = vmatprep.subr.bf16.mxu1 %v6466_v29  ;;  %v2489_v29 = vld [vmem:[#allocation6 + $0x260] sm:$0xff]  ;;  %v6486_v32 = vpack.c.bf16 %v2492_v24, %v2488_v23  ;;  %v2526_v23 = vld [vmem:[#allocation6 + $0x388] sm:$0xff]  ;;  %v2556_v8 = vld [vmem:[#allocation6 + $0x478] sm:$0xff] }
 0x2ed   :  { %v2530_v24 = vld [vmem:[#allocation6 + $0x3a8] sm:$0xff] }
 0x2ee   :  { %6213 = vmatpush1.bf16.msra.mxu0 %v6212_v38  ;;  %v2496_v38 = vld [vmem:[#allocation6 + $0x298] sm:$0xff]  ;;  %v6250_v30 = vpack.c.bf16 %v2530_v24, %v2526_v23 }
 0x2ef   :  { %6469 = vmatpush1.bf16.msra.mxu1 %v6468_v39  ;;  %6215 = vmatprep.subr.bf16.mxu0 %v6214_v41  ;;  %v2500_v39 = vld [vmem:[#allocation6 + $0x2b8] sm:$0xff]  ;;  %v6232_v41 = vpack.c.bf16 %v2489_v29, %v2485_v28  ;;  %v8008_v28 = vsub.s32 0, %v7994_v0  ;;  %v6504_v29 = vpack.c.bf16 %v2523_v22, %v2519_v20 }
 0x2f0   :  { %6471 = vmatprep.subr.bf16.mxu1 %v6470_v45  ;;  %v2497_v45 = vld [vmem:[#allocation6 + $0x2a0] sm:$0xff]  ;;  %v6490_v47 = vpack.c.bf16 %v2500_v39, %v2496_v38  ;;  %v2531_v38 = vld [vmem:[#allocation6 + $0x3b0] sm:$0xff]  ;;  %v2534_v39 = vld [vmem:[#allocation6 + $0x3c8] sm:$0xff] }
 0x2f1   :  { %v1232_v46 = vrot.slane %v7999_v16, %v8008_v28  ;;  %v2560_v20 = vld [vmem:[#allocation6 + $0x498] sm:$0xff] }
 0x2f2   :  { %6217 = vmatpush1.bf16.msra.mxu0 %v6216_v51  ;;  %v2504_v51 = vld [vmem:[#allocation6 + $0x2d8] sm:$0xff] }
 0x2f3   :  { %6473 = vmatpush1.bf16.msra.mxu1 %v6472_v52  ;;  %6219 = vmatprep.subr.bf16.mxu0 %v6218_v53  ;;  %v2508_v52 = vld [vmem:[#allocation6 + $0x2f8] sm:$0xff]  ;;  %v6236_v53 = vpack.c.bf16 %v2497_v45, %v2493_v44  ;;  %v7314_v59 = vadd.f32 %v7986_v31, %v1232_v46 }
 0x2f4   :  { %6475 = vmatprep.subr.bf16.mxu1 %v6474_v37  ;;  %v2505_v37 = vld [vmem:[#allocation6 + $0x2e0] sm:$0xff]  ;;  %v6494_v58 = vpack.c.bf16 %v2508_v52, %v2504_v51  ;;  %v2540_v44 = vld [vmem:[#allocation6 + $0x3f8] sm:$0xff]  ;;  %v2535_v51 = vld [vmem:[#allocation6 + $0x3d0] sm:$0xff] }
 0x2f5   :  { %v2405_v9 = vmax.f32 %v7314_v59, 0.0  ;;  %v2582_v59 = vld [vmem:[#allocation6 + $0x548] sm:$0xff] }
 0x2f6   :  { %6221 = vmatpush1.bf16.msra.mxu0 %v6220_v62  ;;  %v2512_v62 = vld [vmem:[#allocation6 + $0x318] sm:$0xff] }
 0x2f7   :  { %6477 = vmatpush1.bf16.msra.mxu1 %v6476_v63  ;;  %6223 = vmatprep.subr.bf16.mxu0 %v6222_v1  ;;  %v2516_v63 = vld [vmem:[#allocation6 + $0x338] sm:$0xff]  ;;  %v6240_v1 = vpack.c.bf16 %v2505_v37, %v2501_v56 }
 0x2f8   :  { %6479 = vmatprep.subr.bf16.mxu1 %v6478_v5  ;;  %v2513_v5 = vld [vmem:[#allocation6 + $0x320] sm:$0xff]  ;;  %v6498_v7 = vpack.c.bf16 %v2516_v63, %v2512_v62  ;;  %v2544_v37 = vld [vmem:[#allocation6 + $0x418] sm:$0xff] }
 0x2f9   :  { %v2541_v62 = vld [vmem:[#allocation6 + $0x400] sm:$0xff] }
 0x2fa   :  { %6225 = vmatpush1.bf16.msra.mxu0 %v6224_v11  ;;  %v2520_v11 = vld [vmem:[#allocation6 + $0x358] sm:$0xff]  ;;  %v2545_v63 = vld [vmem:[#allocation6 + $0x420] sm:$0xff] }
 0x2fb   :  { %6481 = vmatpush1.bf16.msra.mxu1 %v6480_v12  ;;  %6227 = vmatprep.subr.bf16.mxu0 %v6226_v14  ;;  %v2524_v12 = vld [vmem:[#allocation6 + $0x378] sm:$0xff]  ;;  %v6244_v14 = vpack.c.bf16 %v2513_v5, %v2509_v4  ;;  %v2550_v5 = vld [vmem:[#allocation6 + $0x448] sm:$0xff]  ;;  %v6260_v6 = vpack.c.bf16 %v2545_v63, %v2541_v62 }
 0x2fc   :  { %6483 = vmatprep.subr.bf16.mxu1 %v6482_v19  ;;  %v2521_v19 = vld [vmem:[#allocation6 + $0x360] sm:$0xff]  ;;  %v6502_v21 = vpack.c.bf16 %v2524_v12, %v2520_v11  ;;  %v2551_v12 = vld [vmem:[#allocation6 + $0x450] sm:$0xff]  ;;  %v2588_v62 = vld [vmem:[#allocation6 + $0x578] sm:$0xff] }
 0x2fd   :  { %v2553_v11 = vld [vmem:[#allocation6 + $0x460] sm:$0xff] }
 0x2fe   :  { %6229 = vmatpush1.bf16.msra.mxu0 %v6228_v25  ;;  %v2528_v25 = vld [vmem:[#allocation6 + $0x398] sm:$0xff]  ;;  %v6264_v22 = vpack.c.bf16 %v2553_v11, %v2549_v10 }
 0x2ff   :  { %6485 = vmatpush1.bf16.msra.mxu1 %v6484_v26  ;;  %6231 = vmatprep.subr.bf16.mxu0 %v6230_v27  ;;  %v2532_v26 = vld [vmem:[#allocation6 + $0x3b8] sm:$0xff]  ;;  %v6248_v27 = vpack.c.bf16 %v2521_v19, %v2517_v18  ;;  %v2562_v18 = vld [vmem:[#allocation6 + $0x4a8] sm:$0xff] }
 0x300   :  { %6487 = vmatprep.subr.bf16.mxu1 %v6486_v32  ;;  %v2525_v32 = vld [vmem:[#allocation6 + $0x380] sm:$0xff]  ;;  %v6506_v35 = vpack.c.bf16 %v2532_v26, %v2528_v25 }
 0x301   :  { %v6252_v45 = vpack.c.bf16 %v2529_v33, %v2525_v32  ;;  %v2557_v25 = vld [vmem:[#allocation6 + $0x480] sm:$0xff]  ;;  %v2566_v32 = vld [vmem:[#allocation6 + $0x4c8] sm:$0xff] }
 0x302   :  { %6233 = vmatpush1.bf16.msra.mxu0 %v6232_v41  ;;  %v2538_v41 = vld [vmem:[#allocation6 + $0x3e8] sm:$0xff]  ;;  %v2561_v26 = vld [vmem:[#allocation6 + $0x4a0] sm:$0xff] }
 0x303   :  { %6489 = vmatpush1.bf16.msra.mxu1 %v6488_v42  ;;  %6235 = vmatprep.subr.bf16.mxu0 %v6234_v43  ;;  %v8011_v42 = vsub.s32 3, %v7994_v0  ;;  %v2536_v43 = vld [vmem:[#allocation6 + $0x3d8] sm:$0xff]  ;;  %v6254_v48 = vpack.c.bf16 %v2538_v41, %v2534_v39  ;;  %v2570_v33 = vld [vmem:[#allocation6 + $0x4e8] sm:$0xff] }
 0x304   :  { %6491 = vmatprep.subr.bf16.mxu1 %v6490_v47  ;;  %v6508_v47 = vpack.c.bf16 %v2531_v38, %v2527_v34  ;;  %v6510_v52 = vpack.c.bf16 %v2540_v44, %v2536_v43  ;;  %v2568_v34 = vld [vmem:[#allocation6 + $0x4d8] sm:$0xff]  ;;  %v6268_v38 = vpack.c.bf16 %v2561_v26, %v2557_v25  ;;  %v6270_v41 = vpack.c.bf16 %v2570_v33, %v2566_v32  ;;  %v2565_v43 = vld [vmem:[#allocation6 + $0x4c0] sm:$0xff]  ;;  %v2603_v32 = vld [vmem:[#allocation6 + $0x5f0] sm:$0xff] }
 0x305   :  { %v1244_v56 = vrot.slane %v7999_v16, %v8011_v42  ;;  %v2554_v16 = vld [vmem:[#allocation6 + $0x468] sm:$0xff]  ;;  %v2569_v44 = vld [vmem:[#allocation6 + $0x4e0] sm:$0xff] }
 0x306   :  { %6237 = vmatpush1.bf16.msra.mxu0 %v6236_v53  ;;  %v2539_v53 = vld [vmem:[#allocation6 + $0x3f0] sm:$0xff]  ;;  %v2597_v26 = vld [vmem:[#allocation6 + $0x5c0] sm:$0xff]  ;;  %v2606_v33 = vld [vmem:[#allocation6 + $0x608] sm:$0xff] }
 0x307   :  { %6493 = vmatpush1.bf16.msra.mxu1 %v6492_v54  ;;  %6239 = vmatprep.subr.bf16.mxu0 %v6238_v55  ;;  %v2542_v54 = vld [vmem:[#allocation6 + $0x408] sm:$0xff]  ;;  %v6512_v60 = vpack.c.bf16 %v2539_v53, %v2535_v51  ;;  %v7317_v4 = vadd.f32 %v7992_v40, %v1244_v56  ;;  %v2580_v51 = vld [vmem:[#allocation6 + $0x538] sm:$0xff]  ;;  %v2577_v56 = vld [vmem:[#allocation6 + $0x520] sm:$0xff] }
 0x308   :  { %6495 = vmatprep.subr.bf16.mxu1 %v6494_v58  ;;  %v2546_v55 = vld [vmem:[#allocation6 + $0x428] sm:$0xff]  ;;  %v6256_v58 = vpack.c.bf16 %v2537_v50, %v2533_v49  ;;  %v2576_v50 = vld [vmem:[#allocation6 + $0x518] sm:$0xff] }
 0x309   :  { %v6258_v61 = vpack.c.bf16 %v2546_v55, %v2542_v54  ;;  %v2408_v19 = vmax.f32 %v7317_v4, 0.0  ;;  %v2578_v49 = vld [vmem:[#allocation6 + $0x528] sm:$0xff]  ;;  %v2573_v55 = vld [vmem:[#allocation6 + $0x500] sm:$0xff] }
 0x30a   :  { %6241 = vmatpush1.bf16.msra.mxu0 %v6240_v1  ;;  %v6514_v1 = vpack.c.bf16 %v2548_v57, %v2544_v37  ;;  %v2575_v37 = vld [vmem:[#allocation6 + $0x510] sm:$0xff]  ;;  %v6530_v57 = vpack.c.bf16 %v2580_v51, %v2576_v50  ;;  %v6276_v63 = vpack.c.bf16 %v2577_v56, %v2573_v55  ;;  %v2585_v4 = vld [vmem:[#allocation6 + $0x560] sm:$0xff]  ;;  %v2618_v50 = vld [vmem:[#allocation6 + $0x668] sm:$0xff] }
 0x30b   :  { %6497 = vmatpush1.bf16.msra.mxu1 %v6496_v2  ;;  %6243 = vmatprep.subr.bf16.mxu0 %v6242_v3  ;;  %v2543_v2 = vld [vmem:[#allocation6 + $0x410] sm:$0xff]  ;;  %v2616_v51 = vld [vmem:[#allocation6 + $0x658] sm:$0xff]  ;;  %v2613_v56 = vld [vmem:[#allocation6 + $0x640] sm:$0xff] }
 0x30c   :  { %6499 = vmatprep.subr.bf16.mxu1 %v6498_v7  ;;  %v2547_v3 = vld [vmem:[#allocation6 + $0x430] sm:$0xff]  ;;  %v2552_v7 = vld [vmem:[#allocation6 + $0x458] sm:$0xff] }
 0x30d   :  { %v6516_v31 = vpack.c.bf16 %v2547_v3, %v2543_v2  ;;  %v6518_v40 = vpack.c.bf16 %v2556_v8, %v2552_v7  ;;  %v2581_v3 = vld [vmem:[#allocation6 + $0x540] sm:$0xff]  ;;  %v2590_v7 = vld [vmem:[#allocation6 + $0x588] sm:$0xff] }
 0x30e   :  { %6245 = vmatpush1.bf16.msra.mxu0 %v6244_v14  ;;  %v6262_v14 = vpack.c.bf16 %v2554_v16, %v2550_v5  ;;  %v2583_v5 = vld [vmem:[#allocation6 + $0x550] sm:$0xff]  ;;  %v2594_v8 = vld [vmem:[#allocation6 + $0x5a8] sm:$0xff]  ;;  %v6280_v10 = vpack.c.bf16 %v2585_v4, %v2581_v3  ;;  %v2621_v4 = vld [vmem:[#allocation6 + $0x680] sm:$0xff] }
 0x30f   :  { %6501 = vmatpush1.bf16.msra.mxu1 %v6500_v15  ;;  %6247 = vmatprep.subr.bf16.mxu0 %v6246_v17  ;;  %v2555_v15 = vld [vmem:[#allocation6 + $0x470] sm:$0xff]  ;;  %v2558_v17 = vld [vmem:[#allocation6 + $0x488] sm:$0xff] }
 0x310   :  { %6503 = vmatprep.subr.bf16.mxu1 %v6502_v21  ;;  %v2564_v21 = vld [vmem:[#allocation6 + $0x4b8] sm:$0xff]  ;;  %v6520_v23 = vpack.c.bf16 %v2555_v15, %v2551_v12  ;;  %v6266_v24 = vpack.c.bf16 %v2562_v18, %v2558_v17  ;;  %v6282_v12 = vpack.c.bf16 %v2594_v8, %v2590_v7  ;;  %v2593_v15 = vld [vmem:[#allocation6 + $0x5a0] sm:$0xff]  ;;  %v2591_v17 = vld [vmem:[#allocation6 + $0x590] sm:$0xff] }
 0x311   :  { %v2627_v7 = vld [vmem:[#allocation6 + $0x6b0] sm:$0xff]  ;;  %v2630_v8 = vld [vmem:[#allocation6 + $0x6c8] sm:$0xff] }
 0x312   :  { %6249 = vmatpush1.bf16.msra.mxu0 %v6248_v27  ;;  %v2559_v27 = vld [vmem:[#allocation6 + $0x490] sm:$0xff] }
 0x313   :  { %6505 = vmatpush1.bf16.msra.mxu1 %v6504_v29  ;;  %6251 = vmatprep.subr.bf16.mxu0 %v6250_v30  ;;  %v6522_v29 = vpack.c.bf16 %v2564_v21, %v2560_v20  ;;  %v2563_v30 = vld [vmem:[#allocation6 + $0x4b0] sm:$0xff]  ;;  %v2602_v20 = vld [vmem:[#allocation6 + $0x5e8] sm:$0xff]  ;;  %v2600_v21 = vld [vmem:[#allocation6 + $0x5d8] sm:$0xff] }
 0x314   :  { %6507 = vmatprep.subr.bf16.mxu1 %v6506_v35  ;;  %v2572_v35 = vld [vmem:[#allocation6 + $0x4f8] sm:$0xff]  ;;  %v6524_v39 = vpack.c.bf16 %v2563_v30, %v2559_v27  ;;  %v2601_v27 = vld [vmem:[#allocation6 + $0x5e0] sm:$0xff] }
 0x315   :  { %v6526_v46 = vpack.c.bf16 %v2572_v35, %v2568_v34  ;;  %v2610_v34 = vld [vmem:[#allocation6 + $0x628] sm:$0xff]  ;;  %v2608_v35 = vld [vmem:[#allocation6 + $0x618] sm:$0xff] }
 0x316   :  { %6253 = vmatpush1.bf16.msra.mxu0 %v6252_v45  ;;  %v2567_v45 = vld [vmem:[#allocation6 + $0x4d0] sm:$0xff] }
 0x317   :  { %6509 = vmatpush1.bf16.msra.mxu1 %v6508_v47  ;;  %6255 = vmatprep.subr.bf16.mxu0 %v6254_v48  ;;  %v2571_v47 = vld [vmem:[#allocation6 + $0x4f0] sm:$0xff]  ;;  %v2574_v48 = vld [vmem:[#allocation6 + $0x508] sm:$0xff] }
 0x318   :  { %6511 = vmatprep.subr.bf16.mxu1 %v6510_v52  ;;  %v6272_v52 = vpack.c.bf16 %v2569_v44, %v2565_v43  ;;  %v6528_v53 = vpack.c.bf16 %v2571_v47, %v2567_v45  ;;  %v6274_v54 = vpack.c.bf16 %v2578_v49, %v2574_v48  ;;  %v6290_v43 = vpack.c.bf16 %v2610_v34, %v2606_v33  ;;  %v2605_v44 = vld [vmem:[#allocation6 + $0x600] sm:$0xff]  ;;  %v2611_v48 = vld [vmem:[#allocation6 + $0x630] sm:$0xff]  ;;  %v2614_v49 = vld [vmem:[#allocation6 + $0x648] sm:$0xff] }
 0x319   :  { %v2609_v45 = vld [vmem:[#allocation6 + $0x620] sm:$0xff]  ;;  %v6294_v55 = vpack.c.bf16 %v2618_v50, %v2614_v49  ;;  %v2643_v33 = vld [vmem:[#allocation6 + $0x730] sm:$0xff]  ;;  %v2646_v34 = vld [vmem:[#allocation6 + $0x748] sm:$0xff] }
 0x31a   :  { %6257 = vmatpush1.bf16.msra.mxu0 %v6256_v58  ;;  %v2579_v58 = vld [vmem:[#allocation6 + $0x530] sm:$0xff]  ;;  %v2654_v50 = vld [vmem:[#allocation6 + $0x788] sm:$0xff] }
 0x31b   :  { %6513 = vmatpush1.bf16.msra.mxu1 %v6512_v60  ;;  %6259 = vmatprep.subr.bf16.mxu0 %v6258_v61  ;;  %v2586_v60 = vld [vmem:[#allocation6 + $0x568] sm:$0xff]  ;;  %v2584_v61 = vld [vmem:[#allocation6 + $0x558] sm:$0xff]  ;;  %v2651_v49 = vld [vmem:[#allocation6 + $0x770] sm:$0xff] }
 0x31c   :  { %6515 = vmatprep.subr.bf16.mxu1 %v6514_v1  ;;  %v6532_v1 = vpack.c.bf16 %v2579_v58, %v2575_v37  ;;  %v6278_v2 = vpack.c.bf16 %v2586_v60, %v2582_v59  ;;  %v6534_v16 = vpack.c.bf16 %v2588_v62, %v2584_v61  ;;  %v2617_v37 = vld [vmem:[#allocation6 + $0x660] sm:$0xff]  ;;  %v2619_v59 = vld [vmem:[#allocation6 + $0x670] sm:$0xff]  ;;  %v2622_v60 = vld [vmem:[#allocation6 + $0x688] sm:$0xff] }
 0x31d   :  { %3012 = vmatmul.mubr.f32.vlgmr.msra.gmra.mrb[4].mxu0 %v2405_v9  ;;  %v2626_v61 = vld [vmem:[#allocation6 + $0x6a8] sm:$0xff]  ;;  %v2624_v62 = vld [vmem:[#allocation6 + $0x698] sm:$0xff] }
 0x31e   :  { %3296 = vmatmul.mubr.f32.vlgmr.msra.gmra.mrb[4].mxu1 %v2405_v9  ;;  %6261 = vmatpush1.bf16.msra.mxu0 %v6260_v6  ;;  %v2587_v6 = vld [vmem:[#allocation6 + $0x570] sm:$0xff]  ;;  %v2592_v9 = vld [vmem:[#allocation6 + $0x598] sm:$0xff]  ;;  %v6298_v3 = vpack.c.bf16 %v2626_v61, %v2622_v60 }
 0x31f   :  { %3082 = vmatprep.mubr.f32.mxu0 %v2408_v19  ;;  %6517 = vmatpush1.bf16.msra.mxu1 %v6516_v31  ;;  %v2596_v31 = vld [vmem:[#allocation6 + $0x5b8] sm:$0xff]  ;;  %v6536_v11 = vpack.c.bf16 %v2587_v6, %v2583_v5  ;;  %v2625_v5 = vld [vmem:[#allocation6 + $0x6a0] sm:$0xff]  ;;  %v2659_v61 = vld [vmem:[#allocation6 + $0x7b0] sm:$0xff] }
 0x320   :  { %3366 = vmatprep.mubr.f32.mxu1 %v2408_v19  ;;  %6263 = vmatprep.subr.bf16.mxu0 %v6262_v14  ;;  %v2589_v14 = vld [vmem:[#allocation6 + $0x580] sm:$0xff]  ;;  %v6538_v18 = vpack.c.bf16 %v2596_v31, %v2592_v9  ;;  %v2595_v19 = vld [vmem:[#allocation6 + $0x5b0] sm:$0xff]  ;;  %v2634_v9 = vld [vmem:[#allocation6 + $0x6e8] sm:$0xff] }
 0x321   :  { %6519 = vmatprep.subr.bf16.mxu1 %v6518_v40  ;;  %v2598_v40 = vld [vmem:[#allocation6 + $0x5c8] sm:$0xff]  ;;  %v2632_v31 = vld [vmem:[#allocation6 + $0x6d8] sm:$0xff] }
 0x322   :  { %6265 = vmatpush1.bf16.msra.mxu0 %v6264_v22  ;;  %v2604_v22 = vld [vmem:[#allocation6 + $0x5f8] sm:$0xff]  ;;  %v6286_v25 = vpack.c.bf16 %v2602_v20, %v2598_v40  ;;  %v2635_v40 = vld [vmem:[#allocation6 + $0x6f0] sm:$0xff]  ;;  %v2638_v20 = vld [vmem:[#allocation6 + $0x708] sm:$0xff] }
 0x323   :  { %6521 = vmatpush1.bf16.msra.mxu1 %v6520_v23  ;;  %6267 = vmatprep.subr.bf16.mxu0 %v6266_v24  ;;  %v6284_v23 = vpack.c.bf16 %v2593_v15, %v2589_v14  ;;  %v6540_v24 = vpack.c.bf16 %v2595_v19, %v2591_v17  ;;  %v6542_v30 = vpack.c.bf16 %v2604_v22, %v2600_v21  ;;  %v2629_v15 = vld [vmem:[#allocation6 + $0x6c0] sm:$0xff]  ;;  %v2642_v21 = vld [vmem:[#allocation6 + $0x728] sm:$0xff]  ;;  %v2640_v22 = vld [vmem:[#allocation6 + $0x718] sm:$0xff] }
 0x324   :  { %6523 = vmatprep.subr.bf16.mxu1 %v6522_v29  ;;  %v2599_v29 = vld [vmem:[#allocation6 + $0x5d0] sm:$0xff]  ;;  %v6302_v14 = vpack.c.bf16 %v2634_v9, %v2630_v8  ;;  %v2633_v17 = vld [vmem:[#allocation6 + $0x6e0] sm:$0xff] }
 0x325   :  { %v2665_v8 = vld [vmem:[#allocation6 + $0x7e0] sm:$0xff]  ;;  %v2663_v9 = vld [vmem:[#allocation6 + $0x7d0] sm:$0xff] }
 0x326   :  { %6269 = vmatpush1.bf16.msra.mxu0 %v6268_v38  ;;  %v2612_v38 = vld [vmem:[#allocation6 + $0x638] sm:$0xff] }
 0x327   :  { %6525 = vmatpush1.bf16.msra.mxu1 %v6524_v39  ;;  %6271 = vmatprep.subr.bf16.mxu0 %v6270_v41  ;;  %v6288_v39 = vpack.c.bf16 %v2601_v27, %v2597_v26  ;;  %v6544_v41 = vpack.c.bf16 %v2603_v32, %v2599_v29  ;;  %v6546_v47 = vpack.c.bf16 %v2612_v38, %v2608_v35  ;;  %v2637_v27 = vld [vmem:[#allocation6 + $0x700] sm:$0xff]  ;;  %v2650_v35 = vld [vmem:[#allocation6 + $0x768] sm:$0xff]  ;;  %v2648_v38 = vld [vmem:[#allocation6 + $0x758] sm:$0xff] }
 0x328   :  { %6527 = vmatprep.subr.bf16.mxu1 %v6526_v46  ;;  %v2607_v46 = vld [vmem:[#allocation6 + $0x610] sm:$0xff]  ;;  %v6306_v26 = vpack.c.bf16 %v2642_v21, %v2638_v20  ;;  %v2641_v29 = vld [vmem:[#allocation6 + $0x720] sm:$0xff] }
 0x329   :  { %v2669_v20 = vld [vmem:[#allocation6 + $0x800] sm:$0xff] }
 0x32a   :  { %6273 = vmatpush1.bf16.msra.mxu0 %v6272_v52  ;;  %v2620_v52 = vld [vmem:[#allocation6 + $0x678] sm:$0xff]  ;;  %v2673_v21 = vld [vmem:[#allocation6 + $0x820] sm:$0xff] }
 0x32b   :  { %6529 = vmatpush1.bf16.msra.mxu1 %v6528_v53  ;;  %6275 = vmatprep.subr.bf16.mxu0 %v6274_v54  ;;  %v6292_v53 = vpack.c.bf16 %v2609_v45, %v2605_v44  ;;  %v6548_v54 = vpack.c.bf16 %v2611_v48, %v2607_v46  ;;  %v6550_v58 = vpack.c.bf16 %v2620_v52, %v2616_v51  ;;  %v2645_v45 = vld [vmem:[#allocation6 + $0x740] sm:$0xff]  ;;  %v2658_v51 = vld [vmem:[#allocation6 + $0x7a8] sm:$0xff]  ;;  %v2656_v52 = vld [vmem:[#allocation6 + $0x798] sm:$0xff] }
 0x32c   :  { %6531 = vmatprep.subr.bf16.mxu1 %v6530_v57  ;;  %v2615_v57 = vld [vmem:[#allocation6 + $0x650] sm:$0xff]  ;;  %v6310_v44 = vpack.c.bf16 %v2650_v35, %v2646_v34  ;;  %v2649_v46 = vld [vmem:[#allocation6 + $0x760] sm:$0xff] }
 0x32d   :  { %v2677_v34 = vld [vmem:[#allocation6 + $0x840] sm:$0xff] }
 0x32e   :  { %6277 = vmatpush1.bf16.msra.mxu0 %v6276_v63  ;;  %v2628_v63 = vld [vmem:[#allocation6 + $0x6b8] sm:$0xff]  ;;  %v2681_v35 = vld [vmem:[#allocation6 + $0x860] sm:$0xff] }
 0x32f   :  { %6533 = vmatpush1.bf16.msra.mxu1 %v6532_v1  ;;  %6279 = vmatprep.subr.bf16.mxu0 %v6278_v2  ;;  %v6296_v1 = vpack.c.bf16 %v2617_v37, %v2613_v56  ;;  %v6552_v2 = vpack.c.bf16 %v2619_v59, %v2615_v57  ;;  %v6554_v6 = vpack.c.bf16 %v2628_v63, %v2624_v62  ;;  %v2653_v57 = vld [vmem:[#allocation6 + $0x780] sm:$0xff]  ;;  %v2655_v59 = vld [vmem:[#allocation6 + $0x790] sm:$0xff]  ;;  %v2662_v62 = vld [vmem:[#allocation6 + $0x7c8] sm:$0xff] }
 0x330   :  { %6535 = vmatprep.subr.bf16.mxu1 %v6534_v16  ;;  %v2623_v16 = vld [vmem:[#allocation6 + $0x690] sm:$0xff]  ;;  %v6314_v37 = vpack.c.bf16 %v2658_v51, %v2654_v50  ;;  %v2666_v63 = vld [vmem:[#allocation6 + $0x7e8] sm:$0xff]  ;;  %v2685_v50 = vld [vmem:[#allocation6 + $0x880] sm:$0xff] }
 0x331   :  { %v2689_v51 = vld [vmem:[#allocation6 + $0x8a0] sm:$0xff] }
 0x332   :  { %6281 = vmatpush1.bf16.msra.mxu0 %v6280_v10  ;;  %v2636_v10 = vld [vmem:[#allocation6 + $0x6f8] sm:$0xff] }
 0x333   :  { %6537 = vmatpush1.bf16.msra.mxu1 %v6536_v11  ;;  %6283 = vmatprep.subr.bf16.mxu0 %v6282_v12  ;;  %v6300_v11 = vpack.c.bf16 %v2625_v5, %v2621_v4  ;;  %v6556_v12 = vpack.c.bf16 %v2627_v7, %v2623_v16  ;;  %v6558_v19 = vpack.c.bf16 %v2636_v10, %v2632_v31  ;;  %v8022_v4 = vld [vmem:[#allocation4] sm:$0xff]  ;;  %v2661_v7 = vld [vmem:[#allocation6 + $0x7c0] sm:$0xff]  ;;  %v2667_v10 = vld [vmem:[#allocation6 + $0x7f0] sm:$0xff] }
 0x334   :  { %6539 = vmatprep.subr.bf16.mxu1 %v6538_v18  ;;  %v2631_v18 = vld [vmem:[#allocation6 + $0x6d0] sm:$0xff]  ;;  %v6572_v16 = vpack.c.bf16 %v2659_v61, %v2655_v59  ;;  %v6332_v59 = vpack.c.bf16 %v2689_v51, %v2685_v50 }
 0x336   :  { %6285 = vmatpush1.bf16.msra.mxu0 %v6284_v23  ;;  %v2644_v23 = vld [vmem:[#allocation6 + $0x738] sm:$0xff] }
 0x337   :  { %6541 = vmatpush1.bf16.msra.mxu1 %v6540_v24  ;;  %6287 = vmatprep.subr.bf16.mxu0 %v6286_v25  ;;  %v6304_v24 = vpack.c.bf16 %v2633_v17, %v2629_v15  ;;  %v6560_v25 = vpack.c.bf16 %v2635_v40, %v2631_v18  ;;  %v6562_v32 = vpack.c.bf16 %v2644_v23, %v2640_v22  ;;  %v2676_v15 = vld [vmem:[#allocation6 + $0x838] sm:$0xff]  ;;  %v2671_v22 = vld [vmem:[#allocation6 + $0x810] sm:$0xff] }
 0x338   :  { %6543 = vmatprep.subr.bf16.mxu1 %v6542_v30  ;;  %v2639_v30 = vld [vmem:[#allocation6 + $0x710] sm:$0xff]  ;;  %v6320_v17 = vpack.c.bf16 %v2665_v8, %v2661_v7  ;;  %v2708_v7 = vld [vmem:[#allocation6 + $0x938] sm:$0xff] }
 0x33a   :  { %6289 = vmatpush1.bf16.msra.mxu0 %v6288_v39  ;;  %v2652_v39 = vld [vmem:[#allocation6 + $0x778] sm:$0xff] }
 0x33b   :  { %6545 = vmatpush1.bf16.msra.mxu1 %v6544_v41  ;;  %6291 = vmatprep.subr.bf16.mxu0 %v6290_v43  ;;  %v6308_v41 = vpack.c.bf16 %v2641_v29, %v2637_v27  ;;  %v6564_v43 = vpack.c.bf16 %v2643_v33, %v2639_v30  ;;  %v6566_v48 = vpack.c.bf16 %v2652_v39, %v2648_v38  ;;  %v2680_v27 = vld [vmem:[#allocation6 + $0x858] sm:$0xff]  ;;  %v2679_v38 = vld [vmem:[#allocation6 + $0x850] sm:$0xff] }
 0x33c   :  { %6547 = vmatprep.subr.bf16.mxu1 %v6546_v47  ;;  %v2647_v47 = vld [vmem:[#allocation6 + $0x750] sm:$0xff]  ;;  %v2684_v29 = vld [vmem:[#allocation6 + $0x878] sm:$0xff]  ;;  %v6324_v30 = vpack.c.bf16 %v2673_v21, %v2669_v20 }
 0x33d   :  { %v6568_v56 = vpack.c.bf16 %v2651_v49, %v2647_v47  ;;  %v6582_v39 = vpack.c.bf16 %v2684_v29, %v2680_v27  ;;  %v6328_v47 = vpack.c.bf16 %v2681_v35, %v2677_v34  ;;  %v2715_v27 = vld [vmem:[#allocation6 + $0x970] sm:$0xff]  ;;  %v2718_v29 = vld [vmem:[#allocation6 + $0x988] sm:$0xff] }
 0x33e   :  { %6293 = vmatpush1.bf16.msra.mxu0 %v6292_v53  ;;  %v2660_v53 = vld [vmem:[#allocation6 + $0x7b8] sm:$0xff] }
 0x33f   :  { %6549 = vmatpush1.bf16.msra.mxu1 %v6548_v54  ;;  %6295 = vmatprep.subr.bf16.mxu0 %v6294_v55  ;;  %v6312_v54 = vpack.c.bf16 %v2649_v46, %v2645_v45  ;;  %v8020_v55 = vsub.s32 2, %v7994_v0  ;;  %v6570_v60 = vpack.c.bf16 %v2660_v53, %v2656_v52  ;;  %v2688_v45 = vld [vmem:[#allocation6 + $0x898] sm:$0xff]  ;;  %v2687_v52 = vld [vmem:[#allocation6 + $0x890] sm:$0xff] }
 0x340   :  { %6551 = vmatprep.subr.bf16.mxu1 %v6550_v58  ;;  %v2657_v58 = vld [vmem:[#allocation6 + $0x7a0] sm:$0xff]  ;;  %v2692_v46 = vld [vmem:[#allocation6 + $0x8b8] sm:$0xff] }
 0x341   :  { %v1240_v5 = vrot.slane %v8022_v4, %v8020_v55  ;;  %v6586_v53 = vpack.c.bf16 %v2692_v46, %v2688_v45  ;;  %v2726_v45 = vld [vmem:[#allocation6 + $0x9c8] sm:$0xff] }
 0x342   :  { %6297 = vmatpush1.bf16.msra.mxu0 %v6296_v1  ;;  %v2664_v1 = vld [vmem:[#allocation6 + $0x7d8] sm:$0xff]  ;;  %v2730_v46 = vld [vmem:[#allocation6 + $0x9e8] sm:$0xff] }
 0x343   :  { %6553 = vmatpush1.bf16.msra.mxu1 %v6552_v2  ;;  %6299 = vmatprep.subr.bf16.mxu0 %v6298_v3  ;;  %v2668_v2 = vld [vmem:[#allocation6 + $0x7f8] sm:$0xff]  ;;  %v6316_v3 = vpack.c.bf16 %v2657_v58, %v2653_v57  ;;  %v7316_v18 = vadd.f32 %v7988_v36, %v1240_v5  ;;  %v2702_v5 = vld [vmem:[#allocation6 + $0x908] sm:$0xff]  ;;  %v6350_v51 = vpack.c.bf16 %v2730_v46, %v2726_v45  ;;  %v2763_v46 = vld [vmem:[#allocation6 + $0xaf0] sm:$0xff] }
 0x344   :  { %6555 = vmatprep.subr.bf16.mxu1 %v6554_v6  ;;  %v6318_v6 = vpack.c.bf16 %v2666_v63, %v2662_v62  ;;  %v6574_v31 = vpack.c.bf16 %v2668_v2, %v2664_v1  ;;  %v2696_v57 = vld [vmem:[#allocation6 + $0x8d8] sm:$0xff]  ;;  %v2693_v62 = vld [vmem:[#allocation6 + $0x8c0] sm:$0xff]  ;;  %v2695_v1 = vld [vmem:[#allocation6 + $0x8d0] sm:$0xff] }
 0x345   :  { %v2700_v58 = vld [vmem:[#allocation6 + $0x8f8] sm:$0xff]  ;;  %v2697_v63 = vld [vmem:[#allocation6 + $0x8e0] sm:$0xff] }
 0x346   :  { %6301 = vmatpush1.bf16.msra.mxu0 %v6300_v11  ;;  %v2670_v11 = vld [vmem:[#allocation6 + $0x808] sm:$0xff]  ;;  %v6590_v2 = vpack.c.bf16 %v2700_v58, %v2696_v57  ;;  %v6336_v8 = vpack.c.bf16 %v2697_v63, %v2693_v62 }
 0x347   :  { %6557 = vmatpush1.bf16.msra.mxu1 %v6556_v12  ;;  %6303 = vmatprep.subr.bf16.mxu0 %v6302_v14  ;;  %v2674_v12 = vld [vmem:[#allocation6 + $0x828] sm:$0xff]  ;;  %v2672_v14 = vld [vmem:[#allocation6 + $0x818] sm:$0xff] }
 0x348   :  { %6559 = vmatprep.subr.bf16.mxu1 %v6558_v19  ;;  %v6576_v19 = vpack.c.bf16 %v2667_v10, %v2663_v9  ;;  %v6322_v40 = vpack.c.bf16 %v2674_v12, %v2670_v11  ;;  %v6578_v23 = vpack.c.bf16 %v2676_v15, %v2672_v14  ;;  %v2701_v10 = vld [vmem:[#allocation6 + $0x900] sm:$0xff]  ;;  %v2703_v12 = vld [vmem:[#allocation6 + $0x910] sm:$0xff]  ;;  %v2734_v57 = vld [vmem:[#allocation6 + $0xa08] sm:$0xff] }
 0x349   :  { %v2705_v11 = vld [vmem:[#allocation6 + $0x920] sm:$0xff]  ;;  %v2707_v15 = vld [vmem:[#allocation6 + $0x930] sm:$0xff]  ;;  %v2738_v58 = vld [vmem:[#allocation6 + $0xa28] sm:$0xff] }
 0x34a   :  { %6305 = vmatpush1.bf16.msra.mxu0 %v6304_v24  ;;  %v2675_v24 = vld [vmem:[#allocation6 + $0x830] sm:$0xff]  ;;  %v6340_v20 = vpack.c.bf16 %v2705_v11, %v2701_v10  ;;  %v6596_v21 = vpack.c.bf16 %v2707_v15, %v2703_v12  ;;  %v6354_v63 = vpack.c.bf16 %v2738_v58, %v2734_v57  ;;  %v2741_v12 = vld [vmem:[#allocation6 + $0xa40] sm:$0xff] }
 0x34b   :  { %6561 = vmatpush1.bf16.msra.mxu1 %v6560_v25  ;;  %6307 = vmatprep.subr.bf16.mxu0 %v6306_v26  ;;  %v2678_v25 = vld [vmem:[#allocation6 + $0x848] sm:$0xff]  ;;  %v6580_v36 = vpack.c.bf16 %v2675_v24, %v2671_v22  ;;  %v2713_v24 = vld [vmem:[#allocation6 + $0x960] sm:$0xff]  ;;  %v2743_v15 = vld [vmem:[#allocation6 + $0xa50] sm:$0xff] }
 0x34c   :  { %6563 = vmatprep.subr.bf16.mxu1 %v6562_v32  ;;  %v2682_v26 = vld [vmem:[#allocation6 + $0x868] sm:$0xff]  ;;  %v2407_v32 = vmax.f32 %v7316_v18, 0.0  ;;  %v2771_v58 = vld [vmem:[#allocation6 + $0xb30] sm:$0xff] }
 0x34d   :  { %v6326_v33 = vpack.c.bf16 %v2682_v26, %v2678_v25  ;;  %v2714_v18 = vld [vmem:[#allocation6 + $0x968] sm:$0xff]  ;;  %v2711_v25 = vld [vmem:[#allocation6 + $0x950] sm:$0xff] }
 0x34e   :  { %6309 = vmatpush1.bf16.msra.mxu0 %v6308_v41  ;;  %v2683_v41 = vld [vmem:[#allocation6 + $0x870] sm:$0xff]  ;;  %v6600_v34 = vpack.c.bf16 %v2715_v27, %v2711_v25  ;;  %v2749_v25 = vld [vmem:[#allocation6 + $0xa80] sm:$0xff] }
 0x34f   :  { %6565 = vmatpush1.bf16.msra.mxu1 %v6564_v43  ;;  %6311 = vmatprep.subr.bf16.mxu0 %v6310_v44  ;;  %v2686_v43 = vld [vmem:[#allocation6 + $0x888] sm:$0xff]  ;;  %v2751_v27 = vld [vmem:[#allocation6 + $0xa90] sm:$0xff] }
 0x350   :  { %6567 = vmatprep.subr.bf16.mxu1 %v6566_v48  ;;  %v2690_v44 = vld [vmem:[#allocation6 + $0x8a8] sm:$0xff]  ;;  %v6584_v48 = vpack.c.bf16 %v2683_v41, %v2679_v38  ;;  %v2717_v38 = vld [vmem:[#allocation6 + $0x980] sm:$0xff]  ;;  %v2719_v41 = vld [vmem:[#allocation6 + $0x990] sm:$0xff] }
 0x351   :  { %v6330_v49 = vpack.c.bf16 %v2690_v44, %v2686_v43  ;;  %v2723_v44 = vld [vmem:[#allocation6 + $0x9b0] sm:$0xff] }
 0x352   :  { %6313 = vmatpush1.bf16.msra.mxu0 %v6312_v54  ;;  %v2691_v54 = vld [vmem:[#allocation6 + $0x8b0] sm:$0xff]  ;;  %v6604_v50 = vpack.c.bf16 %v2723_v44, %v2719_v41  ;;  %v2757_v41 = vld [vmem:[#allocation6 + $0xac0] sm:$0xff] }
 0x353   :  { %6569 = vmatpush1.bf16.msra.mxu1 %v6568_v56  ;;  %6315 = vmatprep.subr.bf16.mxu0 %v6314_v37  ;;  %v2694_v56 = vld [vmem:[#allocation6 + $0x8c8] sm:$0xff]  ;;  %v2759_v44 = vld [vmem:[#allocation6 + $0xad0] sm:$0xff] }
 0x354   :  { %6571 = vmatprep.subr.bf16.mxu1 %v6570_v60  ;;  %v2698_v37 = vld [vmem:[#allocation6 + $0x8e8] sm:$0xff]  ;;  %v6588_v60 = vpack.c.bf16 %v2691_v54, %v2687_v52  ;;  %v2725_v52 = vld [vmem:[#allocation6 + $0x9c0] sm:$0xff]  ;;  %v2727_v54 = vld [vmem:[#allocation6 + $0x9d0] sm:$0xff] }
 0x355   :  { %v6334_v61 = vpack.c.bf16 %v2698_v37, %v2694_v56  ;;  %v2731_v37 = vld [vmem:[#allocation6 + $0x9f0] sm:$0xff] }
 0x356   :  { %6317 = vmatpush1.bf16.msra.mxu0 %v6316_v3  ;;  %v2699_v3 = vld [vmem:[#allocation6 + $0x8f0] sm:$0xff]  ;;  %v6608_v62 = vpack.c.bf16 %v2731_v37, %v2727_v54  ;;  %v2765_v54 = vld [vmem:[#allocation6 + $0xb00] sm:$0xff] }
 0x357   :  { %6573 = vmatpush1.bf16.msra.mxu1 %v6572_v16  ;;  %6319 = vmatprep.subr.bf16.mxu0 %v6318_v6  ;;  %v2706_v16 = vld [vmem:[#allocation6 + $0x928] sm:$0xff]  ;;  %v2704_v6 = vld [vmem:[#allocation6 + $0x918] sm:$0xff]  ;;  %v6592_v9 = vpack.c.bf16 %v2699_v3, %v2695_v1  ;;  %v2733_v1 = vld [vmem:[#allocation6 + $0xa00] sm:$0xff] }
 0x358   :  { %6575 = vmatprep.subr.bf16.mxu1 %v6574_v31  ;;  %v6338_v31 = vpack.c.bf16 %v2706_v16, %v2702_v5  ;;  %v6594_v14 = vpack.c.bf16 %v2708_v7, %v2704_v6  ;;  %v2735_v3 = vld [vmem:[#allocation6 + $0xa10] sm:$0xff]  ;;  %v2742_v6 = vld [vmem:[#allocation6 + $0xa48] sm:$0xff] }
 0x359   :  { %v2739_v16 = vld [vmem:[#allocation6 + $0xa30] sm:$0xff]  ;;  %v2746_v7 = vld [vmem:[#allocation6 + $0xa68] sm:$0xff] }
 0x35a   :  { %6321 = vmatpush1.bf16.msra.mxu0 %v6320_v17  ;;  %v2710_v17 = vld [vmem:[#allocation6 + $0x948] sm:$0xff]  ;;  %v6612_v10 = vpack.c.bf16 %v2739_v16, %v2735_v3  ;;  %v6358_v11 = vpack.c.bf16 %v2746_v7, %v2742_v6  ;;  %v2767_v37 = vld [vmem:[#allocation6 + $0xb10] sm:$0xff]  ;;  %v2773_v3 = vld [vmem:[#allocation6 + $0xb40] sm:$0xff] }
 0x35b   :  { %6577 = vmatpush1.bf16.msra.mxu1 %v6576_v19  ;;  %6323 = vmatprep.subr.bf16.mxu0 %v6322_v40  ;;  %v2712_v19 = vld [vmem:[#allocation6 + $0x958] sm:$0xff]  ;;  %v6342_v22 = vpack.c.bf16 %v2714_v18, %v2710_v17  ;;  %v2747_v18 = vld [vmem:[#allocation6 + $0xa70] sm:$0xff] }
 0x35c   :  { %6579 = vmatprep.subr.bf16.mxu1 %v6578_v23  ;;  %v2716_v40 = vld [vmem:[#allocation6 + $0x978] sm:$0xff]  ;;  %v2709_v23 = vld [vmem:[#allocation6 + $0x940] sm:$0xff]  ;;  %v2775_v16 = vld [vmem:[#allocation6 + $0xb50] sm:$0xff] }
 0x35d   :  { %3083 = vmatmul.mubr.f32.vlgmr.msra.gmra.mrb[4].mxu0 %v2407_v32  ;;  %v6598_v26 = vpack.c.bf16 %v2716_v40, %v2712_v19  ;;  %v2750_v19 = vld [vmem:[#allocation6 + $0xa88] sm:$0xff]  ;;  %v2779_v7 = vld [vmem:[#allocation6 + $0xb70] sm:$0xff] }
 0x35e   :  { %3367 = vmatmul.mubr.f32.vlgmr.msra.gmra.mrb[4].mxu1 %v2407_v32  ;;  %6325 = vmatpush1.bf16.msra.mxu0 %v6324_v30  ;;  %v2722_v30 = vld [vmem:[#allocation6 + $0x9a8] sm:$0xff]  ;;  %v2720_v32 = vld [vmem:[#allocation6 + $0x998] sm:$0xff] }
 0x35f   :  { %6581 = vmatpush1.bf16.msra.mxu1 %v6580_v36  ;;  %6327 = vmatprep.subr.bf16.mxu0 %v6326_v33  ;;  %v2724_v36 = vld [vmem:[#allocation6 + $0x9b8] sm:$0xff]  ;;  %v6344_v33 = vpack.c.bf16 %v2713_v24, %v2709_v23  ;;  %v6346_v35 = vpack.c.bf16 %v2722_v30, %v2718_v29  ;;  %v2754_v40 = vld [vmem:[#allocation6 + $0xaa8] sm:$0xff]  ;;  %v6616_v23 = vpack.c.bf16 %v2747_v18, %v2743_v15  ;;  %v2755_v30 = vld [vmem:[#allocation6 + $0xab0] sm:$0xff] }
 0x360   :  { %6583 = vmatprep.subr.bf16.mxu1 %v6582_v39  ;;  %v2721_v39 = vld [vmem:[#allocation6 + $0x9a0] sm:$0xff]  ;;  %v6602_v43 = vpack.c.bf16 %v2724_v36, %v2720_v32  ;;  %v6362_v24 = vpack.c.bf16 %v2754_v40, %v2750_v19  ;;  %v2758_v32 = vld [vmem:[#allocation6 + $0xac8] sm:$0xff]  ;;  %v2783_v18 = vld [vmem:[#allocation6 + $0xb90] sm:$0xff] }
 0x361   :  { %v2762_v36 = vld [vmem:[#allocation6 + $0xae8] sm:$0xff]  ;;  %v2781_v15 = vld [vmem:[#allocation6 + $0xb80] sm:$0xff]  ;;  %v2787_v40 = vld [vmem:[#allocation6 + $0xbb0] sm:$0xff] }
 0x362   :  { %6329 = vmatpush1.bf16.msra.mxu0 %v6328_v47  ;;  %v2728_v47 = vld [vmem:[#allocation6 + $0x9d8] sm:$0xff] }
 0x363   :  { %6585 = vmatpush1.bf16.msra.mxu1 %v6584_v48  ;;  %6331 = vmatprep.subr.bf16.mxu0 %v6330_v49  ;;  %v2732_v48 = vld [vmem:[#allocation6 + $0x9f8] sm:$0xff]  ;;  %v6348_v49 = vpack.c.bf16 %v2721_v39, %v2717_v38  ;;  %v6620_v38 = vpack.c.bf16 %v2755_v30, %v2751_v27  ;;  %v6366_v39 = vpack.c.bf16 %v2762_v36, %v2758_v32  ;;  %v2789_v27 = vld [vmem:[#allocation6 + $0xbc0] sm:$0xff]  ;;  %v2791_v30 = vld [vmem:[#allocation6 + $0xbd0] sm:$0xff] }
 0x364   :  { %6587 = vmatprep.subr.bf16.mxu1 %v6586_v53  ;;  %v2729_v53 = vld [vmem:[#allocation6 + $0x9e0] sm:$0xff]  ;;  %v6606_v56 = vpack.c.bf16 %v2732_v48, %v2728_v47  ;;  %v2766_v47 = vld [vmem:[#allocation6 + $0xb08] sm:$0xff]  ;;  %v2795_v36 = vld [vmem:[#allocation6 + $0xbf0] sm:$0xff] }
 0x365   :  { %v2770_v48 = vld [vmem:[#allocation6 + $0xb28] sm:$0xff] }
 0x366   :  { %6333 = vmatpush1.bf16.msra.mxu0 %v6332_v59  ;;  %v2736_v59 = vld [vmem:[#allocation6 + $0xa18] sm:$0xff] }
 0x367   :  { %6589 = vmatpush1.bf16.msra.mxu1 %v6588_v60  ;;  %6335 = vmatprep.subr.bf16.mxu0 %v6334_v61  ;;  %v2740_v60 = vld [vmem:[#allocation6 + $0xa38] sm:$0xff]  ;;  %v6352_v61 = vpack.c.bf16 %v2729_v53, %v2725_v52  ;;  %v6624_v52 = vpack.c.bf16 %v2763_v46, %v2759_v44  ;;  %v6370_v53 = vpack.c.bf16 %v2770_v48, %v2766_v47  ;;  %v1251_v46 = vsub.s32 5, %v7994_v0 }
 0x368   :  { %6591 = vmatprep.subr.bf16.mxu1 %v6590_v2  ;;  %v2737_v2 = vld [vmem:[#allocation6 + $0xa20] sm:$0xff]  ;;  %v6610_v5 = vpack.c.bf16 %v2740_v60, %v2736_v59  ;;  %v2774_v59 = vld [vmem:[#allocation6 + $0xb48] sm:$0xff]  ;;  %v1259_v47 = vsub.s32 7, %v7994_v0 }
 0x369   :  { %v2778_v60 = vld [vmem:[#allocation6 + $0xb68] sm:$0xff] }
 0x36a   :  { %6337 = vmatpush1.bf16.msra.mxu0 %v6336_v8  ;;  %v2744_v8 = vld [vmem:[#allocation6 + $0xa58] sm:$0xff] }
 0x36b   :  { %6593 = vmatpush1.bf16.msra.mxu1 %v6592_v9  ;;  %6339 = vmatprep.subr.bf16.mxu0 %v6338_v31  ;;  %v2748_v9 = vld [vmem:[#allocation6 + $0xa78] sm:$0xff]  ;;  %v6356_v31 = vpack.c.bf16 %v2737_v2, %v2733_v1  ;;  %v6628_v1 = vpack.c.bf16 %v2771_v58, %v2767_v37  ;;  %v6374_v2 = vpack.c.bf16 %v2778_v60, %v2774_v59  ;;  %v2801_v37 = vld [vmem:[#allocation6 + $0xc20] sm:$0xff]  ;;  %v2803_v58 = vld [vmem:[#allocation6 + $0xc30] sm:$0xff] }
 0x36c   :  { %6595 = vmatprep.subr.bf16.mxu1 %v6594_v14  ;;  %v2745_v14 = vld [vmem:[#allocation6 + $0xa60] sm:$0xff]  ;;  %v6614_v17 = vpack.c.bf16 %v2748_v9, %v2744_v8  ;;  %v2782_v8 = vld [vmem:[#allocation6 + $0xb88] sm:$0xff] }
 0x36d   :  { %v2786_v9 = vld [vmem:[#allocation6 + $0xba8] sm:$0xff] }
 0x36e   :  { %6341 = vmatpush1.bf16.msra.mxu0 %v6340_v20  ;;  %v2752_v20 = vld [vmem:[#allocation6 + $0xa98] sm:$0xff] }
 0x36f   :  { %6597 = vmatpush1.bf16.msra.mxu1 %v6596_v21  ;;  %6343 = vmatprep.subr.bf16.mxu0 %v6342_v22  ;;  %v2756_v21 = vld [vmem:[#allocation6 + $0xab8] sm:$0xff]  ;;  %v6360_v22 = vpack.c.bf16 %v2745_v14, %v2741_v12  ;;  %v6632_v12 = vpack.c.bf16 %v2779_v7, %v2775_v16  ;;  %v6378_v14 = vpack.c.bf16 %v2786_v9, %v2782_v8  ;;  %v2807_v8 = vld [vmem:[#allocation6 + $0xc50] sm:$0xff] }
 0x370   :  { %6599 = vmatprep.subr.bf16.mxu1 %v6598_v26  ;;  %v2753_v26 = vld [vmem:[#allocation6 + $0xaa0] sm:$0xff]  ;;  %v6618_v29 = vpack.c.bf16 %v2756_v21, %v2752_v20  ;;  %v2790_v20 = vld [vmem:[#allocation6 + $0xbc8] sm:$0xff]  ;;  %v2811_v9 = vld [vmem:[#allocation6 + $0xc70] sm:$0xff] }
 0x371   :  { %v2794_v21 = vld [vmem:[#allocation6 + $0xbe8] sm:$0xff] }
 0x372   :  { %6345 = vmatpush1.bf16.msra.mxu0 %v6344_v33  ;;  %v2760_v33 = vld [vmem:[#allocation6 + $0xad8] sm:$0xff] }
 0x373   :  { %6601 = vmatpush1.bf16.msra.mxu1 %v6600_v34  ;;  %6347 = vmatprep.subr.bf16.mxu0 %v6346_v35  ;;  %v2764_v34 = vld [vmem:[#allocation6 + $0xaf8] sm:$0xff]  ;;  %v6364_v35 = vpack.c.bf16 %v2753_v26, %v2749_v25  ;;  %v6636_v25 = vpack.c.bf16 %v2787_v40, %v2783_v18  ;;  %v6382_v26 = vpack.c.bf16 %v2794_v21, %v2790_v20  ;;  %v2813_v40 = vld [vmem:[#allocation6 + $0xc80] sm:$0xff] }
 0x374   :  { %6603 = vmatprep.subr.bf16.mxu1 %v6602_v43  ;;  %v2761_v43 = vld [vmem:[#allocation6 + $0xae0] sm:$0xff]  ;;  %v6622_v45 = vpack.c.bf16 %v2764_v34, %v2760_v33  ;;  %v2798_v33 = vld [vmem:[#allocation6 + $0xc08] sm:$0xff] }
 0x375   :  { %v2802_v34 = vld [vmem:[#allocation6 + $0xc28] sm:$0xff]  ;;  %v2817_v20 = vld [vmem:[#allocation6 + $0xca0] sm:$0xff] }
 0x376   :  { %6349 = vmatpush1.bf16.msra.mxu0 %v6348_v49  ;;  %v2768_v49 = vld [vmem:[#allocation6 + $0xb18] sm:$0xff] }
 0x377   :  { %6605 = vmatpush1.bf16.msra.mxu1 %v6604_v50  ;;  %6351 = vmatprep.subr.bf16.mxu0 %v6350_v51  ;;  %v2772_v50 = vld [vmem:[#allocation6 + $0xb38] sm:$0xff]  ;;  %v6368_v51 = vpack.c.bf16 %v2761_v43, %v2757_v41  ;;  %v6640_v41 = vpack.c.bf16 %v2795_v36, %v2791_v30  ;;  %v6386_v43 = vpack.c.bf16 %v2802_v34, %v2798_v33  ;;  %v2821_v36 = vld [vmem:[#allocation6 + $0xcc0] sm:$0xff] }
 0x378   :  { %6607 = vmatprep.subr.bf16.mxu1 %v6606_v56  ;;  %v2769_v56 = vld [vmem:[#allocation6 + $0xb20] sm:$0xff]  ;;  %v6626_v57 = vpack.c.bf16 %v2772_v50, %v2768_v49  ;;  %v1252_v49 = vrot.slane %v8022_v4, %v1251_v46  ;;  %v1260_v50 = vrot.slane %v8022_v4, %v1259_v47  ;;  %v6396_v30 = vpack.c.bf16 %v2817_v20, %v2813_v40 }
 0x379   :  { %v2825_v33 = vld [vmem:[#allocation6 + $0xce0] sm:$0xff] }
 0x37a   :  { %6353 = vmatpush1.bf16.msra.mxu0 %v6352_v61  ;;  %v2776_v61 = vld [vmem:[#allocation6 + $0xb58] sm:$0xff]  ;;  %v6400_v46 = vpack.c.bf16 %v2825_v33, %v2821_v36 }
 0x37b   :  { %6609 = vmatpush1.bf16.msra.mxu1 %v6608_v62  ;;  %6355 = vmatprep.subr.bf16.mxu0 %v6354_v63  ;;  %v2780_v62 = vld [vmem:[#allocation6 + $0xb78] sm:$0xff]  ;;  %v6372_v63 = vpack.c.bf16 %v2769_v56, %v2765_v54 }
 0x37c   :  { %6611 = vmatprep.subr.bf16.mxu1 %v6610_v5  ;;  %v2777_v5 = vld [vmem:[#allocation6 + $0xb60] sm:$0xff]  ;;  %v6630_v6 = vpack.c.bf16 %v2780_v62, %v2776_v61  ;;  %v2806_v61 = vld [vmem:[#allocation6 + $0xc48] sm:$0xff] }
 0x37e   :  { %6357 = vmatpush1.bf16.msra.mxu0 %v6356_v31  ;;  %v2784_v31 = vld [vmem:[#allocation6 + $0xb98] sm:$0xff] }
 0x37f   :  { %6613 = vmatpush1.bf16.msra.mxu1 %v6612_v10  ;;  %6359 = vmatprep.subr.bf16.mxu0 %v6358_v11  ;;  %v2788_v10 = vld [vmem:[#allocation6 + $0xbb8] sm:$0xff]  ;;  %v6376_v11 = vpack.c.bf16 %v2777_v5, %v2773_v3 }
 0x380   :  { %6615 = vmatprep.subr.bf16.mxu1 %v6614_v17  ;;  %v2785_v17 = vld [vmem:[#allocation6 + $0xba0] sm:$0xff]  ;;  %v6634_v19 = vpack.c.bf16 %v2788_v10, %v2784_v31  ;;  %v2814_v31 = vld [vmem:[#allocation6 + $0xc88] sm:$0xff] }
 0x382   :  { %6361 = vmatpush1.bf16.msra.mxu0 %v6360_v22  ;;  %v2792_v22 = vld [vmem:[#allocation6 + $0xbd8] sm:$0xff] }
 0x383   :  { %6617 = vmatpush1.bf16.msra.mxu1 %v6616_v23  ;;  %6363 = vmatprep.subr.bf16.mxu0 %v6362_v24  ;;  %v2796_v23 = vld [vmem:[#allocation6 + $0xbf8] sm:$0xff]  ;;  %v6380_v24 = vpack.c.bf16 %v2785_v17, %v2781_v15 }
 0x384   :  { %6619 = vmatprep.subr.bf16.mxu1 %v6618_v29  ;;  %v2793_v29 = vld [vmem:[#allocation6 + $0xbe0] sm:$0xff]  ;;  %v6638_v32 = vpack.c.bf16 %v2796_v23, %v2792_v22  ;;  %v2820_v15 = vld [vmem:[#allocation6 + $0xcb8] sm:$0xff]  ;;  %v2815_v23 = vld [vmem:[#allocation6 + $0xc90] sm:$0xff] }
 0x386   :  { %6365 = vmatpush1.bf16.msra.mxu0 %v6364_v35  ;;  %v2800_v35 = vld [vmem:[#allocation6 + $0xc18] sm:$0xff] }
 0x387   :  { %6621 = vmatpush1.bf16.msra.mxu1 %v6620_v38  ;;  %6367 = vmatprep.subr.bf16.mxu0 %v6366_v39  ;;  %v2804_v38 = vld [vmem:[#allocation6 + $0xc38] sm:$0xff]  ;;  %v6384_v39 = vpack.c.bf16 %v2793_v29, %v2789_v27 }
 0x388   :  { %6623 = vmatprep.subr.bf16.mxu1 %v6622_v45  ;;  %v6642_v44 = vpack.c.bf16 %v2804_v38, %v2800_v35  ;;  %v1247_v45 = vsub.s32 4, %v7994_v0  ;;  %v2824_v27 = vld [vmem:[#allocation6 + $0xcd8] sm:$0xff]  ;;  %v2823_v38 = vld [vmem:[#allocation6 + $0xcd0] sm:$0xff] }
 0x389   :  { %v2828_v29 = vld [vmem:[#allocation6 + $0xcf8] sm:$0xff] }
 0x38a   :  { %6369 = vmatpush1.bf16.msra.mxu0 %v6368_v51  ;;  %v1248_v48 = vrot.slane %v8022_v4, %v1247_v45  ;;  %v2805_v4 = vld [vmem:[#allocation6 + $0xc40] sm:$0xff]  ;;  %v6654_v35 = vpack.c.bf16 %v2828_v29, %v2824_v27  ;;  %v2836_v45 = vld [vmem:[#allocation6 + $0xd38] sm:$0xff]  ;;  %v2862_v27 = vld [vmem:[#allocation6 + $0xe08] sm:$0xff] }
 0x38b   :  { %6625 = vmatpush1.bf16.msra.mxu1 %v6624_v52  ;;  %6371 = vmatprep.subr.bf16.mxu0 %v6370_v53  ;;  %v2797_v52 = vld [vmem:[#allocation6 + $0xc00] sm:$0xff]  ;;  %v2866_v29 = vld [vmem:[#allocation6 + $0xe28] sm:$0xff] }
 0x38c   :  { %6627 = vmatprep.subr.bf16.mxu1 %v6626_v57  ;;  %v2799_v57 = vld [vmem:[#allocation6 + $0xc10] sm:$0xff]  ;;  %v6388_v5 = vpack.c.bf16 %v2801_v37, %v2797_v52  ;;  %v2842_v37 = vld [vmem:[#allocation6 + $0xd68] sm:$0xff] }
 0x38d   :  { %v6644_v16 = vpack.c.bf16 %v2803_v58, %v2799_v57  ;;  %v2831_v52 = vld [vmem:[#allocation6 + $0xd10] sm:$0xff]  ;;  %v2840_v57 = vld [vmem:[#allocation6 + $0xd58] sm:$0xff] }
 0x38e   :  { %6373 = vmatpush1.bf16.msra.mxu0 %v6372_v63  ;;  %v2810_v63 = vld [vmem:[#allocation6 + $0xc68] sm:$0xff]  ;;  %v2844_v58 = vld [vmem:[#allocation6 + $0xd78] sm:$0xff] }
 0x38f   :  { %6629 = vmatpush1.bf16.msra.mxu1 %v6628_v1  ;;  %6375 = vmatprep.subr.bf16.mxu0 %v6374_v2  ;;  %v2808_v1 = vld [vmem:[#allocation6 + $0xc58] sm:$0xff]  ;;  %v6390_v10 = vpack.c.bf16 %v2810_v63, %v2806_v61  ;;  %v2837_v61 = vld [vmem:[#allocation6 + $0xd40] sm:$0xff] }
 0x390   :  { %6631 = vmatprep.subr.bf16.mxu1 %v6630_v6  ;;  %v2812_v2 = vld [vmem:[#allocation6 + $0xc78] sm:$0xff]  ;;  %v2809_v6 = vld [vmem:[#allocation6 + $0xc60] sm:$0xff] }
 0x391   :  { %v6392_v18 = vpack.c.bf16 %v2809_v6, %v2805_v4  ;;  %v2848_v4 = vld [vmem:[#allocation6 + $0xd98] sm:$0xff] }
 0x392   :  { %6377 = vmatpush1.bf16.msra.mxu0 %v6376_v11  ;;  %v6646_v11 = vpack.c.bf16 %v2812_v2, %v2808_v1  ;;  %v6662_v1 = vpack.c.bf16 %v2844_v58, %v2840_v57  ;;  %v2839_v2 = vld [vmem:[#allocation6 + $0xd50] sm:$0xff]  ;;  %v2852_v6 = vld [vmem:[#allocation6 + $0xdb8] sm:$0xff]  ;;  %v2878_v57 = vld [vmem:[#allocation6 + $0xe88] sm:$0xff] }
 0x393   :  { %6633 = vmatpush1.bf16.msra.mxu1 %v6632_v12  ;;  %6379 = vmatprep.subr.bf16.mxu0 %v6378_v14  ;;  %v2818_v12 = vld [vmem:[#allocation6 + $0xca8] sm:$0xff]  ;;  %v2816_v14 = vld [vmem:[#allocation6 + $0xc98] sm:$0xff] }
 0x394   :  { %6635 = vmatprep.subr.bf16.mxu1 %v6634_v19  ;;  %v6648_v19 = vpack.c.bf16 %v2811_v9, %v2807_v8  ;;  %v6394_v21 = vpack.c.bf16 %v2818_v12, %v2814_v31  ;;  %v6650_v22 = vpack.c.bf16 %v2820_v15, %v2816_v14  ;;  %v2845_v9 = vld [vmem:[#allocation6 + $0xd80] sm:$0xff]  ;;  %v2847_v12 = vld [vmem:[#allocation6 + $0xd90] sm:$0xff]  ;;  %v2854_v15 = vld [vmem:[#allocation6 + $0xdc8] sm:$0xff] }
 0x395   :  { %v2849_v31 = vld [vmem:[#allocation6 + $0xda0] sm:$0xff]  ;;  %v2851_v14 = vld [vmem:[#allocation6 + $0xdb0] sm:$0xff]  ;;  %v2882_v58 = vld [vmem:[#allocation6 + $0xea8] sm:$0xff] }
 0x396   :  { %6381 = vmatpush1.bf16.msra.mxu0 %v6380_v24  ;;  %v2819_v24 = vld [vmem:[#allocation6 + $0xcb0] sm:$0xff]  ;;  %v6412_v40 = vpack.c.bf16 %v2849_v31, %v2845_v9  ;;  %v6668_v20 = vpack.c.bf16 %v2851_v14, %v2847_v12 }
 0x397   :  { %6637 = vmatpush1.bf16.msra.mxu1 %v6636_v25  ;;  %6383 = vmatprep.subr.bf16.mxu0 %v6382_v26  ;;  %v2822_v25 = vld [vmem:[#allocation6 + $0xcc8] sm:$0xff] }
 0x398   :  { %6639 = vmatprep.subr.bf16.mxu1 %v6638_v32  ;;  %v2826_v26 = vld [vmem:[#allocation6 + $0xce8] sm:$0xff]  ;;  %v6652_v32 = vpack.c.bf16 %v2819_v24, %v2815_v23 }
 0x399   :  { %v6398_v34 = vpack.c.bf16 %v2826_v26, %v2822_v25  ;;  %v2855_v25 = vld [vmem:[#allocation6 + $0xdd0] sm:$0xff] }
 0x39a   :  { %6385 = vmatpush1.bf16.msra.mxu0 %v6384_v39  ;;  %v2827_v39 = vld [vmem:[#allocation6 + $0xcf0] sm:$0xff] }
 0x39b   :  { %6641 = vmatpush1.bf16.msra.mxu1 %v6640_v41  ;;  %6387 = vmatprep.subr.bf16.mxu0 %v6386_v43  ;;  %v2830_v41 = vld [vmem:[#allocation6 + $0xd08] sm:$0xff]  ;;  %v6656_v47 = vpack.c.bf16 %v2827_v39, %v2823_v38  ;;  %v2859_v26 = vld [vmem:[#allocation6 + $0xdf0] sm:$0xff]  ;;  %v6418_v38 = vpack.c.bf16 %v2866_v29, %v2862_v27 }
 0x39c   :  { %6643 = vmatprep.subr.bf16.mxu1 %v6642_v44  ;;  %v2834_v43 = vld [vmem:[#allocation6 + $0xd28] sm:$0xff]  ;;  %v2832_v44 = vld [vmem:[#allocation6 + $0xd18] sm:$0xff]  ;;  %v6672_v33 = vpack.c.bf16 %v2859_v26, %v2855_v25  ;;  %v2895_v27 = vld [vmem:[#allocation6 + $0xf10] sm:$0xff] }
 0x39d   :  { %v2899_v29 = vld [vmem:[#allocation6 + $0xf30] sm:$0xff] }
 0x3b0   :  { %v2116_v51 = vpop.f32.mrb[2].mxu0 }
 0x3b1   :  { %v7318_v53 = vadd.f32 %v2116_v51, %v1248_v48  ;;  %v8033_v54 = vpop.f32.mrb[2].mxu1  ;;  %v2118_v56 = vpop.f32.mrb[3].mxu0  ;;  %v2829_v48 = vld [vmem:[#allocation6 + $0xd00] sm:$0xff]  ;;  %v6658_v51 = vpack.c.bf16 %v2836_v45, %v2832_v44  ;;  %v2870_v44 = vld [vmem:[#allocation6 + $0xe48] sm:$0xff] }
 0x3b2   :  { %v7319_v59 = vadd.f32 %v2118_v56, %v1252_v49  ;;  %v2402_v60 = vpop.f32.mrb[3].mxu1  ;;  %v2833_v49 = vld [vmem:[#allocation6 + $0xd20] sm:$0xff]  ;;  %v2838_v56 = vld [vmem:[#allocation6 + $0xd48] sm:$0xff] }
 0x3b3   :  { %v7321_v62 = vadd.f32 %v2402_v60, %v1260_v50  ;;  %v2409_v7 = vmax.f32 %v7318_v53, 0.0  ;;  %v6402_v50 = vpack.c.bf16 %v2834_v43, %v2830_v41  ;;  %v2835_v53 = vld [vmem:[#allocation6 + $0xd30] sm:$0xff]  ;;  %v6406_v63 = vpack.c.bf16 %v2842_v37, %v2838_v56  ;;  %v2874_v45 = vld [vmem:[#allocation6 + $0xe68] sm:$0xff] }
 0x3b4   :  { %v2410_v3 = vmax.f32 %v7319_v59, 0.0  ;;  %v6404_v59 = vpack.c.bf16 %v2833_v49, %v2829_v48  ;;  %v6660_v60 = vpack.c.bf16 %v2835_v53, %v2831_v52  ;;  %v2863_v41 = vld [vmem:[#allocation6 + $0xe10] sm:$0xff]  ;;  %v6422_v52 = vpack.c.bf16 %v2874_v45, %v2870_v44 }
 0x3b5   :  { %v2412_v17 = vmax.f32 %v7321_v62, 0.0  ;;  %v2841_v62 = vld [vmem:[#allocation6 + $0xd60] sm:$0xff]  ;;  %v2867_v43 = vld [vmem:[#allocation6 + $0xe30] sm:$0xff] }
 0x3b6   :  { %3153 = vmatprep.mubr.f32.mxu0 %v2410_v3  ;;  %3437 = vmatprep.mubr.f32.mxu1 %v2410_v3  ;;  %v2843_v3 = vld [vmem:[#allocation6 + $0xd70] sm:$0xff]  ;;  %v6676_v49 = vpack.c.bf16 %v2867_v43, %v2863_v41 }
 0x3b7   :  { %3154 = vmatmul.mubr.f32.vlgmr.msra.gmra.mrb[4].mxu0 %v2409_v7  ;;  %3438 = vmatmul.mubr.f32.vlgmr.msra.gmra.mrb[4].mxu1 %v2409_v7  ;;  %v6408_v7 = vpack.c.bf16 %v2841_v62, %v2837_v61  ;;  %v6664_v8 = vpack.c.bf16 %v2843_v3, %v2839_v2  ;;  %v2871_v56 = vld [vmem:[#allocation6 + $0xe50] sm:$0xff]  ;;  %v6426_v2 = vpack.c.bf16 %v2882_v58, %v2878_v57 }
 0x3b8   :  { %6389 = vmatpush1.bf16.msra.mxu0 %v6388_v5  ;;  %6645 = vmatpush1.bf16.msra.mxu1 %v6644_v16  ;;  %v2846_v5 = vld [vmem:[#allocation6 + $0xd88] sm:$0xff]  ;;  %v2875_v37 = vld [vmem:[#allocation6 + $0xe70] sm:$0xff] }
 0x3b9   :  { %3224 = vmatprep.mubr.f32.mxu0 %v2412_v17  ;;  %3508 = vmatprep.mubr.f32.mxu1 %v2412_v17  ;;  %v2850_v16 = vld [vmem:[#allocation6 + $0xda8] sm:$0xff]  ;;  %v6680_v62 = vpack.c.bf16 %v2875_v37, %v2871_v56  ;;  %v2903_v44 = vld [vmem:[#allocation6 + $0xf50] sm:$0xff]  ;;  %v1255_v56 = vsub.s32 6, %v7994_v0 }
 0x3ba   :  { %6391 = vmatprep.subr.bf16.mxu0 %v6390_v10  ;;  %6647 = vmatprep.subr.bf16.mxu1 %v6646_v11  ;;  %v6410_v10 = vpack.c.bf16 %v2850_v16, %v2846_v5  ;;  %v6666_v11 = vpack.c.bf16 %v2852_v6, %v2848_v4  ;;  %v2858_v17 = vld [vmem:[#allocation6 + $0xde8] sm:$0xff]  ;;  %v2879_v5 = vld [vmem:[#allocation6 + $0xe90] sm:$0xff] }
 0x3bb   :  { %v6414_v23 = vpack.c.bf16 %v2858_v17, %v2854_v15  ;;  %v2883_v16 = vld [vmem:[#allocation6 + $0xeb0] sm:$0xff]  ;;  %v2886_v4 = vld [vmem:[#allocation6 + $0xec8] sm:$0xff] }
 0x3bc   :  { %6393 = vmatpush1.bf16.msra.mxu0 %v6392_v18  ;;  %6649 = vmatpush1.bf16.msra.mxu1 %v6648_v19  ;;  %v2856_v18 = vld [vmem:[#allocation6 + $0xdd8] sm:$0xff]  ;;  %v2890_v6 = vld [vmem:[#allocation6 + $0xee8] sm:$0xff]  ;;  %v6684_v31 = vpack.c.bf16 %v2883_v16, %v2879_v5  ;;  %v2887_v15 = vld [vmem:[#allocation6 + $0xed0] sm:$0xff] }
 0x3bd   :  { %6395 = vmatprep.subr.bf16.mxu0 %v6394_v21  ;;  %6651 = vmatprep.subr.bf16.mxu1 %v6650_v22  ;;  %v2860_v19 = vld [vmem:[#allocation6 + $0xdf8] sm:$0xff]  ;;  %v2853_v21 = vld [vmem:[#allocation6 + $0xdc0] sm:$0xff]  ;;  %v6430_v12 = vpack.c.bf16 %v2890_v6, %v2886_v4  ;;  %v2891_v17 = vld [vmem:[#allocation6 + $0xef0] sm:$0xff] }
 0x3be   :  { %v2857_v22 = vld [vmem:[#allocation6 + $0xde0] sm:$0xff]  ;;  %v6670_v24 = vpack.c.bf16 %v2860_v19, %v2856_v18  ;;  %v2894_v18 = vld [vmem:[#allocation6 + $0xf08] sm:$0xff]  ;;  %v2907_v45 = vld [vmem:[#allocation6 + $0xf70] sm:$0xff] }
 0x3bf   :  { %v6416_v36 = vpack.c.bf16 %v2857_v22, %v2853_v21  ;;  %v2898_v19 = vld [vmem:[#allocation6 + $0xf28] sm:$0xff]  ;;  %v6688_v22 = vpack.c.bf16 %v2891_v17, %v2887_v15  ;;  %v2911_v58 = vld [vmem:[#allocation6 + $0xf90] sm:$0xff]  ;;  %v7408_v5 = vld [vmem:[#allocation4] sm:$0xff] }
 0x3c0   :  { %6397 = vmatpush1.bf16.msra.mxu0 %v6396_v30  ;;  %6653 = vmatpush1.bf16.msra.mxu1 %v6652_v32  ;;  %v2864_v30 = vld [vmem:[#allocation6 + $0xe18] sm:$0xff]  ;;  %v6434_v25 = vpack.c.bf16 %v2898_v19, %v2894_v18  ;;  %v1256_v16 = vrot.slane %v7408_v5, %v1255_v56  ;;  %v2921_v6 = vld [vmem:[#allocation6 + $0xfe0] sm:$0xff]  ;;  %v3524_v18 = vld [vmem:[#allocation9 + $0x28] sm:$0xff] }
 0x3c1   :  { %6399 = vmatprep.subr.bf16.mxu0 %v6398_v34  ;;  %6655 = vmatprep.subr.bf16.mxu1 %v6654_v35  ;;  %v2868_v32 = vld [vmem:[#allocation6 + $0xe38] sm:$0xff]  ;;  %v2861_v34 = vld [vmem:[#allocation6 + $0xe00] sm:$0xff] }
 0x3c2   :  { %v2865_v35 = vld [vmem:[#allocation6 + $0xe20] sm:$0xff]  ;;  %v6674_v39 = vpack.c.bf16 %v2868_v32, %v2864_v30  ;;  %v2902_v30 = vld [vmem:[#allocation6 + $0xf48] sm:$0xff]  ;;  %v3521_v17 = vld [vmem:[#allocation9 + $0x10] sm:$0xff] }
 0x3c3   :  { %v6420_v48 = vpack.c.bf16 %v2865_v35, %v2861_v34  ;;  %v2906_v32 = vld [vmem:[#allocation6 + $0xf68] sm:$0xff]  ;;  %v6692_v35 = vpack.c.bf16 %v2899_v29, %v2895_v27  ;;  %v3526_v19 = vld [vmem:[#allocation9 + $0x38] sm:$0xff]  ;;  %v3529_v29 = vld [vmem:[#allocation9 + $0x50] sm:$0xff] }
 0x3c4   :  { %6401 = vmatpush1.bf16.msra.mxu0 %v6400_v46  ;;  %6657 = vmatpush1.bf16.msra.mxu1 %v6656_v47  ;;  %v2872_v46 = vld [vmem:[#allocation6 + $0xe58] sm:$0xff]  ;;  %v6438_v41 = vpack.c.bf16 %v2906_v32, %v2902_v30  ;;  %v3519_v15 = vld [vmem:[#allocation9] sm:$0xff]  ;;  %v3532_v30 = vld [vmem:[#allocation9 + $0x68] sm:$0xff] }
 0x3c5   :  { %6403 = vmatprep.subr.bf16.mxu0 %v6402_v50  ;;  %6659 = vmatprep.subr.bf16.mxu1 %v6658_v51  ;;  %v2876_v47 = vld [vmem:[#allocation6 + $0xe78] sm:$0xff]  ;;  %v2869_v50 = vld [vmem:[#allocation6 + $0xe40] sm:$0xff] }
 0x3c6   :  { %v2873_v51 = vld [vmem:[#allocation6 + $0xe60] sm:$0xff]  ;;  %v6678_v53 = vpack.c.bf16 %v2876_v47, %v2872_v46  ;;  %v2910_v46 = vld [vmem:[#allocation6 + $0xf88] sm:$0xff] }
 0x3c7   :  { %v6424_v61 = vpack.c.bf16 %v2873_v51, %v2869_v50  ;;  %v2914_v47 = vld [vmem:[#allocation6 + $0xfa8] sm:$0xff]  ;;  %v6696_v51 = vpack.c.bf16 %v2907_v45, %v2903_v44  ;;  %v3534_v32 = vld [vmem:[#allocation9 + $0x78] sm:$0xff]  ;;  %v3537_v45 = vld [vmem:[#allocation9 + $0x90] sm:$0xff] }
 0x3c8   :  { %6405 = vmatpush1.bf16.msra.mxu0 %v6404_v59  ;;  %6661 = vmatpush1.bf16.msra.mxu1 %v6660_v60  ;;  %v2880_v59 = vld [vmem:[#allocation6 + $0xe98] sm:$0xff]  ;;  %v6442_v37 = vpack.c.bf16 %v2914_v47, %v2910_v46  ;;  %v3527_v27 = vld [vmem:[#allocation9 + $0x40] sm:$0xff]  ;;  %v3540_v46 = vld [vmem:[#allocation9 + $0xa8] sm:$0xff] }
 0x3c9   :  { %6407 = vmatprep.subr.bf16.mxu0 %v6406_v63  ;;  %6663 = vmatprep.subr.bf16.mxu1 %v6662_v1  ;;  %v2884_v60 = vld [vmem:[#allocation6 + $0xeb8] sm:$0xff]  ;;  %v2877_v63 = vld [vmem:[#allocation6 + $0xe80] sm:$0xff] }
 0x3ca   :  { %v2881_v1 = vld [vmem:[#allocation6 + $0xea0] sm:$0xff]  ;;  %v6682_v3 = vpack.c.bf16 %v2884_v60, %v2880_v59  ;;  %v2915_v59 = vld [vmem:[#allocation6 + $0xfb0] sm:$0xff]  ;;  %v2918_v60 = vld [vmem:[#allocation6 + $0xfc8] sm:$0xff] }
 0x3cb   :  { %v6428_v9 = vpack.c.bf16 %v2881_v1, %v2877_v63  ;;  %v2924_v63 = vld [vmem:[#allocation6 + $0xff8] sm:$0xff]  ;;  %v3535_v44 = vld [vmem:[#allocation9 + $0x80] sm:$0xff] }
 0x3cc   :  { %6409 = vmatpush1.bf16.msra.mxu0 %v6408_v7  ;;  %6665 = vmatpush1.bf16.msra.mxu1 %v6664_v8  ;;  %v2888_v7 = vld [vmem:[#allocation6 + $0xed8] sm:$0xff] }
 0x3cd   :  { %6411 = vmatprep.subr.bf16.mxu0 %v6410_v10  ;;  %6667 = vmatprep.subr.bf16.mxu1 %v6666_v11  ;;  %v2892_v8 = vld [vmem:[#allocation6 + $0xef8] sm:$0xff]  ;;  %v2885_v10 = vld [vmem:[#allocation6 + $0xec0] sm:$0xff] }
 0x3ce   :  { %v2889_v11 = vld [vmem:[#allocation6 + $0xee0] sm:$0xff]  ;;  %v6686_v14 = vpack.c.bf16 %v2892_v8, %v2888_v7  ;;  %v2919_v7 = vld [vmem:[#allocation6 + $0xfd0] sm:$0xff] }
 0x3cf   :  { %v6432_v21 = vpack.c.bf16 %v2889_v11, %v2885_v10  ;;  %v2923_v8 = vld [vmem:[#allocation6 + $0xff0] sm:$0xff]  ;;  %v3542_v47 = vld [vmem:[#allocation9 + $0xb8] sm:$0xff] }
 0x3d0   :  { %6413 = vmatpush1.bf16.msra.mxu0 %v6412_v40  ;;  %6669 = vmatpush1.bf16.msra.mxu1 %v6668_v20  ;;  %v2896_v40 = vld [vmem:[#allocation6 + $0xf18] sm:$0xff]  ;;  %v6704_v11 = vpack.c.bf16 %v2923_v8, %v2919_v7 }
 0x3d1   :  { %6415 = vmatprep.subr.bf16.mxu0 %v6414_v23  ;;  %6671 = vmatprep.subr.bf16.mxu1 %v6670_v24  ;;  %v2900_v20 = vld [vmem:[#allocation6 + $0xf38] sm:$0xff]  ;;  %v2893_v23 = vld [vmem:[#allocation6 + $0xf00] sm:$0xff] }
 0x3d2   :  { %v2897_v24 = vld [vmem:[#allocation6 + $0xf20] sm:$0xff]  ;;  %v6690_v26 = vpack.c.bf16 %v2900_v20, %v2896_v40  ;;  %v6708_v40 = vpack.c.bf16 %v3521_v17, %v3519_v15 }
 0x3d3   :  { %v6436_v34 = vpack.c.bf16 %v2897_v24, %v2893_v23  ;;  %v3525_v23 = vld [vmem:[#allocation9 + $0x30] sm:$0xff]  ;;  %v3528_v24 = vld [vmem:[#allocation9 + $0x48] sm:$0xff]  ;;  %v3558_v7 = vld [vmem:[#allocation9 + $0x138] sm:$0xff] }
 0x3d4   :  { %6417 = vmatpush1.bf16.msra.mxu0 %v6416_v36  ;;  %6673 = vmatpush1.bf16.msra.mxu1 %v6672_v33  ;;  %v2904_v36 = vld [vmem:[#allocation6 + $0xf58] sm:$0xff]  ;;  %v3559_v17 = vld [vmem:[#allocation9 + $0x140] sm:$0xff] }
 0x3d5   :  { %6419 = vmatprep.subr.bf16.mxu0 %v6418_v38  ;;  %6675 = vmatprep.subr.bf16.mxu1 %v6674_v39  ;;  %v2908_v33 = vld [vmem:[#allocation6 + $0xf78] sm:$0xff]  ;;  %v2901_v38 = vld [vmem:[#allocation6 + $0xf40] sm:$0xff] }
 0x3d6   :  { %v2905_v39 = vld [vmem:[#allocation6 + $0xf60] sm:$0xff]  ;;  %v6694_v43 = vpack.c.bf16 %v2908_v33, %v2904_v36  ;;  %v6716_v36 = vpack.c.bf16 %v3529_v29, %v3527_v27  ;;  %v6718_v33 = vpack.c.bf16 %v3534_v32, %v3532_v30  ;;  %v3569_v29 = vld [vmem:[#allocation9 + $0x190] sm:$0xff]  ;;  %v3572_v30 = vld [vmem:[#allocation9 + $0x1a8] sm:$0xff] }
 0x3d7   :  { %v6440_v50 = vpack.c.bf16 %v2905_v39, %v2901_v38  ;;  %v3536_v38 = vld [vmem:[#allocation9 + $0x88] sm:$0xff]  ;;  %v3538_v39 = vld [vmem:[#allocation9 + $0x98] sm:$0xff]  ;;  %v3567_v27 = vld [vmem:[#allocation9 + $0x180] sm:$0xff] }
 0x3d8   :  { %6421 = vmatpush1.bf16.msra.mxu0 %v6420_v48  ;;  %6677 = vmatpush1.bf16.msra.mxu1 %v6676_v49  ;;  %v2912_v48 = vld [vmem:[#allocation6 + $0xf98] sm:$0xff] }
 0x3d9   :  { %6423 = vmatprep.subr.bf16.mxu0 %v6422_v52  ;;  %6679 = vmatprep.subr.bf16.mxu1 %v6678_v53  ;;  %v2916_v49 = vld [vmem:[#allocation6 + $0xfb8] sm:$0xff]  ;;  %v2909_v52 = vld [vmem:[#allocation6 + $0xf80] sm:$0xff] }
 0x3da   :  { %v2913_v53 = vld [vmem:[#allocation6 + $0xfa0] sm:$0xff]  ;;  %v6698_v57 = vpack.c.bf16 %v2916_v49, %v2912_v48  ;;  %v6724_v48 = vpack.c.bf16 %v3537_v45, %v3535_v44  ;;  %v6726_v49 = vpack.c.bf16 %v3542_v47, %v3540_v46  ;;  %v3577_v45 = vld [vmem:[#allocation9 + $0x1d0] sm:$0xff]  ;;  %v3580_v47 = vld [vmem:[#allocation9 + $0x1e8] sm:$0xff] }
 0x3db   :  { %v6444_v1 = vpack.c.bf16 %v2913_v53, %v2909_v52  ;;  %v3544_v52 = vld [vmem:[#allocation9 + $0xc8] sm:$0xff]  ;;  %v3546_v53 = vld [vmem:[#allocation9 + $0xd8] sm:$0xff]  ;;  %v3575_v44 = vld [vmem:[#allocation9 + $0x1c0] sm:$0xff] }
 0x3dc   :  { %6425 = vmatpush1.bf16.msra.mxu0 %v6424_v61  ;;  %6681 = vmatpush1.bf16.msra.mxu1 %v6680_v62  ;;  %v2922_v61 = vld [vmem:[#allocation6 + $0xfe8] sm:$0xff]  ;;  %v2920_v62 = vld [vmem:[#allocation6 + $0xfd8] sm:$0xff]  ;;  %v6764_v46 = vpack.c.bf16 %v3577_v45, %v3575_v44 }
 0x3dd   :  { %6427 = vmatprep.subr.bf16.mxu0 %v6426_v2  ;;  %6683 = vmatprep.subr.bf16.mxu1 %v6682_v3  ;;  %v6700_v2 = vpack.c.bf16 %v2915_v59, %v2911_v58  ;;  %v2917_v3 = vld [vmem:[#allocation6 + $0xfc0] sm:$0xff]  ;;  %v6446_v0 = vpack.c.bf16 %v2922_v61, %v2918_v60  ;;  %v6702_v4 = vpack.c.bf16 %v2924_v63, %v2920_v62  ;;  %v3545_v58 = vld [vmem:[#allocation9 + $0xd0] sm:$0xff]  ;;  %v3548_v59 = vld [vmem:[#allocation9 + $0xe8] sm:$0xff] }
 0x3de   :  { %v6448_v10 = vpack.c.bf16 %v2921_v6, %v2917_v3  ;;  %v3550_v60 = vld [vmem:[#allocation9 + $0xf8] sm:$0xff]  ;;  %v3547_v63 = vld [vmem:[#allocation9 + $0xe0] sm:$0xff]  ;;  %v3556_v6 = vld [vmem:[#allocation9 + $0x128] sm:$0xff] }
 0x3df   :  { %v6734_v62 = vpack.c.bf16 %v3550_v60, %v3548_v59  ;;  %v3554_v3 = vld [vmem:[#allocation9 + $0x118] sm:$0xff]  ;;  %v3801_v59 = vld [vmem:[#allocation12] sm:$0xff] }
 0x3e0   :  { %6429 = vmatpush1.bf16.msra.mxu0 %v6428_v9  ;;  %6685 = vmatpush1.bf16.msra.mxu1 %v6684_v31  ;;  %v3520_v9 = vld [vmem:[#allocation9 + $0x8] sm:$0xff]  ;;  %v3522_v31 = vld [vmem:[#allocation9 + $0x18] sm:$0xff] }
 0x3e1   :  { %6431 = vmatprep.subr.bf16.mxu0 %v6430_v12  ;;  %6687 = vmatprep.subr.bf16.mxu1 %v6686_v14  ;;  %v7320_v12 = vadd.f32 %v8033_v54, %v1256_v16  ;;  %v6706_v14 = vpack.c.bf16 %v3522_v31, %v3520_v9  ;;  %v6742_v9 = vpack.c.bf16 %v3558_v7, %v3556_v6  ;;  %v3555_v31 = vld [vmem:[#allocation9 + $0x120] sm:$0xff]  ;;  %v3574_v32 = vld [vmem:[#allocation9 + $0x1b8] sm:$0xff] }
 0x3e2   :  { %v3813_v7 = vld [vmem:[#allocation12 + $0x60] sm:$0xff] }
 0x3e3   :  { %v2411_v20 = vmax.f32 %v7320_v12, 0.0  ;;  %v3562_v12 = vld [vmem:[#allocation9 + $0x158] sm:$0xff]  ;;  %v3853_v44 = vld [vmem:[#allocation12 + $0x1a0] sm:$0xff] }
 0x3e4   :  { %6433 = vmatpush1.bf16.msra.mxu0 %v6432_v21  ;;  %6689 = vmatpush1.bf16.msra.mxu1 %v6688_v22  ;;  %v6710_v21 = vpack.c.bf16 %v3526_v19, %v3524_v18  ;;  %v3523_v22 = vld [vmem:[#allocation9 + $0x20] sm:$0xff]  ;;  %v3561_v18 = vld [vmem:[#allocation9 + $0x150] sm:$0xff]  ;;  %v3564_v19 = vld [vmem:[#allocation9 + $0x168] sm:$0xff] }
 0x3e5   :  { %6435 = vmatprep.subr.bf16.mxu0 %v6434_v25  ;;  %6691 = vmatprep.subr.bf16.mxu1 %v6690_v26  ;;  %v3530_v25 = vld [vmem:[#allocation9 + $0x58] sm:$0xff]  ;;  %v6712_v54 = vpack.c.bf16 %v3525_v23, %v3523_v22  ;;  %v3563_v22 = vld [vmem:[#allocation9 + $0x160] sm:$0xff]  ;;  %v3565_v23 = vld [vmem:[#allocation9 + $0x170] sm:$0xff] }
 0x3e6   :  { %v6714_v26 = vpack.c.bf16 %v3530_v25, %v3528_v24  ;;  %v3568_v24 = vld [vmem:[#allocation9 + $0x188] sm:$0xff]  ;;  %v3570_v25 = vld [vmem:[#allocation9 + $0x198] sm:$0xff] }
 0x3e8   :  { %6437 = vmatpush1.bf16.msra.mxu0 %v6436_v34  ;;  %6693 = vmatpush1.bf16.msra.mxu1 %v6692_v35  ;;  %v3531_v34 = vld [vmem:[#allocation9 + $0x60] sm:$0xff]  ;;  %v3533_v35 = vld [vmem:[#allocation9 + $0x70] sm:$0xff] }
 0x3e9   :  { %6439 = vmatprep.subr.bf16.mxu0 %v6438_v41  ;;  %6695 = vmatprep.subr.bf16.mxu1 %v6694_v43  ;;  %v6720_v41 = vpack.c.bf16 %v3533_v35, %v3531_v34  ;;  %v6722_v43 = vpack.c.bf16 %v3538_v39, %v3536_v38  ;;  %v3571_v34 = vld [vmem:[#allocation9 + $0x1a0] sm:$0xff]  ;;  %v3573_v35 = vld [vmem:[#allocation9 + $0x1b0] sm:$0xff]  ;;  %v3576_v38 = vld [vmem:[#allocation9 + $0x1c8] sm:$0xff] }
 0x3ea   :  { %v3578_v39 = vld [vmem:[#allocation9 + $0x1d8] sm:$0xff] }
 0x3ec   :  { %6441 = vmatpush1.bf16.msra.mxu0 %v6440_v50  ;;  %6697 = vmatpush1.bf16.msra.mxu1 %v6696_v51  ;;  %v3539_v50 = vld [vmem:[#allocation9 + $0xa0] sm:$0xff]  ;;  %v3541_v51 = vld [vmem:[#allocation9 + $0xb0] sm:$0xff] }
 0x3ed   :  { %6443 = vmatprep.subr.bf16.mxu0 %v6442_v37  ;;  %6699 = vmatprep.subr.bf16.mxu1 %v6698_v57  ;;  %v6728_v56 = vpack.c.bf16 %v3541_v51, %v3539_v50  ;;  %v6730_v37 = vpack.c.bf16 %v3546_v53, %v3544_v52  ;;  %v3543_v57 = vld [vmem:[#allocation9 + $0xc0] sm:$0xff]  ;;  %v3581_v51 = vld [vmem:[#allocation9 + $0x1f0] sm:$0xff]  ;;  %v3584_v53 = vld [vmem:[#allocation9 + $0x208] sm:$0xff] }
 0x3ee   :  { %v6732_v61 = vpack.c.bf16 %v3545_v58, %v3543_v57  ;;  %v3579_v50 = vld [vmem:[#allocation9 + $0x1e0] sm:$0xff]  ;;  %v3802_v57 = vld [vmem:[#allocation12 + $0x8] sm:$0xff] }
 0x3ef   :  { %v6768_v52 = vpack.c.bf16 %v3581_v51, %v3579_v50  ;;  %v3805_v58 = vld [vmem:[#allocation12 + $0x20] sm:$0xff]  ;;  %v3859_v50 = vld [vmem:[#allocation12 + $0x1d0] sm:$0xff] }
 0x3f0   :  { %6445 = vmatpush1.bf16.msra.mxu0 %v6444_v1  ;;  %6701 = vmatpush1.bf16.msra.mxu1 %v6700_v2  ;;  %v3549_v1 = vld [vmem:[#allocation9 + $0xf0] sm:$0xff]  ;;  %v3552_v2 = vld [vmem:[#allocation9 + $0x108] sm:$0xff]  ;;  %v6834_v60 = vpack.c.bf16 %v3805_v58, %v3802_v57 }
 0x3f1   :  { %6447 = vmatprep.subr.bf16.mxu0 %v6446_v0  ;;  %6703 = vmatprep.subr.bf16.mxu1 %v6702_v4  ;;  %v6736_v5 = vpack.c.bf16 %v3549_v1, %v3547_v63  ;;  %v6738_v16 = vpack.c.bf16 %v3554_v3, %v3552_v2  ;;  %v3551_v0 = vld [vmem:[#allocation9 + $0x100] sm:$0xff]  ;;  %v3553_v4 = vld [vmem:[#allocation9 + $0x110] sm:$0xff] }
 0x3f2   :  { %v6740_v8 = vpack.c.bf16 %v3553_v4, %v3551_v0  ;;  %v3811_v63 = vld [vmem:[#allocation12 + $0x50] sm:$0xff]  ;;  %v3817_v0 = vld [vmem:[#allocation12 + $0x80] sm:$0xff] }
 0x3f3   :  { %v3807_v3 = vld [vmem:[#allocation12 + $0x30] sm:$0xff]  ;;  %v3865_v57 = vld [vmem:[#allocation12 + $0x200] sm:$0xff] }
 0x3f4   :  { %6449 = vmatpush1.bf16.msra.mxu0 %v6448_v10  ;;  %6705 = vmatpush1.bf16.msra.mxu1 %v6704_v11  ;;  %v3557_v10 = vld [vmem:[#allocation9 + $0x130] sm:$0xff]  ;;  %v3560_v11 = vld [vmem:[#allocation9 + $0x148] sm:$0xff] }
 0x3f5   :  { %6707 = vmatprep.subr.bf16.mxu0 %v6706_v14  ;;  %v6744_v14 = vpack.c.bf16 %v3557_v10, %v3555_v31  ;;  %v6746_v15 = vpack.c.bf16 %v3562_v12, %v3560_v11  ;;  %6835 = vmatprep.subr.bf16.mxu1 %v6834_v60  ;;  %v3823_v31 = vld [vmem:[#allocation12 + $0xb0] sm:$0xff]  ;;  %v3861_v60 = vld [vmem:[#allocation12 + $0x1e0] sm:$0xff] }
 0x3f6   :  { %v3819_v12 = vld [vmem:[#allocation12 + $0x90] sm:$0xff] }
 0x3f7   :  { %3225 = vmatmul.mubr.f32.vlgmr.msra.gmra.mrb[4].mxu0 %v2411_v20  ;;  %3509 = vmatmul.mubr.f32.vlgmr.msra.gmra.mrb[4].mxu1 %v2411_v20  ;;  %v6748_v20 = vpack.c.bf16 %v3561_v18, %v3559_v17  ;;  %v3829_v17 = vld [vmem:[#allocation12 + $0xe0] sm:$0xff] }
 0x3f8   :  { %6709 = vmatpush1.bf16.msra.mxu0 %v6708_v40  ;;  %v3566_v40 = vld [vmem:[#allocation9 + $0x178] sm:$0xff] }
 0x3f9   :  { %6711 = vmatprep.subr.bf16.mxu0 %v6710_v21  ;;  %v6750_v21 = vpack.c.bf16 %v3566_v40, %v3564_v19  ;;  %v3825_v40 = vld [vmem:[#allocation12 + $0xc0] sm:$0xff] }
 0x3fc   :  { %6713 = vmatpush1.bf16.msra.mxu0 %v6712_v54  ;;  %v6752_v54 = vpack.c.bf16 %v3565_v23, %v3563_v22  ;;  %v3835_v22 = vld [vmem:[#allocation12 + $0x110] sm:$0xff] }
 0x3fd   :  { %6715 = vmatprep.subr.bf16.mxu0 %v6714_v26  ;;  %v6754_v26 = vpack.c.bf16 %v3570_v25, %v3568_v24  ;;  %v3831_v25 = vld [vmem:[#allocation12 + $0xf0] sm:$0xff] }
 0x400   :  { %6717 = vmatpush1.bf16.msra.mxu0 %v6716_v36  ;;  %v6756_v36 = vpack.c.bf16 %v3569_v29, %v3567_v27  ;;  %v3841_v27 = vld [vmem:[#allocation12 + $0x140] sm:$0xff] }
 0x401   :  { %6719 = vmatprep.subr.bf16.mxu0 %v6718_v33  ;;  %v6758_v33 = vpack.c.bf16 %v3574_v32, %v3572_v30  ;;  %v3837_v32 = vld [vmem:[#allocation12 + $0x120] sm:$0xff] }
 0x404   :  { %6721 = vmatpush1.bf16.msra.mxu0 %v6720_v41  ;;  %v6760_v41 = vpack.c.bf16 %v3573_v35, %v3571_v34  ;;  %v3847_v34 = vld [vmem:[#allocation12 + $0x170] sm:$0xff] }
 0x405   :  { %6723 = vmatprep.subr.bf16.mxu0 %v6722_v43  ;;  %v6762_v43 = vpack.c.bf16 %v3578_v39, %v3576_v38  ;;  %v3843_v39 = vld [vmem:[#allocation12 + $0x150] sm:$0xff] }
 0x408   :  { %6725 = vmatpush1.bf16.msra.mxu0 %v6724_v48  ;;  %v3582_v48 = vld [vmem:[#allocation9 + $0x1f8] sm:$0xff] }
 0x409   :  { %6727 = vmatprep.subr.bf16.mxu0 %v6726_v49  ;;  %v6766_v49 = vpack.c.bf16 %v3582_v48, %v3580_v47  ;;  %v3849_v47 = vld [vmem:[#allocation12 + $0x180] sm:$0xff]  ;;  %v3852_v48 = vld [vmem:[#allocation12 + $0x198] sm:$0xff] }
 0x40a   :  { %v6868_v51 = vpack.c.bf16 %v3852_v48, %v3849_v47  ;;  %v3592_v48 = vld [vmem:[#allocation9 + $0x248] sm:$0xff] }
 0x40c   :  { %6729 = vmatpush1.bf16.msra.mxu0 %v6728_v56  ;;  %v3586_v56 = vld [vmem:[#allocation9 + $0x218] sm:$0xff] }
 0x40d   :  { %6731 = vmatprep.subr.bf16.mxu0 %v6730_v37  ;;  %v6770_v37 = vpack.c.bf16 %v3586_v56, %v3584_v53  ;;  %v3855_v53 = vld [vmem:[#allocation12 + $0x1b0] sm:$0xff]  ;;  %v3858_v56 = vld [vmem:[#allocation12 + $0x1c8] sm:$0xff] }
 0x40e   :  { %v6872_v58 = vpack.c.bf16 %v3858_v56, %v3855_v53  ;;  %v3593_v53 = vld [vmem:[#allocation9 + $0x250] sm:$0xff]  ;;  %v3596_v56 = vld [vmem:[#allocation9 + $0x268] sm:$0xff] }
 0x410   :  { %6733 = vmatpush1.bf16.msra.mxu0 %v6732_v61  ;;  %v3804_v61 = vld [vmem:[#allocation12 + $0x18] sm:$0xff] }
 0x411   :  { %6735 = vmatprep.subr.bf16.mxu0 %v6734_v62  ;;  %v3808_v62 = vld [vmem:[#allocation12 + $0x38] sm:$0xff]  ;;  %v6836_v1 = vpack.c.bf16 %v3804_v61, %v3801_v59 }
 0x412   :  { %v6838_v2 = vpack.c.bf16 %v3811_v63, %v3808_v62  ;;  %v3864_v61 = vld [vmem:[#allocation12 + $0x1f8] sm:$0xff]  ;;  %v3871_v63 = vld [vmem:[#allocation12 + $0x230] sm:$0xff] }
 0x413   :  { %6837 = vmatpush1.bf16.msra.mxu1 %v6836_v1  ;;  %v3868_v62 = vld [vmem:[#allocation12 + $0x218] sm:$0xff]  ;;  %v6876_v1 = vpack.c.bf16 %v3864_v61, %v3861_v60  ;;  %v3597_v60 = vld [vmem:[#allocation9 + $0x270] sm:$0xff]  ;;  %v3600_v61 = vld [vmem:[#allocation9 + $0x288] sm:$0xff] }
 0x414   :  { %6737 = vmatpush1.bf16.msra.mxu0 %v6736_v5  ;;  %v3810_v5 = vld [vmem:[#allocation12 + $0x48] sm:$0xff]  ;;  %6839 = vmatprep.subr.bf16.mxu1 %v6838_v2  ;;  %v6878_v2 = vpack.c.bf16 %v3871_v63, %v3868_v62  ;;  %v3602_v62 = vld [vmem:[#allocation9 + $0x298] sm:$0xff] }
 0x415   :  { %6739 = vmatprep.subr.bf16.mxu0 %v6738_v16  ;;  %v3814_v16 = vld [vmem:[#allocation12 + $0x68] sm:$0xff]  ;;  %v6840_v4 = vpack.c.bf16 %v3810_v5, %v3807_v3  ;;  %v3867_v3 = vld [vmem:[#allocation12 + $0x210] sm:$0xff] }
 0x416   :  { %v6842_v6 = vpack.c.bf16 %v3817_v0, %v3814_v16  ;;  %v3870_v5 = vld [vmem:[#allocation12 + $0x228] sm:$0xff]  ;;  %v3877_v0 = vld [vmem:[#allocation12 + $0x260] sm:$0xff] }
 0x417   :  { %6841 = vmatpush1.bf16.msra.mxu1 %v6840_v4  ;;  %v3874_v16 = vld [vmem:[#allocation12 + $0x248] sm:$0xff]  ;;  %v6880_v4 = vpack.c.bf16 %v3870_v5, %v3867_v3 }
 0x418   :  { %6741 = vmatpush1.bf16.msra.mxu0 %v6740_v8  ;;  %v3816_v8 = vld [vmem:[#allocation12 + $0x78] sm:$0xff]  ;;  %6843 = vmatprep.subr.bf16.mxu1 %v6842_v6  ;;  %v6882_v6 = vpack.c.bf16 %v3877_v0, %v3874_v16  ;;  %v3601_v3 = vld [vmem:[#allocation9 + $0x290] sm:$0xff]  ;;  %v3604_v5 = vld [vmem:[#allocation9 + $0x2a8] sm:$0xff] }
 0x419   :  { %6743 = vmatprep.subr.bf16.mxu0 %v6742_v9  ;;  %v3820_v9 = vld [vmem:[#allocation12 + $0x98] sm:$0xff]  ;;  %v6844_v10 = vpack.c.bf16 %v3816_v8, %v3813_v7  ;;  %v3873_v7 = vld [vmem:[#allocation12 + $0x240] sm:$0xff] }
 0x41a   :  { %v6846_v11 = vpack.c.bf16 %v3823_v31, %v3820_v9  ;;  %v3876_v8 = vld [vmem:[#allocation12 + $0x258] sm:$0xff]  ;;  %v3883_v31 = vld [vmem:[#allocation12 + $0x290] sm:$0xff] }
 0x41b   :  { %6845 = vmatpush1.bf16.msra.mxu1 %v6844_v10  ;;  %v3880_v9 = vld [vmem:[#allocation12 + $0x278] sm:$0xff]  ;;  %v6884_v10 = vpack.c.bf16 %v3876_v8, %v3873_v7  ;;  %v3605_v7 = vld [vmem:[#allocation9 + $0x2b0] sm:$0xff]  ;;  %v3608_v8 = vld [vmem:[#allocation9 + $0x2c8] sm:$0xff] }
 0x41c   :  { %6745 = vmatpush1.bf16.msra.mxu0 %v6744_v14  ;;  %v3822_v14 = vld [vmem:[#allocation12 + $0xa8] sm:$0xff]  ;;  %6847 = vmatprep.subr.bf16.mxu1 %v6846_v11  ;;  %v6886_v11 = vpack.c.bf16 %v3883_v31, %v3880_v9  ;;  %v3606_v16 = vld [vmem:[#allocation9 + $0x2b8] sm:$0xff] }
 0x41d   :  { %6747 = vmatprep.subr.bf16.mxu0 %v6746_v15  ;;  %v3826_v15 = vld [vmem:[#allocation12 + $0xc8] sm:$0xff]  ;;  %v6848_v18 = vpack.c.bf16 %v3822_v14, %v3819_v12  ;;  %v3879_v12 = vld [vmem:[#allocation12 + $0x270] sm:$0xff] }
 0x41e   :  { %v6850_v19 = vpack.c.bf16 %v3829_v17, %v3826_v15  ;;  %v3882_v14 = vld [vmem:[#allocation12 + $0x288] sm:$0xff]  ;;  %v3889_v17 = vld [vmem:[#allocation12 + $0x2c0] sm:$0xff]  ;;  %v3610_v9 = vld [vmem:[#allocation9 + $0x2d8] sm:$0xff] }
 0x41f   :  { %6849 = vmatpush1.bf16.msra.mxu1 %v6848_v18  ;;  %v3886_v15 = vld [vmem:[#allocation12 + $0x2a8] sm:$0xff]  ;;  %v8037_v18 = vld [vmem:[#allocation7] sm:$0xf] }
 0x420   :  { %6749 = vmatpush1.bf16.msra.mxu0 %v6748_v20  ;;  %v3828_v20 = vld [vmem:[#allocation12 + $0xd8] sm:$0xff]  ;;  %6851 = vmatprep.subr.bf16.mxu1 %v6850_v19  ;;  %v6888_v19 = vpack.c.bf16 %v3882_v14, %v3879_v12  ;;  %v3609_v12 = vld [vmem:[#allocation9 + $0x2d0] sm:$0xff]  ;;  %v3612_v14 = vld [vmem:[#allocation9 + $0x2e8] sm:$0xff] }
 0x421   :  { %6751 = vmatprep.subr.bf16.mxu0 %v6750_v21  ;;  %v3832_v21 = vld [vmem:[#allocation12 + $0xf8] sm:$0xff]  ;;  %v6852_v23 = vpack.c.bf16 %v3828_v20, %v3825_v40  ;;  %v6890_v40 = vpack.c.bf16 %v3889_v17, %v3886_v15  ;;  %v3885_v20 = vld [vmem:[#allocation12 + $0x2a0] sm:$0xff] }
 0x422   :  { %v6854_v24 = vpack.c.bf16 %v3835_v22, %v3832_v21  ;;  %v3888_v21 = vld [vmem:[#allocation12 + $0x2b8] sm:$0xff]  ;;  %v2930_v22 = vrot.slane %v8037_v18, %v8008_v28 }
 0x423   :  { %6853 = vmatpush1.bf16.msra.mxu1 %v6852_v23  ;;  %v2934_v23 = vrot.slane %v8037_v18, %v7997_v13  ;;  %v3614_v15 = vld [vmem:[#allocation9 + $0x2f8] sm:$0xff] }
 0x424   :  { %6753 = vmatpush1.bf16.msra.mxu0 %v6752_v54  ;;  %v3834_v54 = vld [vmem:[#allocation12 + $0x108] sm:$0xff]  ;;  %6855 = vmatprep.subr.bf16.mxu1 %v6854_v24  ;;  %v2942_v24 = vrot.slane %v8037_v18, %v8011_v42 }
 0x425   :  { %6755 = vmatprep.subr.bf16.mxu0 %v6754_v26  ;;  %v3838_v26 = vld [vmem:[#allocation12 + $0x128] sm:$0xff]  ;;  %v6856_v29 = vpack.c.bf16 %v3834_v54, %v3831_v25  ;;  %v6892_v25 = vpack.c.bf16 %v3888_v21, %v3885_v20 }
 0x426   :  { %v6858_v30 = vpack.c.bf16 %v3841_v27, %v3838_v26  ;;  %v3613_v20 = vld [vmem:[#allocation9 + $0x2f0] sm:$0xff]  ;;  %v3616_v21 = vld [vmem:[#allocation9 + $0x308] sm:$0xff] }
 0x427   :  { %6857 = vmatpush1.bf16.msra.mxu1 %v6856_v29 }
 0x428   :  { %6757 = vmatpush1.bf16.msra.mxu0 %v6756_v36  ;;  %v3840_v36 = vld [vmem:[#allocation12 + $0x138] sm:$0xff]  ;;  %6859 = vmatprep.subr.bf16.mxu1 %v6858_v30 }
 0x429   :  { %6759 = vmatprep.subr.bf16.mxu0 %v6758_v33  ;;  %v3844_v33 = vld [vmem:[#allocation12 + $0x158] sm:$0xff]  ;;  %v6860_v35 = vpack.c.bf16 %v3840_v36, %v3837_v32  ;;  %v3585_v36 = vld [vmem:[#allocation9 + $0x210] sm:$0xff] }
 0x42a   :  { %v6862_v38 = vpack.c.bf16 %v3847_v34, %v3844_v33  ;;  %v3583_v32 = vld [vmem:[#allocation9 + $0x200] sm:$0xff] }
 0x42b   :  { %6861 = vmatpush1.bf16.msra.mxu1 %v6860_v35  ;;  %v3588_v35 = vld [vmem:[#allocation9 + $0x228] sm:$0xff] }
 0x42c   :  { %6761 = vmatpush1.bf16.msra.mxu0 %v6760_v41  ;;  %v3846_v41 = vld [vmem:[#allocation12 + $0x168] sm:$0xff]  ;;  %6863 = vmatprep.subr.bf16.mxu1 %v6862_v38  ;;  %v3590_v38 = vld [vmem:[#allocation9 + $0x238] sm:$0xff] }
 0x42d   :  { %6763 = vmatprep.subr.bf16.mxu0 %v6762_v43  ;;  %v3850_v43 = vld [vmem:[#allocation12 + $0x188] sm:$0xff]  ;;  %v6864_v45 = vpack.c.bf16 %v3846_v41, %v3843_v39  ;;  %v6772_v41 = vpack.c.bf16 %v3585_v36, %v3583_v32  ;;  %v3619_v36 = vld [vmem:[#allocation9 + $0x320] sm:$0xff] }
 0x42f   :  { %6865 = vmatpush1.bf16.msra.mxu1 %v6864_v45  ;;  %v3587_v45 = vld [vmem:[#allocation9 + $0x220] sm:$0xff] }
 0x430   :  { %6765 = vmatpush1.bf16.msra.mxu0 %v6764_v46  ;;  %v6866_v46 = vpack.c.bf16 %v3853_v44, %v3850_v43  ;;  %v6774_v44 = vpack.c.bf16 %v3590_v38, %v3588_v35  ;;  %v3626_v35 = vld [vmem:[#allocation9 + $0x358] sm:$0xff] }
 0x431   :  { %6767 = vmatprep.subr.bf16.mxu0 %v6766_v49  ;;  %v3856_v49 = vld [vmem:[#allocation12 + $0x1b8] sm:$0xff] }
 0x432   :  { %6867 = vmatprep.subr.bf16.mxu1 %v6866_v46  ;;  %v3589_v46 = vld [vmem:[#allocation9 + $0x230] sm:$0xff] }
 0x433   :  { %6869 = vmatpush1.bf16.msra.mxu1 %v6868_v51 }
 0x434   :  { %6769 = vmatpush1.bf16.msra.mxu0 %v6768_v52  ;;  %v6870_v52 = vpack.c.bf16 %v3859_v50, %v3856_v49  ;;  %v3594_v49 = vld [vmem:[#allocation9 + $0x258] sm:$0xff]  ;;  %v6776_v50 = vpack.c.bf16 %v3589_v46, %v3587_v45 }
 0x435   :  { %6771 = vmatprep.subr.bf16.mxu0 %v6770_v37  ;;  %v3862_v37 = vld [vmem:[#allocation12 + $0x1e8] sm:$0xff]  ;;  %v6778_v51 = vpack.c.bf16 %v3594_v49, %v3592_v48  ;;  %v3630_v45 = vld [vmem:[#allocation9 + $0x378] sm:$0xff]  ;;  %v3627_v48 = vld [vmem:[#allocation9 + $0x360] sm:$0xff] }
 0x436   :  { %6871 = vmatprep.subr.bf16.mxu1 %v6870_v52  ;;  %v6874_v59 = vpack.c.bf16 %v3865_v57, %v3862_v37  ;;  %v3591_v52 = vld [vmem:[#allocation9 + $0x240] sm:$0xff]  ;;  %v3598_v37 = vld [vmem:[#allocation9 + $0x278] sm:$0xff]  ;;  %v3629_v49 = vld [vmem:[#allocation9 + $0x370] sm:$0xff] }
 0x437   :  { %6873 = vmatpush1.bf16.msra.mxu1 %v6872_v58  ;;  %v6780_v57 = vpack.c.bf16 %v3593_v53, %v3591_v52  ;;  %v6782_v58 = vpack.c.bf16 %v3598_v37, %v3596_v56  ;;  %v6816_v52 = vpack.c.bf16 %v3629_v49, %v3627_v48  ;;  %v3631_v56 = vld [vmem:[#allocation9 + $0x380] sm:$0xff]  ;;  %v3633_v37 = vld [vmem:[#allocation9 + $0x390] sm:$0xff] }
 0x438   :  { %6875 = vmatprep.subr.bf16.mxu1 %v6874_v59  ;;  %v3595_v59 = vld [vmem:[#allocation9 + $0x260] sm:$0xff]  ;;  %v4084_v48 = vld [vmem:[#allocation15 + $0xd0] sm:$0xff] }
 0x439   :  { %v6784_v63 = vpack.c.bf16 %v3597_v60, %v3595_v59  ;;  %v6820_v59 = vpack.c.bf16 %v3633_v37, %v3631_v56  ;;  %v4088_v49 = vld [vmem:[#allocation15 + $0xf0] sm:$0xff] }
 0x43a   :  { %v4092_v56 = vld [vmem:[#allocation15 + $0x110] sm:$0xff] }
 0x43b   :  { %6877 = vmatpush1.bf16.msra.mxu1 %v6876_v1  ;;  %v6786_v1 = vpack.c.bf16 %v3602_v62, %v3600_v61  ;;  %v3635_v61 = vld [vmem:[#allocation9 + $0x3a0] sm:$0xff]  ;;  %v3637_v62 = vld [vmem:[#allocation9 + $0x3b0] sm:$0xff] }
 0x43c   :  { %6879 = vmatprep.subr.bf16.mxu1 %v6878_v2  ;;  %v3599_v2 = vld [vmem:[#allocation9 + $0x280] sm:$0xff]  ;;  %v4096_v37 = vld [vmem:[#allocation15 + $0x130] sm:$0xff] }
 0x43d   :  { %v6788_v0 = vpack.c.bf16 %v3601_v3, %v3599_v2  ;;  %v6824_v2 = vpack.c.bf16 %v3637_v62, %v3635_v61  ;;  %v4100_v61 = vld [vmem:[#allocation15 + $0x150] sm:$0xff] }
 0x43e   :  { %v4104_v62 = vld [vmem:[#allocation15 + $0x170] sm:$0xff] }
 0x43f   :  { %6881 = vmatpush1.bf16.msra.mxu1 %v6880_v4  ;;  %v6790_v4 = vpack.c.bf16 %v3606_v16, %v3604_v5  ;;  %v3639_v5 = vld [vmem:[#allocation9 + $0x3c0] sm:$0xff]  ;;  %v3641_v16 = vld [vmem:[#allocation9 + $0x3d0] sm:$0xff] }
 0x440   :  { %6883 = vmatprep.subr.bf16.mxu1 %v6882_v6  ;;  %v3603_v6 = vld [vmem:[#allocation9 + $0x2a0] sm:$0xff] }
 0x441   :  { %v6792_v31 = vpack.c.bf16 %v3605_v7, %v3603_v6  ;;  %v6828_v6 = vpack.c.bf16 %v3641_v16, %v3639_v5  ;;  %v2938_v7 = vrot.slane %v8037_v18, %v8020_v55  ;;  %v3851_v18 = vld [vmem:[#allocation12 + $0x190] sm:$0xff] }
 0x442   :  { %v4108_v5 = vld [vmem:[#allocation15 + $0x190] sm:$0xff] }
 0x443   :  { %6885 = vmatpush1.bf16.msra.mxu1 %v6884_v10  ;;  %v6794_v10 = vpack.c.bf16 %v3610_v9, %v3608_v8  ;;  %v3643_v9 = vld [vmem:[#allocation9 + $0x3e0] sm:$0xff]  ;;  %v4112_v16 = vld [vmem:[#allocation15 + $0x1b0] sm:$0xff] }
 0x444   :  { %6887 = vmatprep.subr.bf16.mxu1 %v6886_v11  ;;  %v3607_v11 = vld [vmem:[#allocation9 + $0x2c0] sm:$0xff] }
 0x445   :  { %v6796_v17 = vpack.c.bf16 %v3609_v12, %v3607_v11 }
 0x447   :  { %6889 = vmatpush1.bf16.msra.mxu1 %v6888_v19  ;;  %v6798_v19 = vpack.c.bf16 %v3614_v15, %v3612_v14  ;;  %v3892_v14 = vld [vmem:[#allocation12 + $0x2d8] sm:$0xff]  ;;  %v3895_v15 = vld [vmem:[#allocation12 + $0x2f0] sm:$0xff] }
 0x448   :  { %6891 = vmatprep.subr.bf16.mxu1 %v6890_v40  ;;  %v3611_v40 = vld [vmem:[#allocation9 + $0x2e0] sm:$0xff] }
 0x44b   :  { %6893 = vmatpush1.bf16.msra.mxu1 %v6892_v25  ;;  %v3615_v25 = vld [vmem:[#allocation9 + $0x300] sm:$0xff] }
 0x4ca   :  { %v3226_v54 = vpop.f32.mrb[4].mxu0  ;;  %v8045_v26 = vpop.f32.mrb[4].mxu1 }
 0x4cb   :  { %v7322_v27 = vadd.f32 %v3226_v54, %v2930_v22  ;;  %v3228_v29 = vpop.f32.mrb[5].mxu0  ;;  %v3512_v30 = vpop.f32.mrb[5].mxu1  ;;  %v3618_v22 = vld [vmem:[#allocation9 + $0x318] sm:$0xff]  ;;  %v3617_v54 = vld [vmem:[#allocation9 + $0x310] sm:$0xff]  ;;  %v7324_v11 = vadd.f32 %v8045_v26, %v2938_v7 }
 0x4cc   :  { %v7323_v33 = vadd.f32 %v3228_v29, %v2934_v23  ;;  %v7325_v34 = vadd.f32 %v3512_v30, %v2942_v24  ;;  %v6800_v23 = vpack.c.bf16 %v3613_v20, %v3611_v40  ;;  %v6802_v24 = vpack.c.bf16 %v3618_v22, %v3616_v21  ;;  %v3622_v29 = vld [vmem:[#allocation9 + $0x338] sm:$0xff]  ;;  %v3894_v40 = vld [vmem:[#allocation12 + $0x2e8] sm:$0xff] }
 0x4cd   :  { %v3515_v43 = vmax.f32 %v7322_v27, 0.0  ;;  %v3620_v27 = vld [vmem:[#allocation9 + $0x328] sm:$0xff]  ;;  %v6804_v30 = vpack.c.bf16 %v3617_v54, %v3615_v25  ;;  %v3517_v12 = vmax.f32 %v7324_v11, 0.0  ;;  %v4060_v26 = vld [vmem:[#allocation15 + $0x10] sm:$0xff]  ;;  %v4129_v11 = vld [vmem:[#allocation15 + $0x238] sm:$0xff] }
 0x4ce   :  { %v3516_v39 = vmax.f32 %v7323_v33, 0.0  ;;  %v3518_v47 = vmax.f32 %v7325_v34, 0.0  ;;  %v6806_v32 = vpack.c.bf16 %v3622_v29, %v3620_v27  ;;  %v3621_v33 = vld [vmem:[#allocation9 + $0x330] sm:$0xff]  ;;  %v3624_v34 = vld [vmem:[#allocation9 + $0x348] sm:$0xff]  ;;  %v4069_v29 = vld [vmem:[#allocation15 + $0x58] sm:$0xff] }
 0x4cf   :  { %v6808_v38 = vpack.c.bf16 %v3621_v33, %v3619_v36  ;;  %v3854_v21 = vld [vmem:[#allocation12 + $0x1a8] sm:$0xff]  ;;  %v4064_v54 = vld [vmem:[#allocation15 + $0x30] sm:$0xff] }
 0x4d0   :  { %3723 = vmatprep.mubr.f32.mxu0 %v3516_v39  ;;  %v6810_v39 = vpack.c.bf16 %v3626_v35, %v3624_v34  ;;  %v6898_v22 = vpack.c.bf16 %v3854_v21, %v3851_v18  ;;  %v7028_v27 = vpack.c.bf16 %v4064_v54, %v4060_v26  ;;  %v4068_v36 = vld [vmem:[#allocation15 + $0x50] sm:$0xff]  ;;  %v4077_v35 = vld [vmem:[#allocation15 + $0x98] sm:$0xff] }
 0x4d1   :  { %3724 = vmatmul.mubr.f32.vlgmr.msra.gmra.mrb[6].mxu0 %v3515_v43  ;;  %v3625_v43 = vld [vmem:[#allocation9 + $0x350] sm:$0xff] }
 0x4d2   :  { %6773 = vmatpush1.bf16.msra.mxu0 %v6772_v41  ;;  %3794 = vmatprep.mubr.f32.mxu0 %v3518_v47  ;;  %v3623_v41 = vld [vmem:[#allocation9 + $0x340] sm:$0xff]  ;;  %v4072_v33 = vld [vmem:[#allocation15 + $0x70] sm:$0xff] }
 0x4d3   :  { %6775 = vmatprep.subr.bf16.mxu0 %v6774_v44  ;;  %v3628_v44 = vld [vmem:[#allocation9 + $0x368] sm:$0xff]  ;;  %v6812_v46 = vpack.c.bf16 %v3625_v43, %v3623_v41  ;;  %v7032_v34 = vpack.c.bf16 %v4072_v33, %v4068_v36  ;;  %v4076_v41 = vld [vmem:[#allocation15 + $0x90] sm:$0xff] }
 0x4d4   :  { %v6814_v47 = vpack.c.bf16 %v3630_v45, %v3628_v44  ;;  %v4080_v43 = vld [vmem:[#allocation15 + $0xb0] sm:$0xff]  ;;  %v4085_v45 = vld [vmem:[#allocation15 + $0xd8] sm:$0xff] }
 0x4d5   :  { %v7036_v44 = vpack.c.bf16 %v4080_v43, %v4076_v41  ;;  %v4132_v18 = vld [vmem:[#allocation15 + $0x250] sm:$0xff] }
 0x4d6   :  { %6777 = vmatpush1.bf16.msra.mxu0 %v6776_v50  ;;  %v3632_v50 = vld [vmem:[#allocation9 + $0x388] sm:$0xff]  ;;  %v4136_v21 = vld [vmem:[#allocation15 + $0x270] sm:$0xff] }
 0x4d7   :  { %6779 = vmatprep.subr.bf16.mxu0 %v6778_v51  ;;  %v3634_v51 = vld [vmem:[#allocation9 + $0x398] sm:$0xff] }
 0x4d8   :  { %v6818_v53 = vpack.c.bf16 %v3634_v51, %v3632_v50  ;;  %v7040_v50 = vpack.c.bf16 %v4088_v49, %v4084_v48  ;;  %v4093_v51 = vld [vmem:[#allocation15 + $0x118] sm:$0xff]  ;;  %v4140_v26 = vld [vmem:[#allocation15 + $0x290] sm:$0xff] }
 0x4d9   :  { %v4144_v54 = vld [vmem:[#allocation15 + $0x2b0] sm:$0xff] }
 0x4da   :  { %6781 = vmatpush1.bf16.msra.mxu0 %v6780_v57  ;;  %v3636_v57 = vld [vmem:[#allocation9 + $0x3a8] sm:$0xff]  ;;  %v4148_v36 = vld [vmem:[#allocation15 + $0x2d0] sm:$0xff] }
 0x4db   :  { %6783 = vmatprep.subr.bf16.mxu0 %v6782_v58  ;;  %v3638_v58 = vld [vmem:[#allocation9 + $0x3b8] sm:$0xff] }
 0x4dc   :  { %v6822_v60 = vpack.c.bf16 %v3638_v58, %v3636_v57  ;;  %v7044_v57 = vpack.c.bf16 %v4096_v37, %v4092_v56  ;;  %v4101_v58 = vld [vmem:[#allocation15 + $0x158] sm:$0xff]  ;;  %v4152_v33 = vld [vmem:[#allocation15 + $0x2f0] sm:$0xff] }
 0x4dd   :  { %v4156_v41 = vld [vmem:[#allocation15 + $0x310] sm:$0xff]  ;;  %v3647_v56 = vld [vmem:[#allocation10] sm:$0x3] }
 0x4de   :  { %6785 = vmatpush1.bf16.msra.mxu0 %v6784_v63  ;;  %v3640_v63 = vld [vmem:[#allocation9 + $0x3c8] sm:$0xff]  ;;  %v4160_v43 = vld [vmem:[#allocation15 + $0x330] sm:$0xff]  ;;  %v3656_v37 = vrot.slane %v3647_v56, %v7997_v13 }
 0x4df   :  { %6787 = vmatprep.subr.bf16.mxu0 %v6786_v1  ;;  %v3642_v1 = vld [vmem:[#allocation9 + $0x3d8] sm:$0xff] }
 0x4e0   :  { %v6826_v3 = vpack.c.bf16 %v3642_v1, %v3640_v63  ;;  %v7048_v63 = vpack.c.bf16 %v4104_v62, %v4100_v61  ;;  %v4109_v1 = vld [vmem:[#allocation15 + $0x198] sm:$0xff]  ;;  %v4164_v48 = vld [vmem:[#allocation15 + $0x350] sm:$0xff] }
 0x4e1   :  { %v4168_v49 = vld [vmem:[#allocation15 + $0x370] sm:$0xff]  ;;  %v3857_v61 = vld [vmem:[#allocation12 + $0x1c0] sm:$0xff] }
 0x4e2   :  { %6789 = vmatpush1.bf16.msra.mxu0 %v6788_v0  ;;  %v3644_v0 = vld [vmem:[#allocation9 + $0x3e8] sm:$0xff]  ;;  %v3860_v62 = vld [vmem:[#allocation12 + $0x1d8] sm:$0xff] }
 0x4e3   :  { %6791 = vmatprep.subr.bf16.mxu0 %v6790_v4  ;;  %v3646_v4 = vld [vmem:[#allocation9 + $0x3f8] sm:$0xff] }
 0x4e4   :  { %v6830_v8 = vpack.c.bf16 %v3646_v4, %v3644_v0  ;;  %v7052_v0 = vpack.c.bf16 %v4112_v16, %v4108_v5  ;;  %v4117_v4 = vld [vmem:[#allocation15 + $0x1d8] sm:$0xff]  ;;  %v6902_v5 = vpack.c.bf16 %v3860_v62, %v3857_v61  ;;  %v4074_v62 = vld [vmem:[#allocation15 + $0x80] sm:$0xff] }
 0x4e5   :  { %v3809_v16 = vld [vmem:[#allocation12 + $0x40] sm:$0xff] }
 0x4e6   :  { %6793 = vmatpush1.bf16.msra.mxu0 %v6792_v31  ;;  %v3645_v31 = vld [vmem:[#allocation9 + $0x3f0] sm:$0xff] }
 0x4e7   :  { %6795 = vmatprep.subr.bf16.mxu0 %v6794_v10  ;;  %v6832_v10 = vpack.c.bf16 %v3645_v31, %v3643_v9  ;;  %v4120_v9 = vld [vmem:[#allocation15 + $0x1f0] sm:$0xff] }
 0x4ea   :  { %6797 = vmatpush1.bf16.msra.mxu0 %v6796_v17  ;;  %v6894_v17 = vpack.c.bf16 %v3895_v15, %v3892_v14  ;;  %v4124_v14 = vld [vmem:[#allocation15 + $0x210] sm:$0xff] }
 0x4eb   :  { %6799 = vmatprep.subr.bf16.mxu0 %v6798_v19  ;;  %v3891_v19 = vld [vmem:[#allocation12 + $0x2d0] sm:$0xff] }
 0x4ec   :  { %v6896_v20 = vpack.c.bf16 %v3894_v40, %v3891_v19  ;;  %6895 = vmatprep.subr.bf16.mxu1 %v6894_v17  ;;  %v4128_v15 = vld [vmem:[#allocation15 + $0x230] sm:$0xff]  ;;  %v4133_v19 = vld [vmem:[#allocation15 + $0x258] sm:$0xff] }
 0x4ed   :  { %v7060_v17 = vpack.c.bf16 %v4128_v15, %v4124_v14  ;;  %v4137_v40 = vld [vmem:[#allocation15 + $0x278] sm:$0xff] }
 0x4ee   :  { %6801 = vmatpush1.bf16.msra.mxu0 %v6800_v23  ;;  %6897 = vmatpush1.bf16.msra.mxu1 %v6896_v20  ;;  %v4061_v23 = vld [vmem:[#allocation15 + $0x18] sm:$0xff]  ;;  %v7062_v20 = vpack.c.bf16 %v4137_v40, %v4133_v19  ;;  %v3875_v19 = vld [vmem:[#allocation12 + $0x250] sm:$0xff]  ;;  %v3878_v40 = vld [vmem:[#allocation12 + $0x268] sm:$0xff] }
 0x4ef   :  { %6803 = vmatprep.subr.bf16.mxu0 %v6802_v24  ;;  %6899 = vmatprep.subr.bf16.mxu1 %v6898_v22  ;;  %v4065_v24 = vld [vmem:[#allocation15 + $0x38] sm:$0xff]  ;;  %v7064_v22 = vpack.c.bf16 %v4136_v21, %v4132_v18  ;;  %v6914_v18 = vpack.c.bf16 %v3878_v40, %v3875_v19  ;;  %v3827_v21 = vld [vmem:[#allocation12 + $0xd0] sm:$0xff] }
 0x4f0   :  { %v7026_v25 = vpack.c.bf16 %v4065_v24, %v4061_v23  ;;  %v4141_v23 = vld [vmem:[#allocation15 + $0x298] sm:$0xff]  ;;  %v4107_v19 = vld [vmem:[#allocation15 + $0x188] sm:$0xff] }
 0x4f1   :  { %v4145_v24 = vld [vmem:[#allocation15 + $0x2b8] sm:$0xff]  ;;  %v4111_v40 = vld [vmem:[#allocation15 + $0x1a8] sm:$0xff] }
 0x4f2   :  { %6805 = vmatpush1.bf16.msra.mxu0 %v6804_v30  ;;  %v4073_v30 = vld [vmem:[#allocation15 + $0x78] sm:$0xff] }
 0x4f3   :  { %6807 = vmatprep.subr.bf16.mxu0 %v6806_v32  ;;  %v7030_v32 = vpack.c.bf16 %v4073_v30, %v4069_v29  ;;  %v4149_v29 = vld [vmem:[#allocation15 + $0x2d8] sm:$0xff] }
 0x4f4   :  { %v4153_v30 = vld [vmem:[#allocation15 + $0x2f8] sm:$0xff] }
 0x4f5   :  { %v3821_v15 = vld [vmem:[#allocation12 + $0xa0] sm:$0xff] }
 0x4f6   :  { %6809 = vmatpush1.bf16.msra.mxu0 %v6808_v38  ;;  %v4081_v38 = vld [vmem:[#allocation15 + $0xb8] sm:$0xff] }
 0x4f7   :  { %6811 = vmatprep.subr.bf16.mxu0 %v6810_v39  ;;  %v7034_v39 = vpack.c.bf16 %v4081_v38, %v4077_v35  ;;  %v4157_v35 = vld [vmem:[#allocation15 + $0x318] sm:$0xff] }
 0x4f8   :  { %v4161_v38 = vld [vmem:[#allocation15 + $0x338] sm:$0xff] }
 0x4fa   :  { %6813 = vmatpush1.bf16.msra.mxu0 %v6812_v46  ;;  %v4089_v46 = vld [vmem:[#allocation15 + $0xf8] sm:$0xff] }
 0x4fb   :  { %6815 = vmatprep.subr.bf16.mxu0 %v6814_v47  ;;  %v7038_v47 = vpack.c.bf16 %v4089_v46, %v4085_v45  ;;  %v4165_v45 = vld [vmem:[#allocation15 + $0x358] sm:$0xff] }
 0x4fc   :  { %v4169_v46 = vld [vmem:[#allocation15 + $0x378] sm:$0xff] }
 0x4fe   :  { %6817 = vmatpush1.bf16.msra.mxu0 %v6816_v52  ;;  %v4097_v52 = vld [vmem:[#allocation15 + $0x138] sm:$0xff] }
 0x4ff   :  { %6819 = vmatprep.subr.bf16.mxu0 %v6818_v53  ;;  %v7042_v53 = vpack.c.bf16 %v4097_v52, %v4093_v51  ;;  %v4173_v51 = vld [vmem:[#allocation15 + $0x398] sm:$0xff] }
 0x500   :  { %v4177_v52 = vld [vmem:[#allocation15 + $0x3b8] sm:$0xff] }
 0x502   :  { %6821 = vmatpush1.bf16.msra.mxu0 %v6820_v59  ;;  %v4105_v59 = vld [vmem:[#allocation15 + $0x178] sm:$0xff] }
 0x503   :  { %6823 = vmatprep.subr.bf16.mxu0 %v6822_v60  ;;  %v7046_v60 = vpack.c.bf16 %v4105_v59, %v4101_v58  ;;  %v3803_v58 = vld [vmem:[#allocation12 + $0x10] sm:$0xff]  ;;  %v3806_v59 = vld [vmem:[#allocation12 + $0x28] sm:$0xff] }
 0x506   :  { %6825 = vmatpush1.bf16.msra.mxu0 %v6824_v2  ;;  %v4113_v2 = vld [vmem:[#allocation15 + $0x1b8] sm:$0xff] }
 0x507   :  { %6827 = vmatprep.subr.bf16.mxu0 %v6826_v3  ;;  %v7050_v3 = vpack.c.bf16 %v4113_v2, %v4109_v1  ;;  %v6900_v2 = vpack.c.bf16 %v3806_v59, %v3803_v58  ;;  %v4075_v58 = vld [vmem:[#allocation15 + $0x88] sm:$0xff] }
 0x508   :  { %v4079_v59 = vld [vmem:[#allocation15 + $0xa8] sm:$0xff] }
 0x509   :  { %v6938_v61 = vpack.c.bf16 %v4079_v59, %v4075_v58  ;;  %v4155_v58 = vld [vmem:[#allocation15 + $0x308] sm:$0xff] }
 0x50a   :  { %6829 = vmatpush1.bf16.msra.mxu0 %v6828_v6  ;;  %v4121_v6 = vld [vmem:[#allocation15 + $0x1f8] sm:$0xff]  ;;  %v4159_v59 = vld [vmem:[#allocation15 + $0x328] sm:$0xff] }
 0x50b   :  { %6831 = vmatprep.subr.bf16.mxu0 %v6830_v8  ;;  %v7054_v7 = vpack.c.bf16 %v4121_v6, %v4117_v4  ;;  %v4116_v8 = vld [vmem:[#allocation15 + $0x1d0] sm:$0xff]  ;;  %v3866_v6 = vld [vmem:[#allocation12 + $0x208] sm:$0xff] }
 0x50c   :  { %v7056_v31 = vpack.c.bf16 %v4120_v9, %v4116_v8  ;;  %v3863_v4 = vld [vmem:[#allocation12 + $0x1f0] sm:$0xff] }
 0x50d   :  { %v6906_v8 = vpack.c.bf16 %v3866_v6, %v3863_v4  ;;  %v3815_v9 = vld [vmem:[#allocation12 + $0x70] sm:$0xff]  ;;  %v4086_v4 = vld [vmem:[#allocation15 + $0xe0] sm:$0xff] }
 0x50e   :  { %6833 = vmatpush1.bf16.msra.mxu0 %v6832_v10  ;;  %v4125_v10 = vld [vmem:[#allocation15 + $0x218] sm:$0xff]  ;;  %v4091_v6 = vld [vmem:[#allocation15 + $0x108] sm:$0xff] }
 0x50f   :  { %7027 = vmatprep.subr.bf16.mxu0 %v7026_v25  ;;  %v7066_v25 = vpack.c.bf16 %v4145_v24, %v4141_v23  ;;  %v3881_v23 = vld [vmem:[#allocation12 + $0x280] sm:$0xff]  ;;  %v3884_v24 = vld [vmem:[#allocation12 + $0x298] sm:$0xff] }
 0x511   :  { %3795 = vmatmul.mubr.f32.vlgmr.msra.gmra.mrb[6].mxu0 %v3517_v12  ;;  %v7058_v12 = vpack.c.bf16 %v4129_v11, %v4125_v10  ;;  %v3869_v10 = vld [vmem:[#allocation12 + $0x220] sm:$0xff]  ;;  %v3872_v11 = vld [vmem:[#allocation12 + $0x238] sm:$0xff] }
 0x512   :  { %7029 = vmatpush1.bf16.msra.mxu0 %v7028_v27  ;;  %v7068_v27 = vpack.c.bf16 %v4144_v54, %v4140_v26  ;;  %v6910_v14 = vpack.c.bf16 %v3872_v11, %v3869_v10  ;;  %v6918_v26 = vpack.c.bf16 %v3884_v24, %v3881_v23  ;;  %v3833_v54 = vld [vmem:[#allocation12 + $0x100] sm:$0xff]  ;;  %v4099_v10 = vld [vmem:[#allocation15 + $0x148] sm:$0xff] }
 0x513   :  { %7031 = vmatprep.subr.bf16.mxu0 %v7030_v32  ;;  %v7070_v32 = vpack.c.bf16 %v4153_v30, %v4149_v29  ;;  %v3887_v29 = vld [vmem:[#allocation12 + $0x2b0] sm:$0xff]  ;;  %v3890_v30 = vld [vmem:[#allocation12 + $0x2c8] sm:$0xff] }
 0x514   :  { %v4103_v11 = vld [vmem:[#allocation15 + $0x168] sm:$0xff] }
 0x515   :  { %v4115_v23 = vld [vmem:[#allocation15 + $0x1c8] sm:$0xff] }
 0x516   :  { %7033 = vmatpush1.bf16.msra.mxu0 %v7032_v34  ;;  %v7072_v34 = vpack.c.bf16 %v4152_v33, %v4148_v36  ;;  %v6922_v36 = vpack.c.bf16 %v3890_v30, %v3887_v29  ;;  %v3839_v33 = vld [vmem:[#allocation12 + $0x130] sm:$0xff] }
 0x517   :  { %7035 = vmatprep.subr.bf16.mxu0 %v7034_v39  ;;  %v7074_v39 = vpack.c.bf16 %v4161_v38, %v4157_v35  ;;  %v3893_v35 = vld [vmem:[#allocation12 + $0x2e0] sm:$0xff]  ;;  %v3896_v38 = vld [vmem:[#allocation12 + $0x2f8] sm:$0xff]  ;;  %v4119_v24 = vld [vmem:[#allocation15 + $0x1e8] sm:$0xff] }
 0x518   :  { %v4123_v29 = vld [vmem:[#allocation15 + $0x208] sm:$0xff] }
 0x519   :  { %v4127_v30 = vld [vmem:[#allocation15 + $0x228] sm:$0xff] }
 0x51a   :  { %7037 = vmatpush1.bf16.msra.mxu0 %v7036_v44  ;;  %v7076_v44 = vpack.c.bf16 %v4160_v43, %v4156_v41  ;;  %v6926_v41 = vpack.c.bf16 %v3896_v38, %v3893_v35  ;;  %v3845_v43 = vld [vmem:[#allocation12 + $0x160] sm:$0xff]  ;;  %v4131_v35 = vld [vmem:[#allocation15 + $0x248] sm:$0xff] }
 0x51b   :  { %7039 = vmatprep.subr.bf16.mxu0 %v7038_v47  ;;  %v7078_v47 = vpack.c.bf16 %v4169_v46, %v4165_v45  ;;  %v4059_v45 = vld [vmem:[#allocation15 + $0x8] sm:$0xff] }
 0x51c   :  { %v4063_v46 = vld [vmem:[#allocation15 + $0x28] sm:$0xff] }
 0x51d   :  { %v4135_v38 = vld [vmem:[#allocation15 + $0x268] sm:$0xff] }
 0x51e   :  { %7041 = vmatpush1.bf16.msra.mxu0 %v7040_v50  ;;  %v7080_v50 = vpack.c.bf16 %v4168_v49, %v4164_v48  ;;  %v6930_v48 = vpack.c.bf16 %v4063_v46, %v4059_v45  ;;  %v4058_v49 = vld [vmem:[#allocation15] sm:$0xff]  ;;  %v4139_v45 = vld [vmem:[#allocation15 + $0x288] sm:$0xff] }
 0x51f   :  { %7043 = vmatprep.subr.bf16.mxu0 %v7042_v53  ;;  %v7082_v53 = vpack.c.bf16 %v4177_v52, %v4173_v51  ;;  %v4067_v51 = vld [vmem:[#allocation15 + $0x48] sm:$0xff] }
 0x520   :  { %v4071_v52 = vld [vmem:[#allocation15 + $0x68] sm:$0xff] }
 0x521   :  { %v4143_v46 = vld [vmem:[#allocation15 + $0x2a8] sm:$0xff] }
 0x522   :  { %7045 = vmatpush1.bf16.msra.mxu0 %v7044_v57  ;;  %v3652_v57 = vrot.slane %v3647_v56, %v8008_v28  ;;  %v6934_v56 = vpack.c.bf16 %v4071_v52, %v4067_v51  ;;  %v4147_v51 = vld [vmem:[#allocation15 + $0x2c8] sm:$0xff] }
 0x523   :  { %7047 = vmatprep.subr.bf16.mxu0 %v7046_v60  ;;  %v4151_v52 = vld [vmem:[#allocation15 + $0x2e8] sm:$0xff] }
 0x526   :  { %7049 = vmatpush1.bf16.msra.mxu0 %v7048_v63 }
 0x527   :  { %7051 = vmatprep.subr.bf16.mxu0 %v7050_v3 }
 0x52a   :  { %7053 = vmatpush1.bf16.msra.mxu0 %v7052_v0  ;;  %v3812_v0 = vld [vmem:[#allocation12 + $0x58] sm:$0xff] }
 0x52b   :  { %7055 = vmatprep.subr.bf16.mxu0 %v7054_v7  ;;  %v6904_v7 = vpack.c.bf16 %v3812_v0, %v3809_v16  ;;  %v4082_v0 = vld [vmem:[#allocation15 + $0xc0] sm:$0xff] }
 0x52e   :  { %7057 = vmatpush1.bf16.msra.mxu0 %v7056_v31  ;;  %v3818_v31 = vld [vmem:[#allocation12 + $0x88] sm:$0xff] }
 0x52f   :  { %7059 = vmatprep.subr.bf16.mxu0 %v7058_v12  ;;  %v6908_v12 = vpack.c.bf16 %v3818_v31, %v3815_v9  ;;  %v4090_v9 = vld [vmem:[#allocation15 + $0x100] sm:$0xff] }
 0x530   :  { %v4094_v31 = vld [vmem:[#allocation15 + $0x120] sm:$0xff] }
 0x532   :  { %7061 = vmatpush1.bf16.msra.mxu0 %v7060_v17  ;;  %v3824_v17 = vld [vmem:[#allocation12 + $0xb8] sm:$0xff] }
 0x533   :  { %7063 = vmatprep.subr.bf16.mxu0 %v7062_v20  ;;  %v6912_v20 = vpack.c.bf16 %v3824_v17, %v3821_v15  ;;  %v4098_v15 = vld [vmem:[#allocation15 + $0x140] sm:$0xff] }
 0x534   :  { %v4102_v17 = vld [vmem:[#allocation15 + $0x160] sm:$0xff] }
 0x536   :  { %7065 = vmatpush1.bf16.msra.mxu0 %v7064_v22  ;;  %v3830_v22 = vld [vmem:[#allocation12 + $0xe8] sm:$0xff] }
 0x537   :  { %7067 = vmatprep.subr.bf16.mxu0 %v7066_v25  ;;  %v6916_v25 = vpack.c.bf16 %v3830_v22, %v3827_v21  ;;  %v4106_v21 = vld [vmem:[#allocation15 + $0x180] sm:$0xff] }
 0x538   :  { %v4110_v22 = vld [vmem:[#allocation15 + $0x1a0] sm:$0xff] }
 0x53a   :  { %7069 = vmatpush1.bf16.msra.mxu0 %v7068_v27  ;;  %v3836_v27 = vld [vmem:[#allocation12 + $0x118] sm:$0xff] }
 0x53b   :  { %7071 = vmatprep.subr.bf16.mxu0 %v7070_v32  ;;  %v6920_v32 = vpack.c.bf16 %v3836_v27, %v3833_v54  ;;  %v4114_v54 = vld [vmem:[#allocation15 + $0x1c0] sm:$0xff] }
 0x53c   :  { %v4118_v27 = vld [vmem:[#allocation15 + $0x1e0] sm:$0xff] }
 0x53e   :  { %7073 = vmatpush1.bf16.msra.mxu0 %v7072_v34  ;;  %v3842_v34 = vld [vmem:[#allocation12 + $0x148] sm:$0xff] }
 0x53f   :  { %7075 = vmatprep.subr.bf16.mxu0 %v7074_v39  ;;  %v6924_v39 = vpack.c.bf16 %v3842_v34, %v3839_v33  ;;  %v4122_v33 = vld [vmem:[#allocation15 + $0x200] sm:$0xff] }
 0x540   :  { %v4126_v34 = vld [vmem:[#allocation15 + $0x220] sm:$0xff] }
 0x542   :  { %7077 = vmatpush1.bf16.msra.mxu0 %v7076_v44  ;;  %v3848_v44 = vld [vmem:[#allocation12 + $0x178] sm:$0xff] }
 0x543   :  { %7079 = vmatprep.subr.bf16.mxu0 %v7078_v47  ;;  %v6928_v47 = vpack.c.bf16 %v3848_v44, %v3845_v43  ;;  %v4130_v43 = vld [vmem:[#allocation15 + $0x240] sm:$0xff] }
 0x544   :  { %v4134_v44 = vld [vmem:[#allocation15 + $0x260] sm:$0xff] }
 0x546   :  { %7081 = vmatpush1.bf16.msra.mxu0 %v7080_v50  ;;  %v4062_v50 = vld [vmem:[#allocation15 + $0x20] sm:$0xff] }
 0x547   :  { %7083 = vmatprep.subr.bf16.mxu0 %v7082_v53  ;;  %v6932_v53 = vpack.c.bf16 %v4062_v50, %v4058_v49  ;;  %v4138_v49 = vld [vmem:[#allocation15 + $0x280] sm:$0xff] }
 0x548   :  { %v4142_v50 = vld [vmem:[#allocation15 + $0x2a0] sm:$0xff] }
 0x5e4   :  { %v3796_v60 = vpop.f32.mrb[6].mxu0 }
 0x5e5   :  { %v3798_v63 = vpop.f32.mrb[7].mxu0  ;;  %v8052_v3 = vadd.f32 %v3796_v60, %v3652_v57  ;;  %v4070_v57 = vld [vmem:[#allocation15 + $0x60] sm:$0xff] }
 0x5e6   :  { %v7327_v1 = vadd.f32 %v3798_v63, %v3656_v37  ;;  %v4066_v37 = vld [vmem:[#allocation15 + $0x40] sm:$0xff] }
 0x5e7   :  { %v6936_v60 = vpack.c.bf16 %v4070_v57, %v4066_v37  ;;  %v4078_v63 = vld [vmem:[#allocation15 + $0xa0] sm:$0xff] }
 0x5e8   :  { %3978 = vmatprep.mubr.f32.mxu1 %v7327_v1  ;;  %v4146_v37 = vld [vmem:[#allocation15 + $0x2c0] sm:$0xff] }
 0x5e9   :  { %3979 = vmatmul.mubr.f32.vlgmr.msra.gmra.mrb[6].mxu1 %v8052_v3  ;;  %v4150_v57 = vld [vmem:[#allocation15 + $0x2e0] sm:$0xff] }
 0x5ea   :  { %6901 = vmatpush3.bf16.msra.mxu1 %v6900_v2  ;;  %4049 = vmatprep.mubr.f32.mxu1 %v7327_v1  ;;  %v4083_v1 = vld [vmem:[#allocation15 + $0xc8] sm:$0xff] }
 0x5eb   :  { %6903 = vmatprep.subr.bf16.mxu1 %v6902_v5  ;;  %v4087_v2 = vld [vmem:[#allocation15 + $0xe8] sm:$0xff]  ;;  %v6940_v5 = vpack.c.bf16 %v4078_v63, %v4074_v62  ;;  %v4154_v62 = vld [vmem:[#allocation15 + $0x300] sm:$0xff] }
 0x5ec   :  { %v6942_v16 = vpack.c.bf16 %v4087_v2, %v4083_v1  ;;  %v4158_v63 = vld [vmem:[#allocation15 + $0x320] sm:$0xff]  ;;  %v4163_v1 = vld [vmem:[#allocation15 + $0x348] sm:$0xff] }
 0x5ed   :  { %v4167_v2 = vld [vmem:[#allocation15 + $0x368] sm:$0xff] }
 0x5ee   :  { %6905 = vmatpush3.bf16.msra.mxu1 %v6904_v7  ;;  %v4095_v7 = vld [vmem:[#allocation15 + $0x128] sm:$0xff] }
 0x5ef   :  { %6907 = vmatprep.subr.bf16.mxu1 %v6906_v8  ;;  %v6944_v8 = vpack.c.bf16 %v4086_v4, %v4082_v0  ;;  %v4162_v0 = vld [vmem:[#allocation15 + $0x340] sm:$0xff] }
 0x5f0   :  { %v4166_v4 = vld [vmem:[#allocation15 + $0x360] sm:$0xff] }
 0x5f2   :  { %6909 = vmatpush3.bf16.msra.mxu1 %v6908_v12  ;;  %v6948_v12 = vpack.c.bf16 %v4094_v31, %v4090_v9  ;;  %v4170_v31 = vld [vmem:[#allocation15 + $0x380] sm:$0xff] }
 0x5f3   :  { %6911 = vmatprep.subr.bf16.mxu1 %v6910_v14  ;;  %v6950_v14 = vpack.c.bf16 %v4103_v11, %v4099_v10  ;;  %v4174_v10 = vld [vmem:[#allocation15 + $0x3a0] sm:$0xff]  ;;  %v4176_v11 = vld [vmem:[#allocation15 + $0x3b0] sm:$0xff] }
 0x5f6   :  { %6913 = vmatpush3.bf16.msra.mxu1 %v6912_v20  ;;  %v6952_v20 = vpack.c.bf16 %v4102_v17, %v4098_v15  ;;  %v4183_v15 = vld [vmem:[#allocation15 + $0x3e8] sm:$0xff]  ;;  %v4181_v17 = vld [vmem:[#allocation15 + $0x3d8] sm:$0xff] }
 0x5f7   :  { %6915 = vmatprep.subr.bf16.mxu1 %v6914_v18  ;;  %v6954_v18 = vpack.c.bf16 %v4111_v40, %v4107_v19  ;;  %v6988_v19 = vpack.c.bf16 %v4174_v10, %v4170_v31  ;;  %v4185_v40 = vld [vmem:[#allocation15 + $0x3f8] sm:$0xff]  ;;  %v4211_v31 = vld [vmem:[#allocation15 + $0x4c8] sm:$0xff] }
 0x5f8   :  { %v4215_v10 = vld [vmem:[#allocation15 + $0x4e8] sm:$0xff] }
 0x5fa   :  { %6917 = vmatpush3.bf16.msra.mxu1 %v6916_v25  ;;  %v6956_v25 = vpack.c.bf16 %v4110_v22, %v4106_v21  ;;  %v7086_v21 = vpack.c.bf16 %v4185_v40, %v4181_v17  ;;  %v4182_v22 = vld [vmem:[#allocation15 + $0x3e0] sm:$0xff] }
 0x5fb   :  { %6919 = vmatprep.subr.bf16.mxu1 %v6918_v26  ;;  %v6958_v26 = vpack.c.bf16 %v4119_v24, %v4115_v23  ;;  %v4180_v23 = vld [vmem:[#allocation15 + $0x3d0] sm:$0xff]  ;;  %v4214_v40 = vld [vmem:[#allocation15 + $0x4e0] sm:$0xff] }
 0x5fc   :  { %v4184_v24 = vld [vmem:[#allocation15 + $0x3f0] sm:$0xff] }
 0x5fe   :  { %6921 = vmatpush3.bf16.msra.mxu1 %v6920_v32  ;;  %v6960_v32 = vpack.c.bf16 %v4118_v27, %v4114_v54  ;;  %v4191_v54 = vld [vmem:[#allocation15 + $0x428] sm:$0xff]  ;;  %v4189_v27 = vld [vmem:[#allocation15 + $0x418] sm:$0xff] }
 0x5ff   :  { %6923 = vmatprep.subr.bf16.mxu1 %v6922_v36  ;;  %v6962_v36 = vpack.c.bf16 %v4127_v30, %v4123_v29  ;;  %v4193_v30 = vld [vmem:[#allocation15 + $0x438] sm:$0xff] }
 0x602   :  { %6925 = vmatpush3.bf16.msra.mxu1 %v6924_v39  ;;  %v6964_v39 = vpack.c.bf16 %v4126_v34, %v4122_v33  ;;  %v8056_v33 = vld [vmem:[#allocation13] sm:$0x7] }
 0x603   :  { %6927 = vmatprep.subr.bf16.mxu1 %v6926_v41  ;;  %v6966_v41 = vpack.c.bf16 %v4135_v38, %v4131_v35  ;;  %v3902_v34 = vrot.slane %v8056_v33, %v8008_v28  ;;  %v3906_v35 = vrot.slane %v8056_v33, %v7997_v13 }
 0x606   :  { %6929 = vmatpush3.bf16.msra.mxu1 %v6928_v47  ;;  %v6968_v47 = vpack.c.bf16 %v4134_v44, %v4130_v43 }
 0x607   :  { %6931 = vmatprep.subr.bf16.mxu1 %v6930_v48  ;;  %v6970_v48 = vpack.c.bf16 %v4143_v46, %v4139_v45  ;;  %v4188_v45 = vld [vmem:[#allocation15 + $0x410] sm:$0xff] }
 0x608   :  { %v4192_v46 = vld [vmem:[#allocation15 + $0x430] sm:$0xff] }
 0x609   :  { %4050 = vmatmul.mubr.f32.vlgmr.msra.gmra.mrb[8].mxu1 %v8052_v3  ;;  %v6946_v3 = vpack.c.bf16 %v4095_v7, %v4091_v6  ;;  %v4171_v6 = vld [vmem:[#allocation15 + $0x388] sm:$0xff] }
 0x60a   :  { %6933 = vmatpush1.bf16.msra.mxu1 %v6932_v53  ;;  %v6972_v53 = vpack.c.bf16 %v4142_v50, %v4138_v49  ;;  %v4175_v7 = vld [vmem:[#allocation15 + $0x3a8] sm:$0xff]  ;;  %v4197_v50 = vld [vmem:[#allocation15 + $0x458] sm:$0xff] }
 0x60b   :  { %6935 = vmatprep.subr.bf16.mxu1 %v6934_v56  ;;  %v6974_v56 = vpack.c.bf16 %v4151_v52, %v4147_v51  ;;  %v6986_v9 = vpack.c.bf16 %v4175_v7, %v4171_v6  ;;  %v4199_v49 = vld [vmem:[#allocation15 + $0x468] sm:$0xff]  ;;  %v4201_v51 = vld [vmem:[#allocation15 + $0x478] sm:$0xff]  ;;  %v4206_v6 = vld [vmem:[#allocation15 + $0x4a0] sm:$0xff] }
 0x60e   :  { %6937 = vmatpush1.bf16.msra.mxu1 %v6936_v60  ;;  %v6976_v60 = vpack.c.bf16 %v4150_v57, %v4146_v37  ;;  %v4194_v37 = vld [vmem:[#allocation15 + $0x440] sm:$0xff] }
 0x60f   :  { %6939 = vmatprep.subr.bf16.mxu1 %v6938_v61  ;;  %v6978_v61 = vpack.c.bf16 %v4159_v59, %v4155_v58  ;;  %v4198_v57 = vld [vmem:[#allocation15 + $0x460] sm:$0xff] }
 0x612   :  { %6941 = vmatpush1.bf16.msra.mxu1 %v6940_v5  ;;  %v6980_v5 = vpack.c.bf16 %v4158_v63, %v4154_v62  ;;  %v4200_v62 = vld [vmem:[#allocation15 + $0x470] sm:$0xff]  ;;  %v4203_v63 = vld [vmem:[#allocation15 + $0x488] sm:$0xff] }
 0x613   :  { %6943 = vmatprep.subr.bf16.mxu1 %v6942_v16  ;;  %v6982_v16 = vpack.c.bf16 %v4167_v2, %v4163_v1  ;;  %v4207_v1 = vld [vmem:[#allocation15 + $0x4a8] sm:$0xff]  ;;  %v4205_v2 = vld [vmem:[#allocation15 + $0x498] sm:$0xff] }
 0x614   :  { %v7002_v7 = vpack.c.bf16 %v4207_v1, %v4203_v63  ;;  %v4236_v63 = vld [vmem:[#allocation15 + $0x590] sm:$0xff] }
 0x615   :  { %v4240_v1 = vld [vmem:[#allocation15 + $0x5b0] sm:$0xff] }
 0x616   :  { %6945 = vmatpush1.bf16.msra.mxu1 %v6944_v8  ;;  %v6984_v8 = vpack.c.bf16 %v4166_v4, %v4162_v0  ;;  %v4202_v4 = vld [vmem:[#allocation15 + $0x480] sm:$0xff] }
 0x617   :  { %6947 = vmatprep.subr.bf16.mxu1 %v6946_v3  ;;  %v4172_v3 = vld [vmem:[#allocation15 + $0x390] sm:$0xff] }
 0x61a   :  { %6949 = vmatpush1.bf16.msra.mxu1 %v6948_v12  ;;  %v7084_v12 = vpack.c.bf16 %v4176_v11, %v4172_v3  ;;  %v4204_v3 = vld [vmem:[#allocation15 + $0x490] sm:$0xff]  ;;  %v4213_v11 = vld [vmem:[#allocation15 + $0x4d8] sm:$0xff] }
 0x61b   :  { %6951 = vmatprep.subr.bf16.mxu1 %v6950_v14  ;;  %v4179_v14 = vld [vmem:[#allocation15 + $0x3c8] sm:$0xff] }
 0x61c   :  { %7085 = vmatpush1.bf16.msra.mxu0 %v7084_v12  ;;  %v4217_v12 = vld [vmem:[#allocation15 + $0x4f8] sm:$0xff] }
 0x61d   :  { %7087 = vmatprep.subr.bf16.mxu0 %v7086_v21  ;;  %v4212_v21 = vld [vmem:[#allocation15 + $0x4d0] sm:$0xff] }
 0x61e   :  { %6953 = vmatpush1.bf16.msra.mxu1 %v6952_v20  ;;  %v4178_v20 = vld [vmem:[#allocation15 + $0x3c0] sm:$0xff] }
 0x61f   :  { %6955 = vmatprep.subr.bf16.mxu1 %v6954_v18  ;;  %v6990_v18 = vpack.c.bf16 %v4183_v15, %v4179_v14  ;;  %v6992_v29 = vpack.c.bf16 %v4182_v22, %v4178_v20  ;;  %v7707_v14 = vmov 0.0   ;;  %v7004_v15 = vpack.c.bf16 %v4206_v6, %v4202_v4  ;;  %v4216_v22 = vld [vmem:[#allocation15 + $0x4f0] sm:$0xff] }
 0x620   :  { %v7006_v20 = vpack.c.bf16 %v4215_v10, %v4211_v31  ;;  %v7116_v6 = vpack.c.bf16 %v4240_v1, %v4236_v63  ;;  %v4244_v31 = vld [vmem:[#allocation15 + $0x5d0] sm:$0xff] }
 0x621   :  { %v4248_v10 = vld [vmem:[#allocation15 + $0x5f0] sm:$0xff] }
 0x622   :  { %6957 = vmatpush1.bf16.msra.mxu1 %v6956_v25  ;;  %v7088_v25 = vpack.c.bf16 %v4184_v24, %v4180_v23  ;;  %v4219_v23 = vld [vmem:[#allocation15 + $0x508] sm:$0xff]  ;;  %v4578_v1 = vld [vmem:[#allocation18 + $0x90] sm:$0xff] }
 0x623   :  { %6959 = vmatprep.subr.bf16.mxu1 %v6958_v26  ;;  %v4187_v26 = vld [vmem:[#allocation15 + $0x408] sm:$0xff] }
 0x624   :  { %7089 = vmatpush1.bf16.msra.mxu0 %v7088_v25  ;;  %v4223_v24 = vld [vmem:[#allocation15 + $0x528] sm:$0xff]  ;;  %v4221_v25 = vld [vmem:[#allocation15 + $0x518] sm:$0xff] }
 0x626   :  { %6961 = vmatpush1.bf16.msra.mxu1 %v6960_v32  ;;  %v6994_v32 = vpack.c.bf16 %v4191_v54, %v4187_v26  ;;  %v4225_v26 = vld [vmem:[#allocation15 + $0x538] sm:$0xff] }
 0x627   :  { %6963 = vmatprep.subr.bf16.mxu1 %v6962_v36  ;;  %v7090_v36 = vpack.c.bf16 %v4193_v30, %v4189_v27  ;;  %v7104_v27 = vpack.c.bf16 %v4216_v22, %v4212_v21  ;;  %v4222_v30 = vld [vmem:[#allocation15 + $0x520] sm:$0xff] }
 0x628   :  { %v4560_v22 = vld [vmem:[#allocation18] sm:$0xff] }
 0x629   :  { %7091 = vmatprep.subr.bf16.mxu0 %v7090_v36  ;;  %v7106_v36 = vpack.c.bf16 %v4225_v26, %v4221_v25  ;;  %v4567_v26 = vld [vmem:[#allocation18 + $0x38] sm:$0xff] }
 0x62a   :  { %6965 = vmatpush1.bf16.msra.mxu1 %v6964_v39  ;;  %v4186_v39 = vld [vmem:[#allocation15 + $0x400] sm:$0xff] }
 0x62b   :  { %6967 = vmatprep.subr.bf16.mxu1 %v6966_v41  ;;  %v4190_v41 = vld [vmem:[#allocation15 + $0x420] sm:$0xff] }
 0x62e   :  { %6969 = vmatpush1.bf16.msra.mxu1 %v6968_v47  ;;  %v4195_v47 = vld [vmem:[#allocation15 + $0x448] sm:$0xff] }
 0x62f   :  { %6971 = vmatprep.subr.bf16.mxu1 %v6970_v48  ;;  %v6998_v59 = vpack.c.bf16 %v4199_v49, %v4195_v47  ;;  %v4230_v47 = vld [vmem:[#allocation15 + $0x560] sm:$0xff] }
 0x632   :  { %6973 = vmatpush1.bf16.msra.mxu1 %v6972_v53  ;;  %v6996_v53 = vpack.c.bf16 %v4190_v41, %v4186_v39  ;;  %v4231_v39 = vld [vmem:[#allocation15 + $0x568] sm:$0xff]  ;;  %v4229_v41 = vld [vmem:[#allocation15 + $0x558] sm:$0xff] }
 0x633   :  { %6975 = vmatprep.subr.bf16.mxu1 %v6974_v56  ;;  %v7092_v56 = vpack.c.bf16 %v4192_v46, %v4188_v45  ;;  %v4226_v46 = vld [vmem:[#allocation15 + $0x540] sm:$0xff] }
 0x636   :  { %6977 = vmatpush1.bf16.msra.mxu1 %v6976_v60  ;;  %v7094_v60 = vpack.c.bf16 %v4201_v51, %v4197_v50  ;;  %v4228_v50 = vld [vmem:[#allocation15 + $0x550] sm:$0xff] }
 0x637   :  { %6979 = vmatprep.subr.bf16.mxu1 %v6978_v61  ;;  %v4196_v61 = vld [vmem:[#allocation15 + $0x450] sm:$0xff] }
 0x638   :  { %v7096_v0 = vpack.c.bf16 %v4200_v62, %v4196_v61  ;;  %v4232_v51 = vld [vmem:[#allocation15 + $0x570] sm:$0xff] }
 0x63a   :  { %6981 = vmatpush1.bf16.msra.mxu1 %v6980_v5  ;;  %v4209_v5 = vld [vmem:[#allocation15 + $0x4b8] sm:$0xff] }
 0x63b   :  { %6983 = vmatprep.subr.bf16.mxu1 %v6982_v16  ;;  %v7000_v16 = vpack.c.bf16 %v4198_v57, %v4194_v37  ;;  %v4241_v37 = vld [vmem:[#allocation15 + $0x5b8] sm:$0xff]  ;;  %v7016_v57 = vpack.c.bf16 %v4230_v47, %v4226_v46  ;;  %v4576_v47 = vld [vmem:[#allocation18 + $0x80] sm:$0xff] }
 0x63c   :  { %v4571_v46 = vld [vmem:[#allocation18 + $0x58] sm:$0xff] }
 0x63e   :  { %6985 = vmatpush1.bf16.msra.mxu1 %v6984_v8  ;;  %v7098_v8 = vpack.c.bf16 %v4209_v5, %v4205_v2  ;;  %v4243_v2 = vld [vmem:[#allocation15 + $0x5c8] sm:$0xff] }
 0x63f   :  { %6987 = vmatprep.subr.bf16.mxu1 %v6986_v9  ;;  %v4208_v9 = vld [vmem:[#allocation15 + $0x4b0] sm:$0xff]  ;;  %v4247_v5 = vld [vmem:[#allocation15 + $0x5e8] sm:$0xff] }
 0x640   :  { %v7100_v17 = vpack.c.bf16 %v4208_v9, %v4204_v3  ;;  %v7022_v3 = vpack.c.bf16 %v4247_v5, %v4243_v2  ;;  %v4581_v2 = vld [vmem:[#allocation18 + $0xa8] sm:$0xff] }
 0x642   :  { %6989 = vmatpush1.bf16.msra.mxu1 %v6988_v19  ;;  %v4210_v19 = vld [vmem:[#allocation15 + $0x4c0] sm:$0xff] }
 0x643   :  { %6991 = vmatprep.subr.bf16.mxu1 %v6990_v18  ;;  %v7102_v18 = vpack.c.bf16 %v4217_v12, %v4213_v11  ;;  %v7008_v54 = vpack.c.bf16 %v4214_v40, %v4210_v19  ;;  %v4561_v11 = vld [vmem:[#allocation18 + $0x8] sm:$0xff]  ;;  %v4564_v12 = vld [vmem:[#allocation18 + $0x20] sm:$0xff]  ;;  %v3910_v19 = vrot.slane %v8056_v33, %v8020_v55 }
 0x644   :  { %v7122_v21 = vpack.c.bf16 %v4564_v12, %v4561_v11  ;;  %v4587_v11 = vld [vmem:[#allocation18 + $0xd8] sm:$0xff] }
 0x646   :  { %6993 = vmatpush1.bf16.msra.mxu1 %v6992_v29  ;;  %v4218_v29 = vld [vmem:[#allocation15 + $0x500] sm:$0xff] }
 0x647   :  { %6995 = vmatprep.subr.bf16.mxu1 %v6994_v32  ;;  %v7010_v32 = vpack.c.bf16 %v4223_v24, %v4219_v23  ;;  %v4563_v23 = vld [vmem:[#allocation18 + $0x18] sm:$0xff] }
 0x648   :  { %v7124_v33 = vpack.c.bf16 %v4563_v23, %v4560_v22  ;;  %v4590_v23 = vld [vmem:[#allocation18 + $0xf0] sm:$0xff] }
 0x6bc   :  { %v3980_v38 = vpop.f32.mrb[6].mxu1 }
 0x6bd   :  { %v3981_v43 = vadd.f32 %v3980_v38, %v3902_v34  ;;  %v3982_v44 = vpop.f32.mrb[7].mxu1  ;;  %v4220_v34 = vld [vmem:[#allocation15 + $0x510] sm:$0xff]  ;;  %v4227_v38 = vld [vmem:[#allocation15 + $0x548] sm:$0xff] }
 0x6be   :  { %v3983_v48 = vadd.f32 %v3982_v44, %v3906_v35  ;;  %v4224_v35 = vld [vmem:[#allocation15 + $0x530] sm:$0xff]  ;;  %v7012_v44 = vpack.c.bf16 %v4222_v30, %v4218_v29  ;;  %v4616_v30 = vld [vmem:[#allocation18 + $0x1c0] sm:$0xff] }
 0x6bf   :  { %v4055_v58 = vmax.f32 %v3981_v43, 0.0  ;;  %v4233_v43 = vld [vmem:[#allocation15 + $0x578] sm:$0xff]  ;;  %v7108_v45 = vpack.c.bf16 %v4224_v35, %v4220_v34  ;;  %v4569_v35 = vld [vmem:[#allocation18 + $0x48] sm:$0xff] }
 0x6c0   :  { %v4056_v52 = vmax.f32 %v3983_v48, 0.0  ;;  %v7014_v48 = vpack.c.bf16 %v4231_v39, %v4227_v38  ;;  %v7110_v49 = vpack.c.bf16 %v4233_v43, %v4229_v41  ;;  %v4570_v29 = vld [vmem:[#allocation18 + $0x50] sm:$0xff]  ;;  %v4573_v43 = vld [vmem:[#allocation18 + $0x68] sm:$0xff] }
 0x6c1   :  { %v4566_v34 = vld [vmem:[#allocation18 + $0x30] sm:$0xff]  ;;  %v7126_v41 = vpack.c.bf16 %v4570_v29, %v4567_v26  ;;  %v4592_v29 = vld [vmem:[#allocation18 + $0x100] sm:$0xff] }
 0x6c2   :  { %4336 = vmatprep.mubr.f32.mxu1 %v4056_v52  ;;  %4478 = vmatprep.mubr.f32.mxu0 %v4056_v52  ;;  %v4235_v52 = vld [vmem:[#allocation15 + $0x588] sm:$0xff] }
 0x6c3   :  { %4337 = vmatmul.mubr.f32.vlgmr.msra.gmra.mrb[10].mxu1 %v4055_v58  ;;  %4479 = vmatmul.mubr.f32.vlgmr.msra.gmra.mrb[8].mxu0 %v4055_v58  ;;  %v7112_v58 = vpack.c.bf16 %v4232_v51, %v4228_v50  ;;  %v7128_v50 = vpack.c.bf16 %v4569_v35, %v4566_v34  ;;  %v4572_v51 = vld [vmem:[#allocation18 + $0x60] sm:$0xff] }
 0x6c4   :  { %6997 = vmatpush1.bf16.msra.mxu1 %v6996_v53  ;;  %7093 = vmatpush1.bf16.msra.mxu0 %v7092_v56  ;;  %v4239_v53 = vld [vmem:[#allocation15 + $0x5a8] sm:$0xff]  ;;  %v4237_v56 = vld [vmem:[#allocation15 + $0x598] sm:$0xff] }
 0x6c5   :  { %6999 = vmatprep.subr.bf16.mxu1 %v6998_v59  ;;  %7095 = vmatprep.subr.bf16.mxu0 %v7094_v60  ;;  %v4234_v59 = vld [vmem:[#allocation15 + $0x580] sm:$0xff]  ;;  %v7018_v61 = vpack.c.bf16 %v4239_v53, %v4235_v52  ;;  %v7114_v62 = vpack.c.bf16 %v4241_v37, %v4237_v56  ;;  %v7130_v56 = vpack.c.bf16 %v4576_v47, %v4573_v43  ;;  %v4606_v47 = vld [vmem:[#allocation18 + $0x170] sm:$0xff] }
 0x6c6   :  { %4407 = vmatprep.mubr.f32.mxu1 %v7707_v14  ;;  %4549 = vmatprep.mubr.f32.mxu0 %v7707_v14  ;;  %v4238_v60 = vld [vmem:[#allocation15 + $0x5a0] sm:$0xff]  ;;  %v4610_v14 = vld [vmem:[#allocation18 + $0x190] sm:$0xff] }
 0x6c7   :  { %v7020_v4 = vpack.c.bf16 %v4238_v60, %v4234_v59  ;;  %v4575_v52 = vld [vmem:[#allocation18 + $0x78] sm:$0xff]  ;;  %v4577_v59 = vld [vmem:[#allocation18 + $0x88] sm:$0xff]  ;;  %v4582_v60 = vld [vmem:[#allocation18 + $0xb0] sm:$0xff] }
 0x6c8   :  { %7001 = vmatpush1.bf16.msra.mxu1 %v7000_v16  ;;  %7097 = vmatpush1.bf16.msra.mxu0 %v7096_v0  ;;  %v4245_v16 = vld [vmem:[#allocation15 + $0x5d8] sm:$0xff]  ;;  %v7132_v63 = vpack.c.bf16 %v4575_v52, %v4572_v51  ;;  %v4596_v35 = vld [vmem:[#allocation18 + $0x120] sm:$0xff]  ;;  %v4605_v52 = vld [vmem:[#allocation18 + $0x168] sm:$0xff] }
 0x6c9   :  { %7003 = vmatprep.subr.bf16.mxu1 %v7002_v7  ;;  %7099 = vmatprep.subr.bf16.mxu0 %v7098_v8  ;;  %v4249_v0 = vld [vmem:[#allocation15 + $0x5f8] sm:$0xff]  ;;  %v4242_v7 = vld [vmem:[#allocation15 + $0x5c0] sm:$0xff] }
 0x6ca   :  { %v4246_v8 = vld [vmem:[#allocation15 + $0x5e0] sm:$0xff]  ;;  %v7118_v9 = vpack.c.bf16 %v4249_v0, %v4245_v16  ;;  %v4585_v0 = vld [vmem:[#allocation18 + $0xc8] sm:$0xff]  ;;  %v4602_v51 = vld [vmem:[#allocation18 + $0x150] sm:$0xff] }
 0x6cb   :  { %v7024_v40 = vpack.c.bf16 %v4246_v8, %v4242_v7  ;;  %v4579_v37 = vld [vmem:[#allocation18 + $0x98] sm:$0xff]  ;;  %v4588_v8 = vld [vmem:[#allocation18 + $0xe0] sm:$0xff] }
 0x6cc   :  { %7005 = vmatpush1.bf16.msra.mxu1 %v7004_v15  ;;  %7101 = vmatpush1.bf16.msra.mxu0 %v7100_v17  ;;  %v4613_v15 = vld [vmem:[#allocation18 + $0x1a8] sm:$0xff]  ;;  %v7134_v16 = vpack.c.bf16 %v4582_v60, %v4579_v37  ;;  %v4583_v7 = vld [vmem:[#allocation18 + $0xb8] sm:$0xff]  ;;  %v7152_v37 = vpack.c.bf16 %v4605_v52, %v4602_v51 }
 0x6cd   :  { %7007 = vmatprep.subr.bf16.mxu1 %v7006_v20  ;;  %7103 = vmatprep.subr.bf16.mxu0 %v7102_v18  ;;  %v7120_v20 = vpack.c.bf16 %v4248_v10, %v4244_v31  ;;  %v7250_v24 = vpack.c.bf16 %v4613_v15, %v4610_v14  ;;  %v7136_v31 = vpack.c.bf16 %v4581_v2, %v4578_v1  ;;  %v4584_v10 = vld [vmem:[#allocation18 + $0xc0] sm:$0xff]  ;;  %v4591_v15 = vld [vmem:[#allocation18 + $0xf8] sm:$0xff]  ;;  %v4614_v1 = vld [vmem:[#allocation18 + $0x1b0] sm:$0xff] }
 0x6ce   :  { %v7138_v14 = vpack.c.bf16 %v4588_v8, %v4585_v0  ;;  %v7140_v22 = vpack.c.bf16 %v4587_v11, %v4584_v10  ;;  %v4615_v60 = vld [vmem:[#allocation18 + $0x1b8] sm:$0xff]  ;;  %v4617_v2 = vld [vmem:[#allocation18 + $0x1c8] sm:$0xff]  ;;  %v4626_v10 = vld [vmem:[#allocation18 + $0x210] sm:$0xff] }
 0x6cf   :  { %v7160_v0 = vpack.c.bf16 %v4617_v2, %v4614_v1  ;;  %v4627_v8 = vld [vmem:[#allocation18 + $0x218] sm:$0xff]  ;;  %v4629_v11 = vld [vmem:[#allocation18 + $0x228] sm:$0xff] }
 0x6d0   :  { %7009 = vmatpush1.bf16.msra.mxu1 %v7008_v54  ;;  %7105 = vmatpush1.bf16.msra.mxu0 %v7104_v27  ;;  %v4562_v54 = vld [vmem:[#allocation18 + $0x10] sm:$0xff]  ;;  %v4565_v27 = vld [vmem:[#allocation18 + $0x28] sm:$0xff]  ;;  %v4659_v2 = vld [vmem:[#allocation18 + $0x318] sm:$0xff] }
 0x6d1   :  { %7011 = vmatprep.subr.bf16.mxu1 %v7010_v32  ;;  %7107 = vmatprep.subr.bf16.mxu0 %v7106_v36  ;;  %v4619_v32 = vld [vmem:[#allocation18 + $0x1d8] sm:$0xff]  ;;  %v7252_v38 = vpack.c.bf16 %v4565_v27, %v4562_v54  ;;  %v4597_v54 = vld [vmem:[#allocation18 + $0x128] sm:$0xff] }
 0x6d2   :  { %v4709_v52 = vld [vmem:[#allocation18 + $0x4a8] sm:$0xff] }
 0x6d4   :  { %7013 = vmatpush1.bf16.msra.mxu1 %v7012_v44  ;;  %7109 = vmatpush1.bf16.msra.mxu0 %v7108_v45  ;;  %v7254_v44 = vpack.c.bf16 %v4619_v32, %v4616_v30  ;;  %v4568_v45 = vld [vmem:[#allocation18 + $0x40] sm:$0xff]  ;;  %v4595_v30 = vld [vmem:[#allocation18 + $0x118] sm:$0xff] }
 0x6d5   :  { %7015 = vmatprep.subr.bf16.mxu1 %v7014_v48  ;;  %7111 = vmatprep.subr.bf16.mxu0 %v7110_v49  ;;  %v4622_v48 = vld [vmem:[#allocation18 + $0x1f0] sm:$0xff]  ;;  %v4625_v49 = vld [vmem:[#allocation18 + $0x208] sm:$0xff]  ;;  %v7256_v53 = vpack.c.bf16 %v4571_v46, %v4568_v45  ;;  %v4600_v32 = vld [vmem:[#allocation18 + $0x140] sm:$0xff] }
 0x6d6   :  { %v4601_v45 = vld [vmem:[#allocation18 + $0x148] sm:$0xff]  ;;  %v4603_v46 = vld [vmem:[#allocation18 + $0x158] sm:$0xff] }
 0x6d8   :  { %7017 = vmatpush1.bf16.msra.mxu1 %v7016_v57  ;;  %7113 = vmatpush1.bf16.msra.mxu0 %v7112_v58  ;;  %v7258_v57 = vpack.c.bf16 %v4625_v49, %v4622_v48  ;;  %v4574_v58 = vld [vmem:[#allocation18 + $0x70] sm:$0xff] }
 0x6d9   :  { %7019 = vmatprep.subr.bf16.mxu1 %v7018_v61  ;;  %7115 = vmatprep.subr.bf16.mxu0 %v7114_v62  ;;  %v4628_v61 = vld [vmem:[#allocation18 + $0x220] sm:$0xff]  ;;  %v4631_v62 = vld [vmem:[#allocation18 + $0x238] sm:$0xff]  ;;  %v7260_v5 = vpack.c.bf16 %v4577_v59, %v4574_v58 }
 0x6da   :  { %v4608_v58 = vld [vmem:[#allocation18 + $0x180] sm:$0xff]  ;;  %v4611_v59 = vld [vmem:[#allocation18 + $0x198] sm:$0xff] }
 0x6dc   :  { %v5097_v17 = vpop.f32.mrb[8].mxu1  ;;  %7021 = vmatpush1.bf16.msra.mxu1 %v7020_v4  ;;  %7117 = vmatpush1.bf16.msra.mxu0 %v7116_v6  ;;  %v7262_v4 = vpack.c.bf16 %v4631_v62, %v4628_v61  ;;  %v4580_v6 = vld [vmem:[#allocation18 + $0xa0] sm:$0xff]  ;;  %v4618_v61 = vld [vmem:[#allocation18 + $0x1d0] sm:$0xff]  ;;  %v7156_v62 = vpack.c.bf16 %v4611_v59, %v4608_v58 }
 0x6dd   :  { %v5098_v18 = vpop.f32.mrb[9].mxu1  ;;  %7023 = vmatprep.subr.bf16.mxu1 %v7022_v3  ;;  %7119 = vmatprep.subr.bf16.mxu0 %v7118_v9  ;;  %v4634_v3 = vld [vmem:[#allocation18 + $0x250] sm:$0xff]  ;;  %v4637_v9 = vld [vmem:[#allocation18 + $0x268] sm:$0xff]  ;;  %v7264_v12 = vpack.c.bf16 %v4583_v7, %v4580_v6  ;;  %v4620_v6 = vld [vmem:[#allocation18 + $0x1e0] sm:$0xff] }
 0x6de   :  { %v5099_v25 = vadd.f32 %v5098_v18, %v5097_v17  ;;  %v7266_v17 = vpack.c.bf16 %v4637_v9, %v4634_v3  ;;  %v4640_v18 = vld [vmem:[#allocation18 + $0x280] sm:$0xff]  ;;  %v4623_v7 = vld [vmem:[#allocation18 + $0x1f8] sm:$0xff]  ;;  %v4630_v3 = vld [vmem:[#allocation18 + $0x230] sm:$0xff] }
 0x6df   :  { %v7164_v9 = vpack.c.bf16 %v4623_v7, %v4620_v6  ;;  %v4666_v7 = vld [vmem:[#allocation18 + $0x350] sm:$0xff] }
 0x6e0   :  { %v4052_v36 = vadd.f32 %v5099_v25, %v3910_v19  ;;  %7025 = vmatpush1.bf16.msra.mxu1 %v7024_v40  ;;  %7121 = vmatpush1.bf16.msra.mxu0 %v7120_v20  ;;  %v4586_v19 = vld [vmem:[#allocation18 + $0xd0] sm:$0xff]  ;;  %v4589_v40 = vld [vmem:[#allocation18 + $0xe8] sm:$0xff] }
 0x6e1   :  { %7123 = vmatprep.subr.bf16.mxu1 %v7122_v21  ;;  %7251 = vmatprep.subr.bf16.mxu0 %v7250_v24  ;;  %v4594_v20 = vld [vmem:[#allocation18 + $0x110] sm:$0xff]  ;;  %v4643_v21 = vld [vmem:[#allocation18 + $0x298] sm:$0xff]  ;;  %v4593_v24 = vld [vmem:[#allocation18 + $0x108] sm:$0xff]  ;;  %v7268_v25 = vpack.c.bf16 %v4589_v40, %v4586_v19 }
 0x6e2   :  { %v4057_v39 = vmax.f32 %v4052_v36, 0.0  ;;  %v7142_v26 = vpack.c.bf16 %v4594_v20, %v4591_v15  ;;  %v7270_v27 = vpack.c.bf16 %v4643_v21, %v4640_v18  ;;  %v4646_v36 = vld [vmem:[#allocation18 + $0x2b0] sm:$0xff]  ;;  %v7144_v34 = vpack.c.bf16 %v4593_v24, %v4590_v23  ;;  %v4632_v19 = vld [vmem:[#allocation18 + $0x240] sm:$0xff]  ;;  %v4635_v40 = vld [vmem:[#allocation18 + $0x258] sm:$0xff] }
 0x6e3   :  { %v7168_v15 = vpack.c.bf16 %v4629_v11, %v4626_v10  ;;  %v4639_v20 = vld [vmem:[#allocation18 + $0x278] sm:$0xff]  ;;  %v4642_v18 = vld [vmem:[#allocation18 + $0x290] sm:$0xff]  ;;  %v7172_v21 = vpack.c.bf16 %v4635_v40, %v4632_v19  ;;  %v4641_v24 = vld [vmem:[#allocation18 + $0x288] sm:$0xff] }
 0x6e4   :  { %4408 = vmatmul.mubr.f32.vlgmr.msra.gmra.mrb[10].mxu1 %v4057_v39  ;;  %4550 = vmatmul.mubr.f32.vlgmr.msra.gmra.mrb[8].mxu0 %v4057_v39  ;;  %v7146_v39 = vpack.c.bf16 %v4600_v32, %v4597_v54  ;;  %v4638_v23 = vld [vmem:[#allocation18 + $0x270] sm:$0xff]  ;;  %v4665_v11 = vld [vmem:[#allocation18 + $0x348] sm:$0xff] }
 0x6e5   :  { %7125 = vmatpush1.bf16.msra.mxu1 %v7124_v33  ;;  %7253 = vmatpush3.bf16.msra.mxu0 %v7252_v38  ;;  %v4649_v33 = vld [vmem:[#allocation18 + $0x2c8] sm:$0xff]  ;;  %v7272_v38 = vpack.c.bf16 %v4595_v30, %v4592_v29  ;;  %v7176_v54 = vpack.c.bf16 %v4641_v24, %v4638_v23  ;;  %v4644_v29 = vld [vmem:[#allocation18 + $0x2a0] sm:$0xff]  ;;  %v4647_v30 = vld [vmem:[#allocation18 + $0x2b8] sm:$0xff] }
 0x6e6   :  { %7127 = vmatprep.subr.bf16.mxu1 %v7126_v41  ;;  %7255 = vmatprep.subr.bf16.mxu0 %v7254_v44  ;;  %v4599_v41 = vld [vmem:[#allocation18 + $0x138] sm:$0xff]  ;;  %v7274_v43 = vpack.c.bf16 %v4649_v33, %v4646_v36  ;;  %v4598_v44 = vld [vmem:[#allocation18 + $0x130] sm:$0xff]  ;;  %v7180_v32 = vpack.c.bf16 %v4647_v30, %v4644_v29  ;;  %v4673_v30 = vld [vmem:[#allocation18 + $0x388] sm:$0xff] }
 0x6e7   :  { %v7148_v48 = vpack.c.bf16 %v4599_v41, %v4596_v35  ;;  %v7276_v49 = vpack.c.bf16 %v4601_v45, %v4598_v44  ;;  %v4651_v36 = vld [vmem:[#allocation18 + $0x2d8] sm:$0xff]  ;;  %v4654_v33 = vld [vmem:[#allocation18 + $0x2f0] sm:$0xff]  ;;  %v4653_v41 = vld [vmem:[#allocation18 + $0x2e8] sm:$0xff] }
 0x6e8   :  { %v7182_v35 = vpack.c.bf16 %v4654_v33, %v4651_v36  ;;  %v4604_v45 = vld [vmem:[#allocation18 + $0x160] sm:$0xff]  ;;  %v4670_v29 = vld [vmem:[#allocation18 + $0x370] sm:$0xff] }
 0x6e9   :  { %7129 = vmatpush1.bf16.msra.mxu1 %v7128_v50  ;;  %7257 = vmatpush3.bf16.msra.mxu0 %v7256_v53  ;;  %v7150_v50 = vpack.c.bf16 %v4606_v47, %v4603_v46  ;;  %v4609_v53 = vld [vmem:[#allocation18 + $0x188] sm:$0xff]  ;;  %v4607_v46 = vld [vmem:[#allocation18 + $0x178] sm:$0xff]  ;;  %v4678_v36 = vld [vmem:[#allocation18 + $0x3b0] sm:$0xff] }
 0x6ea   :  { %7131 = vmatprep.subr.bf16.mxu1 %v7130_v56  ;;  %7259 = vmatprep.subr.bf16.mxu0 %v7258_v57  ;;  %v4612_v56 = vld [vmem:[#allocation18 + $0x1a0] sm:$0xff]  ;;  %v7280_v47 = vpack.c.bf16 %v4607_v46, %v4604_v45  ;;  %v4679_v46 = vld [vmem:[#allocation18 + $0x3b8] sm:$0xff] }
 0x6eb   :  { %v7154_v57 = vpack.c.bf16 %v4612_v56, %v4609_v53  ;;  %v8064_v56 = vld [vmem:[#allocation16] sm:$0xf]  ;;  %v4724_v33 = vld [vmem:[#allocation18 + $0x520] sm:$0xff] }
 0x6ec   :  { %v4267_v58 = vrot.slane %v8064_v56, %v8011_v42  ;;  %v4662_v42 = vld [vmem:[#allocation18 + $0x330] sm:$0xff]  ;;  %v4676_v45 = vld [vmem:[#allocation18 + $0x3a0] sm:$0xff] }
 0x6ed   :  { %7133 = vmatpush1.bf16.msra.mxu1 %v7132_v63  ;;  %7261 = vmatpush3.bf16.msra.mxu0 %v7260_v5  ;;  %v7158_v63 = vpack.c.bf16 %v4618_v61, %v4615_v60  ;;  %v4621_v5 = vld [vmem:[#allocation18 + $0x1e8] sm:$0xff]  ;;  %v4656_v61 = vld [vmem:[#allocation18 + $0x300] sm:$0xff]  ;;  %v7192_v23 = vpack.c.bf16 %v4665_v11, %v4662_v42 }
 0x6ee   :  { %7135 = vmatprep.subr.bf16.mxu1 %v7134_v16  ;;  %7263 = vmatprep.subr.bf16.mxu0 %v7262_v4  ;;  %v4624_v16 = vld [vmem:[#allocation18 + $0x200] sm:$0xff]  ;;  %v4745_v42 = vld [vmem:[#allocation18 + $0x5c8] sm:$0xff] }
 0x6ef   :  { %v7162_v4 = vpack.c.bf16 %v4624_v16, %v4621_v5  ;;  %v4658_v5 = vld [vmem:[#allocation18 + $0x310] sm:$0xff]  ;;  %v4661_v16 = vld [vmem:[#allocation18 + $0x328] sm:$0xff] }
 0x6f0   :  { %v7284_v10 = vpack.c.bf16 %v4661_v16, %v4658_v5 }
 0x6f1   :  { %7137 = vmatpush1.bf16.msra.mxu1 %v7136_v31  ;;  %7265 = vmatpush3.bf16.msra.mxu0 %v7264_v12  ;;  %v7166_v31 = vpack.c.bf16 %v4630_v3, %v4627_v8  ;;  %v4633_v12 = vld [vmem:[#allocation18 + $0x248] sm:$0xff]  ;;  %v4712_v8 = vld [vmem:[#allocation18 + $0x4c0] sm:$0xff]  ;;  %v4715_v3 = vld [vmem:[#allocation18 + $0x4d8] sm:$0xff] }
 0x6f2   :  { %7139 = vmatprep.subr.bf16.mxu1 %v7138_v14  ;;  %7267 = vmatprep.subr.bf16.mxu0 %v7266_v17  ;;  %v4636_v14 = vld [vmem:[#allocation18 + $0x260] sm:$0xff]  ;;  %v7286_v40 = vpack.c.bf16 %v4715_v3, %v4712_v8  ;;  %v4691_v3 = vld [vmem:[#allocation18 + $0x418] sm:$0xff] }
 0x6f3   :  { %v7170_v17 = vpack.c.bf16 %v4636_v14, %v4633_v12  ;;  %v4664_v14 = vld [vmem:[#allocation18 + $0x340] sm:$0xff] }
 0x6f4   :  { %v4688_v8 = vld [vmem:[#allocation18 + $0x400] sm:$0xff] }
 0x6f5   :  { %7141 = vmatpush1.bf16.msra.mxu1 %v7140_v22  ;;  %7269 = vmatpush3.bf16.msra.mxu0 %v7268_v25  ;;  %v7174_v22 = vpack.c.bf16 %v4642_v18, %v4639_v20  ;;  %v4645_v25 = vld [vmem:[#allocation18 + $0x2a8] sm:$0xff]  ;;  %v4672_v20 = vld [vmem:[#allocation18 + $0x380] sm:$0xff]  ;;  %v4718_v18 = vld [vmem:[#allocation18 + $0x4f0] sm:$0xff] }
 0x6f6   :  { %7143 = vmatprep.subr.bf16.mxu1 %v7142_v26  ;;  %7271 = vmatprep.subr.bf16.mxu0 %v7270_v27  ;;  %v4648_v26 = vld [vmem:[#allocation18 + $0x2c0] sm:$0xff] }
 0x6f7   :  { %v7178_v27 = vpack.c.bf16 %v4648_v26, %v4645_v25  ;;  %v4668_v25 = vld [vmem:[#allocation18 + $0x360] sm:$0xff]  ;;  %v4671_v26 = vld [vmem:[#allocation18 + $0x378] sm:$0xff] }
 0x6f9   :  { %7145 = vmatpush1.bf16.msra.mxu1 %v7144_v34  ;;  %7273 = vmatpush3.bf16.msra.mxu0 %v7272_v38  ;;  %v4652_v34 = vld [vmem:[#allocation18 + $0x2e0] sm:$0xff]  ;;  %v4655_v38 = vld [vmem:[#allocation18 + $0x2f8] sm:$0xff] }
 0x6fa   :  { %7147 = vmatprep.subr.bf16.mxu1 %v7146_v39  ;;  %7275 = vmatprep.subr.bf16.mxu0 %v7274_v43  ;;  %v4650_v39 = vld [vmem:[#allocation18 + $0x2d0] sm:$0xff]  ;;  %v7278_v43 = vpack.c.bf16 %v4655_v38, %v4652_v34  ;;  %v4727_v34 = vld [vmem:[#allocation18 + $0x538] sm:$0xff]  ;;  %v7292_v38 = vpack.c.bf16 %v4673_v30, %v4670_v29  ;;  %v4701_v30 = vld [vmem:[#allocation18 + $0x468] sm:$0xff] }
 0x6fb   :  { %v7184_v44 = vpack.c.bf16 %v4653_v41, %v4650_v39  ;;  %v4674_v39 = vld [vmem:[#allocation18 + $0x390] sm:$0xff]  ;;  %v4677_v41 = vld [vmem:[#allocation18 + $0x3a8] sm:$0xff] }
 0x6fd   :  { %7149 = vmatpush1.bf16.msra.mxu1 %v7148_v48  ;;  %7277 = vmatpush3.bf16.msra.mxu0 %v7276_v49  ;;  %v4657_v48 = vld [vmem:[#allocation18 + $0x308] sm:$0xff]  ;;  %v4660_v49 = vld [vmem:[#allocation18 + $0x320] sm:$0xff] }
 0x6fe   :  { %7151 = vmatprep.subr.bf16.mxu1 %v7150_v50  ;;  %7279 = vmatprep.subr.bf16.mxu0 %v7278_v43  ;;  %v4706_v50 = vld [vmem:[#allocation18 + $0x490] sm:$0xff]  ;;  %v7186_v51 = vpack.c.bf16 %v4660_v49, %v4657_v48  ;;  %v4684_v48 = vld [vmem:[#allocation18 + $0x3e0] sm:$0xff] }
 0x6ff   :  { %v7282_v53 = vpack.c.bf16 %v4709_v52, %v4706_v50  ;;  %v4730_v49 = vld [vmem:[#allocation18 + $0x550] sm:$0xff]  ;;  %v4733_v50 = vld [vmem:[#allocation18 + $0x568] sm:$0xff]  ;;  %v7296_v52 = vpack.c.bf16 %v4679_v46, %v4676_v45 }
 0x700   :  { %v4714_v45 = vld [vmem:[#allocation18 + $0x4d0] sm:$0xff] }
 0x701   :  { %7153 = vmatpush1.bf16.msra.mxu1 %v7152_v37  ;;  %7281 = vmatpush3.bf16.msra.mxu0 %v7280_v47  ;;  %v4255_v37 = vrot.slane %v8064_v56, %v8008_v28  ;;  %v4681_v47 = vld [vmem:[#allocation18 + $0x3c8] sm:$0xff] }
 0x702   :  { %7155 = vmatprep.subr.bf16.mxu1 %v7154_v57  ;;  %7283 = vmatprep.subr.bf16.mxu0 %v7282_v53  ;;  %v4259_v57 = vrot.slane %v8064_v56, %v7997_v13  ;;  %v4680_v53 = vld [vmem:[#allocation18 + $0x3c0] sm:$0xff] }
 0x705   :  { %7157 = vmatpush1.bf16.msra.mxu1 %v7156_v62 }
 0x706   :  { %7159 = vmatprep.subr.bf16.mxu1 %v7158_v63 }
 0x709   :  { %7161 = vmatpush1.bf16.msra.mxu1 %v7160_v0 }
 0x70a   :  { %7163 = vmatprep.subr.bf16.mxu1 %v7162_v4  ;;  %v4663_v4 = vld [vmem:[#allocation18 + $0x338] sm:$0xff] }
 0x70b   :  { %v7190_v19 = vpack.c.bf16 %v4666_v7, %v4663_v4  ;;  %v4689_v4 = vld [vmem:[#allocation18 + $0x408] sm:$0xff] }
 0x70d   :  { %7165 = vmatpush1.bf16.msra.mxu1 %v7164_v9 }
 0x70e   :  { %7167 = vmatprep.subr.bf16.mxu1 %v7166_v31  ;;  %v7188_v31 = vpack.c.bf16 %v4659_v2, %v4656_v61  ;;  %v4685_v61 = vld [vmem:[#allocation18 + $0x3e8] sm:$0xff]  ;;  %v4739_v2 = vld [vmem:[#allocation18 + $0x598] sm:$0xff] }
 0x711   :  { %7169 = vmatpush1.bf16.msra.mxu1 %v7168_v15  ;;  %v4667_v15 = vld [vmem:[#allocation18 + $0x358] sm:$0xff] }
 0x712   :  { %7171 = vmatprep.subr.bf16.mxu1 %v7170_v17  ;;  %v4669_v17 = vld [vmem:[#allocation18 + $0x368] sm:$0xff]  ;;  %v7288_v24 = vpack.c.bf16 %v4667_v15, %v4664_v14  ;;  %v4692_v14 = vld [vmem:[#allocation18 + $0x420] sm:$0xff]  ;;  %v4695_v15 = vld [vmem:[#allocation18 + $0x438] sm:$0xff] }
 0x715   :  { %7173 = vmatpush1.bf16.msra.mxu1 %v7172_v21  ;;  %v4721_v21 = vld [vmem:[#allocation18 + $0x508] sm:$0xff] }
 0x716   :  { %7175 = vmatprep.subr.bf16.mxu1 %v7174_v22 }
 0x719   :  { %7177 = vmatpush1.bf16.msra.mxu1 %v7176_v54  ;;  %v7194_v54 = vpack.c.bf16 %v4672_v20, %v4669_v17  ;;  %v4697_v20 = vld [vmem:[#allocation18 + $0x448] sm:$0xff] }
 0x71a   :  { %7179 = vmatprep.subr.bf16.mxu1 %v7178_v27  ;;  %v7290_v27 = vpack.c.bf16 %v4721_v21, %v4718_v18  ;;  %v4699_v18 = vld [vmem:[#allocation18 + $0x458] sm:$0xff]  ;;  %v4702_v21 = vld [vmem:[#allocation18 + $0x470] sm:$0xff] }
 0x71d   :  { %7181 = vmatpush1.bf16.msra.mxu1 %v7180_v32  ;;  %v4675_v32 = vld [vmem:[#allocation18 + $0x398] sm:$0xff] }
 0x71e   :  { %7183 = vmatprep.subr.bf16.mxu1 %v7182_v35  ;;  %v7196_v35 = vpack.c.bf16 %v4671_v26, %v4668_v25  ;;  %v7198_v43 = vpack.c.bf16 %v4678_v36, %v4675_v32  ;;  %v4698_v26 = vld [vmem:[#allocation18 + $0x450] sm:$0xff]  ;;  %v4700_v32 = vld [vmem:[#allocation18 + $0x460] sm:$0xff]  ;;  %v4703_v36 = vld [vmem:[#allocation18 + $0x478] sm:$0xff] }
 0x721   :  { %7185 = vmatpush1.bf16.msra.mxu1 %v7184_v44  ;;  %v7294_v44 = vpack.c.bf16 %v4727_v34, %v4724_v33  ;;  %v4705_v33 = vld [vmem:[#allocation18 + $0x488] sm:$0xff]  ;;  %v4708_v34 = vld [vmem:[#allocation18 + $0x4a0] sm:$0xff] }
 0x722   :  { %7187 = vmatprep.subr.bf16.mxu1 %v7186_v51  ;;  %v7200_v51 = vpack.c.bf16 %v4677_v41, %v4674_v39  ;;  %v7218_v41 = vpack.c.bf16 %v4708_v34, %v4705_v33 }
 0x7b7   :  { %v4409_v59 = vpop.f32.mrb[10].mxu1  ;;  %v8072_v60 = vpop.f32.mrb[8].mxu0 }
 0x7b8   :  { %v7328_v62 = vadd.f32 %v4409_v59, %v4255_v37  ;;  %v4411_v63 = vpop.f32.mrb[11].mxu1  ;;  %v4553_v1 = vpop.f32.mrb[9].mxu0  ;;  %v4683_v37 = vld [vmem:[#allocation18 + $0x3d8] sm:$0xff]  ;;  %v4682_v59 = vld [vmem:[#allocation18 + $0x3d0] sm:$0xff] }
 0x7b9   :  { %v7329_v0 = vadd.f32 %v4411_v63, %v4259_v57  ;;  %v7331_v6 = vadd.f32 %v4553_v1, %v4267_v58  ;;  %v7202_v57 = vpack.c.bf16 %v4684_v48, %v4681_v47  ;;  %v7298_v58 = vpack.c.bf16 %v4733_v50, %v4730_v49  ;;  %v4690_v63 = vld [vmem:[#allocation18 + $0x410] sm:$0xff]  ;;  %v4736_v1 = vld [vmem:[#allocation18 + $0x580] sm:$0xff]  ;;  %v4713_v50 = vld [vmem:[#allocation18 + $0x4c8] sm:$0xff] }
 0x7ba   :  { %v4556_v12 = vmax.f32 %v7328_v62, 0.0  ;;  %v4687_v62 = vld [vmem:[#allocation18 + $0x3f8] sm:$0xff]  ;;  %v7204_v5 = vpack.c.bf16 %v4683_v37, %v4680_v53  ;;  %v7300_v16 = vpack.c.bf16 %v4685_v61, %v4682_v59  ;;  %v7302_v7 = vpack.c.bf16 %v4739_v2, %v4736_v1  ;;  %v4710_v49 = vld [vmem:[#allocation18 + $0x4b0] sm:$0xff]  ;;  %v4716_v37 = vld [vmem:[#allocation18 + $0x4e0] sm:$0xff] }
 0x7bb   :  { %v4557_v9 = vmax.f32 %v7329_v0, 0.0  ;;  %v4559_v22 = vmax.f32 %v7331_v6, 0.0  ;;  %v4686_v0 = vld [vmem:[#allocation18 + $0x3f0] sm:$0xff]  ;;  %v7206_v6 = vpack.c.bf16 %v4690_v63, %v4687_v62  ;;  %v4725_v1 = vld [vmem:[#allocation18 + $0x528] sm:$0xff] }
 0x7bc   :  { %v7208_v11 = vpack.c.bf16 %v4689_v4, %v4686_v0  ;;  %v4726_v59 = vld [vmem:[#allocation18 + $0x530] sm:$0xff]  ;;  %v4729_v2 = vld [vmem:[#allocation18 + $0x548] sm:$0xff]  ;;  %v4728_v4 = vld [vmem:[#allocation18 + $0x540] sm:$0xff] }
 0x7bd   :  { %4833 = vmatprep.mubr.f32.mxu1 %v4557_v9  ;;  %4975 = vmatprep.mubr.f32.mxu0 %v4557_v9  ;;  %v4693_v9 = vld [vmem:[#allocation18 + $0x428] sm:$0xff]  ;;  %v4722_v63 = vld [vmem:[#allocation18 + $0x510] sm:$0xff] }
 0x7be   :  { %4834 = vmatmul.mubr.f32.vlgmr.msra.gmra.mrb[12].mxu1 %v4556_v12  ;;  %4976 = vmatmul.mubr.f32.vlgmr.msra.gmra.mrb[10].mxu0 %v4556_v12  ;;  %v7304_v12 = vpack.c.bf16 %v4691_v3, %v4688_v8  ;;  %v4738_v8 = vld [vmem:[#allocation18 + $0x590] sm:$0xff] }
 0x7bf   :  { %7189 = vmatpush1.bf16.msra.mxu1 %v7188_v31  ;;  %7285 = vmatpush3.bf16.msra.mxu0 %v7284_v10  ;;  %v4696_v31 = vld [vmem:[#allocation18 + $0x440] sm:$0xff]  ;;  %v4742_v10 = vld [vmem:[#allocation18 + $0x5b0] sm:$0xff] }
 0x7c0   :  { %4904 = vmatprep.mubr.f32.mxu1 %v4559_v22  ;;  %5045 = vmatprep.mubr.f32.mxu0 %v4559_v22  ;;  %v7210_v17 = vpack.c.bf16 %v4696_v31, %v4693_v9  ;;  %v4748_v22 = vld [vmem:[#allocation18 + $0x5e0] sm:$0xff]  ;;  %v4734_v31 = vld [vmem:[#allocation18 + $0x570] sm:$0xff] }
 0x7c1   :  { %7191 = vmatprep.subr.bf16.mxu1 %v7190_v19  ;;  %7287 = vmatprep.subr.bf16.mxu0 %v7286_v40  ;;  %v7306_v19 = vpack.c.bf16 %v4745_v42, %v4742_v10  ;;  %v4694_v40 = vld [vmem:[#allocation18 + $0x430] sm:$0xff]  ;;  %v4737_v10 = vld [vmem:[#allocation18 + $0x588] sm:$0xff] }
 0x7c2   :  { %v7308_v25 = vpack.c.bf16 %v4697_v20, %v4694_v40  ;;  %v4741_v42 = vld [vmem:[#allocation18 + $0x5a8] sm:$0xff]  ;;  %v4750_v40 = vld [vmem:[#allocation18 + $0x5f0] sm:$0xff] }
 0x7c3   :  { %7193 = vmatpush1.bf16.msra.mxu1 %v7192_v23  ;;  %7289 = vmatpush3.bf16.msra.mxu0 %v7288_v24  ;;  %v4751_v23 = vld [vmem:[#allocation18 + $0x5f8] sm:$0xff]  ;;  %v7212_v24 = vpack.c.bf16 %v4695_v15, %v4692_v14  ;;  %v4740_v15 = vld [vmem:[#allocation18 + $0x5a0] sm:$0xff] }
 0x7c4   :  { %7195 = vmatprep.subr.bf16.mxu1 %v7194_v54  ;;  %7291 = vmatprep.subr.bf16.mxu0 %v7290_v27  ;;  %v4263_v54 = vrot.slane %v8064_v56, %v8020_v55  ;;  %v7214_v27 = vpack.c.bf16 %v4702_v21, %v4699_v18  ;;  %v7310_v29 = vpack.c.bf16 %v4751_v23, %v4748_v22  ;;  %v4704_v56 = vld [vmem:[#allocation18 + $0x480] sm:$0xff]  ;;  %v4746_v21 = vld [vmem:[#allocation18 + $0x5d0] sm:$0xff]  ;;  %v4749_v22 = vld [vmem:[#allocation18 + $0x5e8] sm:$0xff] }
 0x7c5   :  { %v7248_v23 = vpack.c.bf16 %v4749_v22, %v4746_v21 }
 0x7c6   :  { %v8077_v39 = vadd.f32 %v8072_v60, %v4263_v54  ;;  %v7224_v60 = vpack.c.bf16 %v4713_v50, %v4710_v49  ;;  %v4752_v54 = vld [vmem:[#allocation19] sm:$0x7] }
 0x7c7   :  { %7197 = vmatpush1.bf16.msra.mxu1 %v7196_v35  ;;  %7293 = vmatpush3.bf16.msra.mxu0 %v7292_v38  ;;  %v7216_v35 = vpack.c.bf16 %v4701_v30, %v4698_v26  ;;  %v7312_v38 = vpack.c.bf16 %v4703_v36, %v4700_v32  ;;  %v4757_v34 = vrot.slane %v4752_v54, %v8008_v28 }
 0x7c8   :  { %7199 = vmatprep.subr.bf16.mxu1 %v7198_v43  ;;  %7295 = vmatprep.subr.bf16.mxu0 %v7294_v44  ;;  %v4707_v43 = vld [vmem:[#allocation18 + $0x498] sm:$0xff]  ;;  %v4558_v47 = vmax.f32 %v8077_v39, 0.0 }
 0x7c9   :  { %v4711_v44 = vld [vmem:[#allocation18 + $0x4b8] sm:$0xff]  ;;  %v7220_v46 = vpack.c.bf16 %v4707_v43, %v4704_v56 }
 0x7ca   :  { %v7222_v48 = vpack.c.bf16 %v4714_v45, %v4711_v44 }
 0x7cb   :  { %7201 = vmatpush1.bf16.msra.mxu1 %v7200_v51  ;;  %7297 = vmatpush3.bf16.msra.mxu0 %v7296_v52  ;;  %v4717_v51 = vld [vmem:[#allocation18 + $0x4e8] sm:$0xff]  ;;  %v4720_v52 = vld [vmem:[#allocation18 + $0x500] sm:$0xff] }
 0x7cc   :  { %7203 = vmatprep.subr.bf16.mxu1 %v7202_v57  ;;  %7299 = vmatprep.subr.bf16.mxu0 %v7298_v58  ;;  %v7226_v53 = vpack.c.bf16 %v4720_v52, %v4717_v51  ;;  %v4719_v57 = vld [vmem:[#allocation18 + $0x4f8] sm:$0xff] }
 0x7cd   :  { %v4723_v58 = vld [vmem:[#allocation18 + $0x518] sm:$0xff]  ;;  %v7228_v61 = vpack.c.bf16 %v4719_v57, %v4716_v37 }
 0x7ce   :  { %v7230_v62 = vpack.c.bf16 %v4726_v59, %v4723_v58 }
 0x7cf   :  { %7205 = vmatpush1.bf16.msra.mxu1 %v7204_v5  ;;  %7301 = vmatpush3.bf16.msra.mxu0 %v7300_v16  ;;  %v4732_v5 = vld [vmem:[#allocation18 + $0x560] sm:$0xff]  ;;  %v7232_v16 = vpack.c.bf16 %v4725_v1, %v4722_v63 }
 0x7d0   :  { %7207 = vmatprep.subr.bf16.mxu1 %v7206_v6  ;;  %7303 = vmatprep.subr.bf16.mxu0 %v7302_v7  ;;  %v7234_v0 = vpack.c.bf16 %v4732_v5, %v4729_v2  ;;  %v4731_v6 = vld [vmem:[#allocation18 + $0x558] sm:$0xff] }
 0x7d1   :  { %v4735_v7 = vld [vmem:[#allocation18 + $0x578] sm:$0xff]  ;;  %v7236_v3 = vpack.c.bf16 %v4731_v6, %v4728_v4 }
 0x7d2   :  { %v7238_v9 = vpack.c.bf16 %v4738_v8, %v4735_v7 }
 0x7d3   :  { %7209 = vmatpush1.bf16.msra.mxu1 %v7208_v11  ;;  %7305 = vmatpush3.bf16.msra.mxu0 %v7304_v12  ;;  %v4744_v11 = vld [vmem:[#allocation18 + $0x5c0] sm:$0xff]  ;;  %v7240_v12 = vpack.c.bf16 %v4737_v10, %v4734_v31 }
 0x7d4   :  { %7211 = vmatprep.subr.bf16.mxu1 %v7210_v17  ;;  %7307 = vmatprep.subr.bf16.mxu0 %v7306_v19  ;;  %v7242_v14 = vpack.c.bf16 %v4744_v11, %v4741_v42  ;;  %v4743_v17 = vld [vmem:[#allocation18 + $0x5b8] sm:$0xff] }
 0x7d5   :  { %v4747_v19 = vld [vmem:[#allocation18 + $0x5d8] sm:$0xff]  ;;  %v7244_v20 = vpack.c.bf16 %v4743_v17, %v4740_v15 }
 0x7d6   :  { %v7246_v18 = vpack.c.bf16 %v4750_v40, %v4747_v19 }
 0x7d7   :  { %7213 = vmatpush1.bf16.msra.mxu1 %v7212_v24  ;;  %7309 = vmatpush3.bf16.msra.mxu0 %v7308_v25 }
 0x7d8   :  { %7215 = vmatprep.subr.bf16.mxu1 %v7214_v27  ;;  %7311 = vmatprep.subr.bf16.mxu0 %v7310_v29  ;;  %v4765_v27 = vrot.slane %v4752_v54, %v8020_v55 }
 0x7db   :  { %7217 = vmatpush1.bf16.msra.mxu1 %v7216_v35  ;;  %7313 = vmatpush3.bf16.msra.mxu0 %v7312_v38  ;;  %v4761_v35 = vrot.slane %v4752_v54, %v7997_v13 }
 0x7dc   :  { %7219 = vmatprep.subr.bf16.mxu1 %v7218_v41 }
 0x7de   :  { %5046 = vmatmul.mubr.f32.vlgmr.msra.gmra.mrb[12].mxu0 %v4558_v47 }
 0x7df   :  { %7221 = vmatpush1.bf16.msra.mxu1 %v7220_v46 }
 0x7e0   :  { %7223 = vmatprep.subr.bf16.mxu1 %v7222_v48 }
 0x7e3   :  { %7225 = vmatpush1.bf16.msra.mxu1 %v7224_v60 }
 0x7e4   :  { %7227 = vmatprep.subr.bf16.mxu1 %v7226_v53 }
 0x7e7   :  { %7229 = vmatpush1.bf16.msra.mxu1 %v7228_v61 }
 0x7e8   :  { %7231 = vmatprep.subr.bf16.mxu1 %v7230_v62 }
 0x7eb   :  { %7233 = vmatpush1.bf16.msra.mxu1 %v7232_v16 }
 0x7ec   :  { %7235 = vmatprep.subr.bf16.mxu1 %v7234_v0 }
 0x7ef   :  { %7237 = vmatpush1.bf16.msra.mxu1 %v7236_v3 }
 0x7f0   :  { %7239 = vmatprep.subr.bf16.mxu1 %v7238_v9 }
 0x7f3   :  { %7241 = vmatpush1.bf16.msra.mxu1 %v7240_v12 }
 0x7f4   :  { %7243 = vmatprep.subr.bf16.mxu1 %v7242_v14 }
 0x7f7   :  { %7245 = vmatpush1.bf16.msra.mxu1 %v7244_v20 }
 0x7f8   :  { %7247 = vmatprep.subr.bf16.mxu1 %v7246_v18 }
 0x7fb   :  { %7249 = vmatpush1.bf16.msra.mxu1 %v7248_v23 }
 0x7fe   :  { %4905 = vmatmul.mubr.f32.vlgmr.msra.gmra.mrb[12].mxu1 %v4558_v47 }
 0x891   :  { %v5132_v24 = vpop.f32.mrb[10].mxu0 }
 0x892   :  { %v5133_v25 = vpop.f32.mrb[11].mxu0 }
 0x893   :  { %v5134_v26 = vadd.f32 %v5133_v25, %v5132_v24 }
 0x895   :  { %v4978_v32 = vadd.f32 %v5134_v26, %v4765_v27 }
 0x8b1   :  { %v5167_v29 = vpop.f32.mrb[12].mxu0 }
 0x8b2   :  { %v5168_v30 = vpop.f32.mrb[13].mxu0 }
 0x8b3   :  { %v5169_v36 = vadd.f32 %v5168_v30, %v5167_v29 }
 0x8b5   :  { %v5048_v33 = vadd.f32 %v5169_v36, %v4978_v32 }
 0x8b7   :  { %5053 = vst [vmem:[%s8105_s13 + $0x10] sm:$0xff] %v5048_v33 }
 0x8d1   :  { %v4906_v38 = vpop.f32.mrb[12].mxu1 }
 0x8d2   :  { %v7332_v39 = vadd.f32 %v4906_v38, %v4757_v34  ;;  %v4908_v41 = vpop.f32.mrb[13].mxu1 }
 0x8d3   :  { %v7333_v56 = vadd.f32 %v4908_v41, %v4761_v35 }
 0x8d4   :  { %5051 = vst [vmem:[%s8105_s13] sm:$0xff] %v7332_v39 }
 0x8d5   :  { %5052 = vst [vmem:[%s8105_s13 + $0x8] sm:$0xff] %v7333_v56 }
 0x8d6   :  { %5058 = vsyncpa [#allocation3], 1 }
 0x8d7   :  { %5059 = vsyncpa [#allocation5], 1 }
 0x8d8   :  { %5060 = vsyncpa [#allocation8], 1 }
 0x8d9   :  { %5061 = vsyncpa [#allocation11], 1 }
 0x8da   :  { %5062 = vsyncpa [#allocation14], 1 }
 0x8db   :  { %5063 = vsyncpa [#allocation17], 1 }
 0x8dc   :  { %5064 = vsyncpa [#allocation20], 1 }

</bundles_post_ra>
